<compile_context>
chip_gen: v7x
topology: tpu7x:2x2x1
jax: 0.10.0
libtpu: 0.0.40
codegen_flags: <defaults>
</compile_context>

<pallas_src>
import functools
import math

import jax
import jax.numpy as jnp
from jax import lax
from jax.experimental import pallas as pl
from jax.experimental.pallas import tpu as pltpu

INPUT_SIZE = 784
HIDDEN = 1000
NUM_CLASSES = 10

# lane/MXU friendly padded sizes
K1P = 896     # 784  -> 7*128 (7 K-passes on v5e's 128-wide MXU)
HP = 1024     # 1000 -> 8*128
CP = 128      # 10   -> 1*128

_LOG_SQRT_2PI = 0.5 * math.log(2.0 * math.pi)

FUSED_MAX_ROWS = 512              # single fused-call path up to this many rows
_FUSED_VMEM = 40 * 1024 * 1024    # fits v7x 64 MiB with headroom
_TILED_VMEM = 16 * 1024 * 1024    # per-call budget for the grid-tiled path


def _round_up(x, m):
    return ((x + m - 1) // m) * m


def _pick_batch_tile(b):
    """Batch tile (multiple of 16 for bf16 sublanes) with <=~25% padding waste."""
    bp16 = _round_up(max(b, 1), 16)
    limit = max(bp16 + 16, (bp16 * 5) // 4)
    for tb in (256, 128, 64, 32, 16):
        bp = _round_up(b, tb)
        if bp <= limit:
            return tb, bp
    return 16, bp16


# --------------------------- shared in-kernel math ---------------------------

def _rln_layer(y, n_rows, n_cols):
    """RegularityLN (history=None, COMP=0, training path) on a VMEM-resident
    padded (Bp, HP) f32 activation.  Stable form: every exp argument is
    logp - M' <= 0 with M' = -log(std) - log(sqrt(2pi)) >= max(logp), so only
    one full-array exp is needed and no global max reduction.
    Returns (l_nml (1,HP), comp (1,HP), mean (1,1), std (1,1))."""
    bp, hp = y.shape
    row_ok = lax.broadcasted_iota(jnp.int32, (bp, 1), 0) < n_rows
    col_ok = lax.broadcasted_iota(jnp.int32, (1, hp), 1) < n_cols
    valid = row_ok & col_ok
    n = float(n_rows * n_cols)

    yv = jnp.where(valid, y, 0.0)
    mean = jnp.sum(jnp.sum(yv, axis=1, keepdims=True), axis=0, keepdims=True) / n
    centered = jnp.where(valid, y - mean, 0.0)
    c2 = centered * centered
    var = jnp.sum(jnp.sum(c2, axis=1, keepdims=True),
                  axis=0, keepdims=True) / (n - 1.0)          # unbiased (torch.std)
    std = jnp.sqrt(var)
    half_inv_var = 0.5 / var                                  # hoisted scalar

    e = jnp.exp(-c2 * half_inv_var)                           # exp(logp - M') <= 1
    e = jnp.where(row_ok, e, 0.0)                             # padded rows excluded
    s_col = jnp.sum(e, axis=0, keepdims=True)                 # (1, HP)

    m_theo = -jnp.log(std) - _LOG_SQRT_2PI                    # M'
    log_t = m_theo + jnp.log(s_col)                           # = sum_p = log sum exp(logp)
    # comp = log(1 + T); equals both torch branches, stable for T<1 and T>=1.
    comp = jnp.maximum(log_t, 0.0) + jnp.log(1.0 + jnp.exp(-jnp.abs(log_t)))
    l_nml = comp - log_t
    return l_nml, comp, mean, std


def _masked_log_softmax(z, n_cols):
    col = lax.broadcasted_iota(jnp.int32, z.shape, 1)
    ok = col < n_cols
    m = jnp.max(jnp.where(ok, z, -1e30), axis=1, keepdims=True)
    lse = m + jnp.log(jnp.sum(jnp.where(ok, jnp.exp(z - m), 0.0),
                              axis=1, keepdims=True))
    return z - lse


def _write_moment_partials(part_ref, y, tile_idx, tb, n_rows, n_cols):
    """Per-tile masked sum / sum-of-squares into row 0 of an (8,128) block."""
    _, hp = y.shape
    row_ok = (lax.broadcasted_iota(jnp.int32, (tb, 1), 0) + tile_idx * tb) < n_rows
    col_ok = lax.broadcasted_iota(jnp.int32, (1, hp), 1) < n_cols
    yv = jnp.where(row_ok & col_ok, y, 0.0)
    s = jnp.sum(jnp.sum(yv, axis=1, keepdims=True), axis=0, keepdims=True)
    q = jnp.sum(jnp.sum(yv * yv, axis=1, keepdims=True), axis=0, keepdims=True)
    sub = lax.broadcasted_iota(jnp.int32, (8, 128), 0)
    lane = lax.broadcasted_iota(jnp.int32, (8, 128), 1)
    r0 = sub == 0
    part_ref[...] = (jnp.where(r0 & (lane == 0), s, 0.0)
                     + jnp.where(r0 & (lane == 1), q, 0.0))


# --------------------------- fused small-batch kernel ------------------------

def _fused_mlp_kernel(x_ref, w1_ref, b1_ref, w2_ref, b2_ref, w3_ref, b3_ref,
                      out_ref, comp1_ref, comp2_ref, stats_ref, *, n_rows):
    # fc1 (bf16 in, f32 acc) + RLN1 + relu
    y1 = jnp.dot(x_ref[...], w1_ref[...],
                 preferred_element_type=jnp.float32) + b1_ref[...]
    l1, c1, mean1, std1 = _rln_layer(y1, n_rows, HIDDEN)
    h1 = jnp.maximum(l1 * y1, 0.0).astype(jnp.bfloat16)

    # fc2 + RLN2 + relu
    y2 = jnp.dot(h1, w2_ref[...],
                 preferred_element_type=jnp.float32) + b2_ref[...]
    l2, c2, mean2, std2 = _rln_layer(y2, n_rows, HIDDEN)
    h2 = jnp.maximum(l2 * y2, 0.0).astype(jnp.bfloat16)

    # fc3 + masked log_softmax
    z = jnp.dot(h2, w3_ref[...],
                preferred_element_type=jnp.float32) + b3_ref[...]
    out_ref[...] = _masked_log_softmax(z, NUM_CLASSES)

    # side outputs, sublane-padded to (8, N), row 0 carries the payload
    sub_h = lax.broadcasted_iota(jnp.int32, (8, HP), 0)
    comp1_ref[...] = jnp.where(sub_h == 0, c1, 0.0)
    comp2_ref[...] = jnp.where(sub_h == 0, c2, 0.0)
    sub = lax.broadcasted_iota(jnp.int32, (8, 128), 0)
    lane = lax.broadcasted_iota(jnp.int32, (8, 128), 1)
    r0 = sub == 0
    stats_ref[...] = (jnp.where(r0 & (lane == 0), mean1, 0.0)
                      + jnp.where(r0 & (lane == 1), std1, 0.0)
                      + jnp.where(r0 & (lane == 2), mean2, 0.0)
                      + jnp.where(r0 & (lane == 3), std2, 0.0))


def _fused_forward(xp, p, n_rows):
    bp = xp.shape[0]
    vmem = pl.BlockSpec(memory_space=pltpu.MemorySpace.VMEM)
    kern = functools.partial(_fused_mlp_kernel, n_rows=n_rows)
    out, comp1, comp2, stats = pl.pallas_call(
        kern,
        out_shape=(jax.ShapeDtypeStruct((bp, CP), jnp.float32),
                   jax.ShapeDtypeStruct((8, HP), jnp.float32),
                   jax.ShapeDtypeStruct((8, HP), jnp.float32),
                   jax.ShapeDtypeStruct((8, 128), jnp.float32)),
        in_specs=[vmem] * 7,
        out_specs=(vmem, vmem, vmem, vmem),
        compiler_params=pltpu.CompilerParams(vmem_limit_bytes=_FUSED_VMEM),
    )(xp, p["w1"], p["b1"], p["w2"], p["b2"], p["w3"], p["b3"])
    return out, comp1[0], comp2[0], stats[0]


# --------------------------- grid-tiled large-batch path ---------------------

def _fc_moments_kernel(x_ref, w_ref, b_ref, y_ref, part_ref, *, n_rows, n_cols):
    i = pl.program_id(0)
    y = jnp.dot(x_ref[...], w_ref[...],
                preferred_element_type=jnp.float32) + b_ref[...]
    y_ref[...] = y
    _write_moment_partials(part_ref, y, i, y.shape[0], n_rows, n_cols)


def _norm_fc_moments_kernel(y_ref, ln_ref, w_ref, b_ref, y2_ref, part_ref,
                            *, n_rows, n_cols):
    i = pl.program_id(0)
    h = jnp.maximum(ln_ref[...] * y_ref[...], 0.0).astype(jnp.bfloat16)
    y2 = jnp.dot(h, w_ref[...],
                 preferred_element_type=jnp.float32) + b_ref[...]
    y2_ref[...] = y2
    _write_moment_partials(part_ref, y2, i, y2.shape[0], n_rows, n_cols)


def _rln_colsum_kernel(y_ref, stat_ref, part_ref, *, n_rows):
    # stat_ref (1,128): lane 0 = mean, lane 1 = 0.5/var
    i = pl.program_id(0)
    tb, hp = y_ref.shape
    mean = stat_ref[0, 0]
    hiv = stat_ref[0, 1]
    c = y_ref[...] - mean
    e = jnp.exp(-(c * c) * hiv)                       # exp(logp - M') <= 1
    row_ok = (lax.broadcasted_iota(jnp.int32, (tb, 1), 0) + i * tb) < n_rows
    e = jnp.where(row_ok, e, 0.0)
    s_col = jnp.sum(e, axis=0, keepdims=True)         # (1, HP)
    sub = lax.broadcasted_iota(jnp.int32, (8, hp), 0)
    part_ref[...] = jnp.where(sub == 0, s_col, 0.0)


def _norm_head_kernel(y_ref, ln_ref, w_ref, b_ref, o_ref):
    h = jnp.maximum(ln_ref[...] * y_ref[...], 0.0).astype(jnp.bfloat16)
    z = jnp.dot(h, w_ref[...],
                preferred_element_type=jnp.float32) + b_ref[...]
    o_ref[...] = _masked_log_softmax(z, NUM_CLASSES)


def _tiled_params(grid):
    return pltpu.CompilerParams(dimension_semantics=("parallel",) * len(grid),
                                vmem_limit_bytes=_TILED_VMEM)


def _call_fc_moments(x, w, b, tb, n_rows, n_cols):
    bp, kp = x.shape
    hp = w.shape[1]
    nt = bp // tb
    kern = functools.partial(_fc_moments_kernel, n_rows=n_rows, n_cols=n_cols)
    return pl.pallas_call(
        kern,
        out_shape=(jax.ShapeDtypeStruct((bp, hp), jnp.float32),
                   jax.ShapeDtypeStruct((nt * 8, 128), jnp.float32)),
        grid_spec=pltpu.PrefetchScalarGridSpec(
            num_scalar_prefetch=0, grid=(nt,),
            in_specs=[pl.BlockSpec((tb, kp), lambda i: (i, 0)),
                      pl.BlockSpec((kp, hp), lambda i: (0, 0)),
                      pl.BlockSpec((1, hp), lambda i: (0, 0))],
            out_specs=(pl.BlockSpec((tb, hp), lambda i: (i, 0)),
                       pl.BlockSpec((8, 128), lambda i: (i, 0)))),
        compiler_params=_tiled_params((nt,)),
    )(x, w, b)


def _call_norm_fc_moments(y, ln, w, b, tb, n_rows, n_cols):
    bp, hp_in = y.shape
    hp_out = w.shape[1]
    nt = bp // tb
    kern = functools.partial(_norm_fc_moments_kernel, n_rows=n_rows, n_cols=n_cols)
    return pl.pallas_call(
        kern,
        out_shape=(jax.ShapeDtypeStruct((bp, hp_out), jnp.float32),
                   jax.ShapeDtypeStruct((nt * 8, 128), jnp.float32)),
        grid_spec=pltpu.PrefetchScalarGridSpec(
            num_scalar_prefetch=0, grid=(nt,),
            in_specs=[pl.BlockSpec((tb, hp_in), lambda i: (i, 0)),
                      pl.BlockSpec((1, hp_in), lambda i: (0, 0)),
                      pl.BlockSpec((hp_in, hp_out), lambda i: (0, 0)),
                      pl.BlockSpec((1, hp_out), lambda i: (0, 0))],
            out_specs=(pl.BlockSpec((tb, hp_out), lambda i: (i, 0)),
                       pl.BlockSpec((8, 128), lambda i: (i, 0)))),
        compiler_params=_tiled_params((nt,)),
    )(y, ln, w, b)


def _call_colsum(y, stat, tb, n_rows):
    bp, hp = y.shape
    nt = bp // tb
    kern = functools.partial(_rln_colsum_kernel, n_rows=n_rows)
    return pl.pallas_call(
        kern,
        out_shape=jax.ShapeDtypeStruct((nt * 8, hp), jnp.float32),
        grid_spec=pltpu.PrefetchScalarGridSpec(
            num_scalar_prefetch=0, grid=(nt,),
            in_specs=[pl.BlockSpec((tb, hp), lambda i: (i, 0)),
                      pl.BlockSpec((1, 128), lambda i: (0, 0))],
            out_specs=pl.BlockSpec((8, hp), lambda i: (i, 0))),
        compiler_params=_tiled_params((nt,)),
    )(y, stat)


def _call_norm_head(y, ln, w, b, tb):
    bp, hp_in = y.shape
    cp = w.shape[1]
    nt = bp // tb
    return pl.pallas_call(
        _norm_head_kernel,
        out_shape=jax.ShapeDtypeStruct((bp, cp), jnp.float32),
        grid_spec=pltpu.PrefetchScalarGridSpec(
            num_scalar_prefetch=0, grid=(nt,),
            in_specs=[pl.BlockSpec((tb, hp_in), lambda i: (i, 0)),
                      pl.BlockSpec((1, hp_in), lambda i: (0, 0)),
                      pl.BlockSpec((hp_in, cp), lambda i: (0, 0)),
                      pl.BlockSpec((1, cp), lambda i: (0, 0))],
            out_specs=pl.BlockSpec((tb, cp), lambda i: (i, 0))),
        compiler_params=_tiled_params((nt,)),
    )(y, ln, w, b)


def _moments_from_partials(part, n):
    s = jnp.sum(part[:, 0])
    q = jnp.sum(part[:, 1])
    mean = s / n
    var = (q - n * mean * mean) / (n - 1.0)
    std = jnp.sqrt(var)
    return mean, std, var


def _finish_rln(col_part, std):
    s_col = jnp.sum(col_part, axis=0)                       # (HP,)
    m_theo = -jnp.log(std) - _LOG_SQRT_2PI
    log_t = m_theo + jnp.log(s_col)                         # = sum_p
    comp = jnp.maximum(log_t, 0.0) + jnp.log(1.0 + jnp.exp(-jnp.abs(log_t)))
    l_nml = comp - log_t
    return l_nml.reshape(1, -1), comp


def _tiled_forward(xp, p, b, tb):
    n = float(b * HIDDEN)

    y1, mom1 = _call_fc_moments(xp, p["w1"], p["b1"], tb, b, HIDDEN)
    mean1, std1, var1 = _moments_from_partials(mom1, n)
    stat1 = jnp.zeros((1, 128), jnp.float32).at[0, 0].set(mean1).at[0, 1].set(0.5 / var1)
    ln1, comp1 = _finish_rln(_call_colsum(y1, stat1, tb, b), std1)

    y2, mom2 = _call_norm_fc_moments(y1, ln1, p["w2"], p["b2"], tb, b, HIDDEN)
    mean2, std2, var2 = _moments_from_partials(mom2, n)
    stat2 = jnp.zeros((1, 128), jnp.float32).at[0, 0].set(mean2).at[0, 1].set(0.5 / var2)
    ln2, comp2 = _finish_rln(_call_colsum(y2, stat2, tb, b), std2)

    out = _call_norm_head(y2, ln2, p["w3"], p["b3"], tb)
    return out, comp1, comp2, mean1, std1, mean2, std2


# ------------------------------- forward ------------------------------------

def nnrln_forward(x, params, force_tiled=False):
    """NNRLN.forward at default args. Returns (out, x_history_stack, COMP_stack)."""
    x2d = x.reshape(-1, INPUT_SIZE).astype(jnp.float32)
    b = x2d.shape[0]

    fused = (not force_tiled) and (_round_up(b, 16) <= FUSED_MAX_ROWS)
    if fused:
        bp = _round_up(b, 16)
        tb = bp
    else:
        tb, bp = _pick_batch_tile(b)

    xp = jnp.zeros((bp, K1P), jnp.bfloat16).at[:b, :INPUT_SIZE].set(
        x2d.astype(jnp.bfloat16))

    if fused:
        outp, comp1p, comp2p, stats = _fused_forward(xp, params, b)
        mean1, std1, mean2, std2 = stats[0], stats[1], stats[2], stats[3]
    else:
        outp, comp1p, comp2p, mean1, std1, mean2, std2 = _tiled_forward(
            xp, params, b, tb)

    out = outp[:b, :NUM_CLASSES]
    numel = jnp.float32(b * HIDDEN)
    x_history_stack = [
        -1,                                   # inputRN=False path
        [mean1, std1, numel],
        [mean2, std2, numel],
    ]
    comp_stack = [-1, comp1p[:HIDDEN], comp2p[:HIDDEN]]
    return out, x_history_stack, comp_stack


# --------------------------------- params -----------------------------------

def init_params(key):
    """Torch-default init. Returns (raw f32 torch-layout params,
    padded/transposed bf16-weight kernel params)."""
    ks = jax.random.split(key, 6)

    def lin(kw, kb, fan_in, fan_out):
        bound = 1.0 / math.sqrt(fan_in)
        w = jax.random.uniform(kw, (fan_out, fan_in), jnp.float32, -bound, bound)
        bv = jax.random.uniform(kb, (fan_out,), jnp.float32, -bound, bound)
        return w, bv

    w1, b1 = lin(ks[0], ks[1], INPUT_SIZE, HIDDEN)
    w2, b2 = lin(ks[2], ks[3], HIDDEN, HIDDEN)
    w3, b3 = lin(ks[4], ks[5], HIDDEN, NUM_CLASSES)
    raw = dict(w1=w1, b1=b1, w2=w2, b2=b2, w3=w3, b3=b3)

    def pad_wt(w, kp, n_out):
        wt = w.T.astype(jnp.bfloat16)
        return jnp.zeros((kp, n_out), jnp.bfloat16).at[:wt.shape[0],
                                                       :wt.shape[1]].set(wt)

    def pad_b(bv, n_out):
        return jnp.zeros((1, n_out), jnp.float32).at[0, :bv.shape[0]].set(bv)

    padded = dict(
        w1=pad_wt(w1, K1P, HP), b1=pad_b(b1, HP),
        w2=pad_wt(w2, HP, HP),  b2=pad_b(b2, HP),
        w3=pad_wt(w3, HP, CP),  b3=pad_b(b3, CP),
    )
    return raw, padded


# -------------------------------- reference ---------------------------------

def _reference(x, raw):
    x2 = x.reshape(-1, INPUT_SIZE).astype(jnp.float32)
    hp = jax.lax.Precision.HIGHEST

    def rln(y):
        mean = jnp.mean(y)
        std = jnp.std(y, ddof=1)
        var = std * std
        logp = -(y - mean) ** 2 / (2.0 * var) - jnp.log(std) - _LOG_SQRT_2PI
        m = jnp.max(logp)
        s_col = jnp.sum(jnp.exp(logp - m), axis=0)
        sum_p = m + jnp.log(s_col)
        comp_a = jnp.log(1.0 + jnp.sum(jnp.exp(logp), axis=0))
        comp_b = m + jnp.log(jnp.exp(-m) + s_col)
        comp = jnp.where(0.0 > m, comp_a, comp_b)
        return (comp - sum_p)[None, :] * y, comp, mean, std

    h1 = jnp.dot(x2, raw["w1"].T, precision=hp) + raw["b1"]
    h1s, comp1, m1, s1 = rln(h1)
    h2 = jnp.dot(jnp.maximum(h1s, 0.0), raw["w2"].T, precision=hp) + raw["b2"]
    h2s, comp2, m2, s2 = rln(h2)
    logits = jnp.dot(jnp.maximum(h2s, 0.0), raw["w3"].T, precision=hp) + raw["b3"]
    out = jax.nn.log_softmax(logits, axis=1)
    return out, comp1, comp2, m1, s1, m2, s2


if __name__ == "__main__":
    key = jax.random.PRNGKey(0)
    kparam, kx1, kx2 = jax.random.split(key, 3)
    raw, padded = init_params(kparam)

    fwd = jax.jit(nnrln_forward, static_argnames=("force_tiled",))
    tol = dict(atol=2e-2, rtol=2e-2)

    # small batch -> fully fused single-kernel path
    x = jax.random.normal(kx1, (4, 1, 28, 28), jnp.float32)
    out, x_hist, comp_stack = fwd(x, padded)
    jax.block_until_ready(out)
    r_out, r_c1, r_c2, r_m1, r_s1, r_m2, r_s2 = _reference(x, raw)
    assert out.shape == (4, NUM_CLASSES)
    assert comp_stack[1].shape == (HIDDEN,) and comp_stack[2].shape == (HIDDEN,)
    assert jnp.allclose(out, r_out, **tol)
    assert jnp.allclose(comp_stack[1], r_c1, **tol)
    assert jnp.allclose(comp_stack[2], r_c2, **tol)
    assert jnp.allclose(x_hist[1][0], r_m1, **tol)
    assert jnp.allclose(x_hist[1][1], r_s1, **tol)
    assert jnp.allclose(x_hist[2][0], r_m2, **tol)
    assert jnp.allclose(x_hist[2][1], r_s2, **tol)

    # larger batch (forced) -> grid-tiled multi-kernel path (still small shapes)
    xb = jax.random.normal(kx2, (72, INPUT_SIZE), jnp.float32)
    out2, x_hist2, comp_stack2 = fwd(xb, padded, force_tiled=True)
    jax.block_until_ready(out2)
    r2 = _reference(xb, raw)
    assert out2.shape == (72, NUM_CLASSES)
    assert jnp.allclose(out2, r2[0], **tol)
    assert jnp.allclose(comp_stack2[1], r2[1], **tol)
    assert jnp.allclose(comp_stack2[2], r2[2], **tol)
    assert jnp.allclose(x_hist2[1][0], r2[3], **tol)
    assert jnp.allclose(x_hist2[1][1], r2[4], **tol)
    assert jnp.allclose(x_hist2[2][0], r2[5], **tol)
    assert jnp.allclose(x_hist2[2][1], r2[6], **tol)

    print("KERNEL_OK")
</pallas_src>

<mosaic_0001>
module attributes {stable_mosaic.version = 11 : i64} {
  func.func @_fused_mlp_kernel(%arg0: memref<16x896xbf16, #tpu.memory_space<vmem>>, %arg1: memref<896x1024xbf16, #tpu.memory_space<vmem>>, %arg2: memref<1x1024xf32, #tpu.memory_space<vmem>>, %arg3: memref<1024x1024xbf16, #tpu.memory_space<vmem>>, %arg4: memref<1x1024xf32, #tpu.memory_space<vmem>>, %arg5: memref<1024x128xbf16, #tpu.memory_space<vmem>>, %arg6: memref<1x128xf32, #tpu.memory_space<vmem>>, %arg7: memref<16x128xf32, #tpu.memory_space<vmem>>, %arg8: memref<8x1024xf32, #tpu.memory_space<vmem>>, %arg9: memref<8x1024xf32, #tpu.memory_space<vmem>>, %arg10: memref<8x128xf32, #tpu.memory_space<vmem>>) attributes {dimension_semantics = [], scalar_prefetch = 0 : i64, scratch_operands = 0 : i64, tpu.core_type = #tpu.core_type<tc>} {
    %c0 = arith.constant 0 : index
    %c0_0 = arith.constant 0 : index
    %0 = vector.load %arg0[%c0, %c0_0] : memref<16x896xbf16, #tpu.memory_space<vmem>>, vector<16x896xbf16>
    %c0_1 = arith.constant 0 : index
    %c0_2 = arith.constant 0 : index
    %1 = vector.load %arg1[%c0_1, %c0_2] : memref<896x1024xbf16, #tpu.memory_space<vmem>>, vector<896x1024xbf16>
    %cst = arith.constant dense<0.000000e+00> : vector<16x1024xf32>
    %2 = tpu.matmul %0, %1, %cst {dimension_numbers = #tpu.dot_dimension_numbers<[1], [0], [0], [1], [0, 0, 1, 1], [], []>} : vector<16x896xbf16>, vector<896x1024xbf16>, vector<16x1024xf32> -> vector<16x1024xf32>
    %c0_3 = arith.constant 0 : index
    %c0_4 = arith.constant 0 : index
    %3 = vector.load %arg2[%c0_3, %c0_4] : memref<1x1024xf32, #tpu.memory_space<vmem>>, vector<1x1024xf32>
    %4 = vector.broadcast %3 : vector<1x1024xf32> to vector<16x1024xf32>
    %5 = arith.addf %2, %4 : vector<16x1024xf32>
    %6 = tpu.iota {dimensions = array<i32: 0>} : vector<16x1xi32>
    %c4_i32 = arith.constant 4 : i32
    %7 = vector.broadcast %c4_i32 : i32 to vector<16x1xi32>
    %8 = arith.cmpi slt, %6, %7 : vector<16x1xi32>
    %9 = tpu.iota {dimensions = array<i32: 1>} : vector<1x1024xi32>
    %c1000_i32 = arith.constant 1000 : i32
    %10 = vector.broadcast %c1000_i32 : i32 to vector<1x1024xi32>
    %11 = arith.cmpi slt, %9, %10 : vector<1x1024xi32>
    %12 = vector.broadcast %8 : vector<16x1xi1> to vector<16x1024xi1>
    %13 = vector.broadcast %11 : vector<1x1024xi1> to vector<16x1024xi1>
    %14 = arith.andi %12, %13 : vector<16x1024xi1>
    %cst_5 = arith.constant 0.000000e+00 : f32
    %15 = vector.broadcast %cst_5 : f32 to vector<16x1024xf32>
    %16 = arith.select %14, %5, %15 : vector<16x1024xi1>, vector<16x1024xf32>
    %cst_6 = arith.constant dense<0.000000e+00> : vector<16xf32>
    %17 = vector.multi_reduction <add>, %16, %cst_6 [1] : vector<16x1024xf32> to vector<16xf32>
    %18 = vector.shape_cast %17 : vector<16xf32> to vector<16x1xf32>
    %cst_7 = arith.constant dense<0.000000e+00> : vector<1xf32>
    %19 = vector.multi_reduction <add>, %18, %cst_7 [0] : vector<16x1xf32> to vector<1xf32>
    %20 = vector.shape_cast %19 : vector<1xf32> to vector<1x1xf32>
    %cst_8 = arith.constant 4.000000e+03 : f32
    %21 = vector.broadcast %cst_8 : f32 to vector<1x1xf32>
    %22 = arith.divf %20, %21 : vector<1x1xf32>
    %23 = vector.broadcast %22 : vector<1x1xf32> to vector<16x1024xf32>
    %24 = arith.subf %5, %23 : vector<16x1024xf32>
    %cst_9 = arith.constant 0.000000e+00 : f32
    %25 = vector.broadcast %cst_9 : f32 to vector<16x1024xf32>
    %26 = arith.select %14, %24, %25 : vector<16x1024xi1>, vector<16x1024xf32>
    %27 = arith.mulf %26, %26 : vector<16x1024xf32>
    %cst_10 = arith.constant dense<0.000000e+00> : vector<16xf32>
    %28 = vector.multi_reduction <add>, %27, %cst_10 [1] : vector<16x1024xf32> to vector<16xf32>
    %29 = vector.shape_cast %28 : vector<16xf32> to vector<16x1xf32>
    %cst_11 = arith.constant dense<0.000000e+00> : vector<1xf32>
    %30 = vector.multi_reduction <add>, %29, %cst_11 [0] : vector<16x1xf32> to vector<1xf32>
    %31 = vector.shape_cast %30 : vector<1xf32> to vector<1x1xf32>
    %cst_12 = arith.constant 3.999000e+03 : f32
    %32 = vector.broadcast %cst_12 : f32 to vector<1x1xf32>
    %33 = arith.divf %31, %32 : vector<1x1xf32>
    %34 = math.sqrt %33 : vector<1x1xf32>
    %cst_13 = arith.constant 5.000000e-01 : f32
    %35 = vector.broadcast %cst_13 : f32 to vector<1x1xf32>
    %36 = arith.divf %35, %33 : vector<1x1xf32>
    %cst_14 = arith.constant 0.000000e+00 : f32
    %37 = vector.broadcast %cst_14 : f32 to vector<16x1024xf32>
    %38 = arith.subf %37, %27 : vector<16x1024xf32>
    %39 = vector.broadcast %36 : vector<1x1xf32> to vector<16x1024xf32>
    %40 = arith.mulf %38, %39 : vector<16x1024xf32>
    %41 = math.exp %40 : vector<16x1024xf32>
    %cst_15 = arith.constant 0.000000e+00 : f32
    %42 = vector.shape_cast %8 : vector<16x1xi1> to vector<16x1xi1>
    %43 = vector.broadcast %42 : vector<16x1xi1> to vector<16x1024xi1>
    %44 = vector.broadcast %cst_15 : f32 to vector<16x1024xf32>
    %45 = arith.select %43, %41, %44 : vector<16x1024xi1>, vector<16x1024xf32>
    %cst_16 = arith.constant dense<0.000000e+00> : vector<1024xf32>
    %46 = vector.multi_reduction <add>, %45, %cst_16 [0] : vector<16x1024xf32> to vector<1024xf32>
    %47 = vector.shape_cast %46 : vector<1024xf32> to vector<1x1024xf32>
    %48 = math.log %34 : vector<1x1xf32>
    %cst_17 = arith.constant 0.000000e+00 : f32
    %49 = vector.broadcast %cst_17 : f32 to vector<1x1xf32>
    %50 = arith.subf %49, %48 : vector<1x1xf32>
    %cst_18 = arith.constant 0.918938517 : f32
    %51 = vector.broadcast %cst_18 : f32 to vector<1x1xf32>
    %52 = arith.subf %50, %51 : vector<1x1xf32>
    %53 = math.log %47 : vector<1x1024xf32>
    %54 = vector.broadcast %52 : vector<1x1xf32> to vector<1x1024xf32>
    %55 = arith.addf %54, %53 : vector<1x1024xf32>
    %cst_19 = arith.constant 0.000000e+00 : f32
    %56 = vector.broadcast %cst_19 : f32 to vector<1x1024xf32>
    %57 = arith.maximumf %55, %56 : vector<1x1024xf32>
    %58 = math.absf %55 : vector<1x1024xf32>
    %cst_20 = arith.constant 0.000000e+00 : f32
    %59 = vector.broadcast %cst_20 : f32 to vector<1x1024xf32>
    %60 = arith.subf %59, %58 : vector<1x1024xf32>
    %61 = math.exp %60 : vector<1x1024xf32>
    %cst_21 = arith.constant 1.000000e+00 : f32
    %62 = vector.broadcast %cst_21 : f32 to vector<1x1024xf32>
    %63 = arith.addf %62, %61 : vector<1x1024xf32>
    %64 = math.log %63 : vector<1x1024xf32>
    %65 = arith.addf %57, %64 : vector<1x1024xf32>
    %66 = arith.subf %65, %55 : vector<1x1024xf32>
    %67 = vector.broadcast %66 : vector<1x1024xf32> to vector<16x1024xf32>
    %68 = arith.mulf %67, %5 : vector<16x1024xf32>
    %cst_22 = arith.constant 0.000000e+00 : f32
    %69 = vector.broadcast %cst_22 : f32 to vector<16x1024xf32>
    %70 = arith.maximumf %68, %69 : vector<16x1024xf32>
    %71 = arith.truncf %70 : vector<16x1024xf32> to vector<16x1024xbf16>
    %c0_23 = arith.constant 0 : index
    %c0_24 = arith.constant 0 : index
    %72 = vector.load %arg3[%c0_23, %c0_24] : memref<1024x1024xbf16, #tpu.memory_space<vmem>>, vector<1024x1024xbf16>
    %cst_25 = arith.constant dense<0.000000e+00> : vector<16x1024xf32>
    %73 = tpu.matmul %71, %72, %cst_25 {dimension_numbers = #tpu.dot_dimension_numbers<[1], [0], [0], [1], [0, 0, 1, 1], [], []>} : vector<16x1024xbf16>, vector<1024x1024xbf16>, vector<16x1024xf32> -> vector<16x1024xf32>
    %c0_26 = arith.constant 0 : index
    %c0_27 = arith.constant 0 : index
    %74 = vector.load %arg4[%c0_26, %c0_27] : memref<1x1024xf32, #tpu.memory_space<vmem>>, vector<1x1024xf32>
    %75 = vector.broadcast %74 : vector<1x1024xf32> to vector<16x1024xf32>
    %76 = arith.addf %73, %75 : vector<16x1024xf32>
    %77 = tpu.iota {dimensions = array<i32: 0>} : vector<16x1xi32>
    %c4_i32_28 = arith.constant 4 : i32
    %78 = vector.broadcast %c4_i32_28 : i32 to vector<16x1xi32>
    %79 = arith.cmpi slt, %77, %78 : vector<16x1xi32>
    %80 = tpu.iota {dimensions = array<i32: 1>} : vector<1x1024xi32>
    %c1000_i32_29 = arith.constant 1000 : i32
    %81 = vector.broadcast %c1000_i32_29 : i32 to vector<1x1024xi32>
    %82 = arith.cmpi slt, %80, %81 : vector<1x1024xi32>
    %83 = vector.broadcast %79 : vector<16x1xi1> to vector<16x1024xi1>
    %84 = vector.broadcast %82 : vector<1x1024xi1> to vector<16x1024xi1>
    %85 = arith.andi %83, %84 : vector<16x1024xi1>
    %cst_30 = arith.constant 0.000000e+00 : f32
    %86 = vector.broadcast %cst_30 : f32 to vector<16x1024xf32>
    %87 = arith.select %85, %76, %86 : vector<16x1024xi1>, vector<16x1024xf32>
    %cst_31 = arith.constant dense<0.000000e+00> : vector<16xf32>
    %88 = vector.multi_reduction <add>, %87, %cst_31 [1] : vector<16x1024xf32> to vector<16xf32>
    %89 = vector.shape_cast %88 : vector<16xf32> to vector<16x1xf32>
    %cst_32 = arith.constant dense<0.000000e+00> : vector<1xf32>
    %90 = vector.multi_reduction <add>, %89, %cst_32 [0] : vector<16x1xf32> to vector<1xf32>
    %91 = vector.shape_cast %90 : vector<1xf32> to vector<1x1xf32>
    %cst_33 = arith.constant 4.000000e+03 : f32
    %92 = vector.broadcast %cst_33 : f32 to vector<1x1xf32>
    %93 = arith.divf %91, %92 : vector<1x1xf32>
    %94 = vector.broadcast %93 : vector<1x1xf32> to vector<16x1024xf32>
    %95 = arith.subf %76, %94 : vector<16x1024xf32>
    %cst_34 = arith.constant 0.000000e+00 : f32
    %96 = vector.broadcast %cst_34 : f32 to vector<16x1024xf32>
    %97 = arith.select %85, %95, %96 : vector<16x1024xi1>, vector<16x1024xf32>
    %98 = arith.mulf %97, %97 : vector<16x1024xf32>
    %cst_35 = arith.constant dense<0.000000e+00> : vector<16xf32>
    %99 = vector.multi_reduction <add>, %98, %cst_35 [1] : vector<16x1024xf32> to vector<16xf32>
    %100 = vector.shape_cast %99 : vector<16xf32> to vector<16x1xf32>
    %cst_36 = arith.constant dense<0.000000e+00> : vector<1xf32>
    %101 = vector.multi_reduction <add>, %100, %cst_36 [0] : vector<16x1xf32> to vector<1xf32>
    %102 = vector.shape_cast %101 : vector<1xf32> to vector<1x1xf32>
    %cst_37 = arith.constant 3.999000e+03 : f32
    %103 = vector.broadcast %cst_37 : f32 to vector<1x1xf32>
    %104 = arith.divf %102, %103 : vector<1x1xf32>
    %105 = math.sqrt %104 : vector<1x1xf32>
    %cst_38 = arith.constant 5.000000e-01 : f32
    %106 = vector.broadcast %cst_38 : f32 to vector<1x1xf32>
    %107 = arith.divf %106, %104 : vector<1x1xf32>
    %cst_39 = arith.constant 0.000000e+00 : f32
    %108 = vector.broadcast %cst_39 : f32 to vector<16x1024xf32>
    %109 = arith.subf %108, %98 : vector<16x1024xf32>
    %110 = vector.broadcast %107 : vector<1x1xf32> to vector<16x1024xf32>
    %111 = arith.mulf %109, %110 : vector<16x1024xf32>
    %112 = math.exp %111 : vector<16x1024xf32>
    %cst_40 = arith.constant 0.000000e+00 : f32
    %113 = vector.shape_cast %79 : vector<16x1xi1> to vector<16x1xi1>
    %114 = vector.broadcast %113 : vector<16x1xi1> to vector<16x1024xi1>
    %115 = vector.broadcast %cst_40 : f32 to vector<16x1024xf32>
    %116 = arith.select %114, %112, %115 : vector<16x1024xi1>, vector<16x1024xf32>
    %cst_41 = arith.constant dense<0.000000e+00> : vector<1024xf32>
    %117 = vector.multi_reduction <add>, %116, %cst_41 [0] : vector<16x1024xf32> to vector<1024xf32>
    %118 = vector.shape_cast %117 : vector<1024xf32> to vector<1x1024xf32>
    %119 = math.log %105 : vector<1x1xf32>
    %cst_42 = arith.constant 0.000000e+00 : f32
    %120 = vector.broadcast %cst_42 : f32 to vector<1x1xf32>
    %121 = arith.subf %120, %119 : vector<1x1xf32>
    %cst_43 = arith.constant 0.918938517 : f32
    %122 = vector.broadcast %cst_43 : f32 to vector<1x1xf32>
    %123 = arith.subf %121, %122 : vector<1x1xf32>
    %124 = math.log %118 : vector<1x1024xf32>
    %125 = vector.broadcast %123 : vector<1x1xf32> to vector<1x1024xf32>
    %126 = arith.addf %125, %124 : vector<1x1024xf32>
    %cst_44 = arith.constant 0.000000e+00 : f32
    %127 = vector.broadcast %cst_44 : f32 to vector<1x1024xf32>
    %128 = arith.maximumf %126, %127 : vector<1x1024xf32>
    %129 = math.absf %126 : vector<1x1024xf32>
    %cst_45 = arith.constant 0.000000e+00 : f32
    %130 = vector.broadcast %cst_45 : f32 to vector<1x1024xf32>
    %131 = arith.subf %130, %129 : vector<1x1024xf32>
    %132 = math.exp %131 : vector<1x1024xf32>
    %cst_46 = arith.constant 1.000000e+00 : f32
    %133 = vector.broadcast %cst_46 : f32 to vector<1x1024xf32>
    %134 = arith.addf %133, %132 : vector<1x1024xf32>
    %135 = math.log %134 : vector<1x1024xf32>
    %136 = arith.addf %128, %135 : vector<1x1024xf32>
    %137 = arith.subf %136, %126 : vector<1x1024xf32>
    %138 = vector.broadcast %137 : vector<1x1024xf32> to vector<16x1024xf32>
    %139 = arith.mulf %138, %76 : vector<16x1024xf32>
    %cst_47 = arith.constant 0.000000e+00 : f32
    %140 = vector.broadcast %cst_47 : f32 to vector<16x1024xf32>
    %141 = arith.maximumf %139, %140 : vector<16x1024xf32>
    %142 = arith.truncf %141 : vector<16x1024xf32> to vector<16x1024xbf16>
    %c0_48 = arith.constant 0 : index
    %c0_49 = arith.constant 0 : index
    %143 = vector.load %arg5[%c0_48, %c0_49] : memref<1024x128xbf16, #tpu.memory_space<vmem>>, vector<1024x128xbf16>
    %cst_50 = arith.constant dense<0.000000e+00> : vector<16x128xf32>
    %144 = tpu.matmul %142, %143, %cst_50 {dimension_numbers = #tpu.dot_dimension_numbers<[1], [0], [0], [1], [0, 0, 1, 1], [], []>} : vector<16x1024xbf16>, vector<1024x128xbf16>, vector<16x128xf32> -> vector<16x128xf32>
    %c0_51 = arith.constant 0 : index
    %c0_52 = arith.constant 0 : index
    %145 = vector.load %arg6[%c0_51, %c0_52] : memref<1x128xf32, #tpu.memory_space<vmem>>, vector<1x128xf32>
    %146 = vector.broadcast %145 : vector<1x128xf32> to vector<16x128xf32>
    %147 = arith.addf %144, %146 : vector<16x128xf32>
    %148 = tpu.iota {dimensions = array<i32: 1>} : vector<16x128xi32>
    %c10_i32 = arith.constant 10 : i32
    %149 = vector.broadcast %c10_i32 : i32 to vector<16x128xi32>
    %150 = arith.cmpi slt, %148, %149 : vector<16x128xi32>
    %cst_53 = arith.constant -1.000000e+30 : f32
    %151 = vector.broadcast %cst_53 : f32 to vector<16x128xf32>
    %152 = arith.select %150, %147, %151 : vector<16x128xi1>, vector<16x128xf32>
    %cst_54 = arith.constant dense<0xFF800000> : vector<16xf32>
    %153 = vector.multi_reduction <maximumf>, %152, %cst_54 [1] : vector<16x128xf32> to vector<16xf32>
    %154 = vector.shape_cast %153 : vector<16xf32> to vector<16x1xf32>
    %155 = vector.broadcast %154 : vector<16x1xf32> to vector<16x128xf32>
    %156 = arith.subf %147, %155 : vector<16x128xf32>
    %157 = math.exp %156 : vector<16x128xf32>
    %cst_55 = arith.constant 0.000000e+00 : f32
    %158 = vector.broadcast %cst_55 : f32 to vector<16x128xf32>
    %159 = arith.select %150, %157, %158 : vector<16x128xi1>, vector<16x128xf32>
    %cst_56 = arith.constant dense<0.000000e+00> : vector<16xf32>
    %160 = vector.multi_reduction <add>, %159, %cst_56 [1] : vector<16x128xf32> to vector<16xf32>
    %161 = vector.shape_cast %160 : vector<16xf32> to vector<16x1xf32>
    %162 = math.log %161 : vector<16x1xf32>
    %163 = arith.addf %154, %162 : vector<16x1xf32>
    %164 = vector.broadcast %163 : vector<16x1xf32> to vector<16x128xf32>
    %165 = arith.subf %147, %164 : vector<16x128xf32>
    %c0_57 = arith.constant 0 : index
    %c0_58 = arith.constant 0 : index
    %166 = vector.load %arg7[%c0_57, %c0_58] : memref<16x128xf32, #tpu.memory_space<vmem>>, vector<16x128xf32>
    tpu.vector_store %arg7[%c0_57, %c0_58], %165 {strides = array<i32>} : memref<16x128xf32, #tpu.memory_space<vmem>>, vector<16x128xf32>,
    %167 = tpu.iota {dimensions = array<i32: 0>} : vector<8x1024xi32>
    %c0_i32 = arith.constant 0 : i32
    %168 = vector.broadcast %c0_i32 : i32 to vector<8x1024xi32>
    %169 = arith.cmpi eq, %167, %168 : vector<8x1024xi32>
    %cst_59 = arith.constant 0.000000e+00 : f32
    %170 = vector.shape_cast %65 : vector<1x1024xf32> to vector<1x1024xf32>
    %171 = vector.broadcast %170 : vector<1x1024xf32> to vector<8x1024xf32>
    %172 = vector.broadcast %cst_59 : f32 to vector<8x1024xf32>
    %173 = arith.select %169, %171, %172 : vector<8x1024xi1>, vector<8x1024xf32>
    %c0_60 = arith.constant 0 : index
    %c0_61 = arith.constant 0 : index
    %174 = vector.load %arg8[%c0_60, %c0_61] : memref<8x1024xf32, #tpu.memory_space<vmem>>, vector<8x1024xf32>
    tpu.vector_store %arg8[%c0_60, %c0_61], %173 {strides = array<i32>} : memref<8x1024xf32, #tpu.memory_space<vmem>>, vector<8x1024xf32>,
    %c0_i32_62 = arith.constant 0 : i32
    %175 = vector.broadcast %c0_i32_62 : i32 to vector<8x1024xi32>
    %176 = arith.cmpi eq, %167, %175 : vector<8x1024xi32>
    %cst_63 = arith.constant 0.000000e+00 : f32
    %177 = vector.shape_cast %136 : vector<1x1024xf32> to vector<1x1024xf32>
    %178 = vector.broadcast %177 : vector<1x1024xf32> to vector<8x1024xf32>
    %179 = vector.broadcast %cst_63 : f32 to vector<8x1024xf32>
    %180 = arith.select %176, %178, %179 : vector<8x1024xi1>, vector<8x1024xf32>
    %c0_64 = arith.constant 0 : index
    %c0_65 = arith.constant 0 : index
    %181 = vector.load %arg9[%c0_64, %c0_65] : memref<8x1024xf32, #tpu.memory_space<vmem>>, vector<8x1024xf32>
    tpu.vector_store %arg9[%c0_64, %c0_65], %180 {strides = array<i32>} : memref<8x1024xf32, #tpu.memory_space<vmem>>, vector<8x1024xf32>,
    %182 = tpu.iota {dimensions = array<i32: 0>} : vector<8x128xi32>
    %183 = tpu.iota {dimensions = array<i32: 1>} : vector<8x128xi32>
    %c0_i32_66 = arith.constant 0 : i32
    %184 = vector.broadcast %c0_i32_66 : i32 to vector<8x128xi32>
    %185 = arith.cmpi eq, %182, %184 : vector<8x128xi32>
    %c0_i32_67 = arith.constant 0 : i32
    %186 = vector.broadcast %c0_i32_67 : i32 to vector<8x128xi32>
    %187 = arith.cmpi eq, %183, %186 : vector<8x128xi32>
    %188 = arith.andi %185, %187 : vector<8x128xi1>
    %cst_68 = arith.constant 0.000000e+00 : f32
    %189 = vector.shape_cast %22 : vector<1x1xf32> to vector<1x1xf32>
    %190 = vector.broadcast %189 : vector<1x1xf32> to vector<8x128xf32>
    %191 = vector.broadcast %cst_68 : f32 to vector<8x128xf32>
    %192 = arith.select %188, %190, %191 : vector<8x128xi1>, vector<8x128xf32>
    %c1_i32 = arith.constant 1 : i32
    %193 = vector.broadcast %c1_i32 : i32 to vector<8x128xi32>
    %194 = arith.cmpi eq, %183, %193 : vector<8x128xi32>
    %195 = arith.andi %185, %194 : vector<8x128xi1>
    %cst_69 = arith.constant 0.000000e+00 : f32
    %196 = vector.shape_cast %34 : vector<1x1xf32> to vector<1x1xf32>
    %197 = vector.broadcast %196 : vector<1x1xf32> to vector<8x128xf32>
    %198 = vector.broadcast %cst_69 : f32 to vector<8x128xf32>
    %199 = arith.select %195, %197, %198 : vector<8x128xi1>, vector<8x128xf32>
    %200 = arith.addf %192, %199 : vector<8x128xf32>
    %c2_i32 = arith.constant 2 : i32
    %201 = vector.broadcast %c2_i32 : i32 to vector<8x128xi32>
    %202 = arith.cmpi eq, %183, %201 : vector<8x128xi32>
    %203 = arith.andi %185, %202 : vector<8x128xi1>
    %cst_70 = arith.constant 0.000000e+00 : f32
    %204 = vector.shape_cast %93 : vector<1x1xf32> to vector<1x1xf32>
    %205 = vector.broadcast %204 : vector<1x1xf32> to vector<8x128xf32>
    %206 = vector.broadcast %cst_70 : f32 to vector<8x128xf32>
    %207 = arith.select %203, %205, %206 : vector<8x128xi1>, vector<8x128xf32>
    %208 = arith.addf %200, %207 : vector<8x128xf32>
    %c3_i32 = arith.constant 3 : i32
    %209 = vector.broadcast %c3_i32 : i32 to vector<8x128xi32>
    %210 = arith.cmpi eq, %183, %209 : vector<8x128xi32>
    %211 = arith.andi %185, %210 : vector<8x128xi1>
    %cst_71 = arith.constant 0.000000e+00 : f32
    %212 = vector.shape_cast %105 : vector<1x1xf32> to vector<1x1xf32>
    %213 = vector.broadcast %212 : vector<1x1xf32> to vector<8x128xf32>
    %214 = vector.broadcast %cst_71 : f32 to vector<8x128xf32>
    %215 = arith.select %211, %213, %214 : vector<8x128xi1>, vector<8x128xf32>
    %216 = arith.addf %208, %215 : vector<8x128xf32>
    %c0_72 = arith.constant 0 : index
    %c0_73 = arith.constant 0 : index
    %217 = vector.load %arg10[%c0_72, %c0_73] : memref<8x128xf32, #tpu.memory_space<vmem>>, vector<8x128xf32>
    tpu.vector_store %arg10[%c0_72, %c0_73], %216 {strides = array<i32>} : memref<8x128xf32, #tpu.memory_space<vmem>>, vector<8x128xf32>,
    return
  }
}

</mosaic_0001>

<bundles_post_ra>
// kernel: nnrln_forward.1
= control target key start
LH: loop header
LB: loop body
LE: loop exit
PB: predicated region body
PF: predicated region fallthrough
CT: control target
= control target key end

     0   :  { %16 = vsyncpa [#allocation3], 0  ;;  %s11538_s0 = inlined_call_operand.vmem [shape: bf16[16,896], index: 0, kind: input, shape index: {}]   ;;  %s11539_s1 = inlined_call_operand.hbm [shape: bf16[896,1024], index: 1, kind: input, shape index: {}]   ;;  %s11540_s2 = inlined_call_operand.hbm [shape: f32[1,1024], index: 2, kind: input, shape index: {}]   ;;  %s11541_s3 = inlined_call_operand.hbm [shape: bf16[1024,1024], index: 3, kind: input, shape index: {}]   ;;  %s11542_s4 = inlined_call_operand.hbm [shape: f32[1,1024], index: 4, kind: input, shape index: {}]   ;;  %s11543_s5 = inlined_call_operand.hbm [shape: bf16[1024,128], index: 5, kind: input, shape index: {}]   ;;  %s11544_s6 = inlined_call_operand.hbm [shape: f32[1,128], index: 6, kind: input, shape index: {}]   ;;  %s11545_s7 = inlined_call_operand.vmem [shape: f32[16,128], index: 7, kind: output, shape index: {0}]   ;;  %s11546_s8 = inlined_call_operand.vmem [shape: f32[8,1024], index: 8, kind: output, shape index: {1}]   ;;  %s11547_s9 = inlined_call_operand.vmem [shape: f32[8,1024], index: 9, kind: output, shape index: {2}]   ;;  %s11548_s10 = inlined_call_operand.vmem [shape: f32[8,128], index: 10, kind: output, shape index: {3}]  }
   0x1   :  { %17 = vsyncpa [#allocation5], 0 }
   0x2   :  { %18 = vsyncpa [#allocation8], 0 }
   0x3   :  { %19 = vsyncpa [#allocation11], 0  ;;  %s10661_s13 = smov [#allocation4]   ;;  %s10662_s15 = smov [#allocation7]  }
   0x4   :  { %s40_s14 = sshll.u32 %s10661_s13, 4  ;;  %s62_s16 = sshll.u32 %s10662_s15, 4  ;;  %s41_s14 = int_to_ptr.vmem [resolvable:$true] %s40_s14  ;;  %s63_s16 = int_to_ptr.vmem [resolvable:$true] %s62_s16 }
   0x5   :  { %s10521_s19 = scalar_lea.hbm %s11540_s2, 128 }
   0x6   :  { %p10522_p0 = scmp.ne.s32.totalorder %s11540_s2, %s10521_s19  ;;  %p10525_p1 = scmp.lt.u32.totalorder %s10521_s19, %s11540_s2 }
   0x8   :  { %p10527_p2 = pnand %p10525_p1, %p10522_p0 }
   0xa   :  { %10530 = shalt.err (!%p10527_p2)
}
   0xb   :  { %s10531_s24 = scalar_lea.vmem %s41_s14, 128  ;;  %p10536_p4 = scmp.lt.s32.totalorder %s41_s14, %s41_s14 }
   0xc   :  { %p10532_p3 = scmp.ne.s32.totalorder %s41_s14, %s10531_s24  ;;  %p10537_p5 = scmp.lt.s32.totalorder %s10531_s24, %s10531_s24 }
   0xe   :  { %p10538_p6 = por %p10537_p5, %p10536_p4 }
  0x10   :  { %p10539_p7 = pnand %p10538_p6, %p10532_p3 }
  0x12   :  { %10542 = shalt.err (!%p10539_p7)
}
  0x13   :  { %43 = dma.hbm_to_vmem [thread:$0]  %s11540_s2, 128, %s41_s14, [#allocation5]  }
  0x14   :  { %s10543_s29 = scalar_lea.hbm %s11542_s4, 128 }
  0x15   :  { %p10544_p8 = scmp.ne.s32.totalorder %s11542_s4, %s10543_s29  ;;  %p10547_p9 = scmp.lt.u32.totalorder %s10543_s29, %s11542_s4 }
  0x17   :  { %p10549_p10 = pnand %p10547_p9, %p10544_p8 }
  0x19   :  { %10552 = shalt.err (!%p10549_p10)
}
  0x1a   :  { %s10553_s15 = scalar_lea.vmem %s63_s16, 128  ;;  %p10558_p12 = scmp.lt.s32.totalorder %s63_s16, %s63_s16 }
  0x1b   :  { %p10554_p11 = scmp.ne.s32.totalorder %s63_s16, %s10553_s15  ;;  %p10559_p13 = scmp.lt.s32.totalorder %s10553_s15, %s10553_s15 }
  0x1d   :  { %p10560_p0 = por %p10559_p13, %p10558_p12 }
  0x1f   :  { %p10561_p1 = pnand %p10560_p0, %p10554_p11 }
  0x21   :  { %10564 = shalt.err (!%p10561_p1)
}
  0x22   :  { %65 = dma.hbm_to_vmem [thread:$0]  %s11542_s4, 128, %s63_s16, [#allocation8]  }
  0x23   :  { %s10663_s17 = smov [#allocation2]   ;;  %s10565_s21 = scalar_lea.hbm %s11539_s1, 57344 }
  0x24   :  { %s27_s18 = sshll.u32 %s10663_s17, 4  ;;  %p10566_p2 = scmp.ne.s32.totalorder %s11539_s1, %s10565_s21  ;;  %s28_s18 = int_to_ptr.vmem [resolvable:$true] %s27_s18 }
  0x25   :  { %p10569_p3 = scmp.lt.u32.totalorder %s10565_s21, %s11539_s1 }
  0x27   :  { %p10571_p4 = pnand %p10569_p3, %p10566_p2 }
  0x29   :  { %10574 = shalt.err (!%p10571_p4)
}
  0x2a   :  { %s10575_s26 = scalar_lea.vmem %s28_s18, 57344  ;;  %p10580_p6 = scmp.lt.s32.totalorder %s28_s18, %s28_s18 }
  0x2b   :  { %p10576_p5 = scmp.ne.s32.totalorder %s28_s18, %s10575_s26  ;;  %p10581_p7 = scmp.lt.s32.totalorder %s10575_s26, %s10575_s26 }
  0x2d   :  { %p10582_p8 = por %p10581_p7, %p10580_p6 }
  0x2f   :  { %p10583_p9 = pnand %p10582_p8, %p10576_p5 }
  0x31   :  { %10586 = shalt.err (!%p10583_p9)
}
  0x32   :  { %s10664_s4 = smov 512   ;;  %s10665_s16 = smov 32  }
  0x33   :  { %33 = dma.hbm_to_vmem [thread:$0]  %s11539_s1, 57344, %s28_s18, [#allocation3], %s10664_s4, %s10664_s4, %s10665_s16  }
  0x34   :  { %s10666_s29 = smov [#allocation6]   ;;  %s10667_s11 = smov [#allocation9]  }
  0x35   :  { %s49_s30 = sshll.u32 %s10666_s29, 4  ;;  %s71_s12 = sshll.u32 %s10667_s11, 4  ;;  %s50_s30 = int_to_ptr.vmem [resolvable:$true] %s49_s30  ;;  %s72_s12 = int_to_ptr.vmem [resolvable:$true] %s71_s12 }
  0x36   :  { %s10587_s2 = scalar_lea.hbm %s11541_s3, 65536 }
  0x37   :  { %p10588_p10 = scmp.ne.s32.totalorder %s11541_s3, %s10587_s2  ;;  %p10591_p11 = scmp.lt.u32.totalorder %s10587_s2, %s11541_s3 }
  0x39   :  { %p10593_p12 = pnand %p10591_p11, %p10588_p10 }
  0x3b   :  { %10596 = shalt.err (!%p10593_p12)
}
  0x3c   :  { %s10597_s1 = scalar_lea.vmem %s50_s30, 65536  ;;  %p10602_p0 = scmp.lt.s32.totalorder %s50_s30, %s50_s30 }
  0x3d   :  { %p10598_p13 = scmp.ne.s32.totalorder %s50_s30, %s10597_s1  ;;  %p10603_p1 = scmp.lt.s32.totalorder %s10597_s1, %s10597_s1 }
  0x3f   :  { %p10604_p2 = por %p10603_p1, %p10602_p0 }
  0x41   :  { %p10605_p3 = pnand %p10604_p2, %p10598_p13 }
  0x43   :  { %10608 = shalt.err (!%p10605_p3)
}
  0x44   :  { %55 = dma.hbm_to_vmem [thread:$0]  %s11541_s3, 65536, %s50_s30, [#allocation5], %s10664_s4, %s10664_s4, %s10665_s16  }
  0x45   :  { %s10609_s24 = scalar_lea.hbm %s11543_s5, 8192 }
  0x46   :  { %p10610_p4 = scmp.ne.s32.totalorder %s11543_s5, %s10609_s24  ;;  %p10613_p5 = scmp.lt.u32.totalorder %s10609_s24, %s11543_s5 }
  0x48   :  { %p10615_p6 = pnand %p10613_p5, %p10610_p4 }
  0x4a   :  { %10618 = shalt.err (!%p10615_p6)
}
  0x4b   :  { %s10619_s29 = scalar_lea.vmem %s72_s12, 8192  ;;  %p10624_p8 = scmp.lt.s32.totalorder %s72_s12, %s72_s12 }
  0x4c   :  { %p10620_p7 = scmp.ne.s32.totalorder %s72_s12, %s10619_s29  ;;  %p10625_p9 = scmp.lt.s32.totalorder %s10619_s29, %s10619_s29 }
  0x4e   :  { %p10626_p10 = por %p10625_p9, %p10624_p8 }
  0x50   :  { %p10627_p11 = pnand %p10626_p10, %p10620_p7 }
  0x52   :  { %10630 = shalt.err (!%p10627_p11)
}
  0x53   :  { %s10668_s3 = smov 64   ;;  %s10669_s4 = smov 4  }
  0x54   :  { %77 = dma.hbm_to_vmem [thread:$0]  %s11543_s5, 8192, %s72_s12, [#allocation8], %s10668_s3, %s10668_s3, %s10669_s4  }
  0x55   :  { %s10670_s11 = smov [#allocation10]   ;;  %s10631_s14 = scalar_lea.hbm %s11544_s6, 16 }
  0x56   :  { %s84_s13 = sshll.u32 %s10670_s11, 4  ;;  %p10632_p12 = scmp.ne.s32.totalorder %s11544_s6, %s10631_s14  ;;  %s85_s13 = int_to_ptr.vmem [resolvable:$true] %s84_s13 }
  0x57   :  { %p10635_p13 = scmp.lt.u32.totalorder %s10631_s14, %s11544_s6 }
  0x59   :  { %p10637_p0 = pnand %p10635_p13, %p10632_p12 }
  0x5b   :  { %10640 = shalt.err (!%p10637_p0)
}
  0x5c   :  { %s10641_s18 = scalar_lea.vmem %s85_s13, 16  ;;  %s10645_s5 = scalar_lea.vmem %s85_s13, 32 }
  0x5d   :  { %p10642_p1 = scmp.ne.s32.totalorder %s85_s13, %s10641_s18  ;;  %p10646_p2 = scmp.lt.s32.totalorder %s85_s13, %s85_s13 }
  0x5e   :  { %p10647_p3 = scmp.lt.s32.totalorder %s10645_s5, %s10641_s18 }
  0x60   :  { %p10648_p4 = por %p10647_p3, %p10646_p2 }
  0x62   :  { %p10649_p5 = pnand %p10648_p4, %p10642_p1 }
  0x64   :  { %10652 = shalt.err (!%p10649_p5)
}
  0x65   :  { %87 = dma.hbm_to_vmem [thread:$0]  %s11544_s6, 16, %s85_s13, [#allocation11]  }
  0x66   :  { %10653 = dma.done.wait [#allocation3], 57344  }
  0x67   :  { %10654 = vsyncadd [#allocation3], 4294909952 }
  0x68   :  { %10655 = dma.done.wait [#allocation5], 65664  }
  0x69   :  { %10656 = vsyncadd [#allocation5], 4294901632 }
  0x6a   :  { %10657 = dma.done.wait [#allocation8], 8320  }
  0x6b   :  { %10658 = vsyncadd [#allocation8], 4294958976 }
  0x6c   :  { %10659 = dma.done.wait [#allocation11], 16  }
  0x6d   :  { %10660 = vsyncadd [#allocation11], 4294967280  ;;  %v115_v0 = vld [vmem:[#allocation2] sm:$0xff]  ;;  %v116_v2 = vld [vmem:[#allocation2 + $0x8] sm:$0xff] }
  0x6e   :  { %v119_v1 = vld [vmem:[#allocation2 + $0x20] sm:$0xff]  ;;  %v120_v4 = vld [vmem:[#allocation2 + $0x28] sm:$0xff] }
  0x6f   :  { %v9038_v3 = vcombine.high %v115_v0, %v119_v1  ;;  %v9037_v5 = vcombine.low %v115_v0, %v119_v1  ;;  %v123_v6 = vld [vmem:[#allocation2 + $0x40] sm:$0xff]  ;;  %v9040_v8 = vcombine.high %v116_v2, %v120_v4  ;;  %v9039_v9 = vcombine.low %v116_v2, %v120_v4  ;;  %v124_v11 = vld [vmem:[#allocation2 + $0x48] sm:$0xff] }
  0x70   :  { %v127_v7 = vld [vmem:[#allocation2 + $0x60] sm:$0xff]  ;;  %v128_v12 = vld [vmem:[#allocation2 + $0x68] sm:$0xff] }
  0x71   :  { %v9046_v10 = vcombine.high %v123_v6, %v127_v7  ;;  %v131_v13 = vld [vmem:[#allocation2 + $0x80] sm:$0xff]  ;;  %2881 = vmatprep.subr.bf16.mxu0 %v9038_v3  ;;  %v9048_v14 = vcombine.high %v124_v11, %v128_v12  ;;  %v132_v16 = vld [vmem:[#allocation2 + $0x88] sm:$0xff]  ;;  %3053 = vmatprep.subr.bf16.mxu1 %v9040_v8  ;;  %v9045_v18 = vcombine.low %v123_v6, %v127_v7 }
  0x72   :  { %v135_v15 = vld [vmem:[#allocation2 + $0xa0] sm:$0xff]  ;;  %v136_v17 = vld [vmem:[#allocation2 + $0xa8] sm:$0xff]  ;;  %2882 = vmatpush1.bf16.msra.mxu0 %v9037_v5  ;;  %3054 = vmatpush1.bf16.msra.mxu1 %v9039_v9  ;;  %v9047_v19 = vcombine.low %v124_v11, %v128_v12 }
  0x73   :  { %2883 = vmatprep.subr.bf16.mxu0 %v9046_v10  ;;  %v9054_v20 = vcombine.high %v131_v13, %v135_v15  ;;  %3055 = vmatprep.subr.bf16.mxu1 %v9048_v14  ;;  %v9056_v21 = vcombine.high %v132_v16, %v136_v17  ;;  %v139_v22 = vld [vmem:[#allocation2 + $0xc0] sm:$0xff]  ;;  %v140_v24 = vld [vmem:[#allocation2 + $0xc8] sm:$0xff]  ;;  %v9053_v26 = vcombine.low %v131_v13, %v135_v15 }
  0x74   :  { %v143_v23 = vld [vmem:[#allocation2 + $0xe0] sm:$0xff]  ;;  %v144_v25 = vld [vmem:[#allocation2 + $0xe8] sm:$0xff]  ;;  %v9055_v27 = vcombine.low %v132_v16, %v136_v17 }
  0x75   :  { %v9062_v28 = vcombine.high %v139_v22, %v143_v23  ;;  %v9064_v29 = vcombine.high %v140_v24, %v144_v25  ;;  %v147_v30 = vld [vmem:[#allocation2 + $0x100] sm:$0xff]  ;;  %v148_v32 = vld [vmem:[#allocation2 + $0x108] sm:$0xff]  ;;  %v9061_v34 = vcombine.low %v139_v22, %v143_v23  ;;  %v9063_v35 = vcombine.low %v140_v24, %v144_v25 }
  0x76   :  { %2884 = vmatpush1.bf16.msra.mxu0 %v9045_v18  ;;  %3056 = vmatpush1.bf16.msra.mxu1 %v9047_v19  ;;  %v151_v31 = vld [vmem:[#allocation2 + $0x120] sm:$0xff]  ;;  %v152_v33 = vld [vmem:[#allocation2 + $0x128] sm:$0xff] }
  0x77   :  { %2885 = vmatprep.subr.bf16.mxu0 %v9054_v20  ;;  %3057 = vmatprep.subr.bf16.mxu1 %v9056_v21  ;;  %v9070_v36 = vcombine.high %v147_v30, %v151_v31  ;;  %v9072_v37 = vcombine.high %v148_v32, %v152_v33  ;;  %v155_v38 = vld [vmem:[#allocation2 + $0x140] sm:$0xff]  ;;  %v156_v40 = vld [vmem:[#allocation2 + $0x148] sm:$0xff]  ;;  %v9069_v42 = vcombine.low %v147_v30, %v151_v31 }
  0x78   :  { %v159_v39 = vld [vmem:[#allocation2 + $0x160] sm:$0xff]  ;;  %v160_v41 = vld [vmem:[#allocation2 + $0x168] sm:$0xff]  ;;  %v9071_v43 = vcombine.low %v148_v32, %v152_v33 }
  0x79   :  { %v9078_v44 = vcombine.high %v155_v38, %v159_v39  ;;  %v9080_v45 = vcombine.high %v156_v40, %v160_v41  ;;  %v163_v46 = vld [vmem:[#allocation2 + $0x180] sm:$0xff]  ;;  %v164_v48 = vld [vmem:[#allocation2 + $0x188] sm:$0xff]  ;;  %v9077_v50 = vcombine.low %v155_v38, %v159_v39  ;;  %v9079_v51 = vcombine.low %v156_v40, %v160_v41 }
  0x7a   :  { %2886 = vmatpush1.bf16.msra.mxu0 %v9053_v26  ;;  %3058 = vmatpush1.bf16.msra.mxu1 %v9055_v27  ;;  %v167_v47 = vld [vmem:[#allocation2 + $0x1a0] sm:$0xff]  ;;  %v168_v49 = vld [vmem:[#allocation2 + $0x1a8] sm:$0xff] }
  0x7b   :  { %2887 = vmatprep.subr.bf16.mxu0 %v9062_v28  ;;  %3059 = vmatprep.subr.bf16.mxu1 %v9064_v29  ;;  %v9086_v52 = vcombine.high %v163_v46, %v167_v47  ;;  %v9088_v53 = vcombine.high %v164_v48, %v168_v49  ;;  %v171_v54 = vld [vmem:[#allocation2 + $0x1c0] sm:$0xff]  ;;  %v172_v57 = vld [vmem:[#allocation2 + $0x1c8] sm:$0xff]  ;;  %v9085_v59 = vcombine.low %v163_v46, %v167_v47 }
  0x7c   :  { %v175_v55 = vld [vmem:[#allocation2 + $0x1e0] sm:$0xff]  ;;  %v176_v58 = vld [vmem:[#allocation2 + $0x1e8] sm:$0xff]  ;;  %v9087_v60 = vcombine.low %v164_v48, %v168_v49 }
  0x7d   :  { %v10292_v56 = vld [vmem:[%s11538_s0 + $0x4] ss:$28 sps:$4 sm:$0xff]   ;;  %v9094_v61 = vcombine.high %v171_v54, %v175_v55  ;;  %v9096_v62 = vcombine.high %v172_v57, %v176_v58  ;;  %v180_v1 = vld [vmem:[#allocation2 + $0x208] sm:$0xff]  ;;  %v9093_v3 = vcombine.low %v171_v54, %v175_v55  ;;  %v9095_v4 = vcombine.low %v172_v57, %v176_v58 }
  0x7e   :  { %2888 = vmatpush1.bf16.msra.mxu0 %v9061_v34  ;;  %3060 = vmatpush1.bf16.msra.mxu1 %v9063_v35  ;;  %v179_v63 = vld [vmem:[#allocation2 + $0x200] sm:$0xff]  ;;  %v184_v2 = vld [vmem:[#allocation2 + $0x228] sm:$0xff] }
  0x7f   :  { %2889 = vmatprep.subr.bf16.mxu0 %v9070_v36  ;;  %3061 = vmatprep.subr.bf16.mxu1 %v9072_v37  ;;  %v183_v0 = vld [vmem:[#allocation2 + $0x220] sm:$0xff]  ;;  %v9104_v6 = vcombine.high %v180_v1, %v184_v2  ;;  %v188_v9 = vld [vmem:[#allocation2 + $0x248] sm:$0xff]  ;;  %v9103_v12 = vcombine.low %v180_v1, %v184_v2 }
  0x80   :  { %2913 = vmatprep.mubr.bf16.mxu0 %v10292_v56  ;;  %3085 = vmatprep.mubr.bf16.mxu1 %v10292_v56  ;;  %v9102_v5 = vcombine.high %v179_v63, %v183_v0  ;;  %v187_v7 = vld [vmem:[#allocation2 + $0x240] sm:$0xff]  ;;  %v192_v10 = vld [vmem:[#allocation2 + $0x268] sm:$0xff]  ;;  %v9101_v11 = vcombine.low %v179_v63, %v183_v0 }
  0x81   :  { %v191_v8 = vld [vmem:[#allocation2 + $0x260] sm:$0xff]  ;;  %v9112_v14 = vcombine.high %v188_v9, %v192_v10  ;;  %v196_v17 = vld [vmem:[#allocation2 + $0x288] sm:$0xff]  ;;  %v9111_v20 = vcombine.low %v188_v9, %v192_v10 }
  0x82   :  { %2890 = vmatpush1.bf16.msra.mxu0 %v9069_v42  ;;  %3062 = vmatpush1.bf16.msra.mxu1 %v9071_v43  ;;  %v9110_v13 = vcombine.high %v187_v7, %v191_v8  ;;  %v195_v15 = vld [vmem:[#allocation2 + $0x280] sm:$0xff]  ;;  %v200_v18 = vld [vmem:[#allocation2 + $0x2a8] sm:$0xff]  ;;  %v9109_v19 = vcombine.low %v187_v7, %v191_v8 }
  0x83   :  { %2891 = vmatprep.subr.bf16.mxu0 %v9078_v44  ;;  %3063 = vmatprep.subr.bf16.mxu1 %v9080_v45  ;;  %v199_v16 = vld [vmem:[#allocation2 + $0x2a0] sm:$0xff]  ;;  %v9120_v22 = vcombine.high %v196_v17, %v200_v18  ;;  %v204_v25 = vld [vmem:[#allocation2 + $0x2c8] sm:$0xff]  ;;  %v9119_v28 = vcombine.low %v196_v17, %v200_v18 }
  0x84   :  { %v9118_v21 = vcombine.high %v195_v15, %v199_v16  ;;  %v203_v23 = vld [vmem:[#allocation2 + $0x2c0] sm:$0xff]  ;;  %v208_v26 = vld [vmem:[#allocation2 + $0x2e8] sm:$0xff]  ;;  %v9117_v27 = vcombine.low %v195_v15, %v199_v16 }
  0x85   :  { %v207_v24 = vld [vmem:[#allocation2 + $0x2e0] sm:$0xff]  ;;  %v9128_v30 = vcombine.high %v204_v25, %v208_v26  ;;  %v212_v33 = vld [vmem:[#allocation2 + $0x308] sm:$0xff]  ;;  %v9127_v36 = vcombine.low %v204_v25, %v208_v26 }
  0x86   :  { %2892 = vmatpush1.bf16.msra.mxu0 %v9077_v50  ;;  %3064 = vmatpush1.bf16.msra.mxu1 %v9079_v51  ;;  %v9126_v29 = vcombine.high %v203_v23, %v207_v24  ;;  %v211_v31 = vld [vmem:[#allocation2 + $0x300] sm:$0xff]  ;;  %v216_v34 = vld [vmem:[#allocation2 + $0x328] sm:$0xff]  ;;  %v9125_v35 = vcombine.low %v203_v23, %v207_v24 }
  0x87   :  { %2893 = vmatprep.subr.bf16.mxu0 %v9086_v52  ;;  %3065 = vmatprep.subr.bf16.mxu1 %v9088_v53  ;;  %v215_v32 = vld [vmem:[#allocation2 + $0x320] sm:$0xff]  ;;  %v9136_v38 = vcombine.high %v212_v33, %v216_v34  ;;  %v220_v41 = vld [vmem:[#allocation2 + $0x348] sm:$0xff]  ;;  %v9135_v44 = vcombine.low %v212_v33, %v216_v34 }
  0x88   :  { %v9134_v37 = vcombine.high %v211_v31, %v215_v32  ;;  %v219_v39 = vld [vmem:[#allocation2 + $0x340] sm:$0xff]  ;;  %v224_v42 = vld [vmem:[#allocation2 + $0x368] sm:$0xff]  ;;  %v9133_v43 = vcombine.low %v211_v31, %v215_v32 }
  0x89   :  { %v223_v40 = vld [vmem:[#allocation2 + $0x360] sm:$0xff]  ;;  %v9144_v46 = vcombine.high %v220_v41, %v224_v42  ;;  %v228_v49 = vld [vmem:[#allocation2 + $0x388] sm:$0xff]  ;;  %v9143_v52 = vcombine.low %v220_v41, %v224_v42 }
  0x8a   :  { %2894 = vmatpush1.bf16.msra.mxu0 %v9085_v59  ;;  %3066 = vmatpush1.bf16.msra.mxu1 %v9087_v60  ;;  %v9142_v45 = vcombine.high %v219_v39, %v223_v40  ;;  %v227_v47 = vld [vmem:[#allocation2 + $0x380] sm:$0xff]  ;;  %v232_v50 = vld [vmem:[#allocation2 + $0x3a8] sm:$0xff]  ;;  %v9141_v51 = vcombine.low %v219_v39, %v223_v40 }
  0x8b   :  { %2895 = vmatprep.subr.bf16.mxu0 %v9094_v61  ;;  %3067 = vmatprep.subr.bf16.mxu1 %v9096_v62  ;;  %v231_v48 = vld [vmem:[#allocation2 + $0x3a0] sm:$0xff]  ;;  %v9152_v54 = vcombine.high %v228_v49, %v232_v50  ;;  %v236_v57 = vld [vmem:[#allocation2 + $0x3c8] sm:$0xff]  ;;  %v9151_v60 = vcombine.low %v228_v49, %v232_v50 }
  0x8c   :  { %v9150_v53 = vcombine.high %v227_v47, %v231_v48  ;;  %v235_v55 = vld [vmem:[#allocation2 + $0x3c0] sm:$0xff]  ;;  %v240_v58 = vld [vmem:[#allocation2 + $0x3e8] sm:$0xff]  ;;  %v9149_v59 = vcombine.low %v227_v47, %v231_v48 }
  0x8d   :  { %v239_v56 = vld [vmem:[#allocation2 + $0x3e0] sm:$0xff]  ;;  %v9160_v62 = vcombine.high %v236_v57, %v240_v58  ;;  %v244_v1 = vld [vmem:[#allocation2 + $0x408] sm:$0xff] }
  0x8e   :  { %2896 = vmatpush1.bf16.msra.mxu0 %v9093_v3  ;;  %3068 = vmatpush1.bf16.msra.mxu1 %v9095_v4  ;;  %v9158_v61 = vcombine.high %v235_v55, %v239_v56  ;;  %v243_v63 = vld [vmem:[#allocation2 + $0x400] sm:$0xff]  ;;  %v248_v2 = vld [vmem:[#allocation2 + $0x428] sm:$0xff]  ;;  %v9157_v3 = vcombine.low %v235_v55, %v239_v56  ;;  %v9159_v4 = vcombine.low %v236_v57, %v240_v58 }
  0x8f   :  { %2897 = vmatprep.subr.bf16.mxu0 %v9102_v5  ;;  %3069 = vmatprep.subr.bf16.mxu1 %v9104_v6  ;;  %v247_v0 = vld [vmem:[#allocation2 + $0x420] sm:$0xff]  ;;  %v9168_v6 = vcombine.high %v244_v1, %v248_v2  ;;  %v252_v10 = vld [vmem:[#allocation2 + $0x448] sm:$0xff] }
  0x90   :  { %v9166_v5 = vcombine.high %v243_v63, %v247_v0  ;;  %v251_v7 = vld [vmem:[#allocation2 + $0x440] sm:$0xff]  ;;  %v10295_v18 = vld [vmem:[%s11538_s0 + $0xc] ss:$28 sps:$4 sm:$0xff]  }
  0x91   :  { %v255_v8 = vld [vmem:[#allocation2 + $0x460] sm:$0xff]  ;;  %v276_v34 = vld [vmem:[#allocation2 + $0x508] sm:$0xff] }
  0x92   :  { %2898 = vmatpush1.bf16.msra.mxu0 %v9101_v11  ;;  %3070 = vmatpush1.bf16.msra.mxu1 %v9103_v12  ;;  %v10294_v9 = vld [vmem:[%s11538_s0] ss:$28 sps:$4 sm:$0xff]   ;;  %v256_v11 = vld [vmem:[#allocation2 + $0x468] sm:$0xff]  ;;  %v9165_v12 = vcombine.low %v243_v63, %v247_v0 }
  0x93   :  { %2899 = vmatprep.subr.bf16.mxu0 %v9110_v13  ;;  %3071 = vmatprep.subr.bf16.mxu1 %v9112_v14  ;;  %v9167_v13 = vcombine.low %v244_v1, %v248_v2  ;;  %v9174_v14 = vcombine.high %v251_v7, %v255_v8  ;;  %v259_v15 = vld [vmem:[#allocation2 + $0x480] sm:$0xff]  ;;  %v9176_v16 = vcombine.high %v252_v10, %v256_v11  ;;  %v284_v42 = vld [vmem:[#allocation2 + $0x548] sm:$0xff] }
  0x94   :  { %v263_v17 = vld [vmem:[#allocation2 + $0x4a0] sm:$0xff]  ;;  %v292_v50 = vld [vmem:[#allocation2 + $0x588] sm:$0xff] }
  0x95   :  { %v9182_v23 = vcombine.high %v259_v15, %v263_v17  ;;  %v267_v24 = vld [vmem:[#allocation2 + $0x4c0] sm:$0xff]  ;;  %v300_v58 = vld [vmem:[#allocation2 + $0x5c8] sm:$0xff] }
  0x96   :  { %2900 = vmatpush1.bf16.msra.mxu0 %v9109_v19  ;;  %3072 = vmatpush1.bf16.msra.mxu1 %v9111_v20  ;;  %v260_v19 = vld [vmem:[#allocation2 + $0x488] sm:$0xff]  ;;  %v271_v25 = vld [vmem:[#allocation2 + $0x4e0] sm:$0xff] }
  0x97   :  { %2901 = vmatprep.subr.bf16.mxu0 %v9118_v21  ;;  %3073 = vmatprep.subr.bf16.mxu1 %v9120_v22  ;;  %v264_v20 = vld [vmem:[#allocation2 + $0x4a8] sm:$0xff]  ;;  %v9173_v21 = vcombine.low %v251_v7, %v255_v8  ;;  %v9175_v22 = vcombine.low %v252_v10, %v256_v11  ;;  %v9190_v31 = vcombine.high %v267_v24, %v271_v25  ;;  %v275_v32 = vld [vmem:[#allocation2 + $0x500] sm:$0xff] }
  0x98   :  { %v9184_v26 = vcombine.high %v260_v19, %v264_v20  ;;  %v279_v33 = vld [vmem:[#allocation2 + $0x520] sm:$0xff]  ;;  %v308_v2 = vld [vmem:[#allocation2 + $0x608] sm:$0xff] }
  0x99   :  { %v9198_v39 = vcombine.high %v275_v32, %v279_v33  ;;  %v283_v40 = vld [vmem:[#allocation2 + $0x540] sm:$0xff]  ;;  %v316_v10 = vld [vmem:[#allocation2 + $0x648] sm:$0xff] }
  0x9a   :  { %2902 = vmatpush1.bf16.msra.mxu0 %v9117_v27  ;;  %3074 = vmatpush1.bf16.msra.mxu1 %v9119_v28  ;;  %v268_v27 = vld [vmem:[#allocation2 + $0x4c8] sm:$0xff]  ;;  %v287_v41 = vld [vmem:[#allocation2 + $0x560] sm:$0xff] }
  0x9b   :  { %2903 = vmatprep.subr.bf16.mxu0 %v9126_v29  ;;  %3075 = vmatprep.subr.bf16.mxu1 %v9128_v30  ;;  %v272_v28 = vld [vmem:[#allocation2 + $0x4e8] sm:$0xff]  ;;  %v9181_v29 = vcombine.low %v259_v15, %v263_v17  ;;  %v9183_v30 = vcombine.low %v260_v19, %v264_v20  ;;  %v9206_v47 = vcombine.high %v283_v40, %v287_v41  ;;  %v291_v48 = vld [vmem:[#allocation2 + $0x580] sm:$0xff] }
  0x9c   :  { %v295_v49 = vld [vmem:[#allocation2 + $0x5a0] sm:$0xff]  ;;  %v324_v19 = vld [vmem:[#allocation2 + $0x688] sm:$0xff] }
  0x9d   :  { %v9214_v55 = vcombine.high %v291_v48, %v295_v49  ;;  %v299_v56 = vld [vmem:[#allocation2 + $0x5c0] sm:$0xff]  ;;  %v328_v20 = vld [vmem:[#allocation2 + $0x6a8] sm:$0xff] }
  0x9e   :  { %2904 = vmatpush1.bf16.msra.mxu0 %v9125_v35  ;;  %3076 = vmatpush1.bf16.msra.mxu1 %v9127_v36  ;;  %v9192_v35 = vcombine.high %v268_v27, %v272_v28  ;;  %v280_v36 = vld [vmem:[#allocation2 + $0x528] sm:$0xff]  ;;  %v303_v57 = vld [vmem:[#allocation2 + $0x5e0] sm:$0xff] }
  0x9f   :  { %2905 = vmatprep.subr.bf16.mxu0 %v9134_v37  ;;  %3077 = vmatprep.subr.bf16.mxu1 %v9136_v38  ;;  %v9189_v37 = vcombine.low %v267_v24, %v271_v25  ;;  %v9191_v38 = vcombine.low %v268_v27, %v272_v28  ;;  %v9222_v63 = vcombine.high %v299_v56, %v303_v57  ;;  %v307_v0 = vld [vmem:[#allocation2 + $0x600] sm:$0xff]  ;;  %v336_v28 = vld [vmem:[#allocation2 + $0x6e8] sm:$0xff] }
  0xa0   :  { %v311_v1 = vld [vmem:[#allocation2 + $0x620] sm:$0xff]  ;;  %v9248_v27 = vcombine.high %v324_v19, %v328_v20 }
  0xa1   :  { %v9230_v7 = vcombine.high %v307_v0, %v311_v1  ;;  %v315_v8 = vld [vmem:[#allocation2 + $0x640] sm:$0xff] }
  0xa2   :  { %2906 = vmatpush1.bf16.msra.mxu0 %v9133_v43  ;;  %3078 = vmatpush1.bf16.msra.mxu1 %v9135_v44  ;;  %v9200_v43 = vcombine.high %v276_v34, %v280_v36  ;;  %v288_v44 = vld [vmem:[#allocation2 + $0x568] sm:$0xff]  ;;  %v327_v17 = vld [vmem:[#allocation2 + $0x6a0] sm:$0xff] }
  0xa3   :  { %2907 = vmatprep.subr.bf16.mxu0 %v9142_v45  ;;  %3079 = vmatprep.subr.bf16.mxu1 %v9144_v46  ;;  %v9197_v45 = vcombine.low %v275_v32, %v279_v33  ;;  %v9199_v46 = vcombine.low %v276_v34, %v280_v36  ;;  %v331_v24 = vld [vmem:[#allocation2 + $0x6c0] sm:$0xff]  ;;  %v340_v34 = vld [vmem:[#allocation2 + $0x708] sm:$0xff] }
  0xa4   :  { %v335_v25 = vld [vmem:[#allocation2 + $0x6e0] sm:$0xff]  ;;  %v344_v36 = vld [vmem:[#allocation2 + $0x728] sm:$0xff] }
  0xa5   :  { %v339_v32 = vld [vmem:[#allocation2 + $0x700] sm:$0xff] }
  0xa6   :  { %2908 = vmatpush1.bf16.msra.mxu0 %v9141_v51  ;;  %3080 = vmatpush1.bf16.msra.mxu1 %v9143_v52  ;;  %v9208_v51 = vcombine.high %v284_v42, %v288_v44  ;;  %v296_v52 = vld [vmem:[#allocation2 + $0x5a8] sm:$0xff]  ;;  %v343_v33 = vld [vmem:[#allocation2 + $0x720] sm:$0xff] }
  0xa7   :  { %2909 = vmatprep.subr.bf16.mxu0 %v9150_v53  ;;  %3081 = vmatprep.subr.bf16.mxu1 %v9152_v54  ;;  %v9205_v53 = vcombine.low %v283_v40, %v287_v41  ;;  %v9207_v54 = vcombine.low %v284_v42, %v288_v44  ;;  %v347_v40 = vld [vmem:[#allocation2 + $0x740] sm:$0xff]  ;;  %v348_v42 = vld [vmem:[#allocation2 + $0x748] sm:$0xff] }
  0xa8   :  { %v351_v41 = vld [vmem:[#allocation2 + $0x760] sm:$0xff]  ;;  %v352_v44 = vld [vmem:[#allocation2 + $0x768] sm:$0xff] }
  0xaa   :  { %2910 = vmatpush1.bf16.msra.mxu0 %v9149_v59  ;;  %3082 = vmatpush1.bf16.msra.mxu1 %v9151_v60  ;;  %v9216_v59 = vcombine.high %v292_v50, %v296_v52  ;;  %v304_v60 = vld [vmem:[#allocation2 + $0x5e8] sm:$0xff] }
  0xab   :  { %2911 = vmatprep.subr.bf16.mxu0 %v9158_v61  ;;  %3083 = vmatprep.subr.bf16.mxu1 %v9160_v62  ;;  %v9213_v61 = vcombine.low %v291_v48, %v295_v49  ;;  %v9215_v62 = vcombine.low %v292_v50, %v296_v52  ;;  %v355_v48 = vld [vmem:[#allocation2 + $0x780] sm:$0xff]  ;;  %v356_v50 = vld [vmem:[#allocation2 + $0x788] sm:$0xff] }
  0xac   :  { %v359_v49 = vld [vmem:[#allocation2 + $0x7a0] sm:$0xff]  ;;  %v360_v52 = vld [vmem:[#allocation2 + $0x7a8] sm:$0xff] }
  0xae   :  { %2912 = vmatpush1.bf16.msra.mxu0 %v9157_v3  ;;  %3084 = vmatpush1.bf16.msra.mxu1 %v9159_v4  ;;  %v9224_v3 = vcombine.high %v300_v58, %v304_v60  ;;  %v312_v4 = vld [vmem:[#allocation2 + $0x628] sm:$0xff] }
  0xaf   :  { %2924 = vmatprep.subr.bf16.mxu0 %v9166_v5  ;;  %3096 = vmatprep.subr.bf16.mxu1 %v9168_v6  ;;  %v9221_v5 = vcombine.low %v299_v56, %v303_v57  ;;  %v9223_v6 = vcombine.low %v300_v58, %v304_v60  ;;  %v9232_v11 = vcombine.high %v308_v2, %v312_v4  ;;  %v363_v56 = vld [vmem:[#allocation2 + $0x7c0] sm:$0xff]  ;;  %v364_v58 = vld [vmem:[#allocation2 + $0x7c8] sm:$0xff] }
  0xb0   :  { %v367_v57 = vld [vmem:[#allocation2 + $0x7e0] sm:$0xff]  ;;  %v368_v60 = vld [vmem:[#allocation2 + $0x7e8] sm:$0xff] }
  0xb1   :  { %2914 = vmatmul.mubr.bf16.vlgmr.msra.gmra.mrb[0].mxu0 %v10294_v9  ;;  %3086 = vmatmul.mubr.bf16.vlgmr.msra.gmra.mrb[0].mxu1 %v10294_v9  ;;  %v319_v9 = vld [vmem:[#allocation2 + $0x660] sm:$0xff] }
  0xb2   :  { %2925 = vmatpush1.bf16.msra.mxu0 %v9165_v12  ;;  %3097 = vmatpush1.bf16.msra.mxu1 %v9167_v13  ;;  %v320_v12 = vld [vmem:[#allocation2 + $0x668] sm:$0xff]  ;;  %v9229_v13 = vcombine.low %v307_v0, %v311_v1  ;;  %v9238_v15 = vcombine.high %v315_v8, %v319_v9  ;;  %v371_v0 = vld [vmem:[#allocation2 + $0x800] sm:$0xff] }
  0xb3   :  { %2926 = vmatprep.subr.bf16.mxu0 %v9174_v14  ;;  %3098 = vmatprep.subr.bf16.mxu1 %v9176_v16  ;;  %v9231_v14 = vcombine.low %v308_v2, %v312_v4  ;;  %v323_v16 = vld [vmem:[#allocation2 + $0x680] sm:$0xff]  ;;  %v372_v2 = vld [vmem:[#allocation2 + $0x808] sm:$0xff] }
  0xb4   :  { %2956 = vmatprep.mubr.bf16.mxu0 %v10295_v18  ;;  %3128 = vmatprep.mubr.bf16.mxu1 %v10295_v18  ;;  %v9240_v18 = vcombine.high %v316_v10, %v320_v12  ;;  %v375_v1 = vld [vmem:[#allocation2 + $0x820] sm:$0xff]  ;;  %v376_v4 = vld [vmem:[#allocation2 + $0x828] sm:$0xff] }
  0xb6   :  { %2927 = vmatpush1.bf16.msra.mxu0 %v9173_v21  ;;  %3099 = vmatpush1.bf16.msra.mxu1 %v9175_v22  ;;  %v9237_v21 = vcombine.low %v315_v8, %v319_v9  ;;  %v9239_v22 = vcombine.low %v316_v10, %v320_v12  ;;  %v10297_v8 = vld [vmem:[%s11538_s0 + $0x8] ss:$28 sps:$4 sm:$0xff]   ;;  %v9296_v12 = vcombine.high %v372_v2, %v376_v4 }
  0xb7   :  { %2928 = vmatprep.subr.bf16.mxu0 %v9182_v23  ;;  %3100 = vmatprep.subr.bf16.mxu1 %v9184_v26  ;;  %v9246_v23 = vcombine.high %v323_v16, %v327_v17  ;;  %v332_v26 = vld [vmem:[#allocation2 + $0x6c8] sm:$0xff]  ;;  %v379_v9 = vld [vmem:[#allocation2 + $0x840] sm:$0xff] }
  0xb8   :  { %v383_v10 = vld [vmem:[#allocation2 + $0x860] sm:$0xff] }
  0xba   :  { %2929 = vmatpush1.bf16.msra.mxu0 %v9181_v29  ;;  %3101 = vmatpush1.bf16.msra.mxu1 %v9183_v30  ;;  %v9245_v29 = vcombine.low %v323_v16, %v327_v17  ;;  %v9247_v30 = vcombine.low %v324_v19, %v328_v20  ;;  %v9295_v16 = vcombine.low %v372_v2, %v376_v4  ;;  %v388_v19 = vld [vmem:[#allocation2 + $0x888] sm:$0xff]  ;;  %v439_v4 = vld [vmem:[#allocation2 + $0xa20] sm:$0xff] }
  0xbb   :  { %2930 = vmatprep.subr.bf16.mxu0 %v9190_v31  ;;  %3102 = vmatprep.subr.bf16.mxu1 %v9192_v35  ;;  %v9254_v31 = vcombine.high %v331_v24, %v335_v25  ;;  %v9256_v35 = vcombine.high %v332_v26, %v336_v28  ;;  %v9302_v17 = vcombine.high %v379_v9, %v383_v10  ;;  %v392_v20 = vld [vmem:[#allocation2 + $0x8a8] sm:$0xff] }
  0xbe   :  { %2931 = vmatpush1.bf16.msra.mxu0 %v9189_v37  ;;  %3103 = vmatpush1.bf16.msra.mxu1 %v9191_v38  ;;  %v9253_v37 = vcombine.low %v331_v24, %v335_v25  ;;  %v9255_v38 = vcombine.low %v332_v26, %v336_v28  ;;  %v395_v26 = vld [vmem:[#allocation2 + $0x8c0] sm:$0xff]  ;;  %v9312_v28 = vcombine.high %v388_v19, %v392_v20 }
  0xbf   :  { %2932 = vmatprep.subr.bf16.mxu0 %v9198_v39  ;;  %3104 = vmatprep.subr.bf16.mxu1 %v9200_v43  ;;  %v9262_v39 = vcombine.high %v339_v32, %v343_v33  ;;  %v9264_v43 = vcombine.high %v340_v34, %v344_v36 }
  0xc2   :  { %2933 = vmatpush1.bf16.msra.mxu0 %v9197_v45  ;;  %3105 = vmatpush1.bf16.msra.mxu1 %v9199_v46  ;;  %v9261_v45 = vcombine.low %v339_v32, %v343_v33  ;;  %v9263_v46 = vcombine.low %v340_v34, %v344_v36  ;;  %v9311_v32 = vcombine.low %v388_v19, %v392_v20  ;;  %v407_v36 = vld [vmem:[#allocation2 + $0x920] sm:$0xff] }
  0xc3   :  { %2934 = vmatprep.subr.bf16.mxu0 %v9206_v47  ;;  %3106 = vmatprep.subr.bf16.mxu1 %v9208_v51  ;;  %v9270_v47 = vcombine.high %v347_v40, %v351_v41  ;;  %v9272_v51 = vcombine.high %v348_v42, %v352_v44  ;;  %v451_v19 = vld [vmem:[#allocation2 + $0xa80] sm:$0xff] }
  0xc4   :  { %v455_v20 = vld [vmem:[#allocation2 + $0xaa0] sm:$0xff] }
  0xc6   :  { %2935 = vmatpush1.bf16.msra.mxu0 %v9205_v53  ;;  %3107 = vmatpush1.bf16.msra.mxu1 %v9207_v54  ;;  %v9269_v53 = vcombine.low %v347_v40, %v351_v41  ;;  %v9271_v54 = vcombine.low %v348_v42, %v352_v44  ;;  %v415_v44 = vld [vmem:[#allocation2 + $0x960] sm:$0xff] }
  0xc7   :  { %2936 = vmatprep.subr.bf16.mxu0 %v9214_v55  ;;  %3108 = vmatprep.subr.bf16.mxu1 %v9216_v59  ;;  %v9278_v55 = vcombine.high %v355_v48, %v359_v49  ;;  %v9280_v59 = vcombine.high %v356_v50, %v360_v52 }
  0xca   :  { %2937 = vmatpush1.bf16.msra.mxu0 %v9213_v61  ;;  %3109 = vmatpush1.bf16.msra.mxu1 %v9215_v62  ;;  %v9277_v61 = vcombine.low %v355_v48, %v359_v49  ;;  %v9279_v62 = vcombine.low %v356_v50, %v360_v52  ;;  %v423_v52 = vld [vmem:[#allocation2 + $0x9a0] sm:$0xff] }
  0xcb   :  { %2938 = vmatprep.subr.bf16.mxu0 %v9222_v63  ;;  %3110 = vmatprep.subr.bf16.mxu1 %v9224_v3  ;;  %v9286_v63 = vcombine.high %v363_v56, %v367_v57  ;;  %v9288_v3 = vcombine.high %v364_v58, %v368_v60 }
  0xce   :  { %2939 = vmatpush1.bf16.msra.mxu0 %v9221_v5  ;;  %3111 = vmatpush1.bf16.msra.mxu1 %v9223_v6  ;;  %v9285_v5 = vcombine.low %v363_v56, %v367_v57  ;;  %v9287_v6 = vcombine.low %v364_v58, %v368_v60  ;;  %v431_v60 = vld [vmem:[#allocation2 + $0x9e0] sm:$0xff] }
  0xcf   :  { %2940 = vmatprep.subr.bf16.mxu0 %v9230_v7  ;;  %3112 = vmatprep.subr.bf16.mxu1 %v9232_v11  ;;  %v9294_v7 = vcombine.high %v371_v0, %v375_v1  ;;  %v380_v11 = vld [vmem:[#allocation2 + $0x848] sm:$0xff] }
  0xd2   :  { %2941 = vmatpush1.bf16.msra.mxu0 %v9229_v13  ;;  %3113 = vmatpush1.bf16.msra.mxu1 %v9231_v14  ;;  %v384_v13 = vld [vmem:[#allocation2 + $0x868] sm:$0xff]  ;;  %v9293_v14 = vcombine.low %v371_v0, %v375_v1 }
  0xd3   :  { %2942 = vmatprep.subr.bf16.mxu0 %v9238_v15  ;;  %3114 = vmatprep.subr.bf16.mxu1 %v9240_v18  ;;  %v387_v15 = vld [vmem:[#allocation2 + $0x880] sm:$0xff]  ;;  %v9303_v24 = vcombine.low %v380_v11, %v384_v13 }
  0xd4   :  { %v391_v18 = vld [vmem:[#allocation2 + $0x8a0] sm:$0xff] }
  0xd5   :  { %v9310_v25 = vcombine.high %v387_v15, %v391_v18 }
  0xd6   :  { %2943 = vmatpush1.bf16.msra.mxu0 %v9237_v21  ;;  %3115 = vmatpush1.bf16.msra.mxu1 %v9239_v22  ;;  %v9304_v21 = vcombine.high %v380_v11, %v384_v13  ;;  %v10298_v22 = vld [vmem:[%s11538_s0 + $0x14] ss:$28 sps:$4 sm:$0xff]   ;;  %v443_v11 = vld [vmem:[#allocation2 + $0xa40] sm:$0xff]  ;;  %v444_v13 = vld [vmem:[#allocation2 + $0xa48] sm:$0xff] }
  0xd7   :  { %2944 = vmatprep.subr.bf16.mxu0 %v9246_v23  ;;  %3116 = vmatprep.subr.bf16.mxu1 %v9248_v27  ;;  %v9301_v23 = vcombine.low %v379_v9, %v383_v10  ;;  %v399_v27 = vld [vmem:[#allocation2 + $0x8e0] sm:$0xff] }
  0xd8   :  { %v9318_v33 = vcombine.high %v395_v26, %v399_v27 }
  0xda   :  { %2945 = vmatpush1.bf16.msra.mxu0 %v9245_v29  ;;  %3117 = vmatpush1.bf16.msra.mxu1 %v9247_v30  ;;  %v396_v29 = vld [vmem:[#allocation2 + $0x8c8] sm:$0xff] }
  0xdb   :  { %2946 = vmatprep.subr.bf16.mxu0 %v9254_v31  ;;  %3118 = vmatprep.subr.bf16.mxu1 %v9256_v35  ;;  %v400_v30 = vld [vmem:[#allocation2 + $0x8e8] sm:$0xff]  ;;  %v9309_v31 = vcombine.low %v387_v15, %v391_v18  ;;  %v403_v35 = vld [vmem:[#allocation2 + $0x900] sm:$0xff] }
  0xdc   :  { %v9320_v34 = vcombine.high %v396_v29, %v400_v30  ;;  %v9319_v40 = vcombine.low %v396_v29, %v400_v30  ;;  %v9326_v41 = vcombine.high %v403_v35, %v407_v36  ;;  %v460_v29 = vld [vmem:[#allocation2 + $0xac8] sm:$0xff] }
  0xdd   :  { %v464_v30 = vld [vmem:[#allocation2 + $0xae8] sm:$0xff] }
  0xde   :  { %2947 = vmatpush1.bf16.msra.mxu0 %v9253_v37  ;;  %3119 = vmatpush1.bf16.msra.mxu1 %v9255_v38  ;;  %v404_v37 = vld [vmem:[#allocation2 + $0x908] sm:$0xff] }
  0xdf   :  { %2948 = vmatprep.subr.bf16.mxu0 %v9262_v39  ;;  %3120 = vmatprep.subr.bf16.mxu1 %v9264_v43  ;;  %v408_v38 = vld [vmem:[#allocation2 + $0x928] sm:$0xff]  ;;  %v9317_v39 = vcombine.low %v395_v26, %v399_v27  ;;  %v411_v43 = vld [vmem:[#allocation2 + $0x940] sm:$0xff] }
  0xe0   :  { %v9328_v42 = vcombine.high %v404_v37, %v408_v38  ;;  %v9327_v48 = vcombine.low %v404_v37, %v408_v38  ;;  %v9334_v49 = vcombine.high %v411_v43, %v415_v44  ;;  %v459_v27 = vld [vmem:[#allocation2 + $0xac0] sm:$0xff]  ;;  %v468_v37 = vld [vmem:[#allocation2 + $0xb08] sm:$0xff] }
  0xe1   :  { %v472_v38 = vld [vmem:[#allocation2 + $0xb28] sm:$0xff] }
  0xe2   :  { %2949 = vmatpush1.bf16.msra.mxu0 %v9261_v45  ;;  %3121 = vmatpush1.bf16.msra.mxu1 %v9263_v46  ;;  %v412_v45 = vld [vmem:[#allocation2 + $0x948] sm:$0xff] }
  0xe3   :  { %2950 = vmatprep.subr.bf16.mxu0 %v9270_v47  ;;  %3122 = vmatprep.subr.bf16.mxu1 %v9272_v51  ;;  %v416_v46 = vld [vmem:[#allocation2 + $0x968] sm:$0xff]  ;;  %v9325_v47 = vcombine.low %v403_v35, %v407_v36  ;;  %v419_v51 = vld [vmem:[#allocation2 + $0x980] sm:$0xff] }
  0xe4   :  { %v9336_v50 = vcombine.high %v412_v45, %v416_v46  ;;  %v9335_v56 = vcombine.low %v412_v45, %v416_v46  ;;  %v9342_v57 = vcombine.high %v419_v51, %v423_v52  ;;  %v467_v35 = vld [vmem:[#allocation2 + $0xb00] sm:$0xff]  ;;  %v476_v45 = vld [vmem:[#allocation2 + $0xb48] sm:$0xff] }
  0xe5   :  { %v471_v36 = vld [vmem:[#allocation2 + $0xb20] sm:$0xff]  ;;  %v480_v46 = vld [vmem:[#allocation2 + $0xb68] sm:$0xff] }
  0xe6   :  { %2951 = vmatpush1.bf16.msra.mxu0 %v9269_v53  ;;  %3123 = vmatpush1.bf16.msra.mxu1 %v9271_v54  ;;  %v420_v53 = vld [vmem:[#allocation2 + $0x988] sm:$0xff] }
  0xe7   :  { %2952 = vmatprep.subr.bf16.mxu0 %v9278_v55  ;;  %3124 = vmatprep.subr.bf16.mxu1 %v9280_v59  ;;  %v424_v54 = vld [vmem:[#allocation2 + $0x9a8] sm:$0xff]  ;;  %v9333_v55 = vcombine.low %v411_v43, %v415_v44  ;;  %v427_v59 = vld [vmem:[#allocation2 + $0x9c0] sm:$0xff] }
  0xe8   :  { %v9344_v58 = vcombine.high %v420_v53, %v424_v54  ;;  %v9343_v0 = vcombine.low %v420_v53, %v424_v54  ;;  %v9350_v1 = vcombine.high %v427_v59, %v431_v60  ;;  %v475_v43 = vld [vmem:[#allocation2 + $0xb40] sm:$0xff]  ;;  %v484_v53 = vld [vmem:[#allocation2 + $0xb88] sm:$0xff] }
  0xe9   :  { %v479_v44 = vld [vmem:[#allocation2 + $0xb60] sm:$0xff]  ;;  %v488_v54 = vld [vmem:[#allocation2 + $0xba8] sm:$0xff] }
  0xea   :  { %2953 = vmatpush1.bf16.msra.mxu0 %v9277_v61  ;;  %3125 = vmatpush1.bf16.msra.mxu1 %v9279_v62  ;;  %v428_v61 = vld [vmem:[#allocation2 + $0x9c8] sm:$0xff] }
  0xeb   :  { %2954 = vmatprep.subr.bf16.mxu0 %v9286_v63  ;;  %3126 = vmatprep.subr.bf16.mxu1 %v9288_v3  ;;  %v432_v62 = vld [vmem:[#allocation2 + $0x9e8] sm:$0xff]  ;;  %v9341_v63 = vcombine.low %v419_v51, %v423_v52  ;;  %v435_v3 = vld [vmem:[#allocation2 + $0xa00] sm:$0xff] }
  0xec   :  { %v9352_v2 = vcombine.high %v428_v61, %v432_v62  ;;  %v9358_v9 = vcombine.high %v435_v3, %v439_v4  ;;  %v9357_v15 = vcombine.low %v435_v3, %v439_v4  ;;  %v483_v51 = vld [vmem:[#allocation2 + $0xb80] sm:$0xff] }
  0xed   :  { %v487_v52 = vld [vmem:[#allocation2 + $0xba0] sm:$0xff] }
  0xee   :  { %2955 = vmatpush1.bf16.msra.mxu0 %v9285_v5  ;;  %3127 = vmatpush1.bf16.msra.mxu1 %v9287_v6  ;;  %v436_v5 = vld [vmem:[#allocation2 + $0xa08] sm:$0xff]  ;;  %v499_v3 = vld [vmem:[#allocation2 + $0xc00] sm:$0xff] }
  0xef   :  { %2967 = vmatprep.subr.bf16.mxu0 %v9294_v7  ;;  %3139 = vmatprep.subr.bf16.mxu1 %v9296_v12  ;;  %v440_v6 = vld [vmem:[#allocation2 + $0xa28] sm:$0xff]  ;;  %v9349_v7 = vcombine.low %v427_v59, %v431_v60  ;;  %v447_v12 = vld [vmem:[#allocation2 + $0xa60] sm:$0xff] }
  0xf0   :  { %v9360_v10 = vcombine.high %v436_v5, %v440_v6  ;;  %v491_v59 = vld [vmem:[#allocation2 + $0xbc0] sm:$0xff] }
  0xf1   :  { %2957 = vmatmul.mubr.bf16.vlgmr.msra.gmra.mrb[0].mxu0 %v10297_v8  ;;  %3129 = vmatmul.mubr.bf16.vlgmr.msra.gmra.mrb[0].mxu1 %v10297_v8  ;;  %v9351_v8 = vcombine.low %v428_v61, %v432_v62  ;;  %v495_v60 = vld [vmem:[#allocation2 + $0xbe0] sm:$0xff]  ;;  %v492_v61 = vld [vmem:[#allocation2 + $0xbc8] sm:$0xff] }
  0xf2   :  { %2968 = vmatpush1.bf16.msra.mxu0 %v9293_v14  ;;  %3140 = vmatpush1.bf16.msra.mxu1 %v9295_v16  ;;  %v448_v14 = vld [vmem:[#allocation2 + $0xa68] sm:$0xff]  ;;  %v9359_v16 = vcombine.low %v436_v5, %v440_v6  ;;  %v503_v4 = vld [vmem:[#allocation2 + $0xc20] sm:$0xff] }
  0xf3   :  { %2969 = vmatprep.subr.bf16.mxu0 %v9302_v17  ;;  %3141 = vmatprep.subr.bf16.mxu1 %v9304_v21  ;;  %v9366_v17 = vcombine.high %v443_v11, %v447_v12  ;;  %v9368_v18 = vcombine.high %v444_v13, %v448_v14  ;;  %v452_v21 = vld [vmem:[#allocation2 + $0xa88] sm:$0xff] }
  0xf4   :  { %2999 = vmatprep.mubr.bf16.mxu0 %v10298_v22  ;;  %3171 = vmatprep.mubr.bf16.mxu1 %v10298_v22  ;;  %v456_v22 = vld [vmem:[#allocation2 + $0xaa8] sm:$0xff] }
  0xf5   :  { %v9376_v26 = vcombine.high %v452_v21, %v456_v22  ;;  %v496_v62 = vld [vmem:[#allocation2 + $0xbe8] sm:$0xff] }
  0xf6   :  { %2970 = vmatpush1.bf16.msra.mxu0 %v9301_v23  ;;  %3142 = vmatpush1.bf16.msra.mxu1 %v9303_v24  ;;  %v9365_v23 = vcombine.low %v443_v11, %v447_v12  ;;  %v9367_v24 = vcombine.low %v444_v13, %v448_v14  ;;  %v500_v5 = vld [vmem:[#allocation2 + $0xc08] sm:$0xff]  ;;  %v507_v11 = vld [vmem:[#allocation2 + $0xc40] sm:$0xff] }
  0xf7   :  { %2971 = vmatprep.subr.bf16.mxu0 %v9310_v25  ;;  %3143 = vmatprep.subr.bf16.mxu1 %v9312_v28  ;;  %v9374_v25 = vcombine.high %v451_v19, %v455_v20  ;;  %v463_v28 = vld [vmem:[#allocation2 + $0xae0] sm:$0xff]  ;;  %v504_v6 = vld [vmem:[#allocation2 + $0xc28] sm:$0xff] }
  0xf8   :  { %v511_v12 = vld [vmem:[#allocation2 + $0xc60] sm:$0xff]  ;;  %v10300_v13 = vld [vmem:[%s11538_s0 + $0x10] ss:$28 sps:$4 sm:$0xff]  }
  0xf9   :  { %v508_v14 = vld [vmem:[#allocation2 + $0xc48] sm:$0xff] }
  0xfa   :  { %2972 = vmatpush1.bf16.msra.mxu0 %v9309_v31  ;;  %3144 = vmatpush1.bf16.msra.mxu1 %v9311_v32  ;;  %v9373_v31 = vcombine.low %v451_v19, %v455_v20  ;;  %v9375_v32 = vcombine.low %v452_v21, %v456_v22  ;;  %v515_v20 = vld [vmem:[#allocation2 + $0xc80] sm:$0xff]  ;;  %v516_v22 = vld [vmem:[#allocation2 + $0xc88] sm:$0xff] }
  0xfb   :  { %2973 = vmatprep.subr.bf16.mxu0 %v9318_v33  ;;  %3145 = vmatprep.subr.bf16.mxu1 %v9320_v34  ;;  %v9382_v33 = vcombine.high %v459_v27, %v463_v28  ;;  %v9384_v34 = vcombine.high %v460_v29, %v464_v30  ;;  %v519_v21 = vld [vmem:[#allocation2 + $0xca0] sm:$0xff] }
  0xfe   :  { %2974 = vmatpush1.bf16.msra.mxu0 %v9317_v39  ;;  %3146 = vmatpush1.bf16.msra.mxu1 %v9319_v40  ;;  %v9381_v39 = vcombine.low %v459_v27, %v463_v28  ;;  %v9383_v40 = vcombine.low %v460_v29, %v464_v30  ;;  %v523_v28 = vld [vmem:[#allocation2 + $0xcc0] sm:$0xff]  ;;  %v10671_v30 = vmov 0  }
  0xff   :  { %2975 = vmatprep.subr.bf16.mxu0 %v9326_v41  ;;  %3147 = vmatprep.subr.bf16.mxu1 %v9328_v42  ;;  %v9390_v41 = vcombine.high %v467_v35, %v471_v36  ;;  %v9392_v42 = vcombine.high %v468_v37, %v472_v38  ;;  %v527_v29 = vld [vmem:[#allocation2 + $0xce0] sm:$0xff] }
 0x102   :  { %2976 = vmatpush1.bf16.msra.mxu0 %v9325_v47  ;;  %3148 = vmatpush1.bf16.msra.mxu1 %v9327_v48  ;;  %v9389_v47 = vcombine.low %v467_v35, %v471_v36  ;;  %v9391_v48 = vcombine.low %v468_v37, %v472_v38  ;;  %v9446_v35 = vcombine.high %v523_v28, %v527_v29  ;;  %v531_v37 = vld [vmem:[#allocation2 + $0xd00] sm:$0xff] }
 0x103   :  { %2977 = vmatprep.subr.bf16.mxu0 %v9334_v49  ;;  %3149 = vmatprep.subr.bf16.mxu1 %v9336_v50  ;;  %v9398_v49 = vcombine.high %v475_v43, %v479_v44  ;;  %v9400_v50 = vcombine.high %v476_v45, %v480_v46  ;;  %v535_v38 = vld [vmem:[#allocation2 + $0xd20] sm:$0xff] }
 0x106   :  { %2978 = vmatpush1.bf16.msra.mxu0 %v9333_v55  ;;  %3150 = vmatpush1.bf16.msra.mxu1 %v9335_v56  ;;  %v9397_v55 = vcombine.low %v475_v43, %v479_v44  ;;  %v9399_v56 = vcombine.low %v476_v45, %v480_v46  ;;  %v9454_v43 = vcombine.high %v531_v37, %v535_v38  ;;  %v539_v45 = vld [vmem:[#allocation2 + $0xd40] sm:$0xff] }
 0x107   :  { %2979 = vmatprep.subr.bf16.mxu0 %v9342_v57  ;;  %3151 = vmatprep.subr.bf16.mxu1 %v9344_v58  ;;  %v9406_v57 = vcombine.high %v483_v51, %v487_v52  ;;  %v9408_v58 = vcombine.high %v484_v53, %v488_v54  ;;  %v543_v46 = vld [vmem:[#allocation2 + $0xd60] sm:$0xff] }
 0x10a   :  { %2980 = vmatpush1.bf16.msra.mxu0 %v9341_v63  ;;  %3152 = vmatpush1.bf16.msra.mxu1 %v9343_v0  ;;  %v9405_v63 = vcombine.low %v483_v51, %v487_v52  ;;  %v9407_v0 = vcombine.low %v484_v53, %v488_v54  ;;  %v9462_v51 = vcombine.high %v539_v45, %v543_v46  ;;  %v547_v53 = vld [vmem:[#allocation2 + $0xd80] sm:$0xff] }
 0x10b   :  { %2981 = vmatprep.subr.bf16.mxu0 %v9350_v1  ;;  %3153 = vmatprep.subr.bf16.mxu1 %v9352_v2  ;;  %v9414_v1 = vcombine.high %v491_v59, %v495_v60  ;;  %v9416_v2 = vcombine.high %v492_v61, %v496_v62  ;;  %v551_v54 = vld [vmem:[#allocation2 + $0xda0] sm:$0xff] }
 0x10e   :  { %2982 = vmatpush1.bf16.msra.mxu0 %v9349_v7  ;;  %3154 = vmatpush1.bf16.msra.mxu1 %v9351_v8  ;;  %v9413_v7 = vcombine.low %v491_v59, %v495_v60  ;;  %v9415_v8 = vcombine.low %v492_v61, %v496_v62  ;;  %v9470_v59 = vcombine.high %v547_v53, %v551_v54  ;;  %v555_v61 = vld [vmem:[#allocation2 + $0xdc0] sm:$0xff] }
 0x10f   :  { %2983 = vmatprep.subr.bf16.mxu0 %v9358_v9  ;;  %3155 = vmatprep.subr.bf16.mxu1 %v9360_v10  ;;  %v9422_v9 = vcombine.high %v499_v3, %v503_v4  ;;  %v9424_v10 = vcombine.high %v500_v5, %v504_v6  ;;  %v559_v62 = vld [vmem:[#allocation2 + $0xde0] sm:$0xff] }
 0x112   :  { %2984 = vmatpush1.bf16.msra.mxu0 %v9357_v15  ;;  %3156 = vmatpush1.bf16.msra.mxu1 %v9359_v16  ;;  %v512_v15 = vld [vmem:[#allocation2 + $0xc68] sm:$0xff]  ;;  %v9421_v16 = vcombine.low %v499_v3, %v503_v4  ;;  %v9478_v3 = vcombine.high %v555_v61, %v559_v62 }
 0x113   :  { %2985 = vmatprep.subr.bf16.mxu0 %v9366_v17  ;;  %3157 = vmatprep.subr.bf16.mxu1 %v9368_v18  ;;  %v9423_v17 = vcombine.low %v500_v5, %v504_v6  ;;  %v9430_v18 = vcombine.high %v507_v11, %v511_v12  ;;  %v9432_v19 = vcombine.high %v508_v14, %v512_v15  ;;  %v117_v5 = vld [vmem:[#allocation2 + $0x10] sm:$0xff] }
 0x114   :  { %v121_v6 = vld [vmem:[#allocation2 + $0x30] sm:$0xff] }
 0x116   :  { %2986 = vmatpush1.bf16.msra.mxu0 %v9365_v23  ;;  %3158 = vmatpush1.bf16.msra.mxu1 %v9367_v24  ;;  %v520_v23 = vld [vmem:[#allocation2 + $0xca8] sm:$0xff]  ;;  %v9429_v24 = vcombine.low %v507_v11, %v511_v12  ;;  %v9042_v11 = vcombine.high %v117_v5, %v121_v6 }
 0x117   :  { %2987 = vmatprep.subr.bf16.mxu0 %v9374_v25  ;;  %3159 = vmatprep.subr.bf16.mxu1 %v9376_v26  ;;  %v9431_v25 = vcombine.low %v508_v14, %v512_v15  ;;  %v9438_v26 = vcombine.high %v515_v20, %v519_v21  ;;  %v9440_v27 = vcombine.high %v516_v22, %v520_v23  ;;  %v129_v14 = vld [vmem:[#allocation2 + $0x70] sm:$0xff] }
 0x118   :  { %v10301_v15 = vld [vmem:[%s11538_s0 + $0x18] ss:$28 sps:$4 sm:$0xff]  }
 0x11a   :  { %2988 = vmatpush1.bf16.msra.mxu0 %v9373_v31  ;;  %3160 = vmatpush1.bf16.msra.mxu1 %v9375_v32  ;;  %v524_v31 = vld [vmem:[#allocation2 + $0xcc8] sm:$0xff] }
 0x11b   :  { %2989 = vmatprep.subr.bf16.mxu0 %v9382_v33  ;;  %3161 = vmatprep.subr.bf16.mxu1 %v9384_v34  ;;  %v528_v32 = vld [vmem:[#allocation2 + $0xce8] sm:$0xff]  ;;  %v9437_v33 = vcombine.low %v515_v20, %v519_v21  ;;  %v9439_v34 = vcombine.low %v516_v22, %v520_v23  ;;  %v133_v22 = vld [vmem:[#allocation2 + $0x90] sm:$0xff] }
 0x11c   :  { %v9448_v36 = vcombine.high %v524_v31, %v528_v32  ;;  %v137_v23 = vld [vmem:[#allocation2 + $0xb0] sm:$0xff] }
 0x11e   :  { %2990 = vmatpush1.bf16.msra.mxu0 %v9381_v39  ;;  %3162 = vmatpush1.bf16.msra.mxu1 %v9383_v40  ;;  %v532_v39 = vld [vmem:[#allocation2 + $0xd08] sm:$0xff] }
 0x11f   :  { %2991 = vmatprep.subr.bf16.mxu0 %v9390_v41  ;;  %3163 = vmatprep.subr.bf16.mxu1 %v9392_v42  ;;  %v536_v40 = vld [vmem:[#allocation2 + $0xd28] sm:$0xff]  ;;  %v9445_v41 = vcombine.low %v523_v28, %v527_v29  ;;  %v9447_v42 = vcombine.low %v524_v31, %v528_v32  ;;  %v9058_v28 = vcombine.high %v133_v22, %v137_v23  ;;  %v141_v31 = vld [vmem:[#allocation2 + $0xd0] sm:$0xff] }
 0x120   :  { %v9456_v44 = vcombine.high %v532_v39, %v536_v40  ;;  %v145_v32 = vld [vmem:[#allocation2 + $0xf0] sm:$0xff] }
 0x122   :  { %2992 = vmatpush1.bf16.msra.mxu0 %v9389_v47  ;;  %3164 = vmatpush1.bf16.msra.mxu1 %v9391_v48  ;;  %v540_v47 = vld [vmem:[#allocation2 + $0xd48] sm:$0xff] }
 0x123   :  { %2993 = vmatprep.subr.bf16.mxu0 %v9398_v49  ;;  %3165 = vmatprep.subr.bf16.mxu1 %v9400_v50  ;;  %v544_v48 = vld [vmem:[#allocation2 + $0xd68] sm:$0xff]  ;;  %v9453_v49 = vcombine.low %v531_v37, %v535_v38  ;;  %v9455_v50 = vcombine.low %v532_v39, %v536_v40  ;;  %v9066_v38 = vcombine.high %v141_v31, %v145_v32  ;;  %v149_v40 = vld [vmem:[#allocation2 + $0x110] sm:$0xff] }
 0x124   :  { %v9464_v52 = vcombine.high %v540_v47, %v544_v48 }
 0x126   :  { %2994 = vmatpush1.bf16.msra.mxu0 %v9397_v55  ;;  %3166 = vmatpush1.bf16.msra.mxu1 %v9399_v56  ;;  %v548_v55 = vld [vmem:[#allocation2 + $0xd88] sm:$0xff] }
 0x127   :  { %2995 = vmatprep.subr.bf16.mxu0 %v9406_v57  ;;  %3167 = vmatprep.subr.bf16.mxu1 %v9408_v58  ;;  %v552_v56 = vld [vmem:[#allocation2 + $0xda8] sm:$0xff]  ;;  %v9461_v57 = vcombine.low %v539_v45, %v543_v46  ;;  %v9463_v58 = vcombine.low %v540_v47, %v544_v48  ;;  %v157_v48 = vld [vmem:[#allocation2 + $0x150] sm:$0xff] }
 0x128   :  { %v9472_v60 = vcombine.high %v548_v55, %v552_v56 }
 0x12a   :  { %2996 = vmatpush1.bf16.msra.mxu0 %v9405_v63  ;;  %3168 = vmatpush1.bf16.msra.mxu1 %v9407_v0  ;;  %v556_v63 = vld [vmem:[#allocation2 + $0xdc8] sm:$0xff] }
 0x12b   :  { %2997 = vmatprep.subr.bf16.mxu0 %v9414_v1  ;;  %3169 = vmatprep.subr.bf16.mxu1 %v9416_v2  ;;  %v560_v0 = vld [vmem:[#allocation2 + $0xde8] sm:$0xff]  ;;  %v9469_v1 = vcombine.low %v547_v53, %v551_v54  ;;  %v9471_v2 = vcombine.low %v548_v55, %v552_v56  ;;  %v165_v56 = vld [vmem:[#allocation2 + $0x190] sm:$0xff] }
 0x12c   :  { %v9480_v4 = vcombine.high %v556_v63, %v560_v0 }
 0x12e   :  { %2998 = vmatpush1.bf16.msra.mxu0 %v9413_v7  ;;  %3170 = vmatpush1.bf16.msra.mxu1 %v9415_v8  ;;  %v118_v7 = vld [vmem:[#allocation2 + $0x18] sm:$0xff] }
 0x12f   :  { %3010 = vmatprep.subr.bf16.mxu0 %v9422_v9  ;;  %3182 = vmatprep.subr.bf16.mxu1 %v9424_v10  ;;  %v122_v8 = vld [vmem:[#allocation2 + $0x38] sm:$0xff]  ;;  %v9477_v9 = vcombine.low %v555_v61, %v559_v62  ;;  %v9479_v10 = vcombine.low %v556_v63, %v560_v0  ;;  %v173_v0 = vld [vmem:[#allocation2 + $0x1d0] sm:$0xff] }
 0x130   :  { %v9044_v12 = vcombine.high %v118_v7, %v122_v8 }
 0x131   :  { %3000 = vmatmul.mubr.bf16.vlgmr.msra.gmra.mrb[0].mxu0 %v10300_v13  ;;  %3172 = vmatmul.mubr.bf16.vlgmr.msra.gmra.mrb[0].mxu1 %v10300_v13  ;;  %v125_v13 = vld [vmem:[#allocation2 + $0x50] sm:$0xff] }
 0x132   :  { %3011 = vmatpush1.bf16.msra.mxu0 %v9421_v16  ;;  %3183 = vmatpush1.bf16.msra.mxu1 %v9423_v17  ;;  %v126_v16 = vld [vmem:[#allocation2 + $0x58] sm:$0xff]  ;;  %v9050_v20 = vcombine.high %v125_v13, %v129_v14 }
 0x133   :  { %3012 = vmatprep.subr.bf16.mxu0 %v9430_v18  ;;  %3184 = vmatprep.subr.bf16.mxu1 %v9432_v19  ;;  %v130_v17 = vld [vmem:[#allocation2 + $0x78] sm:$0xff]  ;;  %v9041_v18 = vcombine.low %v117_v5, %v121_v6  ;;  %v9043_v19 = vcombine.low %v118_v7, %v122_v8  ;;  %v181_v8 = vld [vmem:[#allocation2 + $0x210] sm:$0xff] }
 0x134   :  { %3042 = vmatprep.mubr.bf16.mxu0 %v10671_v30  ;;  %3214 = vmatprep.mubr.bf16.mxu1 %v10671_v30  ;;  %v9052_v21 = vcombine.high %v126_v16, %v130_v17 }
 0x136   :  { %3013 = vmatpush1.bf16.msra.mxu0 %v9429_v24  ;;  %3185 = vmatpush1.bf16.msra.mxu1 %v9431_v25  ;;  %v134_v24 = vld [vmem:[#allocation2 + $0x98] sm:$0xff] }
 0x137   :  { %3014 = vmatprep.subr.bf16.mxu0 %v9438_v26  ;;  %3186 = vmatprep.subr.bf16.mxu1 %v9440_v27  ;;  %v138_v25 = vld [vmem:[#allocation2 + $0xb8] sm:$0xff]  ;;  %v9049_v26 = vcombine.low %v125_v13, %v129_v14  ;;  %v9051_v27 = vcombine.low %v126_v16, %v130_v17  ;;  %v189_v16 = vld [vmem:[#allocation2 + $0x250] sm:$0xff] }
 0x138   :  { %v9060_v29 = vcombine.high %v134_v24, %v138_v25  ;;  %v9059_v37 = vcombine.low %v134_v24, %v138_v25  ;;  %v193_v17 = vld [vmem:[#allocation2 + $0x270] sm:$0xff] }
 0x139   :  { %v197_v24 = vld [vmem:[#allocation2 + $0x290] sm:$0xff] }
 0x13a   :  { %3015 = vmatpush1.bf16.msra.mxu0 %v9437_v33  ;;  %3187 = vmatpush1.bf16.msra.mxu1 %v9439_v34  ;;  %v10514_v33 = vld [vmem:[%s11538_s0 + $0x4] ss:$28 sps:$4 sm:$0xff]   ;;  %v142_v34 = vld [vmem:[#allocation2 + $0xd8] sm:$0xff]  ;;  %v201_v25 = vld [vmem:[#allocation2 + $0x2b0] sm:$0xff] }
 0x13b   :  { %3016 = vmatprep.subr.bf16.mxu0 %v9446_v35  ;;  %3188 = vmatprep.subr.bf16.mxu1 %v9448_v36  ;;  %v146_v35 = vld [vmem:[#allocation2 + $0xf8] sm:$0xff]  ;;  %v9057_v36 = vcombine.low %v133_v22, %v137_v23  ;;  %v9114_v22 = vcombine.high %v189_v16, %v193_v17 }
 0x13c   :  { %v9068_v39 = vcombine.high %v142_v34, %v146_v35  ;;  %v9067_v45 = vcombine.low %v142_v34, %v146_v35  ;;  %v209_v34 = vld [vmem:[#allocation2 + $0x2f0] sm:$0xff]  ;;  %v206_v35 = vld [vmem:[#allocation2 + $0x2d8] sm:$0xff] }
 0x13e   :  { %3017 = vmatpush1.bf16.msra.mxu0 %v9445_v41  ;;  %3189 = vmatpush1.bf16.msra.mxu1 %v9447_v42  ;;  %v153_v41 = vld [vmem:[#allocation2 + $0x130] sm:$0xff]  ;;  %v150_v42 = vld [vmem:[#allocation2 + $0x118] sm:$0xff] }
 0x13f   :  { %3018 = vmatprep.subr.bf16.mxu0 %v9454_v43  ;;  %3190 = vmatprep.subr.bf16.mxu1 %v9456_v44  ;;  %v154_v43 = vld [vmem:[#allocation2 + $0x138] sm:$0xff]  ;;  %v9065_v44 = vcombine.low %v141_v31, %v145_v32  ;;  %v9074_v46 = vcombine.high %v149_v40, %v153_v41  ;;  %v9122_v31 = vcombine.high %v197_v24, %v201_v25 }
 0x140   :  { %v9076_v47 = vcombine.high %v150_v42, %v154_v43  ;;  %v9075_v53 = vcombine.low %v150_v42, %v154_v43  ;;  %v217_v42 = vld [vmem:[#allocation2 + $0x330] sm:$0xff]  ;;  %v214_v43 = vld [vmem:[#allocation2 + $0x318] sm:$0xff] }
 0x142   :  { %3019 = vmatpush1.bf16.msra.mxu0 %v9453_v49  ;;  %3191 = vmatpush1.bf16.msra.mxu1 %v9455_v50  ;;  %v161_v49 = vld [vmem:[#allocation2 + $0x170] sm:$0xff]  ;;  %v158_v50 = vld [vmem:[#allocation2 + $0x158] sm:$0xff] }
 0x143   :  { %3020 = vmatprep.subr.bf16.mxu0 %v9462_v51  ;;  %3192 = vmatprep.subr.bf16.mxu1 %v9464_v52  ;;  %v162_v51 = vld [vmem:[#allocation2 + $0x178] sm:$0xff]  ;;  %v9073_v52 = vcombine.low %v149_v40, %v153_v41  ;;  %v9082_v54 = vcombine.high %v157_v48, %v161_v49  ;;  %v213_v41 = vld [vmem:[#allocation2 + $0x310] sm:$0xff] }
 0x144   :  { %v9084_v55 = vcombine.high %v158_v50, %v162_v51  ;;  %v9083_v61 = vcombine.low %v158_v50, %v162_v51  ;;  %v225_v50 = vld [vmem:[#allocation2 + $0x370] sm:$0xff]  ;;  %v222_v51 = vld [vmem:[#allocation2 + $0x358] sm:$0xff] }
 0x146   :  { %3021 = vmatpush1.bf16.msra.mxu0 %v9461_v57  ;;  %3193 = vmatpush1.bf16.msra.mxu1 %v9463_v58  ;;  %v169_v57 = vld [vmem:[#allocation2 + $0x1b0] sm:$0xff]  ;;  %v166_v58 = vld [vmem:[#allocation2 + $0x198] sm:$0xff] }
 0x147   :  { %3022 = vmatprep.subr.bf16.mxu0 %v9470_v59  ;;  %3194 = vmatprep.subr.bf16.mxu1 %v9472_v60  ;;  %v170_v59 = vld [vmem:[#allocation2 + $0x1b8] sm:$0xff]  ;;  %v9081_v60 = vcombine.low %v157_v48, %v161_v49  ;;  %v9090_v62 = vcombine.high %v165_v56, %v169_v57  ;;  %v221_v49 = vld [vmem:[#allocation2 + $0x350] sm:$0xff] }
 0x148   :  { %v9092_v63 = vcombine.high %v166_v58, %v170_v59  ;;  %v9091_v5 = vcombine.low %v166_v58, %v170_v59  ;;  %v233_v58 = vld [vmem:[#allocation2 + $0x3b0] sm:$0xff]  ;;  %v230_v59 = vld [vmem:[#allocation2 + $0x398] sm:$0xff] }
 0x14a   :  { %3023 = vmatpush1.bf16.msra.mxu0 %v9469_v1  ;;  %3195 = vmatpush1.bf16.msra.mxu1 %v9471_v2  ;;  %v177_v1 = vld [vmem:[#allocation2 + $0x1f0] sm:$0xff]  ;;  %v174_v2 = vld [vmem:[#allocation2 + $0x1d8] sm:$0xff] }
 0x14b   :  { %3024 = vmatprep.subr.bf16.mxu0 %v9478_v3  ;;  %3196 = vmatprep.subr.bf16.mxu1 %v9480_v4  ;;  %v178_v3 = vld [vmem:[#allocation2 + $0x1f8] sm:$0xff]  ;;  %v9089_v4 = vcombine.low %v165_v56, %v169_v57  ;;  %v9098_v6 = vcombine.high %v173_v0, %v177_v1  ;;  %v229_v57 = vld [vmem:[#allocation2 + $0x390] sm:$0xff] }
 0x14c   :  { %v9100_v7 = vcombine.high %v174_v2, %v178_v3  ;;  %v9099_v13 = vcombine.low %v174_v2, %v178_v3  ;;  %v241_v2 = vld [vmem:[#allocation2 + $0x3f0] sm:$0xff]  ;;  %v238_v3 = vld [vmem:[#allocation2 + $0x3d8] sm:$0xff] }
 0x14e   :  { %3025 = vmatpush1.bf16.msra.mxu0 %v9477_v9  ;;  %3197 = vmatpush1.bf16.msra.mxu1 %v9479_v10  ;;  %v185_v9 = vld [vmem:[#allocation2 + $0x230] sm:$0xff]  ;;  %v182_v10 = vld [vmem:[#allocation2 + $0x218] sm:$0xff] }
 0x14f   :  { %3225 = vmatprep.subr.bf16.mxu0 %v9042_v11  ;;  %3397 = vmatprep.subr.bf16.mxu1 %v9044_v12  ;;  %v186_v11 = vld [vmem:[#allocation2 + $0x238] sm:$0xff]  ;;  %v9097_v12 = vcombine.low %v173_v0, %v177_v1  ;;  %v9106_v14 = vcombine.high %v181_v8, %v185_v9  ;;  %v237_v1 = vld [vmem:[#allocation2 + $0x3d0] sm:$0xff] }
 0x151   :  { %3043 = vmatmul.mubr.bf16.vlgmr.msra.gmra.mrb[0].mxu0 %v10301_v15  ;;  %3215 = vmatmul.mubr.bf16.vlgmr.msra.gmra.mrb[0].mxu1 %v10301_v15  ;;  %v9108_v15 = vcombine.high %v182_v10, %v186_v11 }
 0x152   :  { %3226 = vmatpush1.bf16.msra.mxu0 %v9041_v18  ;;  %3398 = vmatpush1.bf16.msra.mxu1 %v9043_v19  ;;  %v190_v18 = vld [vmem:[#allocation2 + $0x258] sm:$0xff] }
 0x153   :  { %3227 = vmatprep.subr.bf16.mxu0 %v9050_v20  ;;  %3399 = vmatprep.subr.bf16.mxu1 %v9052_v21  ;;  %v194_v19 = vld [vmem:[#allocation2 + $0x278] sm:$0xff]  ;;  %v9105_v20 = vcombine.low %v181_v8, %v185_v9  ;;  %v9107_v21 = vcombine.low %v182_v10, %v186_v11  ;;  %v245_v9 = vld [vmem:[#allocation2 + $0x410] sm:$0xff] }
 0x154   :  { %3257 = vmatprep.mubr.bf16.mxu0 %v10514_v33  ;;  %3429 = vmatprep.mubr.bf16.mxu1 %v10514_v33  ;;  %v9116_v23 = vcombine.high %v190_v18, %v194_v19  ;;  %v205_v33 = vld [vmem:[#allocation2 + $0x2d0] sm:$0xff]  ;;  %v246_v11 = vld [vmem:[#allocation2 + $0x418] sm:$0xff] }
 0x155   :  { %v249_v10 = vld [vmem:[#allocation2 + $0x430] sm:$0xff] }
 0x156   :  { %3228 = vmatpush1.bf16.msra.mxu0 %v9049_v26  ;;  %3400 = vmatpush1.bf16.msra.mxu1 %v9051_v27  ;;  %v198_v26 = vld [vmem:[#allocation2 + $0x298] sm:$0xff] }
 0x157   :  { %3229 = vmatprep.subr.bf16.mxu0 %v9058_v28  ;;  %3401 = vmatprep.subr.bf16.mxu1 %v9060_v29  ;;  %v202_v27 = vld [vmem:[#allocation2 + $0x2b8] sm:$0xff]  ;;  %v9113_v28 = vcombine.low %v189_v16, %v193_v17  ;;  %v9115_v29 = vcombine.low %v190_v18, %v194_v19  ;;  %v253_v17 = vld [vmem:[#allocation2 + $0x450] sm:$0xff] }
 0x158   :  { %v9124_v32 = vcombine.high %v198_v26, %v202_v27  ;;  %v257_v18 = vld [vmem:[#allocation2 + $0x470] sm:$0xff]  ;;  %v254_v19 = vld [vmem:[#allocation2 + $0x458] sm:$0xff] }
 0x15a   :  { %3230 = vmatpush1.bf16.msra.mxu0 %v9057_v36  ;;  %3402 = vmatpush1.bf16.msra.mxu1 %v9059_v37  ;;  %v210_v36 = vld [vmem:[#allocation2 + $0x2f8] sm:$0xff]  ;;  %v9121_v37 = vcombine.low %v197_v24, %v201_v25  ;;  %v261_v25 = vld [vmem:[#allocation2 + $0x490] sm:$0xff] }
 0x15b   :  { %3231 = vmatprep.subr.bf16.mxu0 %v9066_v38  ;;  %3403 = vmatprep.subr.bf16.mxu1 %v9068_v39  ;;  %v9123_v38 = vcombine.low %v198_v26, %v202_v27  ;;  %v9130_v39 = vcombine.high %v205_v33, %v209_v34  ;;  %v9132_v40 = vcombine.high %v206_v35, %v210_v36  ;;  %v265_v26 = vld [vmem:[#allocation2 + $0x4b0] sm:$0xff]  ;;  %v10515_v27 = vld [vmem:[%s11538_s0] ss:$28 sps:$4 sm:$0xff]  }
 0x15e   :  { %3232 = vmatpush1.bf16.msra.mxu0 %v9065_v44  ;;  %3404 = vmatpush1.bf16.msra.mxu1 %v9067_v45  ;;  %v218_v44 = vld [vmem:[#allocation2 + $0x338] sm:$0xff]  ;;  %v9129_v45 = vcombine.low %v205_v33, %v209_v34  ;;  %v9186_v33 = vcombine.high %v261_v25, %v265_v26 }
 0x15f   :  { %3233 = vmatprep.subr.bf16.mxu0 %v9074_v46  ;;  %3405 = vmatprep.subr.bf16.mxu1 %v9076_v47  ;;  %v9131_v46 = vcombine.low %v206_v35, %v210_v36  ;;  %v9138_v47 = vcombine.high %v213_v41, %v217_v42  ;;  %v9140_v48 = vcombine.high %v214_v43, %v218_v44  ;;  %v269_v35 = vld [vmem:[#allocation2 + $0x4d0] sm:$0xff] }
 0x160   :  { %v273_v36 = vld [vmem:[#allocation2 + $0x4f0] sm:$0xff] }
 0x162   :  { %3234 = vmatpush1.bf16.msra.mxu0 %v9073_v52  ;;  %3406 = vmatpush1.bf16.msra.mxu1 %v9075_v53  ;;  %v226_v52 = vld [vmem:[#allocation2 + $0x378] sm:$0xff]  ;;  %v9137_v53 = vcombine.low %v213_v41, %v217_v42  ;;  %v9194_v42 = vcombine.high %v269_v35, %v273_v36 }
 0x163   :  { %3235 = vmatprep.subr.bf16.mxu0 %v9082_v54  ;;  %3407 = vmatprep.subr.bf16.mxu1 %v9084_v55  ;;  %v9139_v54 = vcombine.low %v214_v43, %v218_v44  ;;  %v9146_v55 = vcombine.high %v221_v49, %v225_v50  ;;  %v9148_v56 = vcombine.high %v222_v51, %v226_v52  ;;  %v277_v44 = vld [vmem:[#allocation2 + $0x510] sm:$0xff] }
 0x166   :  { %3236 = vmatpush1.bf16.msra.mxu0 %v9081_v60  ;;  %3408 = vmatpush1.bf16.msra.mxu1 %v9083_v61  ;;  %v234_v60 = vld [vmem:[#allocation2 + $0x3b8] sm:$0xff]  ;;  %v9145_v61 = vcombine.low %v221_v49, %v225_v50 }
 0x167   :  { %3237 = vmatprep.subr.bf16.mxu0 %v9090_v62  ;;  %3409 = vmatprep.subr.bf16.mxu1 %v9092_v63  ;;  %v9147_v62 = vcombine.low %v222_v51, %v226_v52  ;;  %v9154_v63 = vcombine.high %v229_v57, %v233_v58  ;;  %v9156_v0 = vcombine.high %v230_v59, %v234_v60  ;;  %v285_v52 = vld [vmem:[#allocation2 + $0x550] sm:$0xff] }
 0x16a   :  { %3238 = vmatpush1.bf16.msra.mxu0 %v9089_v4  ;;  %3410 = vmatpush1.bf16.msra.mxu1 %v9091_v5  ;;  %v242_v4 = vld [vmem:[#allocation2 + $0x3f8] sm:$0xff]  ;;  %v9153_v5 = vcombine.low %v229_v57, %v233_v58 }
 0x16b   :  { %3239 = vmatprep.subr.bf16.mxu0 %v9098_v6  ;;  %3411 = vmatprep.subr.bf16.mxu1 %v9100_v7  ;;  %v9155_v6 = vcombine.low %v230_v59, %v234_v60  ;;  %v9162_v7 = vcombine.high %v237_v1, %v241_v2  ;;  %v9164_v8 = vcombine.high %v238_v3, %v242_v4  ;;  %v293_v60 = vld [vmem:[#allocation2 + $0x590] sm:$0xff] }
 0x16e   :  { %3240 = vmatpush1.bf16.msra.mxu0 %v9097_v12  ;;  %3412 = vmatpush1.bf16.msra.mxu1 %v9099_v13  ;;  %v250_v12 = vld [vmem:[#allocation2 + $0x438] sm:$0xff]  ;;  %v9161_v13 = vcombine.low %v237_v1, %v241_v2 }
 0x16f   :  { %3241 = vmatprep.subr.bf16.mxu0 %v9106_v14  ;;  %3413 = vmatprep.subr.bf16.mxu1 %v9108_v15  ;;  %v9163_v14 = vcombine.low %v238_v3, %v242_v4  ;;  %v9170_v15 = vcombine.high %v245_v9, %v249_v10  ;;  %v9172_v16 = vcombine.high %v246_v11, %v250_v12  ;;  %v301_v4 = vld [vmem:[#allocation2 + $0x5d0] sm:$0xff] }
 0x172   :  { %3242 = vmatpush1.bf16.msra.mxu0 %v9105_v20  ;;  %3414 = vmatpush1.bf16.msra.mxu1 %v9107_v21  ;;  %v258_v20 = vld [vmem:[#allocation2 + $0x478] sm:$0xff]  ;;  %v9169_v21 = vcombine.low %v245_v9, %v249_v10 }
 0x173   :  { %3243 = vmatprep.subr.bf16.mxu0 %v9114_v22  ;;  %3415 = vmatprep.subr.bf16.mxu1 %v9116_v23  ;;  %v9171_v22 = vcombine.low %v246_v11, %v250_v12  ;;  %v9178_v23 = vcombine.high %v253_v17, %v257_v18  ;;  %v9180_v24 = vcombine.high %v254_v19, %v258_v20  ;;  %v309_v12 = vld [vmem:[#allocation2 + $0x610] sm:$0xff] }
 0x176   :  { %3244 = vmatpush1.bf16.msra.mxu0 %v9113_v28  ;;  %3416 = vmatpush1.bf16.msra.mxu1 %v9115_v29  ;;  %v262_v28 = vld [vmem:[#allocation2 + $0x498] sm:$0xff] }
 0x177   :  { %3245 = vmatprep.subr.bf16.mxu0 %v9122_v31  ;;  %3417 = vmatprep.subr.bf16.mxu1 %v9124_v32  ;;  %v266_v29 = vld [vmem:[#allocation2 + $0x4b8] sm:$0xff]  ;;  %v9177_v31 = vcombine.low %v253_v17, %v257_v18  ;;  %v9179_v32 = vcombine.low %v254_v19, %v258_v20  ;;  %v317_v20 = vld [vmem:[#allocation2 + $0x650] sm:$0xff] }
 0x178   :  { %v9188_v34 = vcombine.high %v262_v28, %v266_v29  ;;  %v9187_v41 = vcombine.low %v262_v28, %v266_v29  ;;  %v325_v28 = vld [vmem:[#allocation2 + $0x690] sm:$0xff] }
 0x179   :  { %v329_v29 = vld [vmem:[#allocation2 + $0x6b0] sm:$0xff] }
 0x17a   :  { %3246 = vmatpush1.bf16.msra.mxu0 %v9121_v37  ;;  %3418 = vmatpush1.bf16.msra.mxu1 %v9123_v38  ;;  %v10516_v37 = vld [vmem:[%s11538_s0 + $0xc] ss:$28 sps:$4 sm:$0xff]   ;;  %v270_v38 = vld [vmem:[#allocation2 + $0x4d8] sm:$0xff] }
 0x17b   :  { %3247 = vmatprep.subr.bf16.mxu0 %v9130_v39  ;;  %3419 = vmatprep.subr.bf16.mxu1 %v9132_v40  ;;  %v274_v39 = vld [vmem:[#allocation2 + $0x4f8] sm:$0xff]  ;;  %v9185_v40 = vcombine.low %v261_v25, %v265_v26 }
 0x17c   :  { %v9196_v43 = vcombine.high %v270_v38, %v274_v39  ;;  %v9195_v49 = vcombine.low %v270_v38, %v274_v39  ;;  %v337_v38 = vld [vmem:[#allocation2 + $0x6f0] sm:$0xff]  ;;  %v334_v39 = vld [vmem:[#allocation2 + $0x6d8] sm:$0xff] }
 0x17e   :  { %3248 = vmatpush1.bf16.msra.mxu0 %v9129_v45  ;;  %3420 = vmatpush1.bf16.msra.mxu1 %v9131_v46  ;;  %v281_v45 = vld [vmem:[#allocation2 + $0x530] sm:$0xff]  ;;  %v278_v46 = vld [vmem:[#allocation2 + $0x518] sm:$0xff] }
 0x17f   :  { %3249 = vmatprep.subr.bf16.mxu0 %v9138_v47  ;;  %3421 = vmatprep.subr.bf16.mxu1 %v9140_v48  ;;  %v282_v47 = vld [vmem:[#allocation2 + $0x538] sm:$0xff]  ;;  %v9193_v48 = vcombine.low %v269_v35, %v273_v36  ;;  %v9202_v50 = vcombine.high %v277_v44, %v281_v45  ;;  %v9250_v35 = vcombine.high %v325_v28, %v329_v29 }
 0x180   :  { %v9204_v51 = vcombine.high %v278_v46, %v282_v47  ;;  %v9203_v57 = vcombine.low %v278_v46, %v282_v47  ;;  %v345_v46 = vld [vmem:[#allocation2 + $0x730] sm:$0xff]  ;;  %v342_v47 = vld [vmem:[#allocation2 + $0x718] sm:$0xff] }
 0x182   :  { %3250 = vmatpush1.bf16.msra.mxu0 %v9137_v53  ;;  %3422 = vmatpush1.bf16.msra.mxu1 %v9139_v54  ;;  %v289_v53 = vld [vmem:[#allocation2 + $0x570] sm:$0xff]  ;;  %v286_v54 = vld [vmem:[#allocation2 + $0x558] sm:$0xff] }
 0x183   :  { %3251 = vmatprep.subr.bf16.mxu0 %v9146_v55  ;;  %3423 = vmatprep.subr.bf16.mxu1 %v9148_v56  ;;  %v290_v55 = vld [vmem:[#allocation2 + $0x578] sm:$0xff]  ;;  %v9201_v56 = vcombine.low %v277_v44, %v281_v45  ;;  %v9210_v58 = vcombine.high %v285_v52, %v289_v53  ;;  %v341_v45 = vld [vmem:[#allocation2 + $0x710] sm:$0xff] }
 0x184   :  { %v9212_v59 = vcombine.high %v286_v54, %v290_v55  ;;  %v9211_v1 = vcombine.low %v286_v54, %v290_v55  ;;  %v353_v54 = vld [vmem:[#allocation2 + $0x770] sm:$0xff]  ;;  %v350_v55 = vld [vmem:[#allocation2 + $0x758] sm:$0xff] }
 0x186   :  { %3252 = vmatpush1.bf16.msra.mxu0 %v9145_v61  ;;  %3424 = vmatpush1.bf16.msra.mxu1 %v9147_v62  ;;  %v297_v61 = vld [vmem:[#allocation2 + $0x5b0] sm:$0xff]  ;;  %v294_v62 = vld [vmem:[#allocation2 + $0x598] sm:$0xff] }
 0x187   :  { %3253 = vmatprep.subr.bf16.mxu0 %v9154_v63  ;;  %3425 = vmatprep.subr.bf16.mxu1 %v9156_v0  ;;  %v298_v63 = vld [vmem:[#allocation2 + $0x5b8] sm:$0xff]  ;;  %v9209_v0 = vcombine.low %v285_v52, %v289_v53  ;;  %v9218_v2 = vcombine.high %v293_v60, %v297_v61  ;;  %v349_v53 = vld [vmem:[#allocation2 + $0x750] sm:$0xff] }
 0x188   :  { %v9220_v3 = vcombine.high %v294_v62, %v298_v63  ;;  %v9219_v9 = vcombine.low %v294_v62, %v298_v63  ;;  %v361_v62 = vld [vmem:[#allocation2 + $0x7b0] sm:$0xff]  ;;  %v358_v63 = vld [vmem:[#allocation2 + $0x798] sm:$0xff] }
 0x18a   :  { %3254 = vmatpush1.bf16.msra.mxu0 %v9153_v5  ;;  %3426 = vmatpush1.bf16.msra.mxu1 %v9155_v6  ;;  %v305_v5 = vld [vmem:[#allocation2 + $0x5f0] sm:$0xff]  ;;  %v302_v6 = vld [vmem:[#allocation2 + $0x5d8] sm:$0xff] }
 0x18b   :  { %3255 = vmatprep.subr.bf16.mxu0 %v9162_v7  ;;  %3427 = vmatprep.subr.bf16.mxu1 %v9164_v8  ;;  %v306_v7 = vld [vmem:[#allocation2 + $0x5f8] sm:$0xff]  ;;  %v9217_v8 = vcombine.low %v293_v60, %v297_v61  ;;  %v9226_v10 = vcombine.high %v301_v4, %v305_v5  ;;  %v357_v61 = vld [vmem:[#allocation2 + $0x790] sm:$0xff] }
 0x18c   :  { %v9228_v11 = vcombine.high %v302_v6, %v306_v7  ;;  %v9227_v17 = vcombine.low %v302_v6, %v306_v7  ;;  %v369_v6 = vld [vmem:[#allocation2 + $0x7f0] sm:$0xff]  ;;  %v366_v7 = vld [vmem:[#allocation2 + $0x7d8] sm:$0xff] }
 0x18e   :  { %3256 = vmatpush1.bf16.msra.mxu0 %v9161_v13  ;;  %3428 = vmatpush1.bf16.msra.mxu1 %v9163_v14  ;;  %v313_v13 = vld [vmem:[#allocation2 + $0x630] sm:$0xff]  ;;  %v310_v14 = vld [vmem:[#allocation2 + $0x618] sm:$0xff] }
 0x18f   :  { %3268 = vmatprep.subr.bf16.mxu0 %v9170_v15  ;;  %3440 = vmatprep.subr.bf16.mxu1 %v9172_v16  ;;  %v314_v15 = vld [vmem:[#allocation2 + $0x638] sm:$0xff]  ;;  %v9225_v16 = vcombine.low %v301_v4, %v305_v5  ;;  %v9234_v18 = vcombine.high %v309_v12, %v313_v13  ;;  %v365_v5 = vld [vmem:[#allocation2 + $0x7d0] sm:$0xff] }
 0x190   :  { %v9236_v19 = vcombine.high %v310_v14, %v314_v15  ;;  %v9235_v25 = vcombine.low %v310_v14, %v314_v15  ;;  %v377_v14 = vld [vmem:[#allocation2 + $0x830] sm:$0xff]  ;;  %v374_v15 = vld [vmem:[#allocation2 + $0x818] sm:$0xff] }
 0x191   :  { %3258 = vmatmul.mubr.bf16.vlgmr.msra.gmra.mrb[4].mxu0 %v10515_v27  ;;  %3430 = vmatmul.mubr.bf16.vlgmr.msra.gmra.mrb[4].mxu1 %v10515_v27 }
 0x192   :  { %3269 = vmatpush1.bf16.msra.mxu0 %v9169_v21  ;;  %3441 = vmatpush1.bf16.msra.mxu1 %v9171_v22  ;;  %v321_v21 = vld [vmem:[#allocation2 + $0x670] sm:$0xff]  ;;  %v318_v22 = vld [vmem:[#allocation2 + $0x658] sm:$0xff] }
 0x193   :  { %3270 = vmatprep.subr.bf16.mxu0 %v9178_v23  ;;  %3442 = vmatprep.subr.bf16.mxu1 %v9180_v24  ;;  %v322_v23 = vld [vmem:[#allocation2 + $0x678] sm:$0xff]  ;;  %v9233_v24 = vcombine.low %v309_v12, %v313_v13  ;;  %v9242_v26 = vcombine.high %v317_v20, %v321_v21  ;;  %v373_v13 = vld [vmem:[#allocation2 + $0x810] sm:$0xff] }
 0x194   :  { %3300 = vmatprep.mubr.bf16.mxu0 %v10516_v37  ;;  %3472 = vmatprep.mubr.bf16.mxu1 %v10516_v37  ;;  %v9244_v27 = vcombine.high %v318_v22, %v322_v23  ;;  %v333_v37 = vld [vmem:[#allocation2 + $0x6d0] sm:$0xff] }
 0x196   :  { %3271 = vmatpush1.bf16.msra.mxu0 %v9177_v31  ;;  %3443 = vmatpush1.bf16.msra.mxu1 %v9179_v32  ;;  %v326_v31 = vld [vmem:[#allocation2 + $0x698] sm:$0xff] }
 0x197   :  { %3272 = vmatprep.subr.bf16.mxu0 %v9186_v33  ;;  %3444 = vmatprep.subr.bf16.mxu1 %v9188_v34  ;;  %v330_v32 = vld [vmem:[#allocation2 + $0x6b8] sm:$0xff]  ;;  %v9241_v33 = vcombine.low %v317_v20, %v321_v21  ;;  %v9243_v34 = vcombine.low %v318_v22, %v322_v23  ;;  %v381_v21 = vld [vmem:[#allocation2 + $0x850] sm:$0xff] }
 0x198   :  { %v9252_v36 = vcombine.high %v326_v31, %v330_v32  ;;  %v385_v22 = vld [vmem:[#allocation2 + $0x870] sm:$0xff]  ;;  %v382_v23 = vld [vmem:[#allocation2 + $0x858] sm:$0xff] }
 0x19a   :  { %3273 = vmatpush1.bf16.msra.mxu0 %v9185_v40  ;;  %3445 = vmatpush1.bf16.msra.mxu1 %v9187_v41  ;;  %v338_v40 = vld [vmem:[#allocation2 + $0x6f8] sm:$0xff]  ;;  %v9249_v41 = vcombine.low %v325_v28, %v329_v29  ;;  %v389_v29 = vld [vmem:[#allocation2 + $0x890] sm:$0xff] }
 0x19b   :  { %3274 = vmatprep.subr.bf16.mxu0 %v9194_v42  ;;  %3446 = vmatprep.subr.bf16.mxu1 %v9196_v43  ;;  %v9251_v42 = vcombine.low %v326_v31, %v330_v32  ;;  %v9258_v43 = vcombine.high %v333_v37, %v337_v38  ;;  %v9260_v44 = vcombine.high %v334_v39, %v338_v40  ;;  %v393_v31 = vld [vmem:[#allocation2 + $0x8b0] sm:$0xff]  ;;  %v10517_v32 = vld [vmem:[%s11538_s0 + $0x8] ss:$28 sps:$4 sm:$0xff]  }
 0x19e   :  { %3275 = vmatpush1.bf16.msra.mxu0 %v9193_v48  ;;  %3447 = vmatpush1.bf16.msra.mxu1 %v9195_v49  ;;  %v346_v48 = vld [vmem:[#allocation2 + $0x738] sm:$0xff]  ;;  %v9257_v49 = vcombine.low %v333_v37, %v337_v38  ;;  %v9314_v37 = vcombine.high %v389_v29, %v393_v31 }
 0x19f   :  { %3276 = vmatprep.subr.bf16.mxu0 %v9202_v50  ;;  %3448 = vmatprep.subr.bf16.mxu1 %v9204_v51  ;;  %v9259_v50 = vcombine.low %v334_v39, %v338_v40  ;;  %v9266_v51 = vcombine.high %v341_v45, %v345_v46  ;;  %v9268_v52 = vcombine.high %v342_v47, %v346_v48  ;;  %v397_v39 = vld [vmem:[#allocation2 + $0x8d0] sm:$0xff] }
 0x1a0   :  { %v401_v40 = vld [vmem:[#allocation2 + $0x8f0] sm:$0xff] }
 0x1a2   :  { %3277 = vmatpush1.bf16.msra.mxu0 %v9201_v56  ;;  %3449 = vmatpush1.bf16.msra.mxu1 %v9203_v57  ;;  %v354_v56 = vld [vmem:[#allocation2 + $0x778] sm:$0xff]  ;;  %v9265_v57 = vcombine.low %v341_v45, %v345_v46  ;;  %v9322_v46 = vcombine.high %v397_v39, %v401_v40 }
 0x1a3   :  { %3278 = vmatprep.subr.bf16.mxu0 %v9210_v58  ;;  %3450 = vmatprep.subr.bf16.mxu1 %v9212_v59  ;;  %v9267_v58 = vcombine.low %v342_v47, %v346_v48  ;;  %v9274_v59 = vcombine.high %v349_v53, %v353_v54  ;;  %v9276_v60 = vcombine.high %v350_v55, %v354_v56  ;;  %v405_v48 = vld [vmem:[#allocation2 + $0x910] sm:$0xff] }
 0x1a6   :  { %3279 = vmatpush1.bf16.msra.mxu0 %v9209_v0  ;;  %3451 = vmatpush1.bf16.msra.mxu1 %v9211_v1  ;;  %v362_v0 = vld [vmem:[#allocation2 + $0x7b8] sm:$0xff]  ;;  %v9273_v1 = vcombine.low %v349_v53, %v353_v54 }
 0x1a7   :  { %3280 = vmatprep.subr.bf16.mxu0 %v9218_v2  ;;  %3452 = vmatprep.subr.bf16.mxu1 %v9220_v3  ;;  %v9275_v2 = vcombine.low %v350_v55, %v354_v56  ;;  %v9282_v3 = vcombine.high %v357_v61, %v361_v62  ;;  %v9284_v4 = vcombine.high %v358_v63, %v362_v0  ;;  %v413_v56 = vld [vmem:[#allocation2 + $0x950] sm:$0xff] }
 0x1aa   :  { %3281 = vmatpush1.bf16.msra.mxu0 %v9217_v8  ;;  %3453 = vmatpush1.bf16.msra.mxu1 %v9219_v9  ;;  %v370_v8 = vld [vmem:[#allocation2 + $0x7f8] sm:$0xff]  ;;  %v9281_v9 = vcombine.low %v357_v61, %v361_v62 }
 0x1ab   :  { %3282 = vmatprep.subr.bf16.mxu0 %v9226_v10  ;;  %3454 = vmatprep.subr.bf16.mxu1 %v9228_v11  ;;  %v9283_v10 = vcombine.low %v358_v63, %v362_v0  ;;  %v9290_v11 = vcombine.high %v365_v5, %v369_v6  ;;  %v9292_v12 = vcombine.high %v366_v7, %v370_v8  ;;  %v421_v0 = vld [vmem:[#allocation2 + $0x990] sm:$0xff] }
 0x1ae   :  { %3283 = vmatpush1.bf16.msra.mxu0 %v9225_v16  ;;  %3455 = vmatpush1.bf16.msra.mxu1 %v9227_v17  ;;  %v378_v16 = vld [vmem:[#allocation2 + $0x838] sm:$0xff]  ;;  %v9289_v17 = vcombine.low %v365_v5, %v369_v6 }
 0x1af   :  { %3284 = vmatprep.subr.bf16.mxu0 %v9234_v18  ;;  %3456 = vmatprep.subr.bf16.mxu1 %v9236_v19  ;;  %v9291_v18 = vcombine.low %v366_v7, %v370_v8  ;;  %v9298_v19 = vcombine.high %v373_v13, %v377_v14  ;;  %v9300_v20 = vcombine.high %v374_v15, %v378_v16  ;;  %v429_v8 = vld [vmem:[#allocation2 + $0x9d0] sm:$0xff] }
 0x1b2   :  { %3285 = vmatpush1.bf16.msra.mxu0 %v9233_v24  ;;  %3457 = vmatpush1.bf16.msra.mxu1 %v9235_v25  ;;  %v386_v24 = vld [vmem:[#allocation2 + $0x878] sm:$0xff]  ;;  %v9297_v25 = vcombine.low %v373_v13, %v377_v14 }
 0x1b3   :  { %3286 = vmatprep.subr.bf16.mxu0 %v9242_v26  ;;  %3458 = vmatprep.subr.bf16.mxu1 %v9244_v27  ;;  %v9299_v26 = vcombine.low %v374_v15, %v378_v16  ;;  %v9306_v27 = vcombine.high %v381_v21, %v385_v22  ;;  %v9308_v28 = vcombine.high %v382_v23, %v386_v24  ;;  %v437_v16 = vld [vmem:[#allocation2 + $0xa10] sm:$0xff] }
 0x1b6   :  { %3287 = vmatpush1.bf16.msra.mxu0 %v9241_v33  ;;  %3459 = vmatpush1.bf16.msra.mxu1 %v9243_v34  ;;  %v390_v33 = vld [vmem:[#allocation2 + $0x898] sm:$0xff] }
 0x1b7   :  { %3288 = vmatprep.subr.bf16.mxu0 %v9250_v35  ;;  %3460 = vmatprep.subr.bf16.mxu1 %v9252_v36  ;;  %v394_v34 = vld [vmem:[#allocation2 + $0x8b8] sm:$0xff]  ;;  %v9305_v35 = vcombine.low %v381_v21, %v385_v22  ;;  %v9307_v36 = vcombine.low %v382_v23, %v386_v24  ;;  %v445_v24 = vld [vmem:[#allocation2 + $0xa50] sm:$0xff] }
 0x1b8   :  { %v9316_v38 = vcombine.high %v390_v33, %v394_v34  ;;  %v9315_v45 = vcombine.low %v390_v33, %v394_v34  ;;  %v453_v33 = vld [vmem:[#allocation2 + $0xa90] sm:$0xff] }
 0x1b9   :  { %v457_v34 = vld [vmem:[#allocation2 + $0xab0] sm:$0xff] }
 0x1ba   :  { %3289 = vmatpush1.bf16.msra.mxu0 %v9249_v41  ;;  %3461 = vmatpush1.bf16.msra.mxu1 %v9251_v42  ;;  %v10518_v41 = vld [vmem:[%s11538_s0 + $0x14] ss:$28 sps:$4 sm:$0xff]   ;;  %v398_v42 = vld [vmem:[#allocation2 + $0x8d8] sm:$0xff] }
 0x1bb   :  { %3290 = vmatprep.subr.bf16.mxu0 %v9258_v43  ;;  %3462 = vmatprep.subr.bf16.mxu1 %v9260_v44  ;;  %v402_v43 = vld [vmem:[#allocation2 + $0x8f8] sm:$0xff]  ;;  %v9313_v44 = vcombine.low %v389_v29, %v393_v31 }
 0x1bc   :  { %v9324_v47 = vcombine.high %v398_v42, %v402_v43  ;;  %v9323_v53 = vcombine.low %v398_v42, %v402_v43  ;;  %v465_v42 = vld [vmem:[#allocation2 + $0xaf0] sm:$0xff]  ;;  %v462_v43 = vld [vmem:[#allocation2 + $0xad8] sm:$0xff] }
 0x1be   :  { %3291 = vmatpush1.bf16.msra.mxu0 %v9257_v49  ;;  %3463 = vmatpush1.bf16.msra.mxu1 %v9259_v50  ;;  %v409_v49 = vld [vmem:[#allocation2 + $0x930] sm:$0xff]  ;;  %v406_v50 = vld [vmem:[#allocation2 + $0x918] sm:$0xff] }
 0x1bf   :  { %3292 = vmatprep.subr.bf16.mxu0 %v9266_v51  ;;  %3464 = vmatprep.subr.bf16.mxu1 %v9268_v52  ;;  %v410_v51 = vld [vmem:[#allocation2 + $0x938] sm:$0xff]  ;;  %v9321_v52 = vcombine.low %v397_v39, %v401_v40  ;;  %v9330_v54 = vcombine.high %v405_v48, %v409_v49  ;;  %v9378_v39 = vcombine.high %v453_v33, %v457_v34 }
 0x1c0   :  { %v9332_v55 = vcombine.high %v406_v50, %v410_v51  ;;  %v9331_v61 = vcombine.low %v406_v50, %v410_v51  ;;  %v473_v50 = vld [vmem:[#allocation2 + $0xb30] sm:$0xff]  ;;  %v470_v51 = vld [vmem:[#allocation2 + $0xb18] sm:$0xff] }
 0x1c2   :  { %3293 = vmatpush1.bf16.msra.mxu0 %v9265_v57  ;;  %3465 = vmatpush1.bf16.msra.mxu1 %v9267_v58  ;;  %v417_v57 = vld [vmem:[#allocation2 + $0x970] sm:$0xff]  ;;  %v414_v58 = vld [vmem:[#allocation2 + $0x958] sm:$0xff] }
 0x1c3   :  { %3294 = vmatprep.subr.bf16.mxu0 %v9274_v59  ;;  %3466 = vmatprep.subr.bf16.mxu1 %v9276_v60  ;;  %v418_v59 = vld [vmem:[#allocation2 + $0x978] sm:$0xff]  ;;  %v9329_v60 = vcombine.low %v405_v48, %v409_v49  ;;  %v9338_v62 = vcombine.high %v413_v56, %v417_v57  ;;  %v469_v49 = vld [vmem:[#allocation2 + $0xb10] sm:$0xff] }
 0x1c4   :  { %v9340_v63 = vcombine.high %v414_v58, %v418_v59  ;;  %v9339_v5 = vcombine.low %v414_v58, %v418_v59  ;;  %v481_v58 = vld [vmem:[#allocation2 + $0xb70] sm:$0xff]  ;;  %v478_v59 = vld [vmem:[#allocation2 + $0xb58] sm:$0xff] }
 0x1c6   :  { %3295 = vmatpush1.bf16.msra.mxu0 %v9273_v1  ;;  %3467 = vmatpush1.bf16.msra.mxu1 %v9275_v2  ;;  %v425_v1 = vld [vmem:[#allocation2 + $0x9b0] sm:$0xff]  ;;  %v422_v2 = vld [vmem:[#allocation2 + $0x998] sm:$0xff] }
 0x1c7   :  { %3296 = vmatprep.subr.bf16.mxu0 %v9282_v3  ;;  %3468 = vmatprep.subr.bf16.mxu1 %v9284_v4  ;;  %v426_v3 = vld [vmem:[#allocation2 + $0x9b8] sm:$0xff]  ;;  %v9337_v4 = vcombine.low %v413_v56, %v417_v57  ;;  %v9346_v6 = vcombine.high %v421_v0, %v425_v1  ;;  %v477_v57 = vld [vmem:[#allocation2 + $0xb50] sm:$0xff] }
 0x1c8   :  { %v9348_v7 = vcombine.high %v422_v2, %v426_v3  ;;  %v9347_v13 = vcombine.low %v422_v2, %v426_v3  ;;  %v489_v2 = vld [vmem:[#allocation2 + $0xbb0] sm:$0xff]  ;;  %v486_v3 = vld [vmem:[#allocation2 + $0xb98] sm:$0xff] }
 0x1ca   :  { %3297 = vmatpush1.bf16.msra.mxu0 %v9281_v9  ;;  %3469 = vmatpush1.bf16.msra.mxu1 %v9283_v10  ;;  %v433_v9 = vld [vmem:[#allocation2 + $0x9f0] sm:$0xff]  ;;  %v430_v10 = vld [vmem:[#allocation2 + $0x9d8] sm:$0xff] }
 0x1cb   :  { %3298 = vmatprep.subr.bf16.mxu0 %v9290_v11  ;;  %3470 = vmatprep.subr.bf16.mxu1 %v9292_v12  ;;  %v434_v11 = vld [vmem:[#allocation2 + $0x9f8] sm:$0xff]  ;;  %v9345_v12 = vcombine.low %v421_v0, %v425_v1  ;;  %v9354_v14 = vcombine.high %v429_v8, %v433_v9  ;;  %v485_v1 = vld [vmem:[#allocation2 + $0xb90] sm:$0xff] }
 0x1cc   :  { %v9356_v15 = vcombine.high %v430_v10, %v434_v11  ;;  %v9355_v21 = vcombine.low %v430_v10, %v434_v11  ;;  %v497_v10 = vld [vmem:[#allocation2 + $0xbf0] sm:$0xff]  ;;  %v494_v11 = vld [vmem:[#allocation2 + $0xbd8] sm:$0xff] }
 0x1ce   :  { %3299 = vmatpush1.bf16.msra.mxu0 %v9289_v17  ;;  %3471 = vmatpush1.bf16.msra.mxu1 %v9291_v18  ;;  %v441_v17 = vld [vmem:[#allocation2 + $0xa30] sm:$0xff]  ;;  %v438_v18 = vld [vmem:[#allocation2 + $0xa18] sm:$0xff] }
 0x1cf   :  { %3311 = vmatprep.subr.bf16.mxu0 %v9298_v19  ;;  %3483 = vmatprep.subr.bf16.mxu1 %v9300_v20  ;;  %v442_v19 = vld [vmem:[#allocation2 + $0xa38] sm:$0xff]  ;;  %v9353_v20 = vcombine.low %v429_v8, %v433_v9  ;;  %v9362_v22 = vcombine.high %v437_v16, %v441_v17  ;;  %v493_v9 = vld [vmem:[#allocation2 + $0xbd0] sm:$0xff] }
 0x1d0   :  { %v9364_v23 = vcombine.high %v438_v18, %v442_v19  ;;  %v9363_v29 = vcombine.low %v438_v18, %v442_v19  ;;  %v505_v18 = vld [vmem:[#allocation2 + $0xc30] sm:$0xff]  ;;  %v502_v19 = vld [vmem:[#allocation2 + $0xc18] sm:$0xff] }
 0x1d1   :  { %3301 = vmatmul.mubr.bf16.vlgmr.msra.gmra.mrb[4].mxu0 %v10517_v32  ;;  %3473 = vmatmul.mubr.bf16.vlgmr.msra.gmra.mrb[4].mxu1 %v10517_v32 }
 0x1d2   :  { %3312 = vmatpush1.bf16.msra.mxu0 %v9297_v25  ;;  %3484 = vmatpush1.bf16.msra.mxu1 %v9299_v26  ;;  %v449_v25 = vld [vmem:[#allocation2 + $0xa70] sm:$0xff]  ;;  %v446_v26 = vld [vmem:[#allocation2 + $0xa58] sm:$0xff] }
 0x1d3   :  { %3313 = vmatprep.subr.bf16.mxu0 %v9306_v27  ;;  %3485 = vmatprep.subr.bf16.mxu1 %v9308_v28  ;;  %v450_v27 = vld [vmem:[#allocation2 + $0xa78] sm:$0xff]  ;;  %v9361_v28 = vcombine.low %v437_v16, %v441_v17  ;;  %v9370_v31 = vcombine.high %v445_v24, %v449_v25  ;;  %v501_v17 = vld [vmem:[#allocation2 + $0xc10] sm:$0xff] }
 0x1d4   :  { %3343 = vmatprep.mubr.bf16.mxu0 %v10518_v41  ;;  %3515 = vmatprep.mubr.bf16.mxu1 %v10518_v41  ;;  %v9372_v32 = vcombine.high %v446_v26, %v450_v27  ;;  %v461_v41 = vld [vmem:[#allocation2 + $0xad0] sm:$0xff] }
 0x1d6   :  { %3314 = vmatpush1.bf16.msra.mxu0 %v9305_v35  ;;  %3486 = vmatpush1.bf16.msra.mxu1 %v9307_v36  ;;  %v454_v35 = vld [vmem:[#allocation2 + $0xa98] sm:$0xff] }
 0x1d7   :  { %3315 = vmatprep.subr.bf16.mxu0 %v9314_v37  ;;  %3487 = vmatprep.subr.bf16.mxu1 %v9316_v38  ;;  %v458_v36 = vld [vmem:[#allocation2 + $0xab8] sm:$0xff]  ;;  %v9369_v37 = vcombine.low %v445_v24, %v449_v25  ;;  %v9371_v38 = vcombine.low %v446_v26, %v450_v27  ;;  %v509_v25 = vld [vmem:[#allocation2 + $0xc50] sm:$0xff] }
 0x1d8   :  { %v9380_v40 = vcombine.high %v454_v35, %v458_v36  ;;  %v513_v26 = vld [vmem:[#allocation2 + $0xc70] sm:$0xff]  ;;  %v510_v27 = vld [vmem:[#allocation2 + $0xc58] sm:$0xff] }
 0x1da   :  { %3316 = vmatpush1.bf16.msra.mxu0 %v9313_v44  ;;  %3488 = vmatpush1.bf16.msra.mxu1 %v9315_v45  ;;  %v466_v44 = vld [vmem:[#allocation2 + $0xaf8] sm:$0xff]  ;;  %v9377_v45 = vcombine.low %v453_v33, %v457_v34  ;;  %v517_v34 = vld [vmem:[#allocation2 + $0xc90] sm:$0xff] }
 0x1db   :  { %3317 = vmatprep.subr.bf16.mxu0 %v9322_v46  ;;  %3489 = vmatprep.subr.bf16.mxu1 %v9324_v47  ;;  %v9379_v46 = vcombine.low %v454_v35, %v458_v36  ;;  %v9386_v47 = vcombine.high %v461_v41, %v465_v42  ;;  %v9388_v48 = vcombine.high %v462_v43, %v466_v44  ;;  %v521_v35 = vld [vmem:[#allocation2 + $0xcb0] sm:$0xff] }
 0x1dc   :  { %v10519_v36 = vld [vmem:[%s11538_s0 + $0x10] ss:$28 sps:$4 sm:$0xff]  }
 0x1de   :  { %3318 = vmatpush1.bf16.msra.mxu0 %v9321_v52  ;;  %3490 = vmatpush1.bf16.msra.mxu1 %v9323_v53  ;;  %v474_v52 = vld [vmem:[#allocation2 + $0xb38] sm:$0xff]  ;;  %v9385_v53 = vcombine.low %v461_v41, %v465_v42  ;;  %v9442_v41 = vcombine.high %v517_v34, %v521_v35 }
 0x1df   :  { %3319 = vmatprep.subr.bf16.mxu0 %v9330_v54  ;;  %3491 = vmatprep.subr.bf16.mxu1 %v9332_v55  ;;  %v9387_v54 = vcombine.low %v462_v43, %v466_v44  ;;  %v9394_v55 = vcombine.high %v469_v49, %v473_v50  ;;  %v9396_v56 = vcombine.high %v470_v51, %v474_v52  ;;  %v525_v43 = vld [vmem:[#allocation2 + $0xcd0] sm:$0xff] }
 0x1e0   :  { %v529_v44 = vld [vmem:[#allocation2 + $0xcf0] sm:$0xff] }
 0x1e2   :  { %3320 = vmatpush1.bf16.msra.mxu0 %v9329_v60  ;;  %3492 = vmatpush1.bf16.msra.mxu1 %v9331_v61  ;;  %v482_v60 = vld [vmem:[#allocation2 + $0xb78] sm:$0xff]  ;;  %v9393_v61 = vcombine.low %v469_v49, %v473_v50  ;;  %v9450_v49 = vcombine.high %v525_v43, %v529_v44 }
 0x1e3   :  { %3321 = vmatprep.subr.bf16.mxu0 %v9338_v62  ;;  %3493 = vmatprep.subr.bf16.mxu1 %v9340_v63  ;;  %v9395_v62 = vcombine.low %v470_v51, %v474_v52  ;;  %v9402_v63 = vcombine.high %v477_v57, %v481_v58  ;;  %v9404_v0 = vcombine.high %v478_v59, %v482_v60  ;;  %v533_v51 = vld [vmem:[#allocation2 + $0xd10] sm:$0xff] }
 0x1e4   :  { %v537_v52 = vld [vmem:[#allocation2 + $0xd30] sm:$0xff] }
 0x1e6   :  { %3322 = vmatpush1.bf16.msra.mxu0 %v9337_v4  ;;  %3494 = vmatpush1.bf16.msra.mxu1 %v9339_v5  ;;  %v490_v4 = vld [vmem:[#allocation2 + $0xbb8] sm:$0xff]  ;;  %v9401_v5 = vcombine.low %v477_v57, %v481_v58  ;;  %v9458_v58 = vcombine.high %v533_v51, %v537_v52 }
 0x1e7   :  { %3323 = vmatprep.subr.bf16.mxu0 %v9346_v6  ;;  %3495 = vmatprep.subr.bf16.mxu1 %v9348_v7  ;;  %v9403_v6 = vcombine.low %v478_v59, %v482_v60  ;;  %v9410_v7 = vcombine.high %v485_v1, %v489_v2  ;;  %v9412_v8 = vcombine.high %v486_v3, %v490_v4  ;;  %v541_v59 = vld [vmem:[#allocation2 + $0xd50] sm:$0xff] }
 0x1e8   :  { %v545_v60 = vld [vmem:[#allocation2 + $0xd70] sm:$0xff] }
 0x1ea   :  { %3324 = vmatpush1.bf16.msra.mxu0 %v9345_v12  ;;  %3496 = vmatpush1.bf16.msra.mxu1 %v9347_v13  ;;  %v498_v12 = vld [vmem:[#allocation2 + $0xbf8] sm:$0xff]  ;;  %v9409_v13 = vcombine.low %v485_v1, %v489_v2  ;;  %v9466_v2 = vcombine.high %v541_v59, %v545_v60 }
 0x1eb   :  { %3325 = vmatprep.subr.bf16.mxu0 %v9354_v14  ;;  %3497 = vmatprep.subr.bf16.mxu1 %v9356_v15  ;;  %v9411_v14 = vcombine.low %v486_v3, %v490_v4  ;;  %v9418_v15 = vcombine.high %v493_v9, %v497_v10  ;;  %v9420_v16 = vcombine.high %v494_v11, %v498_v12  ;;  %v549_v4 = vld [vmem:[#allocation2 + $0xd90] sm:$0xff] }
 0x1ee   :  { %3326 = vmatpush1.bf16.msra.mxu0 %v9353_v20  ;;  %3498 = vmatpush1.bf16.msra.mxu1 %v9355_v21  ;;  %v506_v20 = vld [vmem:[#allocation2 + $0xc38] sm:$0xff]  ;;  %v9417_v21 = vcombine.low %v493_v9, %v497_v10  ;;  %v10847_v9 = vld [vmem:[#allocation4] sm:$0xff] }
 0x1ef   :  { %3327 = vmatprep.subr.bf16.mxu0 %v9362_v22  ;;  %3499 = vmatprep.subr.bf16.mxu1 %v9364_v23  ;;  %v9419_v22 = vcombine.low %v494_v11, %v498_v12  ;;  %v9426_v23 = vcombine.high %v501_v17, %v505_v18  ;;  %v9428_v24 = vcombine.high %v502_v19, %v506_v20 }
 0x1f2   :  { %3328 = vmatpush1.bf16.msra.mxu0 %v9361_v28  ;;  %3500 = vmatpush1.bf16.msra.mxu1 %v9363_v29  ;;  %v514_v28 = vld [vmem:[#allocation2 + $0xc78] sm:$0xff]  ;;  %v9425_v29 = vcombine.low %v501_v17, %v505_v18  ;;  %v557_v18 = vld [vmem:[#allocation2 + $0xdd0] sm:$0xff] }
 0x1f3   :  { %3329 = vmatprep.subr.bf16.mxu0 %v9370_v31  ;;  %3501 = vmatprep.subr.bf16.mxu1 %v9372_v32  ;;  %v9427_v31 = vcombine.low %v502_v19, %v506_v20  ;;  %v9434_v32 = vcombine.high %v509_v25, %v513_v26  ;;  %v9436_v33 = vcombine.high %v510_v27, %v514_v28  ;;  %v561_v19 = vld [vmem:[#allocation2 + $0xdf0] sm:$0xff] }
 0x1f6   :  { %3330 = vmatpush1.bf16.msra.mxu0 %v9369_v37  ;;  %3502 = vmatpush1.bf16.msra.mxu1 %v9371_v38  ;;  %v518_v37 = vld [vmem:[#allocation2 + $0xc98] sm:$0xff] }
 0x1f7   :  { %3331 = vmatprep.subr.bf16.mxu0 %v9378_v39  ;;  %3503 = vmatprep.subr.bf16.mxu1 %v9380_v40  ;;  %v522_v38 = vld [vmem:[#allocation2 + $0xcb8] sm:$0xff]  ;;  %v9433_v39 = vcombine.low %v509_v25, %v513_v26  ;;  %v9435_v40 = vcombine.low %v510_v27, %v514_v28 }
 0x1f8   :  { %v9444_v42 = vcombine.high %v518_v37, %v522_v38 }
 0x1fa   :  { %3332 = vmatpush1.bf16.msra.mxu0 %v9377_v45  ;;  %3504 = vmatpush1.bf16.msra.mxu1 %v9379_v46  ;;  %v526_v45 = vld [vmem:[#allocation2 + $0xcd8] sm:$0xff] }
 0x1fb   :  { %3333 = vmatprep.subr.bf16.mxu0 %v9386_v47  ;;  %3505 = vmatprep.subr.bf16.mxu1 %v9388_v48  ;;  %v530_v46 = vld [vmem:[#allocation2 + $0xcf8] sm:$0xff]  ;;  %v9441_v47 = vcombine.low %v517_v34, %v521_v35  ;;  %v9443_v48 = vcombine.low %v518_v37, %v522_v38 }
 0x1fc   :  { %v9452_v50 = vcombine.high %v526_v45, %v530_v46  ;;  %v9451_v57 = vcombine.low %v526_v45, %v530_v46 }
 0x1fe   :  { %3334 = vmatpush1.bf16.msra.mxu0 %v9385_v53  ;;  %3506 = vmatpush1.bf16.msra.mxu1 %v9387_v54  ;;  %v534_v53 = vld [vmem:[#allocation2 + $0xd18] sm:$0xff] }
 0x1ff   :  { %3335 = vmatprep.subr.bf16.mxu0 %v9394_v55  ;;  %3507 = vmatprep.subr.bf16.mxu1 %v9396_v56  ;;  %v538_v54 = vld [vmem:[#allocation2 + $0xd38] sm:$0xff]  ;;  %v565_v55 = vlaneseq  ;;  %v9449_v56 = vcombine.low %v525_v43, %v529_v44 }
 0x200   :  { %v9459_v1 = vcombine.low %v534_v53, %v538_v54  ;;  %v10520_v44 = vld [vmem:[%s11538_s0 + $0x18] ss:$28 sps:$4 sm:$0xff]  }
 0x202   :  { %3336 = vmatpush1.bf16.msra.mxu0 %v9393_v61  ;;  %3508 = vmatpush1.bf16.msra.mxu1 %v9395_v62  ;;  %v10844_v61 = vshrl.u32 %v565_v55, 7  ;;  %v542_v62 = vld [vmem:[#allocation2 + $0xd58] sm:$0xff] }
 0x203   :  { %3337 = vmatprep.subr.bf16.mxu0 %v9402_v63  ;;  %3509 = vmatprep.subr.bf16.mxu1 %v9404_v0  ;;  %v546_v63 = vld [vmem:[#allocation2 + $0xd78] sm:$0xff]  ;;  %v9457_v0 = vcombine.low %v533_v51, %v537_v52 }
 0x204   :  { %v9468_v3 = vcombine.high %v542_v62, %v546_v63  ;;  %v575_v10 = vsub.s32 2, %v10844_v61  ;;  %v571_v11 = vsub.s32 1, %v10844_v61  ;;  %v579_v12 = vsub.s32 3, %v10844_v61 }
 0x205   :  { %vm3572_vm0 = vcmp.lt.s32.totalorder %v10844_v61, 4  ;;  %v587_v51 = vsub.s32 5, %v10844_v61  ;;  %vm8961_vm3 = vcmp.eq.s32.totalorder %v10844_v61, 0 }
 0x206   :  { %3338 = vmatpush1.bf16.msra.mxu0 %v9401_v5  ;;  %3510 = vmatpush1.bf16.msra.mxu1 %v9403_v6  ;;  %v553_v5 = vld [vmem:[#allocation2 + $0xdb0] sm:$0xff]  ;;  %v567_v6 = vsub.s32 0, %v10844_v61  ;;  %v576_v25 = vrot.slane %v10847_v9, %v575_v10  ;;  %v572_v26 = vrot.slane %v10847_v9, %v571_v11  ;;  %v580_v27 = vrot.slane %v10847_v9, %v579_v12 }
 0x207   :  { %3339 = vmatprep.subr.bf16.mxu0 %v9410_v7  ;;  %3511 = vmatprep.subr.bf16.mxu1 %v9412_v8  ;;  %v550_v7 = vld [vmem:[#allocation2 + $0xd98] sm:$0xff] }
 0x208   :  { %v554_v8 = vld [vmem:[#allocation2 + $0xdb8] sm:$0xff]  ;;  %v568_v20 = vrot.slane %v10847_v9, %v567_v6 }
 0x209   :  { %v9476_v17 = vcombine.high %v550_v7, %v554_v8  ;;  %v9475_v35 = vcombine.low %v550_v7, %v554_v8 }
 0x20a   :  { %3340 = vmatpush1.bf16.msra.mxu0 %v9409_v13  ;;  %3512 = vmatpush1.bf16.msra.mxu1 %v9411_v14  ;;  %v9465_v13 = vcombine.low %v541_v59, %v545_v60  ;;  %v9467_v14 = vcombine.low %v542_v62, %v546_v63  ;;  %v595_v59 = vsub.s32 7, %v10844_v61 }
 0x20b   :  { %3341 = vmatprep.subr.bf16.mxu0 %v9418_v15  ;;  %3513 = vmatprep.subr.bf16.mxu1 %v9420_v16  ;;  %v9474_v15 = vcombine.high %v549_v4, %v553_v5 }
 0x20e   :  { %3342 = vmatpush1.bf16.msra.mxu0 %v9417_v21  ;;  %3514 = vmatpush1.bf16.msra.mxu1 %v9419_v22 }
 0x20f   :  { %3354 = vmatprep.subr.bf16.mxu0 %v9426_v23  ;;  %3526 = vmatprep.subr.bf16.mxu1 %v9428_v24  ;;  %v558_v23 = vld [vmem:[#allocation2 + $0xdd8] sm:$0xff] }
 0x210   :  { %v562_v24 = vld [vmem:[#allocation2 + $0xdf8] sm:$0xff] }
 0x211   :  { %3344 = vmatmul.mubr.bf16.vlgmr.msra.gmra.mrb[4].mxu0 %v10519_v36  ;;  %3516 = vmatmul.mubr.bf16.vlgmr.msra.gmra.mrb[4].mxu1 %v10519_v36  ;;  %v9482_v36 = vcombine.high %v557_v18, %v561_v19  ;;  %v9483_v43 = vcombine.low %v558_v23, %v562_v24 }
 0x212   :  { %3355 = vmatpush1.bf16.msra.mxu0 %v9425_v29  ;;  %3527 = vmatpush1.bf16.msra.mxu1 %v9427_v31  ;;  %v9473_v31 = vcombine.low %v549_v4, %v553_v5  ;;  %v596_v5 = vrot.slane %v10847_v9, %v595_v59 }
 0x213   :  { %3356 = vmatprep.subr.bf16.mxu0 %v9434_v32  ;;  %3528 = vmatprep.subr.bf16.mxu1 %v9436_v33 }
 0x214   :  { %3386 = vmatprep.mubr.bf16.mxu0 %v10671_v30  ;;  %3558 = vmatprep.mubr.bf16.mxu1 %v10671_v30  ;;  %v9460_v30 = vcombine.high %v534_v53, %v538_v54  ;;  %v10891_v53 = vand.u32 127, %v565_v55  ;;  %v591_v54 = vsub.s32 6, %v10844_v61 }
 0x216   :  { %3357 = vmatpush1.bf16.msra.mxu0 %v9433_v39  ;;  %3529 = vmatpush1.bf16.msra.mxu1 %v9435_v40  ;;  %v9484_v40 = vcombine.high %v558_v23, %v562_v24  ;;  %v3582_v60 = vadd.s32 896, %v10891_v53  ;;  %v592_v63 = vrot.slane %v10847_v9, %v591_v54  ;;  %vm8994_vm4 = vcmp.eq.s32.totalorder %v10891_v53, 0 }
 0x217   :  { %3358 = vmatprep.subr.bf16.mxu0 %v9442_v41  ;;  %3530 = vmatprep.subr.bf16.mxu1 %v9444_v42  ;;  %v9481_v42 = vcombine.low %v557_v18, %v561_v19  ;;  %vm8997_vm5 = vcmp.eq.s32.totalorder %v10891_v53, 1  ;;  %vm11031_vm6 = vmand %vm8961_vm3, %vm8994_vm4  ;;  %vm9001_vm10 = vcmp.eq.s32.totalorder %v10891_v53, 2  ;;  %vm9005_vm12 = vcmp.eq.s32.totalorder %v10891_v53, 3 }
 0x218   :  { %vm3590_vm1 = vcmp.lt.s32.totalorder %v3582_v60, 1000  ;;  %vm8998_vm7 = vmand %vm8961_vm3, %vm8997_vm5 }
 0x219   :  { %vm10940_vm2 = vmand %vm3572_vm0, %vm3590_vm1 }
 0x21a   :  { %3359 = vmatpush1.bf16.msra.mxu0 %v9441_v47  ;;  %3531 = vmatpush1.bf16.msra.mxu1 %v9443_v48  ;;  %vm9002_vm11 = vmand %vm8961_vm3, %vm9001_vm10 }
 0x21b   :  { %3360 = vmatprep.subr.bf16.mxu0 %v9450_v49  ;;  %3532 = vmatprep.subr.bf16.mxu1 %v9452_v50  ;;  %v583_v49 = vsub.s32 4, %v10844_v61  ;;  %vm11396_vm13 = vmand %vm8961_vm3, %vm9005_vm12  ;;  %v10345_v61 = vld [vmem:[#allocation9 + $0x190] sm:$0xff]  }
 0x21e   :  { %3361 = vmatpush1.bf16.msra.mxu0 %v9449_v56  ;;  %3533 = vmatpush1.bf16.msra.mxu1 %v9451_v57  ;;  %v584_v56 = vrot.slane %v10847_v9, %v583_v49 }
 0x21f   :  { %3362 = vmatprep.subr.bf16.mxu0 %v9458_v58  ;;  %3534 = vmatprep.subr.bf16.mxu1 %v9460_v30  ;;  %v588_v30 = vrot.slane %v10847_v9, %v587_v51 }
 0x222   :  { %3363 = vmatpush1.bf16.msra.mxu0 %v9457_v0  ;;  %3535 = vmatpush1.bf16.msra.mxu1 %v9459_v1 }
 0x223   :  { %3364 = vmatprep.subr.bf16.mxu0 %v9466_v2  ;;  %3536 = vmatprep.subr.bf16.mxu1 %v9468_v3 }
 0x224   :  { %v3044_v16 = vpop.f32.mrb[0].mxu0  ;;  %v3216_v21 = vpop.f32.mrb[0].mxu1 }
 0x225   :  { %v3046_v22 = vpop.f32.mrb[1].mxu0  ;;  %v3218_v28 = vpop.f32.mrb[1].mxu1  ;;  %v10875_v45 = vadd.f32 %v3044_v16, %v568_v20  ;;  %v10887_v50 = vadd.f32 %v3216_v21, %v576_v25 }
 0x226   :  { %v3048_v29 = vpop.f32.mrb[2].mxu0  ;;  %3365 = vmatpush1.bf16.msra.mxu0 %v9465_v13  ;;  %v3220_v33 = vpop.f32.mrb[2].mxu1  ;;  %3537 = vmatpush1.bf16.msra.mxu1 %v9467_v14  ;;  %v10877_v46 = vadd.f32 %v3046_v22, %v572_v26  ;;  %v10900_v58 = vadd.f32 %v3218_v28, %v580_v27 }
 0x227   :  { %v10864_v32 = vadd.f32 %v3048_v29, %v568_v20  ;;  %v3050_v34 = vpop.f32.mrb[3].mxu0  ;;  %3366 = vmatprep.subr.bf16.mxu0 %v9474_v15  ;;  %v10866_v37 = vadd.f32 %v3220_v33, %v576_v25  ;;  %v3222_v39 = vpop.f32.mrb[3].mxu1  ;;  %3538 = vmatprep.subr.bf16.mxu1 %v9476_v17  ;;  %v3627_v47 = vsel %vm3572_vm0, %v10875_v45, 0.0  ;;  %v3629_v57 = vsel %vm3572_vm0, %v10887_v50, 0.0  ;;  %v10308_v25 = vld [vmem:[#allocation9 + $0x8] sm:$0xff]  }
 0x228   :  { %v10868_v38 = vadd.f32 %v3050_v34, %v572_v26  ;;  %v10870_v41 = vadd.f32 %v3222_v39, %v580_v27  ;;  %v3628_v48 = vsel %vm3572_vm0, %v10877_v46, 0.0  ;;  %v3630_v3 = vsel %vm3572_vm0, %v10900_v58, 0.0 }
 0x229   :  { %v3643_v52 = vadd.f32 %v3628_v48, %v3627_v47  ;;  %v10672_v33 = vmov 0.0  }
 0x22a   :  { %3367 = vmatpush1.bf16.msra.mxu0 %v9473_v31  ;;  %3539 = vmatpush1.bf16.msra.mxu1 %v9475_v35 }
 0x22b   :  { %3368 = vmatprep.subr.bf16.mxu0 %v9482_v36  ;;  %3540 = vmatprep.subr.bf16.mxu1 %v9484_v40  ;;  %v3644_v55 = vadd.f32 %v3643_v52, %v3629_v57 }
 0x22d   :  { %v3645_v13 = vadd.f32 %v3644_v55, %v3630_v3 }
 0x22e   :  { %3369 = vmatpush1.bf16.msra.mxu0 %v9481_v42  ;;  %3541 = vmatpush1.bf16.msra.mxu1 %v9483_v43 }
 0x231   :  { %3387 = vmatmul.mubr.bf16.vlgmr.msra.gmra.mrb[4].mxu0 %v10520_v44  ;;  %3559 = vmatmul.mubr.bf16.vlgmr.msra.gmra.mrb[4].mxu1 %v10520_v44 }
 0x304   :  { %v3388_v62 = vpop.f32.mrb[4].mxu0  ;;  %v3560_v1 = vpop.f32.mrb[4].mxu1 }
 0x305   :  { %v10910_v0 = vadd.f32 %v3388_v62, %v584_v56  ;;  %v3390_v2 = vpop.f32.mrb[5].mxu0  ;;  %v3562_v7 = vpop.f32.mrb[5].mxu1  ;;  %v10925_v18 = vadd.f32 %v3560_v1, %v592_v63 }
 0x306   :  { %v10915_v4 = vadd.f32 %v3390_v2, %v588_v30  ;;  %v3392_v8 = vpop.f32.mrb[6].mxu0  ;;  %v3564_v16 = vpop.f32.mrb[6].mxu1  ;;  %v10936_v24 = vadd.f32 %v3562_v7, %v596_v5 }
 0x307   :  { %v3631_v14 = vsel %vm3572_vm0, %v10910_v0, 0.0  ;;  %v10923_v15 = vadd.f32 %v3392_v8, %v584_v56  ;;  %v3394_v17 = vpop.f32.mrb[7].mxu0  ;;  %v10927_v19 = vadd.f32 %v3564_v16, %v592_v63  ;;  %v3566_v21 = vpop.f32.mrb[7].mxu1  ;;  %v3633_v27 = vsel %vm3572_vm0, %v10925_v18, 0.0 }
 0x308   :  { %v10929_v20 = vadd.f32 %v3394_v17, %v588_v30  ;;  %v3632_v9 = vsel %vm3572_vm0, %v10915_v4, 0.0  ;;  %v10934_v22 = vadd.f32 %v3566_v21, %v596_v5  ;;  %v3646_v23 = vadd.f32 %v3645_v13, %v3631_v14 }
 0x309   :  { %v3634_v29 = vsel %vm10940_vm2, %v10936_v24, 0.0 }
 0x30a   :  { %v3647_v26 = vadd.f32 %v3646_v23, %v3632_v9 }
 0x30c   :  { %v3648_v28 = vadd.f32 %v3647_v26, %v3633_v27 }
 0x30e   :  { %v3649_v31 = vadd.f32 %v3648_v28, %v3634_v29 }
 0x310   :  { %3650 = vadd.xlane.f32.xlu0 %v3649_v31 }
 0x314   :  { %3659 = vadd.xlane.f32.xlu0 %v10672_v33 }
 0x39d   :  { %v3651_v34 = vpop.xlane.xlu0 %3650 }
 0x3a1   :  { %v3660_v35 = vpop.xlane.xlu0 %3659 }
 0x3a2   :  { %v3661_v36 = vadd.f32 %v3660_v35, %v3651_v34 }
 0x3a4   :  { %v3662_v39 = vrot.slane %v3661_v36, 4 }
 0x3a6   :  { %v3663_v40 = vadd.f32 %v3662_v39, %v3661_v36 }
 0x3a8   :  { %v3664_v42 = vrot.slane %v3663_v40, 2 }
 0x3aa   :  { %v3665_v43 = vadd.f32 %v3664_v42, %v3663_v40  ;;  %v4038_v42 = vld [vmem:[#allocation6] sm:$0xff] }
 0x3ac   :  { %v3666_v44 = vrot.slane %v3665_v43, 1 }
 0x3ae   :  { %v3667_v47 = vadd.f32 %v3666_v44, %v3665_v43  ;;  %v4042_v43 = vld [vmem:[#allocation6 + $0x20] sm:$0xff]  ;;  %v4039_v44 = vld [vmem:[#allocation6 + $0x8] sm:$0xff] }
 0x3b0   :  { %v10950_v48 = vmul.f32 0.00025, %v3667_v47  ;;  %v9486_v47 = vcombine.low %v4038_v42, %v4042_v43 }
 0x3b2   :  { %v3670_v52 = vsub.f32 %v10875_v45, %v10950_v48  ;;  %v3671_v56 = vsub.f32 %v10877_v46, %v10950_v48  ;;  %v3672_v57 = vsub.f32 %v10887_v50, %v10950_v48  ;;  %v3673_v30 = vsub.f32 %v10900_v58, %v10950_v48 }
 0x3b3   :  { %v3674_v62 = vsub.f32 %v10910_v0, %v10950_v48  ;;  %v3675_v3 = vsub.f32 %v10915_v4, %v10950_v48  ;;  %v3676_v13 = vsub.f32 %v10925_v18, %v10950_v48  ;;  %v3677_v21 = vsub.f32 %v10936_v24, %v10950_v48 }
 0x3b4   :  { %v3686_v55 = vsel %vm3572_vm0, %v3670_v52, 0.0  ;;  %v3687_v60 = vsel %vm3572_vm0, %v3671_v56, 0.0  ;;  %v3688_v63 = vsel %vm3572_vm0, %v3672_v57, 0.0  ;;  %v3689_v5 = vsel %vm3572_vm0, %v3673_v30, 0.0  ;;  %v4043_v56 = vld [vmem:[#allocation6 + $0x28] sm:$0xff]  ;;  %v4046_v57 = vld [vmem:[#allocation6 + $0x40] sm:$0xff] }
 0x3b5   :  { %v10968_v1 = vmul.f32 %v3686_v55, %v3686_v55  ;;  %v10970_v2 = vmul.f32 %v3687_v60, %v3687_v60  ;;  %v10976_v7 = vmul.f32 %v3688_v63, %v3688_v63  ;;  %v3690_v14 = vsel %vm3572_vm0, %v3674_v62, 0.0  ;;  %v4050_v30 = vld [vmem:[#allocation6 + $0x60] sm:$0xff]  ;;  %v4047_v63 = vld [vmem:[#allocation6 + $0x48] sm:$0xff] }
 0x3b6   :  { %v10984_v16 = vmul.f32 %v3689_v5, %v3689_v5  ;;  %v3691_v9 = vsel %vm3572_vm0, %v3675_v3, 0.0  ;;  %v10991_v23 = vmul.f32 %v3690_v14, %v3690_v14  ;;  %v3692_v27 = vsel %vm3572_vm0, %v3676_v13, 0.0  ;;  %v4051_v3 = vld [vmem:[#allocation6 + $0x68] sm:$0xff]  ;;  %v4054_v5 = vld [vmem:[#allocation6 + $0x80] sm:$0xff] }
 0x3b7   :  { %v3718_v8 = vadd.f32 %v10970_v2, %v10968_v1  ;;  %v10996_v28 = vmul.f32 %v3691_v9, %v3691_v9  ;;  %v3693_v31 = vsel %vm10940_vm2, %v3677_v21, 0.0  ;;  %v11001_v34 = vmul.f32 %v3692_v27, %v3692_v27  ;;  %v4058_v13 = vld [vmem:[#allocation6 + $0xa0] sm:$0xff]  ;;  %v4055_v14 = vld [vmem:[#allocation6 + $0x88] sm:$0xff] }
 0x3b8   :  { %v11004_v36 = vmul.f32 %v3693_v31, %v3693_v31  ;;  %v9487_v52 = vcombine.high %v4038_v42, %v4042_v43  ;;  %v9488_v55 = vcombine.low %v4039_v44, %v4043_v56  ;;  %v9489_v60 = vcombine.high %v4039_v44, %v4043_v56  ;;  %v4062_v27 = vld [vmem:[#allocation6 + $0xc0] sm:$0xff]  ;;  %v4063_v31 = vld [vmem:[#allocation6 + $0xc8] sm:$0xff] }
 0x3b9   :  { %v3719_v17 = vadd.f32 %v3718_v8, %v10976_v7  ;;  %v9495_v62 = vcombine.high %v4046_v57, %v4050_v30  ;;  %v9497_v8 = vcombine.high %v4047_v63, %v4051_v3  ;;  %v9496_v21 = vcombine.low %v4047_v63, %v4051_v3  ;;  %v4070_v44 = vld [vmem:[#allocation6 + $0x100] sm:$0xff]  ;;  %v4075_v56 = vld [vmem:[#allocation6 + $0x128] sm:$0xff] }
 0x3ba   :  { %7152 = vmatprep.subr.bf16.mxu0 %v9487_v52  ;;  %7324 = vmatprep.subr.bf16.mxu1 %v9489_v60  ;;  %v9503_v9 = vcombine.high %v4054_v5, %v4058_v13  ;;  %v4071_v52 = vld [vmem:[#allocation6 + $0x108] sm:$0xff]  ;;  %v4082_v63 = vld [vmem:[#allocation6 + $0x160] sm:$0xff] }
 0x3bb   :  { %v3720_v26 = vadd.f32 %v3719_v17, %v10984_v16  ;;  %v4059_v17 = vld [vmem:[#allocation6 + $0xa8] sm:$0xff]  ;;  %7153 = vmatpush1.bf16.msra.mxu0 %v9486_v47  ;;  %7325 = vmatpush1.bf16.msra.mxu1 %v9488_v55  ;;  %v4074_v47 = vld [vmem:[#allocation6 + $0x120] sm:$0xff]  ;;  %v9521_v60 = vcombine.high %v4071_v52, %v4075_v56 }
 0x3bc   :  { %7154 = vmatprep.subr.bf16.mxu0 %v9495_v62  ;;  %7326 = vmatprep.subr.bf16.mxu1 %v9497_v8  ;;  %v9519_v55 = vcombine.high %v4070_v44, %v4074_v47  ;;  %v4078_v62 = vld [vmem:[#allocation6 + $0x140] sm:$0xff]  ;;  %v4079_v3 = vld [vmem:[#allocation6 + $0x148] sm:$0xff]  ;;  %v9518_v8 = vcombine.low %v4070_v44, %v4074_v47 }
 0x3bd   :  { %v3721_v29 = vadd.f32 %v3720_v26, %v10991_v23  ;;  %v9505_v26 = vcombine.high %v4055_v14, %v4059_v17 }
 0x3bf   :  { %v3722_v35 = vadd.f32 %v3721_v29, %v10996_v28  ;;  %v4066_v29 = vld [vmem:[#allocation6 + $0xe0] sm:$0xff]  ;;  %7327 = vmatpush1.bf16.msra.mxu1 %v9496_v21 }
 0x3c0   :  { %v9511_v42 = vcombine.high %v4062_v27, %v4066_v29  ;;  %7328 = vmatprep.subr.bf16.mxu1 %v9505_v26  ;;  %v4090_v21 = vld [vmem:[#allocation6 + $0x1a0] sm:$0xff]  ;;  %v4091_v26 = vld [vmem:[#allocation6 + $0x1a8] sm:$0xff] }
 0x3c1   :  { %v3723_v39 = vadd.f32 %v3722_v35, %v11001_v34  ;;  %v4067_v35 = vld [vmem:[#allocation6 + $0xe8] sm:$0xff] }
 0x3c2   :  { %v9513_v43 = vcombine.high %v4063_v31, %v4067_v35 }
 0x3c3   :  { %v3724_v40 = vadd.f32 %v3723_v39, %v11004_v36  ;;  %v9502_v39 = vcombine.low %v4054_v5, %v4058_v13  ;;  %v4083_v5 = vld [vmem:[#allocation6 + $0x168] sm:$0xff]  ;;  %v9520_v13 = vcombine.low %v4071_v52, %v4075_v56 }
 0x3c5   :  { %3725 = vadd.xlane.f32.xlu1 %v3724_v40  ;;  %v9504_v40 = vcombine.low %v4055_v14, %v4059_v17  ;;  %v9527_v14 = vcombine.high %v4078_v62, %v4082_v63  ;;  %v9529_v17 = vcombine.high %v4079_v3, %v4083_v5 }
 0x3c7   :  { %7329 = vmatpush1.bf16.msra.mxu1 %v9504_v40  ;;  %v4098_v40 = vld [vmem:[#allocation6 + $0x1e0] sm:$0xff] }
 0x3c8   :  { %7330 = vmatprep.subr.bf16.mxu1 %v9513_v43  ;;  %v4099_v43 = vld [vmem:[#allocation6 + $0x1e8] sm:$0xff] }
 0x3c9   :  { %3734 = vadd.xlane.f32.xlu1 %v10672_v33 }
 0x3cd   :  { %7872 = vadd.xlane.f32.xlu1 %v10672_v33 }
 0x3d1   :  { %7946 = vadd.xlane.f32.xlu1 %v10672_v33  ;;  %v9494_v33 = vcombine.low %v4046_v57, %v4050_v30  ;;  %v9510_v57 = vcombine.low %v4062_v27, %v4066_v29  ;;  %v9512_v30 = vcombine.low %v4063_v31, %v4067_v35  ;;  %v9526_v27 = vcombine.low %v4078_v62, %v4082_v63 }
 0x3d2   :  { %v9528_v29 = vcombine.low %v4079_v3, %v4083_v5 }
 0x3d3   :  { %7155 = vmatpush1.bf16.msra.mxu0 %v9494_v33  ;;  %7331 = vmatpush1.bf16.msra.mxu1 %v9512_v30  ;;  %v4086_v33 = vld [vmem:[#allocation6 + $0x180] sm:$0xff] }
 0x3d4   :  { %7156 = vmatprep.subr.bf16.mxu0 %v9503_v9  ;;  %7332 = vmatprep.subr.bf16.mxu1 %v9521_v60  ;;  %v4087_v9 = vld [vmem:[#allocation6 + $0x188] sm:$0xff]  ;;  %v9535_v31 = vcombine.high %v4086_v33, %v4090_v21  ;;  %v9534_v44 = vcombine.low %v4086_v33, %v4090_v21  ;;  %v4106_v30 = vld [vmem:[#allocation6 + $0x220] sm:$0xff] }
 0x3d5   :  { %v9537_v35 = vcombine.high %v4087_v9, %v4091_v26  ;;  %v9536_v47 = vcombine.low %v4087_v9, %v4091_v26  ;;  %v4107_v60 = vld [vmem:[#allocation6 + $0x228] sm:$0xff] }
 0x3d7   :  { %7157 = vmatpush1.bf16.msra.mxu0 %v9502_v39  ;;  %7333 = vmatpush1.bf16.msra.mxu1 %v9520_v13  ;;  %v4094_v39 = vld [vmem:[#allocation6 + $0x1c0] sm:$0xff] }
 0x3d8   :  { %7158 = vmatprep.subr.bf16.mxu0 %v9511_v42  ;;  %7334 = vmatprep.subr.bf16.mxu1 %v9529_v17  ;;  %v4095_v42 = vld [vmem:[#allocation6 + $0x1c8] sm:$0xff]  ;;  %v9543_v52 = vcombine.high %v4094_v39, %v4098_v40  ;;  %v9542_v62 = vcombine.low %v4094_v39, %v4098_v40  ;;  %v4114_v13 = vld [vmem:[#allocation6 + $0x260] sm:$0xff] }
 0x3d9   :  { %v9545_v56 = vcombine.high %v4095_v42, %v4099_v43  ;;  %v9544_v63 = vcombine.low %v4095_v42, %v4099_v43  ;;  %v4115_v17 = vld [vmem:[#allocation6 + $0x268] sm:$0xff] }
 0x3db   :  { %7159 = vmatpush1.bf16.msra.mxu0 %v9510_v57  ;;  %7335 = vmatpush1.bf16.msra.mxu1 %v9528_v29  ;;  %v4102_v57 = vld [vmem:[#allocation6 + $0x200] sm:$0xff] }
 0x3dc   :  { %7160 = vmatprep.subr.bf16.mxu0 %v9519_v55  ;;  %7336 = vmatprep.subr.bf16.mxu1 %v9537_v35  ;;  %v4103_v55 = vld [vmem:[#allocation6 + $0x208] sm:$0xff]  ;;  %v9551_v3 = vcombine.high %v4102_v57, %v4106_v30  ;;  %v9550_v33 = vcombine.low %v4102_v57, %v4106_v30  ;;  %v4122_v29 = vld [vmem:[#allocation6 + $0x2a0] sm:$0xff] }
 0x3dd   :  { %v9553_v5 = vcombine.high %v4103_v55, %v4107_v60  ;;  %v9552_v21 = vcombine.low %v4103_v55, %v4107_v60  ;;  %v4123_v35 = vld [vmem:[#allocation6 + $0x2a8] sm:$0xff] }
 0x3df   :  { %7161 = vmatpush1.bf16.msra.mxu0 %v9518_v8  ;;  %7337 = vmatpush1.bf16.msra.mxu1 %v9536_v47  ;;  %v4110_v8 = vld [vmem:[#allocation6 + $0x240] sm:$0xff] }
 0x3e0   :  { %7162 = vmatprep.subr.bf16.mxu0 %v9527_v14  ;;  %7338 = vmatprep.subr.bf16.mxu1 %v9545_v56  ;;  %v4111_v14 = vld [vmem:[#allocation6 + $0x248] sm:$0xff]  ;;  %v9559_v9 = vcombine.high %v4110_v8, %v4114_v13  ;;  %v9558_v39 = vcombine.low %v4110_v8, %v4114_v13  ;;  %v4130_v47 = vld [vmem:[#allocation6 + $0x2e0] sm:$0xff] }
 0x3e1   :  { %v9561_v26 = vcombine.high %v4111_v14, %v4115_v17  ;;  %v9560_v40 = vcombine.low %v4111_v14, %v4115_v17  ;;  %v4131_v56 = vld [vmem:[#allocation6 + $0x2e8] sm:$0xff] }
 0x3e3   :  { %7163 = vmatpush1.bf16.msra.mxu0 %v9526_v27  ;;  %7339 = vmatpush1.bf16.msra.mxu1 %v9544_v63  ;;  %v4118_v27 = vld [vmem:[#allocation6 + $0x280] sm:$0xff] }
 0x3e4   :  { %7164 = vmatprep.subr.bf16.mxu0 %v9535_v31  ;;  %7340 = vmatprep.subr.bf16.mxu1 %v9553_v5  ;;  %v4119_v31 = vld [vmem:[#allocation6 + $0x288] sm:$0xff]  ;;  %v9567_v42 = vcombine.high %v4118_v27, %v4122_v29  ;;  %v9566_v57 = vcombine.low %v4118_v27, %v4122_v29  ;;  %v4138_v63 = vld [vmem:[#allocation6 + $0x320] sm:$0xff] }
 0x3e5   :  { %v9569_v43 = vcombine.high %v4119_v31, %v4123_v35  ;;  %v9568_v30 = vcombine.low %v4119_v31, %v4123_v35  ;;  %v4139_v5 = vld [vmem:[#allocation6 + $0x328] sm:$0xff] }
 0x3e7   :  { %7165 = vmatpush1.bf16.msra.mxu0 %v9534_v44  ;;  %7341 = vmatpush1.bf16.msra.mxu1 %v9552_v21  ;;  %v4126_v44 = vld [vmem:[#allocation6 + $0x2c0] sm:$0xff] }
 0x3e8   :  { %7166 = vmatprep.subr.bf16.mxu0 %v9543_v52  ;;  %7342 = vmatprep.subr.bf16.mxu1 %v9561_v26  ;;  %v4127_v52 = vld [vmem:[#allocation6 + $0x2c8] sm:$0xff]  ;;  %v9575_v55 = vcombine.high %v4126_v44, %v4130_v47  ;;  %v9574_v8 = vcombine.low %v4126_v44, %v4130_v47  ;;  %v4146_v21 = vld [vmem:[#allocation6 + $0x360] sm:$0xff] }
 0x3e9   :  { %v9577_v60 = vcombine.high %v4127_v52, %v4131_v56  ;;  %v9576_v13 = vcombine.low %v4127_v52, %v4131_v56  ;;  %v4147_v26 = vld [vmem:[#allocation6 + $0x368] sm:$0xff] }
 0x3eb   :  { %7167 = vmatpush1.bf16.msra.mxu0 %v9542_v62  ;;  %7343 = vmatpush1.bf16.msra.mxu1 %v9560_v40  ;;  %v4134_v62 = vld [vmem:[#allocation6 + $0x300] sm:$0xff] }
 0x3ec   :  { %7168 = vmatprep.subr.bf16.mxu0 %v9551_v3  ;;  %7344 = vmatprep.subr.bf16.mxu1 %v9569_v43  ;;  %v4135_v3 = vld [vmem:[#allocation6 + $0x308] sm:$0xff]  ;;  %v9583_v14 = vcombine.high %v4134_v62, %v4138_v63  ;;  %v9582_v27 = vcombine.low %v4134_v62, %v4138_v63  ;;  %v4154_v40 = vld [vmem:[#allocation6 + $0x3a0] sm:$0xff] }
 0x3ed   :  { %v9585_v17 = vcombine.high %v4135_v3, %v4139_v5  ;;  %v9584_v29 = vcombine.low %v4135_v3, %v4139_v5  ;;  %v4155_v43 = vld [vmem:[#allocation6 + $0x3a8] sm:$0xff] }
 0x3ef   :  { %7169 = vmatpush1.bf16.msra.mxu0 %v9550_v33  ;;  %7345 = vmatpush1.bf16.msra.mxu1 %v9568_v30  ;;  %v4142_v33 = vld [vmem:[#allocation6 + $0x340] sm:$0xff] }
 0x3f0   :  { %7170 = vmatprep.subr.bf16.mxu0 %v9559_v9  ;;  %7346 = vmatprep.subr.bf16.mxu1 %v9577_v60  ;;  %v4143_v9 = vld [vmem:[#allocation6 + $0x348] sm:$0xff]  ;;  %v9591_v31 = vcombine.high %v4142_v33, %v4146_v21  ;;  %v9590_v44 = vcombine.low %v4142_v33, %v4146_v21  ;;  %v4162_v30 = vld [vmem:[#allocation6 + $0x3e0] sm:$0xff] }
 0x3f1   :  { %v9593_v35 = vcombine.high %v4143_v9, %v4147_v26  ;;  %v9592_v47 = vcombine.low %v4143_v9, %v4147_v26  ;;  %v4163_v60 = vld [vmem:[#allocation6 + $0x3e8] sm:$0xff] }
 0x3f2   :  { %v11012_v33 = vld [vmem:[#allocation6 + $0x408] sm:$0xff] }
 0x3f3   :  { %7171 = vmatpush1.bf16.msra.mxu0 %v9558_v39  ;;  %7347 = vmatpush1.bf16.msra.mxu1 %v9576_v13  ;;  %v4150_v39 = vld [vmem:[#allocation6 + $0x380] sm:$0xff]  ;;  %v11018_v26 = vld [vmem:[#allocation6 + $0x428] sm:$0xff] }
 0x3f4   :  { %7172 = vmatprep.subr.bf16.mxu0 %v9567_v42  ;;  %7348 = vmatprep.subr.bf16.mxu1 %v9585_v17  ;;  %v4151_v42 = vld [vmem:[#allocation6 + $0x388] sm:$0xff]  ;;  %v9599_v52 = vcombine.high %v4150_v39, %v4154_v40  ;;  %v9598_v62 = vcombine.low %v4150_v39, %v4154_v40  ;;  %v11010_v17 = vld [vmem:[#allocation6 + $0x420] sm:$0xff] }
 0x3f5   :  { %v9601_v56 = vcombine.high %v4151_v42, %v4155_v43  ;;  %v9600_v63 = vcombine.low %v4151_v42, %v4155_v43 }
 0x3f7   :  { %7173 = vmatpush1.bf16.msra.mxu0 %v9566_v57  ;;  %7349 = vmatpush1.bf16.msra.mxu1 %v9584_v29  ;;  %v4158_v57 = vld [vmem:[#allocation6 + $0x3c0] sm:$0xff]  ;;  %v9617_v29 = vcombine.high %v11012_v33, %v11018_v26 }
 0x3f8   :  { %7174 = vmatprep.subr.bf16.mxu0 %v9575_v55  ;;  %7350 = vmatprep.subr.bf16.mxu1 %v9593_v35  ;;  %v4159_v55 = vld [vmem:[#allocation6 + $0x3c8] sm:$0xff]  ;;  %v9607_v3 = vcombine.high %v4158_v57, %v4162_v30 }
 0x3f9   :  { %v9609_v5 = vcombine.high %v4159_v55, %v4163_v60  ;;  %v9608_v13 = vcombine.low %v4159_v55, %v4163_v60  ;;  %v3754_v55 = vsub.f32 0.0, %v10968_v1  ;;  %v3755_v60 = vsub.f32 0.0, %v10970_v2 }
 0x3fb   :  { %7175 = vmatpush1.bf16.msra.mxu0 %v9574_v8  ;;  %7351 = vmatpush1.bf16.msra.mxu1 %v9592_v47  ;;  %v9606_v8 = vcombine.low %v4158_v57, %v4162_v30 }
 0x3fc   :  { %7176 = vmatprep.subr.bf16.mxu0 %v9583_v14  ;;  %7352 = vmatprep.subr.bf16.mxu1 %v9601_v56  ;;  %v11008_v14 = vld [vmem:[#allocation6 + $0x400] sm:$0xff] }
 0x3fd   :  { %v9614_v21 = vcombine.low %v11008_v14, %v11010_v17  ;;  %v9615_v9 = vcombine.high %v11008_v14, %v11010_v17  ;;  %v4194_v14 = vld [vmem:[#allocation6 + $0x4e0] sm:$0xff]  ;;  %v4191_v17 = vld [vmem:[#allocation6 + $0x4c8] sm:$0xff] }
 0x3ff   :  { %7177 = vmatpush1.bf16.msra.mxu0 %v9582_v27  ;;  %7353 = vmatpush1.bf16.msra.mxu1 %v9600_v63  ;;  %v9616_v27 = vcombine.low %v11012_v33, %v11018_v26  ;;  %v4195_v33 = vld [vmem:[#allocation6 + $0x4e8] sm:$0xff] }
 0x400   :  { %7178 = vmatprep.subr.bf16.mxu0 %v9591_v31  ;;  %7354 = vmatprep.subr.bf16.mxu1 %v9609_v5 }
 0x403   :  { %7179 = vmatpush1.bf16.msra.mxu0 %v9590_v44  ;;  %7355 = vmatpush1.bf16.msra.mxu1 %v9608_v13  ;;  %v3756_v13 = vsub.f32 0.0, %v10976_v7 }
 0x404   :  { %7180 = vmatprep.subr.bf16.mxu0 %v9599_v52  ;;  %7367 = vmatprep.subr.bf16.mxu1 %v9617_v29 }
 0x407   :  { %7181 = vmatpush1.bf16.msra.mxu0 %v9598_v62 }
 0x408   :  { %7182 = vmatprep.subr.bf16.mxu0 %v9607_v3  ;;  %v3757_v3 = vsub.f32 0.0, %v10984_v16  ;;  %v8996_v16 = vsel %vm11031_vm6, %v10950_v48, 0.0 }
 0x40b   :  { %7183 = vmatpush1.bf16.msra.mxu0 %v9606_v8 }
 0x40c   :  { %7195 = vmatprep.subr.bf16.mxu0 %v9615_v9 }
 0x452   :  { %v3726_v31 = vpop.xlane.xlu1 %3725 }
 0x456   :  { %v3735_v35 = vpop.xlane.xlu1 %3734 }
 0x457   :  { %v3736_v39 = vadd.f32 %v3735_v35, %v3726_v31  ;;  %v3758_v35 = vsub.f32 0.0, %v10991_v23 }
 0x459   :  { %v3737_v40 = vrot.slane %v3736_v39, 4 }
 0x45b   :  { %v3738_v42 = vadd.f32 %v3737_v40, %v3736_v39  ;;  %v3759_v39 = vsub.f32 0.0, %v10996_v28 }
 0x45d   :  { %v3739_v43 = vrot.slane %v3738_v42, 2 }
 0x45f   :  { %v3740_v44 = vadd.f32 %v3739_v43, %v3738_v42 }
 0x461   :  { %v3741_v47 = vrot.slane %v3740_v44, 1 }
 0x463   :  { %v3742_v52 = vadd.f32 %v3741_v47, %v3740_v44 }
 0x465   :  { %v3744_v56 = vmul.f32 0.00025006253, %v3742_v52 }
 0x467   :  { %10366 = vrsqrt.f32 %v3744_v56  ;;  %vm3747_vm8 = vcmp.eq.f32.partialorder %v3744_v56, inf  ;;  %v3750_v5 = vand.u32 2147483648, %v3744_v56  ;;  %vm3749_vm9 = vcmp.eq.f32.partialorder %v3744_v56, 0.0 }
 0x468   :  { %10368 = vrcp.f32 %v3744_v56 }
 0x471   :  { %v10367_v57 = vpop.eup %10366 }
 0x472   :  { %v10369_v30 = vpop.eup %10368  ;;  %v3746_v63 = vmul.f32 %v10367_v57, %v3744_v56 }
 0x473   :  { %v3753_v8 = vmul.f32 0.5, %v10369_v30 }
 0x474   :  { %v3748_v1 = vsel %vm3747_vm8, %v3744_v56, %v3746_v63  ;;  %v3761_v56 = vsub.f32 0.0, %v11004_v36 }
 0x475   :  { %v3751_v2 = vsel %vm3749_vm9, %v3750_v5, %v3748_v1  ;;  %v3771_v9 = vmul.f32 %v3755_v60, %v3753_v8  ;;  %v3770_v29 = vmul.f32 %v3754_v55, %v3753_v8  ;;  %v3773_v31 = vmul.f32 %v3757_v3, %v3753_v8 }
 0x476   :  { %v8999_v40 = vsel %vm8998_vm7, %v3751_v2, 0.0  ;;  %v3772_v47 = vmul.f32 %v3756_v13, %v3753_v8  ;;  %v3775_v52 = vmul.f32 %v3759_v39, %v3753_v8  ;;  %v3774_v57 = vmul.f32 %v3758_v35, %v3753_v8 }
 0x477   :  { %v11044_v42 = vadd.f32 %v8999_v40, %v8996_v16  ;;  %v3788_v43 = vmul.f32 1.442695, %v3771_v9  ;;  %v3786_v44 = vmul.f32 1.442695, %v3770_v29  ;;  %v3792_v7 = vmul.f32 1.442695, %v3773_v31 }
 0x478   :  { %v3790_v23 = vmul.f32 1.442695, %v3772_v47  ;;  %v3796_v28 = vmul.f32 1.442695, %v3775_v52  ;;  %v3794_v30 = vmul.f32 1.442695, %v3774_v57  ;;  %v3777_v55 = vmul.f32 %v3761_v56, %v3753_v8 }
 0x479   :  { %10370 = vpow2.f32 %v3788_v43  ;;  %v3760_v60 = vsub.f32 0.0, %v11001_v34 }
 0x47a   :  { %10372 = vpow2.f32 %v3786_v44  ;;  %v3800_v48 = vmul.f32 1.442695, %v3777_v55 }
 0x47b   :  { %10374 = vpow2.f32 %v3792_v7  ;;  %v3776_v62 = vmul.f32 %v3760_v60, %v3753_v8 }
 0x47c   :  { %10376 = vpow2.f32 %v3790_v23 }
 0x47d   :  { %10378 = vpow2.f32 %v3796_v28  ;;  %v3798_v5 = vmul.f32 1.442695, %v3776_v62 }
 0x47e   :  { %10380 = vpow2.f32 %v3794_v30 }
 0x47f   :  { %10382 = vpow2.f32 %v3800_v48 }
 0x480   :  { %10384 = vlog2.f32 %v3751_v2 }
 0x481   :  { %10386 = vpow2.f32 %v3798_v5 }
 0x483   :  { %v10371_v63 = vpop.eup %10370 }
 0x484   :  { %v10373_v3 = vpop.eup %10372  ;;  %v3819_v36 = vsel %vm3572_vm0, %v10371_v63, 0.0 }
 0x485   :  { %v10375_v13 = vpop.eup %10374  ;;  %v3842_v1 = vrot.slane %v3819_v36, 4  ;;  %v3818_v9 = vsel %vm3572_vm0, %v10373_v3, 0.0 }
 0x486   :  { %v10377_v29 = vpop.eup %10376  ;;  %v3835_v31 = vrot.slane %v3818_v9, 4  ;;  %v3821_v34 = vsel %vm3572_vm0, %v10375_v13, 0.0 }
 0x487   :  { %v10379_v35 = vpop.eup %10378  ;;  %v3843_v39 = vadd.f32 %v3842_v1, %v3819_v36  ;;  %v3856_v8 = vrot.slane %v3821_v34, 4  ;;  %v3820_v16 = vsel %vm3572_vm0, %v10377_v29, 0.0 }
 0x488   :  { %v10381_v40 = vpop.eup %10380  ;;  %v3836_v43 = vadd.f32 %v3835_v31, %v3818_v9  ;;  %v3849_v44 = vrot.slane %v3820_v16, 4  ;;  %v3823_v7 = vsel %vm3572_vm0, %v10379_v35, 0.0 }
 0x489   :  { %v10383_v47 = vpop.eup %10382  ;;  %v3844_v52 = vrot.slane %v3843_v39, 2  ;;  %v3857_v2 = vadd.f32 %v3856_v8, %v3821_v34  ;;  %v3870_v56 = vrot.slane %v3823_v7, 4  ;;  %v3822_v28 = vsel %vm3572_vm0, %v10381_v40, 0.0 }
 0x48a   :  { %v3837_v57 = vrot.slane %v3836_v43, 2  ;;  %v3850_v23 = vadd.f32 %v3849_v44, %v3820_v16  ;;  %v3825_v30 = vsel %vm3572_vm0, %v10383_v47, 0.0  ;;  %v3863_v5 = vrot.slane %v3822_v28, 4  ;;  %v10385_v35 = vpop.eup %10384 }
 0x48b   :  { %v3845_v55 = vadd.f32 %v3844_v52, %v3843_v39  ;;  %v3858_v48 = vrot.slane %v3857_v2, 2  ;;  %v3871_v60 = vadd.f32 %v3870_v56, %v3823_v7  ;;  %v3884_v13 = vrot.slane %v3825_v30, 4  ;;  %v10387_v7 = vpop.eup %10386 }
 0x48c   :  { %v3838_v62 = vadd.f32 %v3837_v57, %v3836_v43  ;;  %v3851_v63 = vrot.slane %v3850_v23, 2  ;;  %v3864_v39 = vadd.f32 %v3863_v5, %v3822_v28 }
 0x48d   :  { %v3846_v3 = vrot.slane %v3845_v55, 1  ;;  %v3859_v36 = vadd.f32 %v3858_v48, %v3857_v2  ;;  %v3872_v29 = vrot.slane %v3871_v60, 2  ;;  %v3885_v47 = vadd.f32 %v3884_v13, %v3825_v30 }
 0x48e   :  { %v3839_v1 = vrot.slane %v3838_v62, 1  ;;  %v3852_v9 = vadd.f32 %v3851_v63, %v3850_v23  ;;  %v3891_v2 = vmul.f32 0.6931472, %v10385_v35  ;;  %v3865_v57 = vrot.slane %v3864_v39, 2 }
 0x48f   :  { %v3847_v31 = vadd.f32 %v3846_v3, %v3845_v55  ;;  %v3860_v34 = vrot.slane %v3859_v36, 1  ;;  %v3873_v40 = vadd.f32 %v3872_v29, %v3871_v60  ;;  %v3886_v23 = vrot.slane %v3885_v47, 2 }
 0x490   :  { %v3840_v8 = vadd.f32 %v3839_v1, %v3838_v62  ;;  %v3853_v16 = vrot.slane %v3852_v9, 1  ;;  %v3824_v55 = vsel %vm3572_vm0, %v10387_v7, 0.0  ;;  %v3866_v48 = vadd.f32 %v3865_v57, %v3864_v39 }
 0x491   :  { %10388 = vlog2.f32 %v3847_v31  ;;  %v3861_v44 = vadd.f32 %v3860_v34, %v3859_v36  ;;  %v3874_v52 = vrot.slane %v3873_v40, 1  ;;  %v3887_v60 = vadd.f32 %v3886_v23, %v3885_v47 }
 0x492   :  { %10390 = vlog2.f32 %v3840_v8  ;;  %v3854_v43 = vadd.f32 %v3853_v16, %v3852_v9  ;;  %v3877_v62 = vrot.slane %v3824_v55, 4  ;;  %v3892_v63 = vsub.f32 0.0, %v3891_v2 }
 0x493   :  { %10392 = vlog2.f32 %v3861_v44  ;;  %v3875_v56 = vadd.f32 %v3874_v52, %v3873_v40  ;;  %v3867_v28 = vrot.slane %v3866_v48, 1  ;;  %v3888_v30 = vrot.slane %v3887_v60, 1 }
 0x494   :  { %10394 = vlog2.f32 %v3854_v43  ;;  %v3878_v3 = vadd.f32 %v3877_v62, %v3824_v55  ;;  %v11064_v9 = vadd.f32 -0.9189385, %v3892_v63 }
 0x495   :  { %10396 = vlog2.f32 %v3875_v56  ;;  %v3868_v36 = vadd.f32 %v3867_v28, %v3866_v48  ;;  %v3889_v13 = vadd.f32 %v3888_v30, %v3887_v60 }
 0x496   :  { %v3879_v31 = vrot.slane %v3878_v3, 2 }
 0x497   :  { %10398 = vlog2.f32 %v3868_v36 }
 0x498   :  { %10400 = vlog2.f32 %v3889_v13  ;;  %v3880_v52 = vadd.f32 %v3879_v31, %v3878_v3 }
 0x49a   :  { %v3881_v30 = vrot.slane %v3880_v52, 1 }
 0x49b   :  { %v10389_v5 = vpop.eup %10388 }
 0x49c   :  { %v10391_v1 = vpop.eup %10390  ;;  %v3897_v29 = vmul.f32 0.6931472, %v10389_v5 }
 0x49d   :  { %v10393_v34 = vpop.eup %10392  ;;  %v3895_v35 = vmul.f32 0.6931472, %v10391_v1 }
 0x49e   :  { %v10395_v8 = vpop.eup %10394  ;;  %v11067_v16 = vadd.f32 %v11064_v9, %v3897_v29  ;;  %v3901_v40 = vmul.f32 0.6931472, %v10393_v34 }
 0x49f   :  { %v11070_v44 = vadd.f32 %v11064_v9, %v3895_v35  ;;  %v3899_v39 = vmul.f32 0.6931472, %v10395_v8  ;;  %v10397_v47 = vpop.eup %10396  ;;  %v3882_v35 = vadd.f32 %v3881_v30, %v3880_v52 }
 0x4a0   :  { %v3927_v7 = vand.u32 2147483647, %v11067_v16  ;;  %v11074_v43 = vadd.f32 %v11064_v9, %v3901_v40  ;;  %v3905_v57 = vmul.f32 0.6931472, %v10397_v47 }
 0x4a1   :  { %v3926_v2 = vand.u32 2147483647, %v11070_v44  ;;  %v11078_v56 = vadd.f32 %v11064_v9, %v3899_v39  ;;  %v10399_v1 = vpop.eup %10398 }
 0x4a2   :  { %v3935_v23 = vsub.f32 0.0, %v3927_v7  ;;  %v3929_v55 = vand.u32 2147483647, %v11074_v43  ;;  %v11083_v62 = vadd.f32 %v11064_v9, %v3905_v57  ;;  %v10401_v34 = vpop.eup %10400  ;;  %v3903_v40 = vmul.f32 0.6931472, %v10399_v1 }
 0x4a3   :  { %v3934_v48 = vsub.f32 0.0, %v3926_v2  ;;  %v3928_v60 = vand.u32 2147483647, %v11078_v56  ;;  %v3909_v39 = vmul.f32 0.6931472, %v10401_v34 }
 0x4a4   :  { %v3944_v63 = vmul.f32 1.442695, %v3935_v23  ;;  %v3937_v28 = vsub.f32 0.0, %v3929_v55  ;;  %v3931_v5 = vand.u32 2147483647, %v11083_v62  ;;  %v11087_v47 = vadd.f32 %v11064_v9, %v3903_v40 }
 0x4a5   :  { %v3942_v36 = vmul.f32 1.442695, %v3934_v48  ;;  %v3936_v3 = vsub.f32 0.0, %v3928_v60  ;;  %v11090_v7 = vadd.f32 %v11064_v9, %v3909_v39 }
 0x4a6   :  { %10402 = vpow2.f32 %v3944_v63  ;;  %v3948_v13 = vmul.f32 1.442695, %v3937_v28  ;;  %v3939_v31 = vsub.f32 0.0, %v3931_v5  ;;  %v3930_v60 = vand.u32 2147483647, %v11087_v47 }
 0x4a7   :  { %10404 = vpow2.f32 %v3942_v36  ;;  %v3946_v29 = vmul.f32 1.442695, %v3936_v3  ;;  %v3933_v28 = vand.u32 2147483647, %v11090_v7 }
 0x4a8   :  { %10406 = vpow2.f32 %v3948_v13  ;;  %v3952_v8 = vmul.f32 1.442695, %v3939_v31  ;;  %v3938_v13 = vsub.f32 0.0, %v3930_v60 }
 0x4a9   :  { %10408 = vpow2.f32 %v3946_v29  ;;  %v3941_v1 = vsub.f32 0.0, %v3933_v28  ;;  %v3921_v28 = vmax.f32 %v11074_v43, 0.0 }
 0x4aa   :  { %10410 = vpow2.f32 %v3952_v8  ;;  %v3950_v34 = vmul.f32 1.442695, %v3938_v13  ;;  %v3923_v13 = vmax.f32 %v11083_v62, 0.0 }
 0x4ab   :  { %10412 = vlog2.f32 %v3882_v35  ;;  %v3956_v35 = vmul.f32 1.442695, %v3941_v1 }
 0x4b0   :  { %v10403_v2 = vpop.eup %10402 }
 0x4b1   :  { %v10405_v57 = vpop.eup %10404  ;;  %v3959_v23 = vadd.f32 1.0, %v10403_v2 }
 0x4b2   :  { %v10407_v55 = vpop.eup %10406  ;;  %v3958_v48 = vadd.f32 1.0, %v10405_v57  ;;  %v3919_v57 = vmax.f32 %v11067_v16, 0.0 }
 0x4b3   :  { %v10409_v52 = vpop.eup %10408  ;;  %10414 = vlog2.f32 %v3959_v23  ;;  %v3961_v63 = vadd.f32 1.0, %v10407_v55 }
 0x4b4   :  { %10416 = vlog2.f32 %v3958_v48  ;;  %v3960_v30 = vadd.f32 1.0, %v10409_v52  ;;  %v10411_v36 = vpop.eup %10410  ;;  %v3918_v48 = vmax.f32 %v11070_v44, 0.0 }
 0x4b5   :  { %10418 = vlog2.f32 %v3961_v63  ;;  %v10413_v3 = vpop.eup %10412  ;;  %v3963_v5 = vadd.f32 1.0, %v10411_v36 }
 0x4b6   :  { %10420 = vlog2.f32 %v3960_v30  ;;  %v3907_v29 = vmul.f32 0.6931472, %v10413_v3  ;;  %v3920_v3 = vmax.f32 %v11078_v56, 0.0 }
 0x4b7   :  { %10422 = vlog2.f32 %v3963_v5 }
 0x4b8   :  { %v11095_v31 = vadd.f32 %v11064_v9, %v3907_v29  ;;  %10424 = vpow2.f32 %v3950_v34 }
 0x4b9   :  { %10426 = vpow2.f32 %v3956_v35 }
 0x4ba   :  { %v3932_v8 = vand.u32 2147483647, %v11095_v31 }
 0x4bc   :  { %v3940_v39 = vsub.f32 0.0, %v3932_v8 }
 0x4bd   :  { %v10415_v40 = vpop.eup %10414 }
 0x4be   :  { %v10417_v2 = vpop.eup %10416  ;;  %v3969_v23 = vmul.f32 0.6931472, %v10415_v40  ;;  %v3954_v52 = vmul.f32 1.442695, %v3940_v39 }
 0x4bf   :  { %v10419_v55 = vpop.eup %10418  ;;  %v3967_v60 = vmul.f32 0.6931472, %v10417_v2 }
 0x4c0   :  { %v10421_v63 = vpop.eup %10420  ;;  %v3983_v9 = vadd.f32 %v3969_v23, %v3919_v57  ;;  %v3973_v30 = vmul.f32 0.6931472, %v10419_v55  ;;  %10428 = vpow2.f32 %v3954_v52 }
 0x4c1   :  { %v3982_v36 = vadd.f32 %v3967_v60, %v3918_v48  ;;  %v3971_v5 = vmul.f32 0.6931472, %v10421_v63  ;;  %v10423_v1 = vpop.eup %10422 }
 0x4c2   :  { %v3991_v29 = vsub.f32 %v3983_v9, %v11067_v16  ;;  %v8963_v34 = vsel %vm8961_vm3, %v3983_v9, 0.0  ;;  %v3985_v8 = vadd.f32 %v3973_v30, %v3921_v28  ;;  %v3977_v2 = vmul.f32 0.6931472, %v10423_v1  ;;  %v4174_v9 = vld [vmem:[#allocation6 + $0x440] sm:$0xff]  ;;  %v4175_v30 = vld [vmem:[#allocation6 + $0x448] sm:$0xff] }
 0x4c3   :  { %8971 = vst [vmem:[%s11546_s8 + $0x8] sm:$0xff] %v8963_v34  ;;  %v3990_v35 = vsub.f32 %v3982_v36, %v11070_v44  ;;  %v8962_v40 = vsel %vm8961_vm3, %v3982_v36, 0.0  ;;  %v3984_v39 = vadd.f32 %v3971_v5, %v3920_v3  ;;  %v4178_v28 = vld [vmem:[#allocation6 + $0x460] sm:$0xff]  ;;  %v4179_v36 = vld [vmem:[#allocation6 + $0x468] sm:$0xff]  ;;  %v10425_v5 = vpop.eup %10424 }
 0x4c4   :  { %v3999_v57 = vmul.f32 %v10877_v46, %v3991_v29  ;;  %v4007_v16 = vmul.f32 %v10868_v38, %v3991_v29  ;;  %8970 = vst [vmem:[%s11546_s8] sm:$0xff] %v8962_v40  ;;  %v3993_v23 = vsub.f32 %v3985_v8, %v11074_v43  ;;  %v8965_v55 = vsel %vm8961_vm3, %v3985_v8, 0.0  ;;  %v10427_v34 = vpop.eup %10426  ;;  %v4182_v40 = vld [vmem:[#allocation6 + $0x480] sm:$0xff] }
 0x4c5   :  { %v3998_v44 = vmul.f32 %v10875_v45, %v3990_v35  ;;  %v4006_v48 = vmul.f32 %v10864_v32, %v3990_v35  ;;  %8973 = vst [vmem:[%s11546_s8 + $0x18] sm:$0xff] %v8965_v55  ;;  %v3992_v46 = vsub.f32 %v3984_v39, %v11078_v56  ;;  %v8964_v38 = vsel %vm8961_vm3, %v3984_v39, 0.0  ;;  %v4187_v55 = vld [vmem:[#allocation6 + $0x4a8] sm:$0xff] }
 0x4c6   :  { %v4015_v60 = vmax.f32 %v3999_v57, 0.0  ;;  %v4023_v52 = vmax.f32 %v4007_v16, 0.0  ;;  %v4001_v43 = vmul.f32 %v10900_v58, %v3993_v23  ;;  %v4009_v63 = vmul.f32 %v10870_v41, %v3993_v23  ;;  %8972 = vst [vmem:[%s11546_s8 + $0x10] sm:$0xff] %v8964_v38  ;;  %v4186_v16 = vld [vmem:[#allocation6 + $0x4a0] sm:$0xff]  ;;  %v4183_v23 = vld [vmem:[#allocation6 + $0x488] sm:$0xff] }
 0x4c7   :  { %v4014_v32 = vmax.f32 %v3998_v44, 0.0  ;;  %v4022_v45 = vmax.f32 %v4006_v48, 0.0  ;;  %v4000_v56 = vmul.f32 %v10887_v50, %v3992_v46  ;;  %v4008_v3 = vmul.f32 %v10866_v37, %v3992_v46 }
 0x4c8   :  { %v11135_v1 = vpack.c.bf16 %v4023_v52, %v4015_v60  ;;  %v4017_v58 = vmax.f32 %v4001_v43, 0.0  ;;  %v4025_v29 = vmax.f32 %v4009_v63, 0.0  ;;  %v3987_v41 = vadd.f32 %v3977_v2, %v3923_v13 }
 0x4c9   :  { %v11137_v8 = vpack.c.bf16 %v4022_v45, %v4014_v32  ;;  %v9623_v35 = vcombine.high %v4174_v9, %v4178_v28  ;;  %v4016_v39 = vmax.f32 %v4000_v56, 0.0  ;;  %v4024_v57 = vmax.f32 %v4008_v3, 0.0  ;;  %v4202_v56 = vld [vmem:[#allocation6 + $0x520] sm:$0xff]  ;;  %v4199_v3 = vld [vmem:[#allocation6 + $0x508] sm:$0xff] }
 0x4ca   :  { %7184 = vmatprep.mubr.bf16.mxu0 %v11135_v1  ;;  %7356 = vmatprep.mubr.bf16.mxu1 %v11135_v1  ;;  %v11141_v50 = vpack.c.bf16 %v4025_v29, %v4017_v58  ;;  %v9625_v37 = vcombine.high %v4175_v30, %v4179_v36  ;;  %v3995_v44 = vsub.f32 %v3987_v41, %v11083_v62  ;;  %v8967_v13 = vsel %vm8961_vm3, %v3987_v41, 0.0  ;;  %v10429_v38 = vpop.eup %10428 }
 0x4cb   :  { %7185 = vmatmul.mubr.bf16.vlgmr.msra.gmra.mrb[8].mxu0 %v11137_v8  ;;  %7357 = vmatmul.mubr.bf16.vlgmr.msra.gmra.mrb[8].mxu1 %v11137_v8  ;;  %v9622_v2 = vcombine.low %v4174_v9, %v4178_v28  ;;  %v11148_v48 = vpack.c.bf16 %v4024_v57, %v4016_v39  ;;  %8975 = vst [vmem:[%s11546_s8 + $0x28] sm:$0xff] %v8967_v13  ;;  %v3962_v46 = vadd.f32 1.0, %v10425_v5  ;;  %v3965_v43 = vadd.f32 1.0, %v10427_v34  ;;  %v4190_v28 = vld [vmem:[#allocation6 + $0x4c0] sm:$0xff]  ;;  %v4203_v5 = vld [vmem:[#allocation6 + $0x528] sm:$0xff] }
 0x4cc   :  { %7196 = vmatpush1.bf16.msra.mxu0 %v9614_v21  ;;  %7368 = vmatpush1.bf16.msra.mxu1 %v9616_v27  ;;  %v9624_v62 = vcombine.low %v4175_v30, %v4179_v36  ;;  %v4003_v60 = vmul.f32 %v10915_v4, %v3995_v44  ;;  %v4011_v52 = vmul.f32 %v10929_v20, %v3995_v44  ;;  %v3964_v32 = vadd.f32 1.0, %v10429_v38  ;;  %v4198_v36 = vld [vmem:[#allocation6 + $0x500] sm:$0xff]  ;;  %v4207_v39 = vld [vmem:[#allocation6 + $0x548] sm:$0xff] }
 0x4cd   :  { %7227 = vmatprep.mubr.bf16.mxu0 %v11141_v50  ;;  %7399 = vmatprep.mubr.bf16.mxu1 %v11141_v50  ;;  %v9631_v63 = vcombine.high %v4182_v40, %v4186_v16  ;;  %v9633_v9 = vcombine.high %v4183_v23, %v4187_v55  ;;  %10430 = vlog2.f32 %v3962_v46  ;;  %v9630_v4 = vcombine.low %v4182_v40, %v4186_v16  ;;  %v4210_v40 = vld [vmem:[#allocation6 + $0x560] sm:$0xff]  ;;  %v4211_v57 = vld [vmem:[#allocation6 + $0x568] sm:$0xff] }
 0x4ce   :  { %7197 = vmatprep.subr.bf16.mxu0 %v9623_v35  ;;  %7369 = vmatprep.subr.bf16.mxu1 %v9625_v37  ;;  %v4019_v21 = vmax.f32 %v4003_v60, 0.0  ;;  %v4027_v26 = vmax.f32 %v4011_v52, 0.0  ;;  %10432 = vlog2.f32 %v3965_v43  ;;  %v9632_v20 = vcombine.low %v4183_v23, %v4187_v55  ;;  %v4206_v35 = vld [vmem:[#allocation6 + $0x540] sm:$0xff]  ;;  %v4215_v60 = vld [vmem:[#allocation6 + $0x588] sm:$0xff] }
 0x4cf   :  { %v9639_v45 = vcombine.high %v4190_v28, %v4194_v14  ;;  %v9641_v30 = vcombine.high %v4191_v17, %v4195_v33  ;;  %10434 = vlog2.f32 %v3964_v32  ;;  %v9638_v58 = vcombine.low %v4190_v28, %v4194_v14  ;;  %v4214_v38 = vld [vmem:[#allocation6 + $0x580] sm:$0xff]  ;;  %v4219_v52 = vld [vmem:[#allocation6 + $0x5a8] sm:$0xff] }
 0x4d0   :  { %7198 = vmatpush1.bf16.msra.mxu0 %v9622_v2  ;;  %7370 = vmatpush1.bf16.msra.mxu1 %v9624_v62  ;;  %v11163_v27 = vpack.c.bf16 %v4027_v26, %v4019_v21  ;;  %v9640_v29 = vcombine.low %v4191_v17, %v4195_v33  ;;  %v9647_v41 = vcombine.high %v4198_v36, %v4202_v56  ;;  %v3922_v55 = vmax.f32 %v11087_v47, 0.0  ;;  %v4218_v62 = vld [vmem:[#allocation6 + $0x5a0] sm:$0xff] }
 0x4d1   :  { %7199 = vmatprep.subr.bf16.mxu0 %v9631_v63  ;;  %7371 = vmatprep.subr.bf16.mxu1 %v9633_v9  ;;  %v9649_v34 = vcombine.high %v4199_v3, %v4203_v5  ;;  %v9646_v16 = vcombine.low %v4198_v36, %v4202_v56  ;;  %v9648_v23 = vcombine.low %v4199_v3, %v4203_v5  ;;  %v3925_v63 = vmax.f32 %v11090_v7, 0.0  ;;  %v4222_v32 = vld [vmem:[#allocation6 + $0x5c0] sm:$0xff]  ;;  %v4223_v36 = vld [vmem:[#allocation6 + $0x5c8] sm:$0xff] }
 0x4d2   :  { %v9655_v2 = vcombine.high %v4206_v35, %v4210_v40  ;;  %v9657_v46 = vcombine.high %v4207_v39, %v4211_v57  ;;  %v9654_v28 = vcombine.low %v4206_v35, %v4210_v40  ;;  %v9656_v17 = vcombine.low %v4207_v39, %v4211_v57  ;;  %v4227_v56 = vld [vmem:[#allocation6 + $0x5e8] sm:$0xff]  ;;  %v4230_v57 = vld [vmem:[#allocation6 + $0x600] sm:$0xff] }
 0x4d3   :  { %v9673_v39 = vcombine.high %v4223_v36, %v4227_v56 }
 0x4d4   :  { %7200 = vmatpush1.bf16.msra.mxu0 %v9630_v4  ;;  %7372 = vmatpush1.bf16.msra.mxu1 %v9632_v20  ;;  %v9663_v4 = vcombine.high %v4214_v38, %v4218_v62  ;;  %v9665_v20 = vcombine.high %v4215_v60, %v4219_v52 }
 0x4d5   :  { %7201 = vmatprep.subr.bf16.mxu0 %v9639_v45  ;;  %7373 = vmatprep.subr.bf16.mxu1 %v9641_v30  ;;  %v4226_v30 = vld [vmem:[#allocation6 + $0x5e0] sm:$0xff] }
 0x4d7   :  { %v10431_v37 = vpop.eup %10430 }
 0x4d8   :  { %7202 = vmatpush1.bf16.msra.mxu0 %v9638_v58  ;;  %7374 = vmatpush1.bf16.msra.mxu1 %v9640_v29  ;;  %v3975_v44 = vmul.f32 0.6931472, %v10431_v37  ;;  %v10433_v13 = vpop.eup %10432  ;;  %v9662_v29 = vcombine.low %v4214_v38, %v4218_v62  ;;  %v4234_v37 = vld [vmem:[#allocation6 + $0x620] sm:$0xff] }
 0x4d9   :  { %7203 = vmatprep.subr.bf16.mxu0 %v9647_v41  ;;  %7375 = vmatprep.subr.bf16.mxu1 %v9649_v34  ;;  %v3981_v9 = vmul.f32 0.6931472, %v10433_v13  ;;  %v10435_v14 = vpop.eup %10434  ;;  %v9664_v41 = vcombine.low %v4215_v60, %v4219_v52  ;;  %v3924_v34 = vmax.f32 %v11095_v31, 0.0 }
 0x4da   :  { %v3986_v43 = vadd.f32 %v3975_v44, %v3922_v55  ;;  %v3979_v45 = vmul.f32 0.6931472, %v10435_v14  ;;  %v4235_v55 = vld [vmem:[#allocation6 + $0x628] sm:$0xff] }
 0x4db   :  { %v3989_v26 = vadd.f32 %v3981_v9, %v3925_v63  ;;  %v4243_v14 = vld [vmem:[#allocation6 + $0x668] sm:$0xff] }
 0x4dc   :  { %7204 = vmatpush1.bf16.msra.mxu0 %v9646_v16  ;;  %7376 = vmatpush1.bf16.msra.mxu1 %v9648_v23  ;;  %v3994_v33 = vsub.f32 %v3986_v43, %v11087_v47  ;;  %v8966_v21 = vsel %vm8961_vm3, %v3986_v43, 0.0  ;;  %v3988_v16 = vadd.f32 %v3979_v45, %v3924_v34  ;;  %v4231_v23 = vld [vmem:[#allocation6 + $0x608] sm:$0xff]  ;;  %v4238_v43 = vld [vmem:[#allocation6 + $0x640] sm:$0xff] }
 0x4dd   :  { %7205 = vmatprep.subr.bf16.mxu0 %v9655_v2  ;;  %7377 = vmatprep.subr.bf16.mxu1 %v9657_v46  ;;  %8974 = vst [vmem:[%s11546_s8 + $0x20] sm:$0xff] %v8966_v21  ;;  %v3997_v5 = vsub.f32 %v3989_v26, %v11090_v7  ;;  %v8969_v58 = vsel %vm8961_vm3, %v3989_v26, 0.0  ;;  %v9671_v7 = vcombine.high %v4222_v32, %v4226_v30  ;;  %v4247_v45 = vld [vmem:[#allocation6 + $0x688] sm:$0xff] }
 0x4de   :  { %v4002_v3 = vmul.f32 %v10910_v0, %v3994_v33  ;;  %v4010_v47 = vmul.f32 %v10923_v15, %v3994_v33  ;;  %8977 = vst [vmem:[%s11546_s8 + $0x38] sm:$0xff] %v8969_v58  ;;  %v9670_v46 = vcombine.low %v4222_v32, %v4226_v30  ;;  %v3996_v38 = vsub.f32 %v3988_v16, %v11095_v31  ;;  %v4242_v31 = vld [vmem:[#allocation6 + $0x660] sm:$0xff]  ;;  %v4251_v30 = vld [vmem:[#allocation6 + $0x6a8] sm:$0xff] }
 0x4df   :  { %v4005_v0 = vmul.f32 %v10936_v24, %v3997_v5  ;;  %v4013_v15 = vmul.f32 %v10934_v22, %v3997_v5  ;;  %v9672_v24 = vcombine.low %v4223_v36, %v4227_v56  ;;  %v9679_v22 = vcombine.high %v4230_v57, %v4234_v37  ;;  %v4254_v5 = vld [vmem:[#allocation6 + $0x6c0] sm:$0xff] }
 0x4e0   :  { %7206 = vmatpush1.bf16.msra.mxu0 %v9654_v28  ;;  %7378 = vmatpush1.bf16.msra.mxu1 %v9656_v17  ;;  %v4018_v35 = vmax.f32 %v4002_v3, 0.0  ;;  %v4026_v40 = vmax.f32 %v4010_v47, 0.0  ;;  %v8968_v60 = vsel %vm8961_vm3, %v3988_v16, 0.0  ;;  %v9681_v52 = vcombine.high %v4231_v23, %v4235_v55  ;;  %v4239_v28 = vld [vmem:[#allocation6 + $0x648] sm:$0xff]  ;;  %v4258_v58 = vld [vmem:[#allocation6 + $0x6e0] sm:$0xff] }
 0x4e1   :  { %7207 = vmatprep.subr.bf16.mxu0 %v9663_v4  ;;  %7379 = vmatprep.subr.bf16.mxu1 %v9665_v20  ;;  %v4021_v13 = vmax.f32 %v4005_v0, 0.0  ;;  %v4029_v2 = vmax.f32 %v4013_v15, 0.0  ;;  %v4004_v63 = vmul.f32 %v10925_v18, %v3996_v38  ;;  %v4012_v9 = vmul.f32 %v10927_v19, %v3996_v38  ;;  %8976 = vst [vmem:[%s11546_s8 + $0x30] sm:$0xff] %v8968_v60  ;;  %v4246_v18 = vld [vmem:[#allocation6 + $0x680] sm:$0xff]  ;;  %v4275_v38 = vld [vmem:[#allocation6 + $0x768] sm:$0xff] }
 0x4e2   :  { %v11184_v44 = vpack.c.bf16 %v4026_v40, %v4018_v35  ;;  %v9678_v21 = vcombine.low %v4230_v57, %v4234_v37  ;;  %v9680_v26 = vcombine.low %v4231_v23, %v4235_v55  ;;  %v9687_v4 = vcombine.high %v4238_v43, %v4242_v31  ;;  %v4250_v19 = vld [vmem:[#allocation6 + $0x6a0] sm:$0xff]  ;;  %v4267_v57 = vld [vmem:[#allocation6 + $0x728] sm:$0xff] }
 0x4e3   :  { %v11187_v62 = vpack.c.bf16 %v4029_v2, %v4021_v13  ;;  %v4020_v17 = vmax.f32 %v4004_v63, 0.0  ;;  %v4028_v33 = vmax.f32 %v4012_v9, 0.0  ;;  %v9689_v20 = vcombine.high %v4239_v28, %v4243_v14  ;;  %v4262_v15 = vld [vmem:[#allocation6 + $0x700] sm:$0xff]  ;;  %v4279_v9 = vld [vmem:[#allocation6 + $0x788] sm:$0xff] }
 0x4e4   :  { %7208 = vmatpush1.bf16.msra.mxu0 %v9662_v29  ;;  %7380 = vmatpush1.bf16.msra.mxu1 %v9664_v41  ;;  %v9686_v36 = vcombine.low %v4238_v43, %v4242_v31  ;;  %v9688_v56 = vcombine.low %v4239_v28, %v4243_v14  ;;  %v9695_v3 = vcombine.high %v4246_v18, %v4250_v19  ;;  %v4255_v29 = vld [vmem:[#allocation6 + $0x6c8] sm:$0xff]  ;;  %v4270_v13 = vld [vmem:[#allocation6 + $0x740] sm:$0xff] }
 0x4e5   :  { %7209 = vmatprep.subr.bf16.mxu0 %v9671_v7  ;;  %7381 = vmatprep.subr.bf16.mxu1 %v9673_v39  ;;  %v11196_v32 = vpack.c.bf16 %v4028_v33, %v4020_v17  ;;  %v9697_v47 = vcombine.high %v4247_v45, %v4251_v30  ;;  %v4259_v41 = vld [vmem:[#allocation6 + $0x6e8] sm:$0xff]  ;;  %v9694_v34 = vcombine.low %v4246_v18, %v4250_v19  ;;  %v4266_v7 = vld [vmem:[#allocation6 + $0x720] sm:$0xff] }
 0x4e6   :  { %v9696_v35 = vcombine.low %v4247_v45, %v4251_v30  ;;  %v9703_v40 = vcombine.high %v4254_v5, %v4258_v58  ;;  %v9705_v0 = vcombine.high %v4255_v29, %v4259_v41  ;;  %v4263_v39 = vld [vmem:[#allocation6 + $0x708] sm:$0xff]  ;;  %v9702_v37 = vcombine.low %v4254_v5, %v4258_v58  ;;  %v4274_v2 = vld [vmem:[#allocation6 + $0x760] sm:$0xff] }
 0x4e7   :  { %v9704_v16 = vcombine.low %v4255_v29, %v4259_v41  ;;  %v9711_v23 = vcombine.high %v4262_v15, %v4266_v7  ;;  %v9713_v55 = vcombine.high %v4263_v39, %v4267_v57  ;;  %v9719_v60 = vcombine.high %v4270_v13, %v4274_v2  ;;  %v4278_v43 = vld [vmem:[#allocation6 + $0x780] sm:$0xff]  ;;  %v4283_v31 = vld [vmem:[#allocation6 + $0x7a8] sm:$0xff] }
 0x4e8   :  { %7210 = vmatpush1.bf16.msra.mxu0 %v9670_v46  ;;  %7382 = vmatpush1.bf16.msra.mxu1 %v9672_v24  ;;  %v4271_v46 = vld [vmem:[#allocation6 + $0x748] sm:$0xff]  ;;  %v9710_v24 = vcombine.low %v4262_v15, %v4266_v7  ;;  %v4282_v63 = vld [vmem:[#allocation6 + $0x7a0] sm:$0xff]  ;;  %v9718_v28 = vcombine.low %v4270_v13, %v4274_v2  ;;  %v9729_v33 = vcombine.high %v4279_v9, %v4283_v31 }
 0x4e9   :  { %7211 = vmatprep.subr.bf16.mxu0 %v9679_v22  ;;  %7383 = vmatprep.subr.bf16.mxu1 %v9681_v52  ;;  %v9712_v22 = vcombine.low %v4263_v39, %v4267_v57  ;;  %v9721_v52 = vcombine.high %v4271_v46, %v4275_v38  ;;  %v9720_v14 = vcombine.low %v4271_v46, %v4275_v38 }
 0x4ea   :  { %v9727_v17 = vcombine.high %v4278_v43, %v4282_v63  ;;  %v9726_v18 = vcombine.low %v4278_v43, %v4282_v63  ;;  %v9728_v19 = vcombine.low %v4279_v9, %v4283_v31 }
 0x4ec   :  { %7212 = vmatpush1.bf16.msra.mxu0 %v9678_v21  ;;  %7384 = vmatpush1.bf16.msra.mxu1 %v9680_v26  ;;  %v4286_v21 = vld [vmem:[#allocation6 + $0x7c0] sm:$0xff] }
 0x4ed   :  { %7213 = vmatprep.subr.bf16.mxu0 %v9687_v4  ;;  %7385 = vmatprep.subr.bf16.mxu1 %v9689_v20  ;;  %v4290_v26 = vld [vmem:[#allocation6 + $0x7e0] sm:$0xff]  ;;  %v4287_v4 = vld [vmem:[#allocation6 + $0x7c8] sm:$0xff] }
 0x4ee   :  { %v4291_v20 = vld [vmem:[#allocation6 + $0x7e8] sm:$0xff]  ;;  %v9735_v45 = vcombine.high %v4286_v21, %v4290_v26  ;;  %v9734_v5 = vcombine.low %v4286_v21, %v4290_v26 }
 0x4ef   :  { %v9737_v30 = vcombine.high %v4287_v4, %v4291_v20  ;;  %v9736_v58 = vcombine.low %v4287_v4, %v4291_v20 }
 0x4f0   :  { %7214 = vmatpush1.bf16.msra.mxu0 %v9686_v36  ;;  %7386 = vmatpush1.bf16.msra.mxu1 %v9688_v56  ;;  %v4294_v36 = vld [vmem:[#allocation6 + $0x800] sm:$0xff] }
 0x4f1   :  { %7215 = vmatprep.subr.bf16.mxu0 %v9695_v3  ;;  %7387 = vmatprep.subr.bf16.mxu1 %v9697_v47  ;;  %v4298_v56 = vld [vmem:[#allocation6 + $0x820] sm:$0xff]  ;;  %v4295_v3 = vld [vmem:[#allocation6 + $0x808] sm:$0xff] }
 0x4f2   :  { %v4299_v47 = vld [vmem:[#allocation6 + $0x828] sm:$0xff]  ;;  %v9743_v29 = vcombine.high %v4294_v36, %v4298_v56  ;;  %v9742_v15 = vcombine.low %v4294_v36, %v4298_v56 }
 0x4f3   :  { %v9745_v41 = vcombine.high %v4295_v3, %v4299_v47  ;;  %v9744_v7 = vcombine.low %v4295_v3, %v4299_v47 }
 0x4f4   :  { %7216 = vmatpush1.bf16.msra.mxu0 %v9694_v34  ;;  %7388 = vmatpush1.bf16.msra.mxu1 %v9696_v35  ;;  %v4302_v34 = vld [vmem:[#allocation6 + $0x840] sm:$0xff] }
 0x4f5   :  { %7217 = vmatprep.subr.bf16.mxu0 %v9703_v40  ;;  %7389 = vmatprep.subr.bf16.mxu1 %v9705_v0  ;;  %v4306_v35 = vld [vmem:[#allocation6 + $0x860] sm:$0xff]  ;;  %v4303_v40 = vld [vmem:[#allocation6 + $0x848] sm:$0xff] }
 0x4f6   :  { %v4307_v0 = vld [vmem:[#allocation6 + $0x868] sm:$0xff]  ;;  %v9751_v39 = vcombine.high %v4302_v34, %v4306_v35  ;;  %v9750_v13 = vcombine.low %v4302_v34, %v4306_v35 }
 0x4f7   :  { %v9753_v57 = vcombine.high %v4303_v40, %v4307_v0  ;;  %v9752_v2 = vcombine.low %v4303_v40, %v4307_v0 }
 0x4f8   :  { %7218 = vmatpush1.bf16.msra.mxu0 %v9702_v37  ;;  %7390 = vmatpush1.bf16.msra.mxu1 %v9704_v16  ;;  %v4310_v37 = vld [vmem:[#allocation6 + $0x880] sm:$0xff] }
 0x4f9   :  { %7219 = vmatprep.subr.bf16.mxu0 %v9711_v23  ;;  %7391 = vmatprep.subr.bf16.mxu1 %v9713_v55  ;;  %v4314_v16 = vld [vmem:[#allocation6 + $0x8a0] sm:$0xff]  ;;  %v4311_v23 = vld [vmem:[#allocation6 + $0x888] sm:$0xff] }
 0x4fa   :  { %v4315_v55 = vld [vmem:[#allocation6 + $0x8a8] sm:$0xff]  ;;  %v9759_v46 = vcombine.high %v4310_v37, %v4314_v16  ;;  %v9758_v43 = vcombine.low %v4310_v37, %v4314_v16 }
 0x4fb   :  { %v9761_v38 = vcombine.high %v4311_v23, %v4315_v55  ;;  %v9760_v63 = vcombine.low %v4311_v23, %v4315_v55 }
 0x4fc   :  { %7220 = vmatpush1.bf16.msra.mxu0 %v9710_v24  ;;  %7392 = vmatpush1.bf16.msra.mxu1 %v9712_v22  ;;  %v4318_v24 = vld [vmem:[#allocation6 + $0x8c0] sm:$0xff] }
 0x4fd   :  { %7221 = vmatprep.subr.bf16.mxu0 %v9719_v60  ;;  %7393 = vmatprep.subr.bf16.mxu1 %v9721_v52  ;;  %v4322_v22 = vld [vmem:[#allocation6 + $0x8e0] sm:$0xff]  ;;  %v4319_v60 = vld [vmem:[#allocation6 + $0x8c8] sm:$0xff] }
 0x4fe   :  { %v4323_v52 = vld [vmem:[#allocation6 + $0x8e8] sm:$0xff]  ;;  %v9767_v9 = vcombine.high %v4318_v24, %v4322_v22  ;;  %v9766_v21 = vcombine.low %v4318_v24, %v4322_v22 }
 0x4ff   :  { %v9769_v31 = vcombine.high %v4319_v60, %v4323_v52  ;;  %v9768_v26 = vcombine.low %v4319_v60, %v4323_v52 }
 0x500   :  { %7222 = vmatpush1.bf16.msra.mxu0 %v9718_v28  ;;  %7394 = vmatpush1.bf16.msra.mxu1 %v9720_v14  ;;  %v4326_v28 = vld [vmem:[#allocation6 + $0x900] sm:$0xff] }
 0x501   :  { %7223 = vmatprep.subr.bf16.mxu0 %v9727_v17  ;;  %7395 = vmatprep.subr.bf16.mxu1 %v9729_v33  ;;  %v4330_v14 = vld [vmem:[#allocation6 + $0x920] sm:$0xff]  ;;  %v4327_v17 = vld [vmem:[#allocation6 + $0x908] sm:$0xff] }
 0x502   :  { %v4331_v33 = vld [vmem:[#allocation6 + $0x928] sm:$0xff]  ;;  %v9775_v4 = vcombine.high %v4326_v28, %v4330_v14  ;;  %v9774_v36 = vcombine.low %v4326_v28, %v4330_v14 }
 0x503   :  { %v9777_v20 = vcombine.high %v4327_v17, %v4331_v33  ;;  %v9776_v56 = vcombine.low %v4327_v17, %v4331_v33 }
 0x504   :  { %7224 = vmatpush1.bf16.msra.mxu0 %v9726_v18  ;;  %7396 = vmatpush1.bf16.msra.mxu1 %v9728_v19  ;;  %v4334_v18 = vld [vmem:[#allocation6 + $0x940] sm:$0xff] }
 0x505   :  { %7225 = vmatprep.subr.bf16.mxu0 %v9735_v45  ;;  %7397 = vmatprep.subr.bf16.mxu1 %v9737_v30  ;;  %v4338_v19 = vld [vmem:[#allocation6 + $0x960] sm:$0xff]  ;;  %v4335_v45 = vld [vmem:[#allocation6 + $0x948] sm:$0xff] }
 0x506   :  { %v4339_v30 = vld [vmem:[#allocation6 + $0x968] sm:$0xff]  ;;  %v9783_v3 = vcombine.high %v4334_v18, %v4338_v19  ;;  %v9782_v34 = vcombine.low %v4334_v18, %v4338_v19 }
 0x507   :  { %v9785_v47 = vcombine.high %v4335_v45, %v4339_v30  ;;  %v9784_v35 = vcombine.low %v4335_v45, %v4339_v30 }
 0x508   :  { %7226 = vmatpush1.bf16.msra.mxu0 %v9734_v5  ;;  %7398 = vmatpush1.bf16.msra.mxu1 %v9736_v58  ;;  %v4342_v5 = vld [vmem:[#allocation6 + $0x980] sm:$0xff] }
 0x509   :  { %7238 = vmatprep.subr.bf16.mxu0 %v9743_v29  ;;  %7410 = vmatprep.subr.bf16.mxu1 %v9745_v41  ;;  %v4346_v58 = vld [vmem:[#allocation6 + $0x9a0] sm:$0xff]  ;;  %v4343_v29 = vld [vmem:[#allocation6 + $0x988] sm:$0xff] }
 0x50a   :  { %v4347_v41 = vld [vmem:[#allocation6 + $0x9a8] sm:$0xff]  ;;  %v9791_v40 = vcombine.high %v4342_v5, %v4346_v58  ;;  %v9790_v37 = vcombine.low %v4342_v5, %v4346_v58 }
 0x50b   :  { %7228 = vmatmul.mubr.bf16.vlgmr.msra.gmra.mrb[8].mxu0 %v11148_v48  ;;  %7400 = vmatmul.mubr.bf16.vlgmr.msra.gmra.mrb[8].mxu1 %v11148_v48  ;;  %v9793_v0 = vcombine.high %v4343_v29, %v4347_v41  ;;  %v9792_v16 = vcombine.low %v4343_v29, %v4347_v41 }
 0x50c   :  { %7239 = vmatpush1.bf16.msra.mxu0 %v9742_v15  ;;  %7270 = vmatprep.mubr.bf16.mxu0 %v11163_v27  ;;  %v4350_v15 = vld [vmem:[#allocation6 + $0x9c0] sm:$0xff] }
 0x50d   :  { %7411 = vmatpush1.bf16.msra.mxu1 %v9744_v7  ;;  %7442 = vmatprep.mubr.bf16.mxu1 %v11163_v27  ;;  %v4354_v7 = vld [vmem:[#allocation6 + $0x9e0] sm:$0xff] }
 0x50e   :  { %7240 = vmatprep.subr.bf16.mxu0 %v9751_v39  ;;  %7412 = vmatprep.subr.bf16.mxu1 %v9753_v57  ;;  %v4351_v39 = vld [vmem:[#allocation6 + $0x9c8] sm:$0xff]  ;;  %v9799_v23 = vcombine.high %v4350_v15, %v4354_v7  ;;  %v9798_v24 = vcombine.low %v4350_v15, %v4354_v7 }
 0x50f   :  { %v4355_v57 = vld [vmem:[#allocation6 + $0x9e8] sm:$0xff] }
 0x510   :  { %7241 = vmatpush1.bf16.msra.mxu0 %v9750_v13  ;;  %v9801_v55 = vcombine.high %v4351_v39, %v4355_v57  ;;  %v4358_v13 = vld [vmem:[#allocation6 + $0xa00] sm:$0xff]  ;;  %v9800_v22 = vcombine.low %v4351_v39, %v4355_v57 }
 0x511   :  { %7413 = vmatpush1.bf16.msra.mxu1 %v9752_v2  ;;  %7242 = vmatprep.subr.bf16.mxu0 %v9759_v46  ;;  %v4362_v2 = vld [vmem:[#allocation6 + $0xa20] sm:$0xff]  ;;  %v4359_v46 = vld [vmem:[#allocation6 + $0xa08] sm:$0xff] }
 0x512   :  { %7414 = vmatprep.subr.bf16.mxu1 %v9761_v38  ;;  %v4363_v38 = vld [vmem:[#allocation6 + $0xa28] sm:$0xff]  ;;  %v9807_v60 = vcombine.high %v4358_v13, %v4362_v2  ;;  %v9806_v28 = vcombine.low %v4358_v13, %v4362_v2 }
 0x513   :  { %v9809_v52 = vcombine.high %v4359_v46, %v4363_v38  ;;  %v9808_v14 = vcombine.low %v4359_v46, %v4363_v38 }
 0x514   :  { %7243 = vmatpush1.bf16.msra.mxu0 %v9758_v43  ;;  %v4366_v43 = vld [vmem:[#allocation6 + $0xa40] sm:$0xff] }
 0x515   :  { %7415 = vmatpush1.bf16.msra.mxu1 %v9760_v63  ;;  %7244 = vmatprep.subr.bf16.mxu0 %v9767_v9  ;;  %v4370_v63 = vld [vmem:[#allocation6 + $0xa60] sm:$0xff]  ;;  %v4367_v9 = vld [vmem:[#allocation6 + $0xa48] sm:$0xff] }
 0x516   :  { %7416 = vmatprep.subr.bf16.mxu1 %v9769_v31  ;;  %v4371_v31 = vld [vmem:[#allocation6 + $0xa68] sm:$0xff]  ;;  %v9815_v17 = vcombine.high %v4366_v43, %v4370_v63  ;;  %v9814_v18 = vcombine.low %v4366_v43, %v4370_v63 }
 0x517   :  { %v9817_v33 = vcombine.high %v4367_v9, %v4371_v31  ;;  %v9816_v19 = vcombine.low %v4367_v9, %v4371_v31 }
 0x518   :  { %7245 = vmatpush1.bf16.msra.mxu0 %v9766_v21  ;;  %v4374_v21 = vld [vmem:[#allocation6 + $0xa80] sm:$0xff] }
 0x519   :  { %7417 = vmatpush1.bf16.msra.mxu1 %v9768_v26  ;;  %7246 = vmatprep.subr.bf16.mxu0 %v9775_v4  ;;  %v4378_v26 = vld [vmem:[#allocation6 + $0xaa0] sm:$0xff]  ;;  %v4375_v4 = vld [vmem:[#allocation6 + $0xa88] sm:$0xff] }
 0x51a   :  { %7418 = vmatprep.subr.bf16.mxu1 %v9777_v20  ;;  %v4379_v20 = vld [vmem:[#allocation6 + $0xaa8] sm:$0xff]  ;;  %v9823_v45 = vcombine.high %v4374_v21, %v4378_v26  ;;  %v9822_v5 = vcombine.low %v4374_v21, %v4378_v26 }
 0x51b   :  { %v9825_v30 = vcombine.high %v4375_v4, %v4379_v20  ;;  %v9824_v58 = vcombine.low %v4375_v4, %v4379_v20 }
 0x51c   :  { %7247 = vmatpush1.bf16.msra.mxu0 %v9774_v36  ;;  %v4382_v36 = vld [vmem:[#allocation6 + $0xac0] sm:$0xff] }
 0x51d   :  { %7419 = vmatpush1.bf16.msra.mxu1 %v9776_v56  ;;  %7248 = vmatprep.subr.bf16.mxu0 %v9783_v3  ;;  %v4386_v56 = vld [vmem:[#allocation6 + $0xae0] sm:$0xff]  ;;  %v4383_v3 = vld [vmem:[#allocation6 + $0xac8] sm:$0xff] }
 0x51e   :  { %7420 = vmatprep.subr.bf16.mxu1 %v9785_v47  ;;  %v4387_v47 = vld [vmem:[#allocation6 + $0xae8] sm:$0xff]  ;;  %v9831_v29 = vcombine.high %v4382_v36, %v4386_v56  ;;  %v9830_v15 = vcombine.low %v4382_v36, %v4386_v56 }
 0x51f   :  { %v9833_v41 = vcombine.high %v4383_v3, %v4387_v47  ;;  %v9832_v7 = vcombine.low %v4383_v3, %v4387_v47 }
 0x520   :  { %7249 = vmatpush1.bf16.msra.mxu0 %v9782_v34  ;;  %v4390_v34 = vld [vmem:[#allocation6 + $0xb00] sm:$0xff] }
 0x521   :  { %7421 = vmatpush1.bf16.msra.mxu1 %v9784_v35  ;;  %7250 = vmatprep.subr.bf16.mxu0 %v9791_v40  ;;  %v4394_v35 = vld [vmem:[#allocation6 + $0xb20] sm:$0xff]  ;;  %v4391_v40 = vld [vmem:[#allocation6 + $0xb08] sm:$0xff] }
 0x522   :  { %7422 = vmatprep.subr.bf16.mxu1 %v9793_v0  ;;  %v4395_v0 = vld [vmem:[#allocation6 + $0xb28] sm:$0xff]  ;;  %v9839_v39 = vcombine.high %v4390_v34, %v4394_v35  ;;  %v9838_v13 = vcombine.low %v4390_v34, %v4394_v35 }
 0x523   :  { %v9841_v57 = vcombine.high %v4391_v40, %v4395_v0  ;;  %v9840_v2 = vcombine.low %v4391_v40, %v4395_v0  ;;  %v4435_v34 = vld [vmem:[#allocation6 + $0xc68] sm:$0xff]  ;;  %v4438_v0 = vld [vmem:[#allocation6 + $0xc80] sm:$0xff] }
 0x524   :  { %7251 = vmatpush1.bf16.msra.mxu0 %v9790_v37  ;;  %v4398_v37 = vld [vmem:[#allocation6 + $0xb40] sm:$0xff] }
 0x525   :  { %7423 = vmatpush1.bf16.msra.mxu1 %v9792_v16  ;;  %7252 = vmatprep.subr.bf16.mxu0 %v9799_v23  ;;  %v4402_v16 = vld [vmem:[#allocation6 + $0xb60] sm:$0xff]  ;;  %v4399_v23 = vld [vmem:[#allocation6 + $0xb48] sm:$0xff] }
 0x526   :  { %7424 = vmatprep.subr.bf16.mxu1 %v9801_v55  ;;  %v4403_v55 = vld [vmem:[#allocation6 + $0xb68] sm:$0xff]  ;;  %v9847_v46 = vcombine.high %v4398_v37, %v4402_v16  ;;  %v9846_v43 = vcombine.low %v4398_v37, %v4402_v16 }
 0x527   :  { %v9849_v38 = vcombine.high %v4399_v23, %v4403_v55  ;;  %v9848_v63 = vcombine.low %v4399_v23, %v4403_v55 }
 0x528   :  { %7253 = vmatpush1.bf16.msra.mxu0 %v9798_v24  ;;  %v4406_v24 = vld [vmem:[#allocation6 + $0xb80] sm:$0xff] }
 0x529   :  { %7425 = vmatpush1.bf16.msra.mxu1 %v9800_v22  ;;  %7254 = vmatprep.subr.bf16.mxu0 %v9807_v60  ;;  %v4410_v22 = vld [vmem:[#allocation6 + $0xba0] sm:$0xff]  ;;  %v4407_v60 = vld [vmem:[#allocation6 + $0xb88] sm:$0xff] }
 0x52a   :  { %7426 = vmatprep.subr.bf16.mxu1 %v9809_v52  ;;  %v4411_v52 = vld [vmem:[#allocation6 + $0xba8] sm:$0xff]  ;;  %v9855_v9 = vcombine.high %v4406_v24, %v4410_v22  ;;  %v9854_v21 = vcombine.low %v4406_v24, %v4410_v22 }
 0x52b   :  { %v9857_v31 = vcombine.high %v4407_v60, %v4411_v52  ;;  %v9856_v26 = vcombine.low %v4407_v60, %v4411_v52 }
 0x52c   :  { %7255 = vmatpush1.bf16.msra.mxu0 %v9806_v28  ;;  %v4414_v28 = vld [vmem:[#allocation6 + $0xbc0] sm:$0xff] }
 0x52d   :  { %7427 = vmatpush1.bf16.msra.mxu1 %v9808_v14  ;;  %7256 = vmatprep.subr.bf16.mxu0 %v9815_v17  ;;  %v4418_v14 = vld [vmem:[#allocation6 + $0xbe0] sm:$0xff]  ;;  %v4415_v17 = vld [vmem:[#allocation6 + $0xbc8] sm:$0xff] }
 0x52e   :  { %7428 = vmatprep.subr.bf16.mxu1 %v9817_v33  ;;  %v4419_v33 = vld [vmem:[#allocation6 + $0xbe8] sm:$0xff]  ;;  %v9863_v4 = vcombine.high %v4414_v28, %v4418_v14  ;;  %v9862_v36 = vcombine.low %v4414_v28, %v4418_v14 }
 0x52f   :  { %v9865_v20 = vcombine.high %v4415_v17, %v4419_v33  ;;  %v9864_v56 = vcombine.low %v4415_v17, %v4419_v33 }
 0x530   :  { %7257 = vmatpush1.bf16.msra.mxu0 %v9814_v18  ;;  %v4422_v18 = vld [vmem:[#allocation6 + $0xc00] sm:$0xff] }
 0x531   :  { %7429 = vmatpush1.bf16.msra.mxu1 %v9816_v19  ;;  %7258 = vmatprep.subr.bf16.mxu0 %v9823_v45  ;;  %v4426_v19 = vld [vmem:[#allocation6 + $0xc20] sm:$0xff]  ;;  %v4423_v45 = vld [vmem:[#allocation6 + $0xc08] sm:$0xff] }
 0x532   :  { %7430 = vmatprep.subr.bf16.mxu1 %v9825_v30  ;;  %v4427_v30 = vld [vmem:[#allocation6 + $0xc28] sm:$0xff]  ;;  %v9871_v3 = vcombine.high %v4422_v18, %v4426_v19 }
 0x533   :  { %v9873_v47 = vcombine.high %v4423_v45, %v4427_v30  ;;  %v9872_v35 = vcombine.low %v4423_v45, %v4427_v30 }
 0x534   :  { %7259 = vmatpush1.bf16.msra.mxu0 %v9822_v5  ;;  %v4430_v5 = vld [vmem:[#allocation6 + $0xc40] sm:$0xff] }
 0x535   :  { %7431 = vmatpush1.bf16.msra.mxu1 %v9824_v58  ;;  %7260 = vmatprep.subr.bf16.mxu0 %v9831_v29  ;;  %v4434_v58 = vld [vmem:[#allocation6 + $0xc60] sm:$0xff]  ;;  %v9870_v29 = vcombine.low %v4422_v18, %v4426_v19 }
 0x536   :  { %7432 = vmatprep.subr.bf16.mxu1 %v9833_v41  ;;  %v4431_v41 = vld [vmem:[#allocation6 + $0xc48] sm:$0xff]  ;;  %v9879_v40 = vcombine.high %v4430_v5, %v4434_v58  ;;  %v9878_v37 = vcombine.low %v4430_v5, %v4434_v58 }
 0x537   :  { %v9880_v16 = vcombine.low %v4431_v41, %v4435_v34 }
 0x538   :  { %7261 = vmatpush1.bf16.msra.mxu0 %v9830_v15  ;;  %v4442_v15 = vld [vmem:[#allocation6 + $0xca0] sm:$0xff] }
 0x539   :  { %7433 = vmatpush1.bf16.msra.mxu1 %v9832_v7  ;;  %7262 = vmatprep.subr.bf16.mxu0 %v9839_v39  ;;  %v9881_v7 = vcombine.high %v4431_v41, %v4435_v34  ;;  %v4439_v39 = vld [vmem:[#allocation6 + $0xc88] sm:$0xff]  ;;  %v9887_v23 = vcombine.high %v4438_v0, %v4442_v15  ;;  %v9886_v24 = vcombine.low %v4438_v0, %v4442_v15  ;;  %v4478_v34 = vld [vmem:[#allocation6 + $0xdc0] sm:$0xff] }
 0x53a   :  { %7434 = vmatprep.subr.bf16.mxu1 %v9841_v57  ;;  %v4443_v57 = vld [vmem:[#allocation6 + $0xca8] sm:$0xff] }
 0x53b   :  { %v9889_v55 = vcombine.high %v4439_v39, %v4443_v57  ;;  %v9888_v22 = vcombine.low %v4439_v39, %v4443_v57  ;;  %v4483_v0 = vld [vmem:[#allocation6 + $0xde8] sm:$0xff] }
 0x53c   :  { %7263 = vmatpush1.bf16.msra.mxu0 %v9838_v13  ;;  %v4446_v13 = vld [vmem:[#allocation6 + $0xcc0] sm:$0xff] }
 0x53d   :  { %7435 = vmatpush1.bf16.msra.mxu1 %v9840_v2  ;;  %7264 = vmatprep.subr.bf16.mxu0 %v9847_v46  ;;  %v4450_v2 = vld [vmem:[#allocation6 + $0xce0] sm:$0xff]  ;;  %v4447_v46 = vld [vmem:[#allocation6 + $0xcc8] sm:$0xff] }
 0x53e   :  { %7436 = vmatprep.subr.bf16.mxu1 %v9849_v38  ;;  %v4451_v38 = vld [vmem:[#allocation6 + $0xce8] sm:$0xff]  ;;  %v9895_v60 = vcombine.high %v4446_v13, %v4450_v2  ;;  %v9894_v28 = vcombine.low %v4446_v13, %v4450_v2 }
 0x53f   :  { %v9897_v52 = vcombine.high %v4447_v46, %v4451_v38  ;;  %v9896_v14 = vcombine.low %v4447_v46, %v4451_v38 }
 0x540   :  { %7265 = vmatpush1.bf16.msra.mxu0 %v9846_v43  ;;  %v4454_v43 = vld [vmem:[#allocation6 + $0xd00] sm:$0xff] }
 0x541   :  { %7437 = vmatpush1.bf16.msra.mxu1 %v9848_v63  ;;  %7266 = vmatprep.subr.bf16.mxu0 %v9855_v9  ;;  %v4458_v63 = vld [vmem:[#allocation6 + $0xd20] sm:$0xff]  ;;  %v4455_v9 = vld [vmem:[#allocation6 + $0xd08] sm:$0xff] }
 0x542   :  { %7438 = vmatprep.subr.bf16.mxu1 %v9857_v31  ;;  %v4459_v31 = vld [vmem:[#allocation6 + $0xd28] sm:$0xff]  ;;  %v9903_v17 = vcombine.high %v4454_v43, %v4458_v63  ;;  %v9902_v18 = vcombine.low %v4454_v43, %v4458_v63 }
 0x543   :  { %v9905_v33 = vcombine.high %v4455_v9, %v4459_v31  ;;  %v9904_v19 = vcombine.low %v4455_v9, %v4459_v31 }
 0x544   :  { %7267 = vmatpush1.bf16.msra.mxu0 %v9854_v21  ;;  %v4462_v21 = vld [vmem:[#allocation6 + $0xd40] sm:$0xff] }
 0x545   :  { %7439 = vmatpush1.bf16.msra.mxu1 %v9856_v26  ;;  %7268 = vmatprep.subr.bf16.mxu0 %v9863_v4  ;;  %v4466_v26 = vld [vmem:[#allocation6 + $0xd60] sm:$0xff]  ;;  %v4463_v4 = vld [vmem:[#allocation6 + $0xd48] sm:$0xff] }
 0x546   :  { %7440 = vmatprep.subr.bf16.mxu1 %v9865_v20  ;;  %v4467_v20 = vld [vmem:[#allocation6 + $0xd68] sm:$0xff]  ;;  %v9911_v45 = vcombine.high %v4462_v21, %v4466_v26  ;;  %v9910_v5 = vcombine.low %v4462_v21, %v4466_v26 }
 0x547   :  { %v9913_v30 = vcombine.high %v4463_v4, %v4467_v20  ;;  %v9912_v58 = vcombine.low %v4463_v4, %v4467_v20 }
 0x548   :  { %7269 = vmatpush1.bf16.msra.mxu0 %v9862_v36  ;;  %v4470_v36 = vld [vmem:[#allocation6 + $0xd80] sm:$0xff] }
 0x549   :  { %7441 = vmatpush1.bf16.msra.mxu1 %v9864_v56  ;;  %7281 = vmatprep.subr.bf16.mxu0 %v9871_v3  ;;  %v4474_v56 = vld [vmem:[#allocation6 + $0xda0] sm:$0xff]  ;;  %v4471_v3 = vld [vmem:[#allocation6 + $0xd88] sm:$0xff] }
 0x54a   :  { %7453 = vmatprep.subr.bf16.mxu1 %v9873_v47  ;;  %v4475_v47 = vld [vmem:[#allocation6 + $0xda8] sm:$0xff]  ;;  %v9918_v15 = vcombine.low %v4470_v36, %v4474_v56 }
 0x54b   :  { %7271 = vmatmul.mubr.bf16.vlgmr.msra.gmra.mrb[8].mxu0 %v11184_v44  ;;  %v9921_v41 = vcombine.high %v4471_v3, %v4475_v47 }
 0x54c   :  { %7443 = vmatmul.mubr.bf16.vlgmr.msra.gmra.mrb[8].mxu1 %v11184_v44  ;;  %7282 = vmatpush1.bf16.msra.mxu0 %v9870_v29  ;;  %v9919_v29 = vcombine.high %v4470_v36, %v4474_v56 }
 0x54d   :  { %7313 = vmatprep.mubr.bf16.mxu0 %v11187_v62  ;;  %7454 = vmatpush1.bf16.msra.mxu1 %v9872_v35  ;;  %v4482_v35 = vld [vmem:[#allocation6 + $0xde0] sm:$0xff] }
 0x54e   :  { %7485 = vmatprep.mubr.bf16.mxu1 %v11187_v62  ;;  %7283 = vmatprep.subr.bf16.mxu0 %v9879_v40  ;;  %v4479_v40 = vld [vmem:[#allocation6 + $0xdc8] sm:$0xff]  ;;  %v9927_v39 = vcombine.high %v4478_v34, %v4482_v35  ;;  %v9926_v13 = vcombine.low %v4478_v34, %v4482_v35 }
 0x54f   :  { %7455 = vmatprep.subr.bf16.mxu1 %v9881_v7  ;;  %v9920_v7 = vcombine.low %v4471_v3, %v4475_v47  ;;  %v9929_v57 = vcombine.high %v4479_v40, %v4483_v0  ;;  %v9928_v2 = vcombine.low %v4479_v40, %v4483_v0 }
 0x550   :  { %7284 = vmatpush1.bf16.msra.mxu0 %v9878_v37  ;;  %v4486_v37 = vld [vmem:[#allocation6 + $0xe00] sm:$0xff] }
 0x551   :  { %7456 = vmatpush1.bf16.msra.mxu1 %v9880_v16  ;;  %7285 = vmatprep.subr.bf16.mxu0 %v9887_v23  ;;  %v4490_v16 = vld [vmem:[#allocation6 + $0xe20] sm:$0xff]  ;;  %v4487_v23 = vld [vmem:[#allocation6 + $0xe08] sm:$0xff] }
 0x552   :  { %7457 = vmatprep.subr.bf16.mxu1 %v9889_v55  ;;  %v4491_v55 = vld [vmem:[#allocation6 + $0xe28] sm:$0xff]  ;;  %v9935_v46 = vcombine.high %v4486_v37, %v4490_v16  ;;  %v9934_v43 = vcombine.low %v4486_v37, %v4490_v16 }
 0x553   :  { %v9937_v38 = vcombine.high %v4487_v23, %v4491_v55  ;;  %v9936_v63 = vcombine.low %v4487_v23, %v4491_v55 }
 0x554   :  { %7286 = vmatpush1.bf16.msra.mxu0 %v9886_v24  ;;  %v4494_v24 = vld [vmem:[#allocation6 + $0xe40] sm:$0xff] }
 0x555   :  { %7458 = vmatpush1.bf16.msra.mxu1 %v9888_v22  ;;  %7287 = vmatprep.subr.bf16.mxu0 %v9895_v60  ;;  %v4498_v22 = vld [vmem:[#allocation6 + $0xe60] sm:$0xff]  ;;  %v4495_v60 = vld [vmem:[#allocation6 + $0xe48] sm:$0xff] }
 0x556   :  { %7459 = vmatprep.subr.bf16.mxu1 %v9897_v52  ;;  %v4499_v52 = vld [vmem:[#allocation6 + $0xe68] sm:$0xff]  ;;  %v9943_v9 = vcombine.high %v4494_v24, %v4498_v22  ;;  %v9942_v21 = vcombine.low %v4494_v24, %v4498_v22 }
 0x557   :  { %v9945_v31 = vcombine.high %v4495_v60, %v4499_v52  ;;  %v9944_v26 = vcombine.low %v4495_v60, %v4499_v52 }
 0x558   :  { %7288 = vmatpush1.bf16.msra.mxu0 %v9894_v28  ;;  %v4502_v28 = vld [vmem:[#allocation6 + $0xe80] sm:$0xff] }
 0x559   :  { %7460 = vmatpush1.bf16.msra.mxu1 %v9896_v14  ;;  %7289 = vmatprep.subr.bf16.mxu0 %v9903_v17  ;;  %v4506_v14 = vld [vmem:[#allocation6 + $0xea0] sm:$0xff]  ;;  %v4503_v17 = vld [vmem:[#allocation6 + $0xe88] sm:$0xff] }
 0x55a   :  { %7461 = vmatprep.subr.bf16.mxu1 %v9905_v33  ;;  %v4507_v33 = vld [vmem:[#allocation6 + $0xea8] sm:$0xff]  ;;  %v9951_v4 = vcombine.high %v4502_v28, %v4506_v14  ;;  %v9950_v36 = vcombine.low %v4502_v28, %v4506_v14 }
 0x55b   :  { %v9953_v20 = vcombine.high %v4503_v17, %v4507_v33  ;;  %v9952_v56 = vcombine.low %v4503_v17, %v4507_v33 }
 0x55c   :  { %7290 = vmatpush1.bf16.msra.mxu0 %v9902_v18  ;;  %v4510_v18 = vld [vmem:[#allocation6 + $0xec0] sm:$0xff] }
 0x55d   :  { %7462 = vmatpush1.bf16.msra.mxu1 %v9904_v19  ;;  %7291 = vmatprep.subr.bf16.mxu0 %v9911_v45  ;;  %v4514_v19 = vld [vmem:[#allocation6 + $0xee0] sm:$0xff]  ;;  %v4511_v45 = vld [vmem:[#allocation6 + $0xec8] sm:$0xff] }
 0x55e   :  { %7463 = vmatprep.subr.bf16.mxu1 %v9913_v30  ;;  %v4515_v30 = vld [vmem:[#allocation6 + $0xee8] sm:$0xff]  ;;  %v9959_v3 = vcombine.high %v4510_v18, %v4514_v19  ;;  %v9958_v34 = vcombine.low %v4510_v18, %v4514_v19 }
 0x55f   :  { %v9961_v47 = vcombine.high %v4511_v45, %v4515_v30  ;;  %v9960_v35 = vcombine.low %v4511_v45, %v4515_v30 }
 0x560   :  { %7292 = vmatpush1.bf16.msra.mxu0 %v9910_v5  ;;  %v4518_v5 = vld [vmem:[#allocation6 + $0xf00] sm:$0xff] }
 0x561   :  { %7464 = vmatpush1.bf16.msra.mxu1 %v9912_v58  ;;  %7293 = vmatprep.subr.bf16.mxu0 %v9919_v29  ;;  %v4522_v58 = vld [vmem:[#allocation6 + $0xf20] sm:$0xff]  ;;  %v4519_v29 = vld [vmem:[#allocation6 + $0xf08] sm:$0xff] }
 0x562   :  { %7465 = vmatprep.subr.bf16.mxu1 %v9921_v41  ;;  %v4523_v41 = vld [vmem:[#allocation6 + $0xf28] sm:$0xff]  ;;  %v9967_v40 = vcombine.high %v4518_v5, %v4522_v58  ;;  %v9966_v37 = vcombine.low %v4518_v5, %v4522_v58  ;;  %v4053_v5 = vld [vmem:[#allocation6 + $0x78] sm:$0xff] }
 0x563   :  { %v9969_v0 = vcombine.high %v4519_v29, %v4523_v41  ;;  %v9968_v16 = vcombine.low %v4519_v29, %v4523_v41  ;;  %v4056_v41 = vld [vmem:[#allocation6 + $0x90] sm:$0xff] }
 0x564   :  { %7294 = vmatpush1.bf16.msra.mxu0 %v9918_v15  ;;  %v4526_v15 = vld [vmem:[#allocation6 + $0xf40] sm:$0xff] }
 0x565   :  { %7466 = vmatpush1.bf16.msra.mxu1 %v9920_v7  ;;  %7295 = vmatprep.subr.bf16.mxu0 %v9927_v39  ;;  %v4530_v7 = vld [vmem:[#allocation6 + $0xf60] sm:$0xff]  ;;  %v4527_v39 = vld [vmem:[#allocation6 + $0xf48] sm:$0xff] }
 0x566   :  { %7467 = vmatprep.subr.bf16.mxu1 %v9929_v57  ;;  %v4531_v57 = vld [vmem:[#allocation6 + $0xf68] sm:$0xff]  ;;  %v9975_v23 = vcombine.high %v4526_v15, %v4530_v7  ;;  %v9974_v24 = vcombine.low %v4526_v15, %v4530_v7 }
 0x567   :  { %v9977_v55 = vcombine.high %v4527_v39, %v4531_v57  ;;  %v9976_v22 = vcombine.low %v4527_v39, %v4531_v57 }
 0x568   :  { %7296 = vmatpush1.bf16.msra.mxu0 %v9926_v13  ;;  %v4534_v13 = vld [vmem:[#allocation6 + $0xf80] sm:$0xff] }
 0x569   :  { %7468 = vmatpush1.bf16.msra.mxu1 %v9928_v2  ;;  %7297 = vmatprep.subr.bf16.mxu0 %v9935_v46  ;;  %v4538_v2 = vld [vmem:[#allocation6 + $0xfa0] sm:$0xff]  ;;  %v4535_v46 = vld [vmem:[#allocation6 + $0xf88] sm:$0xff] }
 0x56a   :  { %7469 = vmatprep.subr.bf16.mxu1 %v9937_v38  ;;  %v4539_v38 = vld [vmem:[#allocation6 + $0xfa8] sm:$0xff]  ;;  %v9983_v60 = vcombine.high %v4534_v13, %v4538_v2  ;;  %v9982_v28 = vcombine.low %v4534_v13, %v4538_v2 }
 0x56b   :  { %v9985_v52 = vcombine.high %v4535_v46, %v4539_v38  ;;  %v9984_v14 = vcombine.low %v4535_v46, %v4539_v38 }
 0x56c   :  { %7298 = vmatpush1.bf16.msra.mxu0 %v9934_v43  ;;  %v4542_v43 = vld [vmem:[#allocation6 + $0xfc0] sm:$0xff] }
 0x56d   :  { %7470 = vmatpush1.bf16.msra.mxu1 %v9936_v63  ;;  %7299 = vmatprep.subr.bf16.mxu0 %v9943_v9  ;;  %v4546_v63 = vld [vmem:[#allocation6 + $0xfe0] sm:$0xff]  ;;  %v4543_v9 = vld [vmem:[#allocation6 + $0xfc8] sm:$0xff] }
 0x56e   :  { %7471 = vmatprep.subr.bf16.mxu1 %v9945_v31  ;;  %v4547_v31 = vld [vmem:[#allocation6 + $0xfe8] sm:$0xff]  ;;  %v9991_v17 = vcombine.high %v4542_v43, %v4546_v63  ;;  %v9990_v18 = vcombine.low %v4542_v43, %v4546_v63 }
 0x56f   :  { %v9993_v33 = vcombine.high %v4543_v9, %v4547_v31  ;;  %v9992_v19 = vcombine.low %v4543_v9, %v4547_v31  ;;  %v4080_v31 = vld [vmem:[#allocation6 + $0x150] sm:$0xff] }
 0x570   :  { %7300 = vmatpush1.bf16.msra.mxu0 %v9942_v21  ;;  %v4040_v21 = vld [vmem:[#allocation6 + $0x10] sm:$0xff] }
 0x571   :  { %7472 = vmatpush1.bf16.msra.mxu1 %v9944_v26  ;;  %7301 = vmatprep.subr.bf16.mxu0 %v9951_v4  ;;  %v4044_v26 = vld [vmem:[#allocation6 + $0x30] sm:$0xff]  ;;  %v4041_v4 = vld [vmem:[#allocation6 + $0x18] sm:$0xff] }
 0x572   :  { %7473 = vmatprep.subr.bf16.mxu1 %v9953_v20  ;;  %v4045_v20 = vld [vmem:[#allocation6 + $0x38] sm:$0xff]  ;;  %v9491_v45 = vcombine.high %v4040_v21, %v4044_v26 }
 0x573   :  { %v9493_v30 = vcombine.high %v4041_v4, %v4045_v20  ;;  %v9492_v58 = vcombine.low %v4041_v4, %v4045_v20  ;;  %v4088_v20 = vld [vmem:[#allocation6 + $0x190] sm:$0xff] }
 0x574   :  { %7302 = vmatpush1.bf16.msra.mxu0 %v9950_v36  ;;  %v4048_v36 = vld [vmem:[#allocation6 + $0x50] sm:$0xff] }
 0x575   :  { %7474 = vmatpush1.bf16.msra.mxu1 %v9952_v56  ;;  %7303 = vmatprep.subr.bf16.mxu0 %v9959_v3  ;;  %v4052_v56 = vld [vmem:[#allocation6 + $0x70] sm:$0xff]  ;;  %v9490_v3 = vcombine.low %v4040_v21, %v4044_v26 }
 0x576   :  { %7475 = vmatprep.subr.bf16.mxu1 %v9961_v47  ;;  %v4049_v47 = vld [vmem:[#allocation6 + $0x58] sm:$0xff]  ;;  %v9499_v29 = vcombine.high %v4048_v36, %v4052_v56  ;;  %v9498_v15 = vcombine.low %v4048_v36, %v4052_v56 }
 0x577   :  { %v9500_v7 = vcombine.low %v4049_v47, %v4053_v5 }
 0x578   :  { %7304 = vmatpush1.bf16.msra.mxu0 %v9958_v34  ;;  %v4060_v34 = vld [vmem:[#allocation6 + $0xb0] sm:$0xff] }
 0x579   :  { %7476 = vmatpush1.bf16.msra.mxu1 %v9960_v35  ;;  %7305 = vmatprep.subr.bf16.mxu0 %v9967_v40  ;;  %v9501_v35 = vcombine.high %v4049_v47, %v4053_v5  ;;  %v4057_v40 = vld [vmem:[#allocation6 + $0x98] sm:$0xff]  ;;  %v9507_v39 = vcombine.high %v4056_v41, %v4060_v34  ;;  %v9506_v13 = vcombine.low %v4056_v41, %v4060_v34  ;;  %v4096_v47 = vld [vmem:[#allocation6 + $0x1d0] sm:$0xff] }
 0x57a   :  { %7477 = vmatprep.subr.bf16.mxu1 %v9969_v0  ;;  %v4061_v0 = vld [vmem:[#allocation6 + $0xb8] sm:$0xff]  ;;  %v4100_v5 = vld [vmem:[#allocation6 + $0x1f0] sm:$0xff] }
 0x57b   :  { %v9509_v57 = vcombine.high %v4057_v40, %v4061_v0  ;;  %v9508_v2 = vcombine.low %v4057_v40, %v4061_v0  ;;  %v4104_v0 = vld [vmem:[#allocation6 + $0x210] sm:$0xff] }
 0x57c   :  { %7306 = vmatpush1.bf16.msra.mxu0 %v9966_v37  ;;  %v4064_v37 = vld [vmem:[#allocation6 + $0xd0] sm:$0xff] }
 0x57d   :  { %7478 = vmatpush1.bf16.msra.mxu1 %v9968_v16  ;;  %7307 = vmatprep.subr.bf16.mxu0 %v9975_v23  ;;  %v4068_v16 = vld [vmem:[#allocation6 + $0xf0] sm:$0xff]  ;;  %v4065_v23 = vld [vmem:[#allocation6 + $0xd8] sm:$0xff] }
 0x57e   :  { %7479 = vmatprep.subr.bf16.mxu1 %v9977_v55  ;;  %v4069_v55 = vld [vmem:[#allocation6 + $0xf8] sm:$0xff]  ;;  %v9515_v46 = vcombine.high %v4064_v37, %v4068_v16 }
 0x57f   :  { %v9517_v38 = vcombine.high %v4065_v23, %v4069_v55  ;;  %v9516_v43 = vcombine.low %v4065_v23, %v4069_v55  ;;  %v4112_v55 = vld [vmem:[#allocation6 + $0x250] sm:$0xff] }
 0x580   :  { %7308 = vmatpush1.bf16.msra.mxu0 %v9974_v24  ;;  %v4072_v24 = vld [vmem:[#allocation6 + $0x110] sm:$0xff] }
 0x581   :  { %7480 = vmatpush1.bf16.msra.mxu1 %v9976_v22  ;;  %7309 = vmatprep.subr.bf16.mxu0 %v9983_v60  ;;  %v4076_v22 = vld [vmem:[#allocation6 + $0x130] sm:$0xff]  ;;  %v4073_v60 = vld [vmem:[#allocation6 + $0x118] sm:$0xff] }
 0x582   :  { %7481 = vmatprep.subr.bf16.mxu1 %v9985_v52  ;;  %v4077_v52 = vld [vmem:[#allocation6 + $0x138] sm:$0xff]  ;;  %v9523_v63 = vcombine.high %v4072_v24, %v4076_v22 }
 0x583   :  { %v9525_v9 = vcombine.high %v4073_v60, %v4077_v52  ;;  %v9524_v21 = vcombine.low %v4073_v60, %v4077_v52  ;;  %v4120_v52 = vld [vmem:[#allocation6 + $0x290] sm:$0xff] }
 0x584   :  { %7310 = vmatpush1.bf16.msra.mxu0 %v9982_v28  ;;  %v4084_v28 = vld [vmem:[#allocation6 + $0x170] sm:$0xff] }
 0x585   :  { %7482 = vmatpush1.bf16.msra.mxu1 %v9984_v14  ;;  %7311 = vmatprep.subr.bf16.mxu0 %v9991_v17  ;;  %v4081_v14 = vld [vmem:[#allocation6 + $0x158] sm:$0xff]  ;;  %v9531_v26 = vcombine.high %v4080_v31, %v4084_v28 }
 0x586   :  { %7483 = vmatprep.subr.bf16.mxu1 %v9993_v33  ;;  %v4085_v17 = vld [vmem:[#allocation6 + $0x178] sm:$0xff]  ;;  %v9522_v33 = vcombine.low %v4072_v24, %v4076_v22 }
 0x587   :  { %v9533_v4 = vcombine.high %v4081_v14, %v4085_v17  ;;  %v9532_v36 = vcombine.low %v4081_v14, %v4085_v17  ;;  %v4128_v17 = vld [vmem:[#allocation6 + $0x2d0] sm:$0xff] }
 0x588   :  { %7312 = vmatpush1.bf16.msra.mxu0 %v9990_v18  ;;  %v4092_v18 = vld [vmem:[#allocation6 + $0x1b0] sm:$0xff] }
 0x589   :  { %7484 = vmatpush1.bf16.msra.mxu1 %v9992_v19  ;;  %7496 = vmatprep.subr.bf16.mxu0 %v9491_v45  ;;  %v4089_v19 = vld [vmem:[#allocation6 + $0x198] sm:$0xff]  ;;  %v9539_v56 = vcombine.high %v4088_v20, %v4092_v18  ;;  %v9538_v41 = vcombine.low %v4088_v20, %v4092_v18 }
 0x58a   :  { %7668 = vmatprep.subr.bf16.mxu1 %v9493_v30  ;;  %v4093_v45 = vld [vmem:[#allocation6 + $0x1b8] sm:$0xff]  ;;  %v9530_v30 = vcombine.low %v4080_v31, %v4084_v28 }
 0x58b   :  { %7314 = vmatmul.mubr.bf16.vlgmr.msra.gmra.mrb[8].mxu0 %v11196_v32  ;;  %v9540_v34 = vcombine.low %v4089_v19, %v4093_v45 }
 0x58c   :  { %7486 = vmatmul.mubr.bf16.vlgmr.msra.gmra.mrb[8].mxu1 %v11196_v32  ;;  %7497 = vmatpush1.bf16.msra.mxu0 %v9490_v3  ;;  %v9541_v3 = vcombine.high %v4089_v19, %v4093_v45  ;;  %v4136_v45 = vld [vmem:[#allocation6 + $0x310] sm:$0xff] }
 0x58d   :  { %7528 = vmatprep.mubr.bf16.mxu0 %v11135_v1  ;;  %7669 = vmatpush1.bf16.msra.mxu1 %v9492_v58  ;;  %v4097_v58 = vld [vmem:[#allocation6 + $0x1d8] sm:$0xff] }
 0x58e   :  { %7700 = vmatprep.mubr.bf16.mxu1 %v11135_v1  ;;  %7498 = vmatprep.subr.bf16.mxu0 %v9499_v29  ;;  %v9514_v1 = vcombine.low %v4064_v37, %v4068_v16  ;;  %v4101_v29 = vld [vmem:[#allocation6 + $0x1f8] sm:$0xff] }
 0x58f   :  { %7670 = vmatprep.subr.bf16.mxu1 %v9501_v35  ;;  %v9547_v35 = vcombine.high %v4096_v47, %v4100_v5  ;;  %v9549_v40 = vcombine.high %v4097_v58, %v4101_v29  ;;  %v9548_v37 = vcombine.low %v4097_v58, %v4101_v29  ;;  %v4144_v29 = vld [vmem:[#allocation6 + $0x350] sm:$0xff] }
 0x590   :  { %7499 = vmatpush1.bf16.msra.mxu0 %v9498_v15  ;;  %v4108_v15 = vld [vmem:[#allocation6 + $0x230] sm:$0xff] }
 0x591   :  { %7671 = vmatpush1.bf16.msra.mxu1 %v9500_v7  ;;  %7500 = vmatprep.subr.bf16.mxu0 %v9507_v39  ;;  %v4105_v7 = vld [vmem:[#allocation6 + $0x218] sm:$0xff]  ;;  %v9555_v16 = vcombine.high %v4104_v0, %v4108_v15 }
 0x592   :  { %7672 = vmatprep.subr.bf16.mxu1 %v9509_v57  ;;  %v4109_v39 = vld [vmem:[#allocation6 + $0x238] sm:$0xff]  ;;  %v9546_v57 = vcombine.low %v4096_v47, %v4100_v5 }
 0x593   :  { %v9557_v23 = vcombine.high %v4105_v7, %v4109_v39  ;;  %v9556_v24 = vcombine.low %v4105_v7, %v4109_v39  ;;  %v4152_v39 = vld [vmem:[#allocation6 + $0x390] sm:$0xff] }
 0x594   :  { %7501 = vmatpush1.bf16.msra.mxu0 %v9506_v13  ;;  %v4116_v13 = vld [vmem:[#allocation6 + $0x270] sm:$0xff] }
 0x595   :  { %7673 = vmatpush1.bf16.msra.mxu1 %v9508_v2  ;;  %7502 = vmatprep.subr.bf16.mxu0 %v9515_v46  ;;  %v4113_v2 = vld [vmem:[#allocation6 + $0x258] sm:$0xff]  ;;  %v9563_v22 = vcombine.high %v4112_v55, %v4116_v13 }
 0x596   :  { %7674 = vmatprep.subr.bf16.mxu1 %v9517_v38  ;;  %v4117_v46 = vld [vmem:[#allocation6 + $0x278] sm:$0xff]  ;;  %v9554_v38 = vcombine.low %v4104_v0, %v4108_v15 }
 0x597   :  { %v9565_v60 = vcombine.high %v4113_v2, %v4117_v46  ;;  %v9564_v31 = vcombine.low %v4113_v2, %v4117_v46  ;;  %v4160_v46 = vld [vmem:[#allocation6 + $0x3d0] sm:$0xff] }
 0x598   :  { %7503 = vmatpush1.bf16.msra.mxu0 %v9514_v1  ;;  %v4124_v1 = vld [vmem:[#allocation6 + $0x2b0] sm:$0xff] }
 0x599   :  { %7675 = vmatpush1.bf16.msra.mxu1 %v9516_v43  ;;  %7504 = vmatprep.subr.bf16.mxu0 %v9523_v63  ;;  %v4121_v43 = vld [vmem:[#allocation6 + $0x298] sm:$0xff]  ;;  %v9571_v28 = vcombine.high %v4120_v52, %v4124_v1 }
 0x59a   :  { %7676 = vmatprep.subr.bf16.mxu1 %v9525_v9  ;;  %v4125_v63 = vld [vmem:[#allocation6 + $0x2b8] sm:$0xff]  ;;  %v9562_v9 = vcombine.low %v4112_v55, %v4116_v13 }
 0x59b   :  { %v9573_v14 = vcombine.high %v4121_v43, %v4125_v63  ;;  %v9572_v20 = vcombine.low %v4121_v43, %v4125_v63  ;;  %v4168_v63 = vld [vmem:[#allocation6 + $0x410] sm:$0xff] }
 0x59c   :  { %7505 = vmatpush1.bf16.msra.mxu0 %v9522_v33  ;;  %v4132_v33 = vld [vmem:[#allocation6 + $0x2f0] sm:$0xff] }
 0x59d   :  { %7677 = vmatpush1.bf16.msra.mxu1 %v9524_v21  ;;  %7506 = vmatprep.subr.bf16.mxu0 %v9531_v26  ;;  %v4129_v21 = vld [vmem:[#allocation6 + $0x2d8] sm:$0xff]  ;;  %v9579_v18 = vcombine.high %v4128_v17, %v4132_v33 }
 0x59e   :  { %7678 = vmatprep.subr.bf16.mxu1 %v9533_v4  ;;  %v4133_v26 = vld [vmem:[#allocation6 + $0x2f8] sm:$0xff]  ;;  %v9570_v4 = vcombine.low %v4120_v52, %v4124_v1 }
 0x59f   :  { %v9581_v19 = vcombine.high %v4129_v21, %v4133_v26  ;;  %v9580_v47 = vcombine.low %v4129_v21, %v4133_v26  ;;  %v4176_v26 = vld [vmem:[#allocation6 + $0x450] sm:$0xff] }
 0x5a0   :  { %7507 = vmatpush1.bf16.msra.mxu0 %v9530_v30  ;;  %v4140_v30 = vld [vmem:[#allocation6 + $0x330] sm:$0xff] }
 0x5a1   :  { %7679 = vmatpush1.bf16.msra.mxu1 %v9532_v36  ;;  %7508 = vmatprep.subr.bf16.mxu0 %v9539_v56  ;;  %v4137_v36 = vld [vmem:[#allocation6 + $0x318] sm:$0xff]  ;;  %v9587_v5 = vcombine.high %v4136_v45, %v4140_v30 }
 0x5a2   :  { %7680 = vmatprep.subr.bf16.mxu1 %v9541_v3  ;;  %v4141_v56 = vld [vmem:[#allocation6 + $0x338] sm:$0xff]  ;;  %v9578_v3 = vcombine.low %v4128_v17, %v4132_v33 }
 0x5a3   :  { %v9589_v58 = vcombine.high %v4137_v36, %v4141_v56  ;;  %v9588_v0 = vcombine.low %v4137_v36, %v4141_v56  ;;  %v4184_v36 = vld [vmem:[#allocation6 + $0x490] sm:$0xff] }
 0x5a4   :  { %7509 = vmatpush1.bf16.msra.mxu0 %v9538_v41  ;;  %v4148_v41 = vld [vmem:[#allocation6 + $0x370] sm:$0xff] }
 0x5a5   :  { %7681 = vmatpush1.bf16.msra.mxu1 %v9540_v34  ;;  %7510 = vmatprep.subr.bf16.mxu0 %v9547_v35  ;;  %v4145_v34 = vld [vmem:[#allocation6 + $0x358] sm:$0xff]  ;;  %v9595_v15 = vcombine.high %v4144_v29, %v4148_v41  ;;  %v4188_v56 = vld [vmem:[#allocation6 + $0x4b0] sm:$0xff] }
 0x5a6   :  { %7682 = vmatprep.subr.bf16.mxu1 %v9549_v40  ;;  %v4149_v35 = vld [vmem:[#allocation6 + $0x378] sm:$0xff]  ;;  %v9586_v40 = vcombine.low %v4136_v45, %v4140_v30 }
 0x5a7   :  { %v9597_v7 = vcombine.high %v4145_v34, %v4149_v35  ;;  %v9596_v55 = vcombine.low %v4145_v34, %v4149_v35  ;;  %v4192_v35 = vld [vmem:[#allocation6 + $0x4d0] sm:$0xff] }
 0x5a8   :  { %7511 = vmatpush1.bf16.msra.mxu0 %v9546_v57  ;;  %v4156_v57 = vld [vmem:[#allocation6 + $0x3b0] sm:$0xff] }
 0x5a9   :  { %7683 = vmatpush1.bf16.msra.mxu1 %v9548_v37  ;;  %7512 = vmatprep.subr.bf16.mxu0 %v9555_v16  ;;  %v4153_v37 = vld [vmem:[#allocation6 + $0x398] sm:$0xff]  ;;  %v9603_v13 = vcombine.high %v4152_v39, %v4156_v57 }
 0x5aa   :  { %7684 = vmatprep.subr.bf16.mxu1 %v9557_v23  ;;  %v4157_v16 = vld [vmem:[#allocation6 + $0x3b8] sm:$0xff]  ;;  %v9594_v23 = vcombine.low %v4144_v29, %v4148_v41  ;;  %v9635_v41 = vcombine.high %v4184_v36, %v4188_v56 }
 0x5ab   :  { %v9605_v2 = vcombine.high %v4153_v37, %v4157_v16  ;;  %v9604_v52 = vcombine.low %v4153_v37, %v4157_v16  ;;  %v4200_v37 = vld [vmem:[#allocation6 + $0x510] sm:$0xff] }
 0x5ac   :  { %7513 = vmatpush1.bf16.msra.mxu0 %v9554_v38  ;;  %v4164_v38 = vld [vmem:[#allocation6 + $0x3f0] sm:$0xff] }
 0x5ad   :  { %7685 = vmatpush1.bf16.msra.mxu1 %v9556_v24  ;;  %7514 = vmatprep.subr.bf16.mxu0 %v9563_v22  ;;  %v4161_v24 = vld [vmem:[#allocation6 + $0x3d8] sm:$0xff]  ;;  %v9611_v1 = vcombine.high %v4160_v46, %v4164_v38  ;;  %v4204_v16 = vld [vmem:[#allocation6 + $0x530] sm:$0xff] }
 0x5ae   :  { %7686 = vmatprep.subr.bf16.mxu1 %v9565_v60  ;;  %v4165_v22 = vld [vmem:[#allocation6 + $0x3f8] sm:$0xff]  ;;  %v9602_v60 = vcombine.low %v4152_v39, %v4156_v57 }
 0x5af   :  { %v9613_v43 = vcombine.high %v4161_v24, %v4165_v22  ;;  %v9612_v17 = vcombine.low %v4161_v24, %v4165_v22  ;;  %v4212_v24 = vld [vmem:[#allocation6 + $0x570] sm:$0xff]  ;;  %v4209_v22 = vld [vmem:[#allocation6 + $0x558] sm:$0xff] }
 0x5b0   :  { %7515 = vmatpush1.bf16.msra.mxu0 %v9562_v9  ;;  %v4172_v9 = vld [vmem:[#allocation6 + $0x430] sm:$0xff] }
 0x5b1   :  { %7687 = vmatpush1.bf16.msra.mxu1 %v9564_v31  ;;  %7516 = vmatprep.subr.bf16.mxu0 %v9571_v28  ;;  %v4169_v31 = vld [vmem:[#allocation6 + $0x418] sm:$0xff]  ;;  %v9619_v33 = vcombine.high %v4168_v63, %v4172_v9 }
 0x5b2   :  { %7688 = vmatprep.subr.bf16.mxu1 %v9573_v14  ;;  %v4173_v28 = vld [vmem:[#allocation6 + $0x438] sm:$0xff]  ;;  %v9610_v14 = vcombine.low %v4160_v46, %v4164_v38  ;;  %v4208_v38 = vld [vmem:[#allocation6 + $0x550] sm:$0xff] }
 0x5b3   :  { %v9621_v21 = vcombine.high %v4169_v31, %v4173_v28  ;;  %v9620_v45 = vcombine.low %v4169_v31, %v4173_v28  ;;  %v4220_v31 = vld [vmem:[#allocation6 + $0x5b0] sm:$0xff]  ;;  %v4217_v28 = vld [vmem:[#allocation6 + $0x598] sm:$0xff] }
 0x5b4   :  { %7517 = vmatpush1.bf16.msra.mxu0 %v9570_v4  ;;  %v4180_v4 = vld [vmem:[#allocation6 + $0x470] sm:$0xff] }
 0x5b5   :  { %7689 = vmatpush1.bf16.msra.mxu1 %v9572_v20  ;;  %7518 = vmatprep.subr.bf16.mxu0 %v9579_v18  ;;  %v9618_v20 = vcombine.low %v4168_v63, %v4172_v9  ;;  %v4177_v18 = vld [vmem:[#allocation6 + $0x458] sm:$0xff]  ;;  %v9627_v30 = vcombine.high %v4176_v26, %v4180_v4  ;;  %v4216_v9 = vld [vmem:[#allocation6 + $0x590] sm:$0xff] }
 0x5b6   :  { %7690 = vmatprep.subr.bf16.mxu1 %v9581_v19  ;;  %v4181_v19 = vld [vmem:[#allocation6 + $0x478] sm:$0xff] }
 0x5b7   :  { %v9628_v29 = vcombine.low %v4177_v18, %v4181_v19 }
 0x5b8   :  { %7519 = vmatpush1.bf16.msra.mxu0 %v9578_v3  ;;  %v9629_v3 = vcombine.high %v4177_v18, %v4181_v19  ;;  %v4225_v18 = vld [vmem:[#allocation6 + $0x5d8] sm:$0xff] }
 0x5b9   :  { %7691 = vmatpush1.bf16.msra.mxu1 %v9580_v47  ;;  %7520 = vmatprep.subr.bf16.mxu0 %v9587_v5  ;;  %v4185_v47 = vld [vmem:[#allocation6 + $0x498] sm:$0xff] }
 0x5ba   :  { %7692 = vmatprep.subr.bf16.mxu1 %v9589_v58  ;;  %v4189_v5 = vld [vmem:[#allocation6 + $0x4b8] sm:$0xff]  ;;  %v9626_v58 = vcombine.low %v4176_v26, %v4180_v4  ;;  %v4224_v4 = vld [vmem:[#allocation6 + $0x5d0] sm:$0xff] }
 0x5bb   :  { %v9637_v34 = vcombine.high %v4185_v47, %v4189_v5  ;;  %v4229_v19 = vld [vmem:[#allocation6 + $0x5f8] sm:$0xff] }
 0x5bc   :  { %7521 = vmatpush1.bf16.msra.mxu0 %v9586_v40  ;;  %v4196_v40 = vld [vmem:[#allocation6 + $0x4f0] sm:$0xff] }
 0x5bd   :  { %7693 = vmatpush1.bf16.msra.mxu1 %v9588_v0  ;;  %7522 = vmatprep.subr.bf16.mxu0 %v9595_v15  ;;  %v4193_v0 = vld [vmem:[#allocation6 + $0x4d8] sm:$0xff]  ;;  %v9643_v39 = vcombine.high %v4192_v35, %v4196_v40 }
 0x5be   :  { %7694 = vmatprep.subr.bf16.mxu1 %v9597_v7  ;;  %v4197_v15 = vld [vmem:[#allocation6 + $0x4f8] sm:$0xff]  ;;  %v9634_v7 = vcombine.low %v4184_v36, %v4188_v56  ;;  %v9677_v56 = vcombine.high %v4225_v18, %v4229_v19 }
 0x5bf   :  { %v9645_v57 = vcombine.high %v4193_v0, %v4197_v15 }
 0x5c0   :  { %7523 = vmatpush1.bf16.msra.mxu0 %v9594_v23  ;;  %v4201_v23 = vld [vmem:[#allocation6 + $0x518] sm:$0xff] }
 0x5c1   :  { %7695 = vmatpush1.bf16.msra.mxu1 %v9596_v55  ;;  %7524 = vmatprep.subr.bf16.mxu0 %v9603_v13  ;;  %v4205_v55 = vld [vmem:[#allocation6 + $0x538] sm:$0xff]  ;;  %v9644_v13 = vcombine.low %v4193_v0, %v4197_v15  ;;  %v4244_v0 = vld [vmem:[#allocation6 + $0x670] sm:$0xff] }
 0x5c2   :  { %7696 = vmatprep.subr.bf16.mxu1 %v9605_v2  ;;  %v9651_v2 = vcombine.high %v4200_v37, %v4204_v16  ;;  %v9653_v46 = vcombine.high %v4201_v23, %v4205_v55  ;;  %v4241_v15 = vld [vmem:[#allocation6 + $0x658] sm:$0xff] }
 0x5c4   :  { %7525 = vmatpush1.bf16.msra.mxu0 %v9602_v60  ;;  %v4213_v60 = vld [vmem:[#allocation6 + $0x578] sm:$0xff] }
 0x5c5   :  { %7697 = vmatpush1.bf16.msra.mxu1 %v9604_v52  ;;  %7526 = vmatprep.subr.bf16.mxu0 %v9611_v1  ;;  %v9650_v52 = vcombine.low %v4200_v37, %v4204_v16  ;;  %v9652_v1 = vcombine.low %v4201_v23, %v4205_v55  ;;  %v9661_v63 = vcombine.high %v4209_v22, %v4213_v60  ;;  %v4248_v16 = vld [vmem:[#allocation6 + $0x690] sm:$0xff]  ;;  %v4249_v55 = vld [vmem:[#allocation6 + $0x698] sm:$0xff] }
 0x5c6   :  { %7698 = vmatprep.subr.bf16.mxu1 %v9613_v43  ;;  %v9659_v43 = vcombine.high %v4208_v38, %v4212_v24  ;;  %v4252_v23 = vld [vmem:[#allocation6 + $0x6b0] sm:$0xff] }
 0x5c8   :  { %7527 = vmatpush1.bf16.msra.mxu0 %v9610_v14  ;;  %v4221_v14 = vld [vmem:[#allocation6 + $0x5b8] sm:$0xff] }
 0x5c9   :  { %7699 = vmatpush1.bf16.msra.mxu1 %v9612_v17  ;;  %7539 = vmatprep.subr.bf16.mxu0 %v9619_v33  ;;  %v9658_v17 = vcombine.low %v4208_v38, %v4212_v24  ;;  %v9660_v33 = vcombine.low %v4209_v22, %v4213_v60  ;;  %v9669_v26 = vcombine.high %v4217_v28, %v4221_v14  ;;  %v4256_v24 = vld [vmem:[#allocation6 + $0x6d0] sm:$0xff]  ;;  %v4257_v60 = vld [vmem:[#allocation6 + $0x6d8] sm:$0xff] }
 0x5ca   :  { %7711 = vmatprep.subr.bf16.mxu1 %v9621_v21  ;;  %v9667_v21 = vcombine.high %v4216_v9, %v4220_v31  ;;  %v4260_v22 = vld [vmem:[#allocation6 + $0x6f0] sm:$0xff] }
 0x5cb   :  { %7529 = vmatmul.mubr.bf16.vlgmr.msra.gmra.mrb[12].mxu0 %v11137_v8 }
 0x5cc   :  { %7701 = vmatmul.mubr.bf16.vlgmr.msra.gmra.mrb[12].mxu1 %v11137_v8  ;;  %7540 = vmatpush1.bf16.msra.mxu0 %v9618_v20  ;;  %v9636_v8 = vcombine.low %v4185_v47, %v4189_v5  ;;  %v4228_v20 = vld [vmem:[#allocation6 + $0x5f0] sm:$0xff]  ;;  %v4233_v5 = vld [vmem:[#allocation6 + $0x618] sm:$0xff] }
 0x5cd   :  { %7571 = vmatprep.mubr.bf16.mxu0 %v11141_v50  ;;  %7712 = vmatpush1.bf16.msra.mxu1 %v9620_v45  ;;  %v9666_v45 = vcombine.low %v4216_v9, %v4220_v31  ;;  %v9675_v36 = vcombine.high %v4224_v4, %v4228_v20  ;;  %v4236_v47 = vld [vmem:[#allocation6 + $0x630] sm:$0xff] }
 0x5ce   :  { %7743 = vmatprep.mubr.bf16.mxu1 %v11141_v50  ;;  %7541 = vmatprep.subr.bf16.mxu0 %v9627_v30  ;;  %v9642_v50 = vcombine.low %v4192_v35, %v4196_v40  ;;  %v9668_v30 = vcombine.low %v4217_v28, %v4221_v14  ;;  %v4240_v40 = vld [vmem:[#allocation6 + $0x650] sm:$0xff]  ;;  %v4265_v14 = vld [vmem:[#allocation6 + $0x718] sm:$0xff] }
 0x5cf   :  { %7713 = vmatprep.subr.bf16.mxu1 %v9629_v3  ;;  %v4232_v3 = vld [vmem:[#allocation6 + $0x610] sm:$0xff] }
 0x5d0   :  { %7542 = vmatpush1.bf16.msra.mxu0 %v9626_v58  ;;  %v4237_v58 = vld [vmem:[#allocation6 + $0x638] sm:$0xff]  ;;  %v4264_v31 = vld [vmem:[#allocation6 + $0x710] sm:$0xff] }
 0x5d1   :  { %7714 = vmatpush1.bf16.msra.mxu1 %v9628_v29  ;;  %7543 = vmatprep.subr.bf16.mxu0 %v9635_v41  ;;  %v9674_v29 = vcombine.low %v4224_v4, %v4228_v20  ;;  %v9676_v41 = vcombine.low %v4225_v18, %v4229_v19  ;;  %v9685_v35 = vcombine.high %v4233_v5, %v4237_v58  ;;  %v4268_v28 = vld [vmem:[#allocation6 + $0x730] sm:$0xff]  ;;  %v4273_v19 = vld [vmem:[#allocation6 + $0x758] sm:$0xff] }
 0x5d2   :  { %7715 = vmatprep.subr.bf16.mxu1 %v9637_v34  ;;  %v9683_v34 = vcombine.high %v4232_v3, %v4236_v47  ;;  %v4272_v20 = vld [vmem:[#allocation6 + $0x750] sm:$0xff] }
 0x5d3   :  { %v4276_v18 = vld [vmem:[#allocation6 + $0x770] sm:$0xff] }
 0x5d4   :  { %7544 = vmatpush1.bf16.msra.mxu0 %v9634_v7  ;;  %v4245_v7 = vld [vmem:[#allocation6 + $0x678] sm:$0xff] }
 0x5d5   :  { %7716 = vmatpush1.bf16.msra.mxu1 %v9636_v8  ;;  %7545 = vmatprep.subr.bf16.mxu0 %v9643_v39  ;;  %v9682_v8 = vcombine.low %v4232_v3, %v4236_v47  ;;  %v9684_v39 = vcombine.low %v4233_v5, %v4237_v58  ;;  %v9693_v37 = vcombine.high %v4241_v15, %v4245_v7  ;;  %v4280_v47 = vld [vmem:[#allocation6 + $0x790] sm:$0xff]  ;;  %v4281_v58 = vld [vmem:[#allocation6 + $0x798] sm:$0xff] }
 0x5d6   :  { %7717 = vmatprep.subr.bf16.mxu1 %v9645_v57  ;;  %v9691_v57 = vcombine.high %v4240_v40, %v4244_v0  ;;  %v4284_v5 = vld [vmem:[#allocation6 + $0x7b0] sm:$0xff] }
 0x5d8   :  { %7546 = vmatpush1.bf16.msra.mxu0 %v9642_v50  ;;  %v4253_v50 = vld [vmem:[#allocation6 + $0x6b8] sm:$0xff] }
 0x5d9   :  { %7718 = vmatpush1.bf16.msra.mxu1 %v9644_v13  ;;  %7547 = vmatprep.subr.bf16.mxu0 %v9651_v2  ;;  %v9690_v13 = vcombine.low %v4240_v40, %v4244_v0  ;;  %v9692_v2 = vcombine.low %v4241_v15, %v4245_v7  ;;  %v9701_v38 = vcombine.high %v4249_v55, %v4253_v50  ;;  %v4288_v0 = vld [vmem:[#allocation6 + $0x7d0] sm:$0xff]  ;;  %v4289_v7 = vld [vmem:[#allocation6 + $0x7d8] sm:$0xff] }
 0x5da   :  { %7719 = vmatprep.subr.bf16.mxu1 %v9653_v46  ;;  %v9699_v46 = vcombine.high %v4248_v16, %v4252_v23  ;;  %v4292_v15 = vld [vmem:[#allocation6 + $0x7f0] sm:$0xff] }
 0x5dc   :  { %7548 = vmatpush1.bf16.msra.mxu0 %v9650_v52  ;;  %v4261_v52 = vld [vmem:[#allocation6 + $0x6f8] sm:$0xff] }
 0x5dd   :  { %7720 = vmatpush1.bf16.msra.mxu1 %v9652_v1  ;;  %7549 = vmatprep.subr.bf16.mxu0 %v9659_v43  ;;  %v9698_v1 = vcombine.low %v4248_v16, %v4252_v23  ;;  %v9700_v43 = vcombine.low %v4249_v55, %v4253_v50  ;;  %v9709_v9 = vcombine.high %v4257_v60, %v4261_v52  ;;  %v4296_v23 = vld [vmem:[#allocation6 + $0x810] sm:$0xff]  ;;  %v4297_v50 = vld [vmem:[#allocation6 + $0x818] sm:$0xff] }
 0x5de   :  { %7721 = vmatprep.subr.bf16.mxu1 %v9661_v63  ;;  %v9707_v63 = vcombine.high %v4256_v24, %v4260_v22  ;;  %v4300_v55 = vld [vmem:[#allocation6 + $0x830] sm:$0xff] }
 0x5e0   :  { %7550 = vmatpush1.bf16.msra.mxu0 %v9658_v17  ;;  %v4269_v17 = vld [vmem:[#allocation6 + $0x738] sm:$0xff] }
 0x5e1   :  { %7722 = vmatpush1.bf16.msra.mxu1 %v9660_v33  ;;  %7551 = vmatprep.subr.bf16.mxu0 %v9667_v21  ;;  %v9706_v33 = vcombine.low %v4256_v24, %v4260_v22  ;;  %v9708_v21 = vcombine.low %v4257_v60, %v4261_v52  ;;  %v9717_v4 = vcombine.high %v4265_v14, %v4269_v17  ;;  %v4304_v22 = vld [vmem:[#allocation6 + $0x850] sm:$0xff] }
 0x5e2   :  { %7723 = vmatprep.subr.bf16.mxu1 %v9669_v26  ;;  %v9715_v26 = vcombine.high %v4264_v31, %v4268_v28  ;;  %v4308_v60 = vld [vmem:[#allocation6 + $0x870] sm:$0xff]  ;;  %v9746_v52 = vcombine.low %v4296_v23, %v4300_v55 }
 0x5e4   :  { %7552 = vmatpush1.bf16.msra.mxu0 %v9666_v45  ;;  %v4277_v45 = vld [vmem:[#allocation6 + $0x778] sm:$0xff] }
 0x5e5   :  { %7724 = vmatpush1.bf16.msra.mxu1 %v9668_v30  ;;  %7553 = vmatprep.subr.bf16.mxu0 %v9675_v36  ;;  %v9714_v30 = vcombine.low %v4264_v31, %v4268_v28  ;;  %v9716_v36 = vcombine.low %v4265_v14, %v4269_v17  ;;  %v9725_v3 = vcombine.high %v4273_v19, %v4277_v45  ;;  %v4312_v31 = vld [vmem:[#allocation6 + $0x890] sm:$0xff]  ;;  %v4313_v17 = vld [vmem:[#allocation6 + $0x898] sm:$0xff] }
 0x5e6   :  { %7725 = vmatprep.subr.bf16.mxu1 %v9677_v56  ;;  %v9723_v56 = vcombine.high %v4272_v20, %v4276_v18  ;;  %v4316_v28 = vld [vmem:[#allocation6 + $0x8b0] sm:$0xff] }
 0x5e8   :  { %7554 = vmatpush1.bf16.msra.mxu0 %v9674_v29  ;;  %v4285_v29 = vld [vmem:[#allocation6 + $0x7b8] sm:$0xff] }
 0x5e9   :  { %7726 = vmatpush1.bf16.msra.mxu1 %v9676_v41  ;;  %7555 = vmatprep.subr.bf16.mxu0 %v9683_v34  ;;  %v9722_v41 = vcombine.low %v4272_v20, %v4276_v18  ;;  %v9724_v34 = vcombine.low %v4273_v19, %v4277_v45  ;;  %v9733_v40 = vcombine.high %v4281_v58, %v4285_v29  ;;  %v4320_v18 = vld [vmem:[#allocation6 + $0x8d0] sm:$0xff]  ;;  %v4321_v45 = vld [vmem:[#allocation6 + $0x8d8] sm:$0xff] }
 0x5ea   :  { %7727 = vmatprep.subr.bf16.mxu1 %v9685_v35  ;;  %v9731_v35 = vcombine.high %v4280_v47, %v4284_v5  ;;  %v4324_v19 = vld [vmem:[#allocation6 + $0x8f0] sm:$0xff] }
 0x5ec   :  { %7556 = vmatpush1.bf16.msra.mxu0 %v9682_v8  ;;  %v4293_v8 = vld [vmem:[#allocation6 + $0x7f8] sm:$0xff] }
 0x5ed   :  { %7728 = vmatpush1.bf16.msra.mxu1 %v9684_v39  ;;  %7557 = vmatprep.subr.bf16.mxu0 %v9691_v57  ;;  %v9730_v39 = vcombine.low %v4280_v47, %v4284_v5  ;;  %v9732_v57 = vcombine.low %v4281_v58, %v4285_v29  ;;  %v9741_v16 = vcombine.high %v4289_v7, %v4293_v8  ;;  %v4328_v47 = vld [vmem:[#allocation6 + $0x910] sm:$0xff]  ;;  %v4329_v58 = vld [vmem:[#allocation6 + $0x918] sm:$0xff] }
 0x5ee   :  { %7729 = vmatprep.subr.bf16.mxu1 %v9693_v37  ;;  %v9739_v37 = vcombine.high %v4288_v0, %v4292_v15  ;;  %v4332_v5 = vld [vmem:[#allocation6 + $0x930] sm:$0xff]  ;;  %v4333_v29 = vld [vmem:[#allocation6 + $0x938] sm:$0xff] }
 0x5f0   :  { %7558 = vmatpush1.bf16.msra.mxu0 %v9690_v13  ;;  %v4301_v13 = vld [vmem:[#allocation6 + $0x838] sm:$0xff] }
 0x5f1   :  { %7730 = vmatpush1.bf16.msra.mxu1 %v9692_v2  ;;  %7559 = vmatprep.subr.bf16.mxu0 %v9699_v46  ;;  %v9738_v2 = vcombine.low %v4288_v0, %v4292_v15  ;;  %v9740_v46 = vcombine.low %v4289_v7, %v4293_v8  ;;  %v9749_v24 = vcombine.high %v4297_v50, %v4301_v13  ;;  %v4340_v0 = vld [vmem:[#allocation6 + $0x970] sm:$0xff]  ;;  %v4337_v15 = vld [vmem:[#allocation6 + $0x958] sm:$0xff] }
 0x5f2   :  { %7731 = vmatprep.subr.bf16.mxu1 %v9701_v38  ;;  %v9747_v38 = vcombine.high %v4296_v23, %v4300_v55  ;;  %v4341_v7 = vld [vmem:[#allocation6 + $0x978] sm:$0xff]  ;;  %v9778_v8 = vcombine.low %v4328_v47, %v4332_v5  ;;  %v4348_v23 = vld [vmem:[#allocation6 + $0x9b0] sm:$0xff] }
 0x5f3   :  { %v4345_v55 = vld [vmem:[#allocation6 + $0x998] sm:$0xff] }
 0x5f4   :  { %7560 = vmatpush1.bf16.msra.mxu0 %v9698_v1  ;;  %v4305_v1 = vld [vmem:[#allocation6 + $0x858] sm:$0xff] }
 0x5f5   :  { %7732 = vmatpush1.bf16.msra.mxu1 %v9700_v43  ;;  %7561 = vmatprep.subr.bf16.mxu0 %v9707_v63  ;;  %v4309_v43 = vld [vmem:[#allocation6 + $0x878] sm:$0xff]  ;;  %v9748_v63 = vcombine.low %v4297_v50, %v4301_v13 }
 0x5f6   :  { %7733 = vmatprep.subr.bf16.mxu1 %v9709_v9  ;;  %v9755_v9 = vcombine.high %v4304_v22, %v4308_v60  ;;  %v9757_v14 = vcombine.high %v4305_v1, %v4309_v43  ;;  %v4349_v50 = vld [vmem:[#allocation6 + $0x9b8] sm:$0xff] }
 0x5f8   :  { %7562 = vmatpush1.bf16.msra.mxu0 %v9706_v33  ;;  %v4317_v33 = vld [vmem:[#allocation6 + $0x8b8] sm:$0xff] }
 0x5f9   :  { %7734 = vmatpush1.bf16.msra.mxu1 %v9708_v21  ;;  %7563 = vmatprep.subr.bf16.mxu0 %v9715_v26  ;;  %v9754_v21 = vcombine.low %v4304_v22, %v4308_v60  ;;  %v9756_v26 = vcombine.low %v4305_v1, %v4309_v43  ;;  %v9765_v20 = vcombine.high %v4313_v17, %v4317_v33  ;;  %v4356_v22 = vld [vmem:[#allocation6 + $0x9f0] sm:$0xff]  ;;  %v4353_v60 = vld [vmem:[#allocation6 + $0x9d8] sm:$0xff] }
 0x5fa   :  { %7735 = vmatprep.subr.bf16.mxu1 %v9717_v4  ;;  %v9763_v4 = vcombine.high %v4312_v31, %v4316_v28  ;;  %v9796_v43 = vcombine.low %v4345_v55, %v4349_v50 }
 0x5fc   :  { %7564 = vmatpush1.bf16.msra.mxu0 %v9714_v30  ;;  %v4325_v30 = vld [vmem:[#allocation6 + $0x8f8] sm:$0xff] }
 0x5fd   :  { %7736 = vmatpush1.bf16.msra.mxu1 %v9716_v36  ;;  %7565 = vmatprep.subr.bf16.mxu0 %v9723_v56  ;;  %v9762_v36 = vcombine.low %v4312_v31, %v4316_v28  ;;  %v9771_v56 = vcombine.high %v4320_v18, %v4324_v19  ;;  %v4360_v31 = vld [vmem:[#allocation6 + $0xa10] sm:$0xff] }
 0x5fe   :  { %7737 = vmatprep.subr.bf16.mxu1 %v9725_v3  ;;  %v9773_v3 = vcombine.high %v4321_v45, %v4325_v30  ;;  %v4364_v28 = vld [vmem:[#allocation6 + $0xa30] sm:$0xff] }
 0x600   :  { %7566 = vmatpush1.bf16.msra.mxu0 %v9722_v41  ;;  %v9772_v41 = vcombine.low %v4321_v45, %v4325_v30  ;;  %v4373_v45 = vld [vmem:[#allocation6 + $0xa78] sm:$0xff]  ;;  %v9810_v30 = vcombine.low %v4360_v31, %v4364_v28 }
 0x601   :  { %7738 = vmatpush1.bf16.msra.mxu1 %v9724_v34  ;;  %7567 = vmatprep.subr.bf16.mxu0 %v9731_v35  ;;  %v9779_v34 = vcombine.high %v4328_v47, %v4332_v5  ;;  %v9781_v35 = vcombine.high %v4329_v58, %v4333_v29  ;;  %v4380_v47 = vld [vmem:[#allocation6 + $0xab0] sm:$0xff]  ;;  %v4377_v5 = vld [vmem:[#allocation6 + $0xa98] sm:$0xff] }
 0x602   :  { %7739 = vmatprep.subr.bf16.mxu1 %v9733_v40  ;;  %v4336_v40 = vld [vmem:[#allocation6 + $0x950] sm:$0xff] }
 0x603   :  { %v9786_v13 = vcombine.low %v4336_v40, %v4340_v0 }
 0x604   :  { %7568 = vmatpush1.bf16.msra.mxu0 %v9730_v39  ;;  %v9780_v39 = vcombine.low %v4329_v58, %v4333_v29  ;;  %v4381_v58 = vld [vmem:[#allocation6 + $0xab8] sm:$0xff] }
 0x605   :  { %7740 = vmatpush1.bf16.msra.mxu1 %v9732_v57  ;;  %7569 = vmatprep.subr.bf16.mxu0 %v9739_v37  ;;  %v9787_v57 = vcombine.high %v4336_v40, %v4340_v0  ;;  %v9789_v37 = vcombine.high %v4337_v15, %v4341_v7  ;;  %v4388_v40 = vld [vmem:[#allocation6 + $0xaf0] sm:$0xff]  ;;  %v4385_v0 = vld [vmem:[#allocation6 + $0xad8] sm:$0xff] }
 0x606   :  { %7741 = vmatprep.subr.bf16.mxu1 %v9741_v16  ;;  %v4344_v16 = vld [vmem:[#allocation6 + $0x990] sm:$0xff] }
 0x607   :  { %v9794_v1 = vcombine.low %v4344_v16, %v4348_v23 }
 0x608   :  { %7570 = vmatpush1.bf16.msra.mxu0 %v9738_v2  ;;  %v9788_v2 = vcombine.low %v4337_v15, %v4341_v7  ;;  %v4389_v15 = vld [vmem:[#allocation6 + $0xaf8] sm:$0xff] }
 0x609   :  { %7742 = vmatpush1.bf16.msra.mxu1 %v9740_v46  ;;  %7582 = vmatprep.subr.bf16.mxu0 %v9747_v38  ;;  %v9795_v46 = vcombine.high %v4344_v16, %v4348_v23  ;;  %v9797_v38 = vcombine.high %v4345_v55, %v4349_v50  ;;  %v4396_v16 = vld [vmem:[#allocation6 + $0xb30] sm:$0xff]  ;;  %v4393_v23 = vld [vmem:[#allocation6 + $0xb18] sm:$0xff] }
 0x60a   :  { %7754 = vmatprep.subr.bf16.mxu1 %v9749_v24  ;;  %v4352_v24 = vld [vmem:[#allocation6 + $0x9d0] sm:$0xff]  ;;  %v4397_v55 = vld [vmem:[#allocation6 + $0xb38] sm:$0xff] }
 0x60b   :  { %7572 = vmatmul.mubr.bf16.vlgmr.msra.gmra.mrb[12].mxu0 %v11148_v48 }
 0x60c   :  { %7744 = vmatmul.mubr.bf16.vlgmr.msra.gmra.mrb[12].mxu1 %v11148_v48  ;;  %7583 = vmatpush1.bf16.msra.mxu0 %v9746_v52  ;;  %v9764_v48 = vcombine.low %v4313_v17, %v4317_v33  ;;  %v4357_v52 = vld [vmem:[#allocation6 + $0x9f8] sm:$0xff]  ;;  %v9802_v33 = vcombine.low %v4352_v24, %v4356_v22 }
 0x60d   :  { %7614 = vmatprep.mubr.bf16.mxu0 %v11163_v27  ;;  %7755 = vmatpush1.bf16.msra.mxu1 %v9748_v63  ;;  %v9803_v63 = vcombine.high %v4352_v24, %v4356_v22  ;;  %v4365_v17 = vld [vmem:[#allocation6 + $0xa38] sm:$0xff]  ;;  %v4404_v24 = vld [vmem:[#allocation6 + $0xb70] sm:$0xff] }
 0x60e   :  { %7786 = vmatprep.mubr.bf16.mxu1 %v11163_v27  ;;  %7584 = vmatprep.subr.bf16.mxu0 %v9755_v9  ;;  %v9770_v27 = vcombine.low %v4320_v18, %v4324_v19  ;;  %v9805_v9 = vcombine.high %v4353_v60, %v4357_v52  ;;  %v4372_v18 = vld [vmem:[#allocation6 + $0xa70] sm:$0xff]  ;;  %v4369_v19 = vld [vmem:[#allocation6 + $0xa58] sm:$0xff] }
 0x60f   :  { %7756 = vmatprep.subr.bf16.mxu1 %v9757_v14  ;;  %v4361_v14 = vld [vmem:[#allocation6 + $0xa18] sm:$0xff] }
 0x610   :  { %7585 = vmatpush1.bf16.msra.mxu0 %v9754_v21  ;;  %v9804_v21 = vcombine.low %v4353_v60, %v4357_v52  ;;  %v4401_v22 = vld [vmem:[#allocation6 + $0xb58] sm:$0xff] }
 0x611   :  { %7757 = vmatpush1.bf16.msra.mxu1 %v9756_v26  ;;  %7586 = vmatprep.subr.bf16.mxu0 %v9763_v4  ;;  %v9811_v26 = vcombine.high %v4360_v31, %v4364_v28  ;;  %v9813_v4 = vcombine.high %v4361_v14, %v4365_v17  ;;  %v4405_v60 = vld [vmem:[#allocation6 + $0xb78] sm:$0xff]  ;;  %v4412_v31 = vld [vmem:[#allocation6 + $0xbb0] sm:$0xff] }
 0x612   :  { %7758 = vmatprep.subr.bf16.mxu1 %v9765_v20  ;;  %v4368_v20 = vld [vmem:[#allocation6 + $0xa50] sm:$0xff]  ;;  %v4409_v28 = vld [vmem:[#allocation6 + $0xb98] sm:$0xff] }
 0x613   :  { %v9818_v29 = vcombine.low %v4368_v20, %v4372_v18 }
 0x614   :  { %7587 = vmatpush1.bf16.msra.mxu0 %v9762_v36  ;;  %v9812_v36 = vcombine.low %v4361_v14, %v4365_v17  ;;  %v4413_v14 = vld [vmem:[#allocation6 + $0xbb8] sm:$0xff] }
 0x615   :  { %7759 = vmatpush1.bf16.msra.mxu1 %v9764_v48  ;;  %7588 = vmatprep.subr.bf16.mxu0 %v9771_v56  ;;  %v9819_v48 = vcombine.high %v4368_v20, %v4372_v18  ;;  %v9821_v56 = vcombine.high %v4369_v19, %v4373_v45  ;;  %v4420_v20 = vld [vmem:[#allocation6 + $0xbf0] sm:$0xff]  ;;  %v4417_v18 = vld [vmem:[#allocation6 + $0xbd8] sm:$0xff] }
 0x616   :  { %7760 = vmatprep.subr.bf16.mxu1 %v9773_v3  ;;  %v4376_v3 = vld [vmem:[#allocation6 + $0xa90] sm:$0xff] }
 0x617   :  { %v9826_v7 = vcombine.low %v4376_v3, %v4380_v47 }
 0x618   :  { %7589 = vmatpush1.bf16.msra.mxu0 %v9770_v27  ;;  %v9820_v27 = vcombine.low %v4369_v19, %v4373_v45  ;;  %v4421_v19 = vld [vmem:[#allocation6 + $0xbf8] sm:$0xff] }
 0x619   :  { %7761 = vmatpush1.bf16.msra.mxu1 %v9772_v41  ;;  %7590 = vmatprep.subr.bf16.mxu0 %v9779_v34  ;;  %v9827_v41 = vcombine.high %v4376_v3, %v4380_v47  ;;  %v9829_v34 = vcombine.high %v4377_v5, %v4381_v58  ;;  %v4428_v3 = vld [vmem:[#allocation6 + $0xc30] sm:$0xff]  ;;  %v4425_v47 = vld [vmem:[#allocation6 + $0xc18] sm:$0xff] }
 0x61a   :  { %7762 = vmatprep.subr.bf16.mxu1 %v9781_v35  ;;  %v4384_v35 = vld [vmem:[#allocation6 + $0xad0] sm:$0xff] }
 0x61b   :  { %v9834_v50 = vcombine.low %v4384_v35, %v4388_v40 }
 0x61c   :  { %7591 = vmatpush1.bf16.msra.mxu0 %v9778_v8  ;;  %v9828_v8 = vcombine.low %v4377_v5, %v4381_v58  ;;  %v4429_v5 = vld [vmem:[#allocation6 + $0xc38] sm:$0xff] }
 0x61d   :  { %7763 = vmatpush1.bf16.msra.mxu1 %v9780_v39  ;;  %7592 = vmatprep.subr.bf16.mxu0 %v9787_v57  ;;  %v9835_v39 = vcombine.high %v4384_v35, %v4388_v40  ;;  %v9837_v57 = vcombine.high %v4385_v0, %v4389_v15  ;;  %v4436_v35 = vld [vmem:[#allocation6 + $0xc70] sm:$0xff] }
 0x61e   :  { %7764 = vmatprep.subr.bf16.mxu1 %v9789_v37  ;;  %v4392_v37 = vld [vmem:[#allocation6 + $0xb10] sm:$0xff] }
 0x61f   :  { %v9842_v52 = vcombine.low %v4392_v37, %v4396_v16 }
 0x620   :  { %7593 = vmatpush1.bf16.msra.mxu0 %v9786_v13  ;;  %v9836_v13 = vcombine.low %v4385_v0, %v4389_v15  ;;  %v4433_v0 = vld [vmem:[#allocation6 + $0xc58] sm:$0xff] }
 0x621   :  { %7765 = vmatpush1.bf16.msra.mxu1 %v9788_v2  ;;  %7594 = vmatprep.subr.bf16.mxu0 %v9795_v46  ;;  %v9843_v2 = vcombine.high %v4392_v37, %v4396_v16  ;;  %v9845_v46 = vcombine.high %v4393_v23, %v4397_v55  ;;  %v4437_v15 = vld [vmem:[#allocation6 + $0xc78] sm:$0xff] }
 0x622   :  { %7766 = vmatprep.subr.bf16.mxu1 %v9797_v38  ;;  %v4400_v38 = vld [vmem:[#allocation6 + $0xb50] sm:$0xff]  ;;  %v9885_v37 = vcombine.high %v4433_v0, %v4437_v15  ;;  %v4441_v16 = vld [vmem:[#allocation6 + $0xc98] sm:$0xff] }
 0x623   :  { %v9850_v17 = vcombine.low %v4400_v38, %v4404_v24 }
 0x624   :  { %7595 = vmatpush1.bf16.msra.mxu0 %v9794_v1  ;;  %v9844_v1 = vcombine.low %v4393_v23, %v4397_v55  ;;  %v4445_v23 = vld [vmem:[#allocation6 + $0xcb8] sm:$0xff] }
 0x625   :  { %7767 = vmatpush1.bf16.msra.mxu1 %v9796_v43  ;;  %7596 = vmatprep.subr.bf16.mxu0 %v9803_v63  ;;  %v9851_v43 = vcombine.high %v4400_v38, %v4404_v24  ;;  %v9853_v63 = vcombine.high %v4401_v22, %v4405_v60  ;;  %v4452_v38 = vld [vmem:[#allocation6 + $0xcf0] sm:$0xff]  ;;  %v4449_v24 = vld [vmem:[#allocation6 + $0xcd8] sm:$0xff] }
 0x626   :  { %7768 = vmatprep.subr.bf16.mxu1 %v9805_v9  ;;  %v4408_v9 = vld [vmem:[#allocation6 + $0xb90] sm:$0xff] }
 0x627   :  { %v9858_v45 = vcombine.low %v4408_v9, %v4412_v31 }
 0x628   :  { %7597 = vmatpush1.bf16.msra.mxu0 %v9802_v33  ;;  %v9852_v33 = vcombine.low %v4401_v22, %v4405_v60  ;;  %v4453_v22 = vld [vmem:[#allocation6 + $0xcf8] sm:$0xff] }
 0x629   :  { %7769 = vmatpush1.bf16.msra.mxu1 %v9804_v21  ;;  %7598 = vmatprep.subr.bf16.mxu0 %v9811_v26  ;;  %v9859_v21 = vcombine.high %v4408_v9, %v4412_v31  ;;  %v9861_v26 = vcombine.high %v4409_v28, %v4413_v14  ;;  %v4457_v9 = vld [vmem:[#allocation6 + $0xd18] sm:$0xff] }
 0x62a   :  { %7770 = vmatprep.subr.bf16.mxu1 %v9813_v4  ;;  %v4416_v4 = vld [vmem:[#allocation6 + $0xbd0] sm:$0xff]  ;;  %v4461_v31 = vld [vmem:[#allocation6 + $0xd38] sm:$0xff] }
 0x62b   :  { %v9866_v58 = vcombine.low %v4416_v4, %v4420_v20 }
 0x62c   :  { %7599 = vmatpush1.bf16.msra.mxu0 %v9810_v30  ;;  %v9860_v30 = vcombine.low %v4409_v28, %v4413_v14  ;;  %v9900_v28 = vcombine.low %v4449_v24, %v4453_v22 }
 0x62d   :  { %7771 = vmatpush1.bf16.msra.mxu1 %v9812_v36  ;;  %7600 = vmatprep.subr.bf16.mxu0 %v9819_v48  ;;  %v9867_v36 = vcombine.high %v4416_v4, %v4420_v20  ;;  %v9869_v48 = vcombine.high %v4417_v18, %v4421_v19  ;;  %v4469_v4 = vld [vmem:[#allocation6 + $0xd78] sm:$0xff] }
 0x62e   :  { %7772 = vmatprep.subr.bf16.mxu1 %v9821_v56  ;;  %v4424_v56 = vld [vmem:[#allocation6 + $0xc10] sm:$0xff] }
 0x62f   :  { %v9874_v40 = vcombine.low %v4424_v56, %v4428_v3 }
 0x630   :  { %7601 = vmatpush1.bf16.msra.mxu0 %v9818_v29  ;;  %v9868_v29 = vcombine.low %v4417_v18, %v4421_v19  ;;  %v9908_v18 = vcombine.low %v4457_v9, %v4461_v31 }
 0x631   :  { %7773 = vmatpush1.bf16.msra.mxu1 %v9820_v27  ;;  %7602 = vmatprep.subr.bf16.mxu0 %v9827_v41  ;;  %v9875_v27 = vcombine.high %v4424_v56, %v4428_v3  ;;  %v9877_v41 = vcombine.high %v4425_v47, %v4429_v5  ;;  %v4477_v56 = vld [vmem:[#allocation6 + $0xdb8] sm:$0xff]  ;;  %v11222_v3 = vld [vmem:[#allocation7] sm:$0xff] }
 0x632   :  { %7774 = vmatprep.subr.bf16.mxu1 %v9829_v34  ;;  %v4432_v34 = vld [vmem:[#allocation6 + $0xc50] sm:$0xff] }
 0x633   :  { %v9882_v55 = vcombine.low %v4432_v34, %v4436_v35 }
 0x634   :  { %7603 = vmatpush1.bf16.msra.mxu0 %v9826_v7  ;;  %v9876_v7 = vcombine.low %v4425_v47, %v4429_v5 }
 0x635   :  { %7775 = vmatpush1.bf16.msra.mxu1 %v9828_v8  ;;  %7604 = vmatprep.subr.bf16.mxu0 %v9835_v39  ;;  %v9883_v8 = vcombine.high %v4432_v34, %v4436_v35  ;;  %v4440_v39 = vld [vmem:[#allocation6 + $0xc90] sm:$0xff]  ;;  %v11229_v35 = vrot.slane %v11222_v3, %v567_v6  ;;  %v11248_v6 = vrot.slane %v11222_v3, %v579_v12 }
 0x636   :  { %7776 = vmatprep.subr.bf16.mxu1 %v9837_v57  ;;  %v4444_v57 = vld [vmem:[#allocation6 + $0xcb0] sm:$0xff] }
 0x637   :  { %v9890_v60 = vcombine.low %v4440_v39, %v4444_v57  ;;  %v4484_v34 = vld [vmem:[#allocation6 + $0xdf0] sm:$0xff] }
 0x638   :  { %7605 = vmatpush1.bf16.msra.mxu0 %v9834_v50  ;;  %v9884_v50 = vcombine.low %v4433_v0, %v4437_v15  ;;  %v4481_v15 = vld [vmem:[#allocation6 + $0xdd8] sm:$0xff] }
 0x639   :  { %7777 = vmatpush1.bf16.msra.mxu1 %v9836_v13  ;;  %7606 = vmatprep.subr.bf16.mxu0 %v9843_v2  ;;  %v9891_v13 = vcombine.high %v4440_v39, %v4444_v57  ;;  %v9893_v2 = vcombine.high %v4441_v16, %v4445_v23  ;;  %v11243_v39 = vrot.slane %v11222_v3, %v571_v11 }
 0x63a   :  { %7778 = vmatprep.subr.bf16.mxu1 %v9845_v46  ;;  %v4448_v46 = vld [vmem:[#allocation6 + $0xcd0] sm:$0xff] }
 0x63c   :  { %7607 = vmatpush1.bf16.msra.mxu0 %v9842_v52  ;;  %v9899_v52 = vcombine.high %v4448_v46, %v4452_v38 }
 0x63d   :  { %7779 = vmatpush1.bf16.msra.mxu1 %v9844_v1  ;;  %7608 = vmatprep.subr.bf16.mxu0 %v9851_v43  ;;  %v9901_v1 = vcombine.high %v4449_v24, %v4453_v22  ;;  %v4456_v43 = vld [vmem:[#allocation6 + $0xd10] sm:$0xff] }
 0x63e   :  { %7780 = vmatprep.subr.bf16.mxu1 %v9853_v63  ;;  %v4460_v63 = vld [vmem:[#allocation6 + $0xd30] sm:$0xff] }
 0x63f   :  { %v9907_v14 = vcombine.high %v4456_v43, %v4460_v63  ;;  %v9906_v20 = vcombine.low %v4456_v43, %v4460_v63  ;;  %v4492_v24 = vld [vmem:[#allocation6 + $0xe30] sm:$0xff] }
 0x640   :  { %7609 = vmatpush1.bf16.msra.mxu0 %v9850_v17  ;;  %v9909_v17 = vcombine.high %v4457_v9, %v4461_v31  ;;  %v4496_v9 = vld [vmem:[#allocation6 + $0xe50] sm:$0xff] }
 0x641   :  { %7781 = vmatpush1.bf16.msra.mxu1 %v9852_v33  ;;  %7610 = vmatprep.subr.bf16.mxu0 %v9859_v21  ;;  %v4464_v33 = vld [vmem:[#allocation6 + $0xd50] sm:$0xff] }
 0x642   :  { %7782 = vmatprep.subr.bf16.mxu1 %v9861_v26  ;;  %v4468_v21 = vld [vmem:[#allocation6 + $0xd70] sm:$0xff]  ;;  %v4465_v26 = vld [vmem:[#allocation6 + $0xd58] sm:$0xff] }
 0x643   :  { %v9915_v19 = vcombine.high %v4464_v33, %v4468_v21  ;;  %v9914_v47 = vcombine.low %v4464_v33, %v4468_v21  ;;  %v9916_v5 = vcombine.low %v4465_v26, %v4469_v4  ;;  %v4500_v31 = vld [vmem:[#allocation6 + $0xe70] sm:$0xff] }
 0x644   :  { %7611 = vmatpush1.bf16.msra.mxu0 %v9858_v45  ;;  %v9917_v45 = vcombine.high %v4465_v26, %v4469_v4  ;;  %v9947_v33 = vcombine.high %v4496_v9, %v4500_v31  ;;  %v4504_v26 = vld [vmem:[#allocation6 + $0xe90] sm:$0xff] }
 0x645   :  { %7783 = vmatpush1.bf16.msra.mxu1 %v9860_v30  ;;  %7612 = vmatprep.subr.bf16.mxu0 %v9867_v36  ;;  %v4472_v30 = vld [vmem:[#allocation6 + $0xd90] sm:$0xff] }
 0x646   :  { %7784 = vmatprep.subr.bf16.mxu1 %v9869_v48  ;;  %v4476_v36 = vld [vmem:[#allocation6 + $0xdb0] sm:$0xff]  ;;  %v4473_v48 = vld [vmem:[#allocation6 + $0xd98] sm:$0xff] }
 0x647   :  { %v4508_v4 = vld [vmem:[#allocation6 + $0xeb0] sm:$0xff] }
 0x648   :  { %7613 = vmatpush1.bf16.msra.mxu0 %v9866_v58  ;;  %v9923_v58 = vcombine.high %v4472_v30, %v4476_v36 }
 0x649   :  { %7785 = vmatpush1.bf16.msra.mxu1 %v9868_v29  ;;  %7625 = vmatprep.subr.bf16.mxu0 %v9875_v27  ;;  %v9925_v27 = vcombine.high %v4473_v48, %v4477_v56 }
 0x64a   :  { %7797 = vmatprep.subr.bf16.mxu1 %v9877_v41  ;;  %v4480_v41 = vld [vmem:[#allocation6 + $0xdd0] sm:$0xff] }
 0x64b   :  { %7615 = vmatmul.mubr.bf16.vlgmr.msra.gmra.mrb[12].mxu0 %v11184_v44  ;;  %v9931_v11 = vcombine.high %v4480_v41, %v4484_v34 }
 0x64c   :  { %7787 = vmatmul.mubr.bf16.vlgmr.msra.gmra.mrb[12].mxu1 %v11184_v44  ;;  %7626 = vmatpush1.bf16.msra.mxu0 %v9874_v40  ;;  %v9892_v44 = vcombine.low %v4441_v16, %v4445_v23  ;;  %v9922_v16 = vcombine.low %v4472_v30, %v4476_v36  ;;  %v9955_v30 = vcombine.high %v4504_v26, %v4508_v4 }
 0x64d   :  { %7657 = vmatprep.mubr.bf16.mxu0 %v11187_v62  ;;  %7798 = vmatpush1.bf16.msra.mxu1 %v9876_v7  ;;  %v4485_v7 = vld [vmem:[#allocation6 + $0xdf8] sm:$0xff] }
 0x64e   :  { %7829 = vmatprep.mubr.bf16.mxu1 %v11187_v62  ;;  %7627 = vmatprep.subr.bf16.mxu0 %v9883_v8  ;;  %v9898_v62 = vcombine.low %v4448_v46, %v4452_v38  ;;  %v11238_v8 = vrot.slane %v11222_v3, %v575_v10  ;;  %v9933_v46 = vcombine.high %v4481_v15, %v4485_v7  ;;  %v4488_v38 = vld [vmem:[#allocation6 + $0xe10] sm:$0xff] }
 0x64f   :  { %7799 = vmatprep.subr.bf16.mxu1 %v9885_v37  ;;  %v9939_v43 = vcombine.high %v4488_v38, %v4492_v24 }
 0x650   :  { %7628 = vmatpush1.bf16.msra.mxu0 %v9882_v55 }
 0x651   :  { %7800 = vmatpush1.bf16.msra.mxu1 %v9884_v50  ;;  %7629 = vmatprep.subr.bf16.mxu0 %v9891_v13  ;;  %v9924_v50 = vcombine.low %v4473_v48, %v4477_v56  ;;  %v4512_v48 = vld [vmem:[#allocation6 + $0xed0] sm:$0xff] }
 0x652   :  { %7801 = vmatprep.subr.bf16.mxu1 %v9893_v2  ;;  %v4516_v56 = vld [vmem:[#allocation6 + $0xef0] sm:$0xff] }
 0x654   :  { %7630 = vmatpush1.bf16.msra.mxu0 %v9890_v60  ;;  %v4489_v60 = vld [vmem:[#allocation6 + $0xe18] sm:$0xff] }
 0x655   :  { %7802 = vmatpush1.bf16.msra.mxu1 %v9892_v44  ;;  %7631 = vmatprep.subr.bf16.mxu0 %v9899_v52  ;;  %v4493_v44 = vld [vmem:[#allocation6 + $0xe38] sm:$0xff]  ;;  %v9930_v52 = vcombine.low %v4480_v41, %v4484_v34  ;;  %v9963_v41 = vcombine.high %v4512_v48, %v4516_v56 }
 0x656   :  { %7803 = vmatprep.subr.bf16.mxu1 %v9901_v1  ;;  %v9932_v1 = vcombine.low %v4481_v15, %v4485_v7  ;;  %v9941_v63 = vcombine.high %v4489_v60, %v4493_v44  ;;  %v4520_v15 = vld [vmem:[#allocation6 + $0xf10] sm:$0xff] }
 0x657   :  { %v4524_v7 = vld [vmem:[#allocation6 + $0xf30] sm:$0xff] }
 0x658   :  { %7632 = vmatpush1.bf16.msra.mxu0 %v9898_v62  ;;  %v4497_v62 = vld [vmem:[#allocation6 + $0xe58] sm:$0xff] }
 0x659   :  { %7804 = vmatpush1.bf16.msra.mxu1 %v9900_v28  ;;  %7633 = vmatprep.subr.bf16.mxu0 %v9907_v14  ;;  %v4501_v28 = vld [vmem:[#allocation6 + $0xe78] sm:$0xff]  ;;  %v9938_v14 = vcombine.low %v4488_v38, %v4492_v24 }
 0x65a   :  { %7805 = vmatprep.subr.bf16.mxu1 %v9909_v17  ;;  %v9940_v17 = vcombine.low %v4489_v60, %v4493_v44  ;;  %v9949_v21 = vcombine.high %v4497_v62, %v4501_v28  ;;  %v4529_v38 = vld [vmem:[#allocation6 + $0xf58] sm:$0xff]  ;;  %v9970_v60 = vcombine.low %v4520_v15, %v4524_v7 }
 0x65b   :  { %v4533_v24 = vld [vmem:[#allocation6 + $0xf78] sm:$0xff] }
 0x65c   :  { %7634 = vmatpush1.bf16.msra.mxu0 %v9906_v20  ;;  %v4505_v20 = vld [vmem:[#allocation6 + $0xe98] sm:$0xff] }
 0x65d   :  { %7806 = vmatpush1.bf16.msra.mxu1 %v9908_v18  ;;  %7635 = vmatprep.subr.bf16.mxu0 %v9915_v19  ;;  %v4509_v18 = vld [vmem:[#allocation6 + $0xeb8] sm:$0xff]  ;;  %v9946_v19 = vcombine.low %v4496_v9, %v4500_v31 }
 0x65e   :  { %v11224_v29 = vpop.f32.mrb[8].mxu0  ;;  %7807 = vmatprep.subr.bf16.mxu1 %v9917_v45  ;;  %v9948_v45 = vcombine.low %v4497_v62, %v4501_v28  ;;  %v9957_v36 = vcombine.high %v4505_v20, %v4509_v18  ;;  %v4537_v9 = vld [vmem:[#allocation6 + $0xf98] sm:$0xff]  ;;  %v9980_v28 = vcombine.low %v4529_v38, %v4533_v24 }
 0x65f   :  { %v11231_v40 = vpop.f32.mrb[8].mxu1  ;;  %v11233_v0 = vpop.f32.mrb[9].mxu0  ;;  %v4541_v31 = vld [vmem:[#allocation6 + $0xfb8] sm:$0xff] }
 0x660   :  { %v11250_v57 = vpop.f32.mrb[9].mxu1  ;;  %v7319_v37 = vpop.f32.mrb[10].mxu0  ;;  %7636 = vmatpush1.bf16.msra.mxu0 %v9914_v47  ;;  %v4513_v47 = vld [vmem:[#allocation6 + $0xed8] sm:$0xff] }
 0x661   :  { %v11253_v23 = vadd.f32 %v7319_v37, %v11229_v35  ;;  %v7491_v10 = vpop.f32.mrb[10].mxu1  ;;  %7808 = vmatpush1.bf16.msra.mxu1 %v9916_v5  ;;  %v7321_v55 = vpop.f32.mrb[11].mxu0  ;;  %7637 = vmatprep.subr.bf16.mxu0 %v9923_v58  ;;  %v4517_v5 = vld [vmem:[#allocation6 + $0xef8] sm:$0xff]  ;;  %v9954_v58 = vcombine.low %v4504_v26, %v4508_v4 }
 0x662   :  { %v11256_v13 = vadd.f32 %v7491_v10, %v11238_v8  ;;  %v11259_v12 = vadd.f32 %v7321_v55, %v11243_v39  ;;  %v7493_v2 = vpop.f32.mrb[11].mxu1  ;;  %7809 = vmatprep.subr.bf16.mxu1 %v9925_v27  ;;  %v9956_v27 = vcombine.low %v4505_v20, %v4509_v18  ;;  %v9965_v34 = vcombine.high %v4513_v47, %v4517_v5  ;;  %v4521_v37 = vld [vmem:[#allocation6 + $0xf18] sm:$0xff] }
 0x663   :  { %v11262_v22 = vadd.f32 %v7493_v2, %v11248_v6  ;;  %v9962_v10 = vcombine.low %v4512_v48, %v4516_v56  ;;  %v9964_v55 = vcombine.low %v4513_v47, %v4517_v5  ;;  %v4528_v2 = vld [vmem:[#allocation6 + $0xf50] sm:$0xff]  ;;  %v4545_v26 = vld [vmem:[#allocation6 + $0xfd8] sm:$0xff]  ;;  %v9988_v18 = vcombine.low %v4537_v9, %v4541_v31 }
 0x664   :  { %7638 = vmatpush1.bf16.msra.mxu0 %v9922_v16  ;;  %v4525_v16 = vld [vmem:[#allocation6 + $0xf38] sm:$0xff]  ;;  %v11268_v48 = vadd.f32 %v11224_v29, %v11229_v35  ;;  %v11272_v56 = vadd.f32 %v11233_v0, %v11243_v39  ;;  %v11289_v35 = vadd.f32 %v11250_v57, %v11248_v6  ;;  %v4571_v0 = vrot.slane %v11222_v3, %v583_v49 }
 0x665   :  { %7810 = vmatpush1.bf16.msra.mxu1 %v9924_v50  ;;  %7639 = vmatprep.subr.bf16.mxu0 %v9931_v11  ;;  %v9971_v50 = vcombine.high %v4520_v15, %v4524_v7  ;;  %v9973_v11 = vcombine.high %v4521_v37, %v4525_v16  ;;  %v9972_v44 = vcombine.low %v4521_v37, %v4525_v16  ;;  %v4549_v4 = vld [vmem:[#allocation6 + $0xff8] sm:$0xff] }
 0x666   :  { %7811 = vmatprep.subr.bf16.mxu1 %v9933_v46  ;;  %v4532_v46 = vld [vmem:[#allocation6 + $0xf70] sm:$0xff]  ;;  %v7840_v47 = vsel %vm3572_vm0, %v11268_v48, 0.0  ;;  %v7841_v5 = vsel %vm3572_vm0, %v11272_v56, 0.0  ;;  %v4583_v49 = vrot.slane %v11222_v3, %v595_v59 }
 0x667   :  { %v9978_v62 = vcombine.low %v4528_v2, %v4532_v46 }
 0x668   :  { %7640 = vmatpush1.bf16.msra.mxu0 %v9930_v52  ;;  %v9979_v52 = vcombine.high %v4528_v2, %v4532_v46 }
 0x669   :  { %7812 = vmatpush1.bf16.msra.mxu1 %v9932_v1  ;;  %7641 = vmatprep.subr.bf16.mxu0 %v9939_v43  ;;  %v9981_v1 = vcombine.high %v4529_v38, %v4533_v24  ;;  %v4536_v43 = vld [vmem:[#allocation6 + $0xf90] sm:$0xff] }
 0x66a   :  { %7813 = vmatprep.subr.bf16.mxu1 %v9941_v63  ;;  %v4540_v63 = vld [vmem:[#allocation6 + $0xfb0] sm:$0xff] }
 0x66b   :  { %v9986_v20 = vcombine.low %v4536_v43, %v4540_v63 }
 0x66c   :  { %7642 = vmatpush1.bf16.msra.mxu0 %v9938_v14  ;;  %v9987_v14 = vcombine.high %v4536_v43, %v4540_v63  ;;  %v7873_v63 = vpop.xlane.xlu1 %7872 }
 0x66d   :  { %7814 = vmatpush1.bf16.msra.mxu1 %v9940_v17  ;;  %7643 = vmatprep.subr.bf16.mxu0 %v9947_v33  ;;  %v9989_v17 = vcombine.high %v4537_v9, %v4541_v31  ;;  %v4544_v33 = vld [vmem:[#allocation6 + $0xfd0] sm:$0xff] }
 0x66e   :  { %7815 = vmatprep.subr.bf16.mxu1 %v9949_v21  ;;  %v4548_v21 = vld [vmem:[#allocation6 + $0xff0] sm:$0xff] }
 0x670   :  { %7644 = vmatpush1.bf16.msra.mxu0 %v9946_v19  ;;  %v9995_v19 = vcombine.high %v4544_v33, %v4548_v21 }
 0x671   :  { %7816 = vmatpush1.bf16.msra.mxu1 %v9948_v45  ;;  %7645 = vmatprep.subr.bf16.mxu0 %v9955_v30  ;;  %v9997_v45 = vcombine.high %v4545_v26, %v4549_v4  ;;  %v9994_v30 = vcombine.low %v4544_v33, %v4548_v21 }
 0x672   :  { %7817 = vmatprep.subr.bf16.mxu1 %v9957_v36  ;;  %v9996_v36 = vcombine.low %v4545_v26, %v4549_v4 }
 0x674   :  { %7646 = vmatpush1.bf16.msra.mxu0 %v9954_v58  ;;  %v11282_v58 = vadd.f32 %v11231_v40, %v11238_v8  ;;  %v4579_v40 = vrot.slane %v11222_v3, %v591_v54 }
 0x675   :  { %7818 = vmatpush1.bf16.msra.mxu1 %v9956_v27  ;;  %7647 = vmatprep.subr.bf16.mxu0 %v9963_v41  ;;  %v4575_v27 = vrot.slane %v11222_v3, %v587_v51  ;;  %v7843_v41 = vsel %vm3572_vm0, %v11289_v35, 0.0 }
 0x676   :  { %7819 = vmatprep.subr.bf16.mxu1 %v9965_v34  ;;  %v7842_v29 = vsel %vm3572_vm0, %v11282_v58, 0.0 }
 0x678   :  { %7648 = vmatpush1.bf16.msra.mxu0 %v9962_v10 }
 0x679   :  { %7820 = vmatpush1.bf16.msra.mxu1 %v9964_v55  ;;  %7649 = vmatprep.subr.bf16.mxu0 %v9971_v50 }
 0x67a   :  { %7821 = vmatprep.subr.bf16.mxu1 %v9973_v11 }
 0x67c   :  { %7650 = vmatpush1.bf16.msra.mxu0 %v9970_v60 }
 0x67d   :  { %7822 = vmatpush1.bf16.msra.mxu1 %v9972_v44  ;;  %7651 = vmatprep.subr.bf16.mxu0 %v9979_v52 }
 0x67e   :  { %7823 = vmatprep.subr.bf16.mxu1 %v9981_v1 }
 0x680   :  { %7652 = vmatpush1.bf16.msra.mxu0 %v9978_v62 }
 0x681   :  { %7824 = vmatpush1.bf16.msra.mxu1 %v9980_v28  ;;  %7653 = vmatprep.subr.bf16.mxu0 %v9987_v14 }
 0x682   :  { %7825 = vmatprep.subr.bf16.mxu1 %v9989_v17 }
 0x684   :  { %7654 = vmatpush1.bf16.msra.mxu0 %v9986_v20 }
 0x685   :  { %7826 = vmatpush1.bf16.msra.mxu1 %v9988_v18  ;;  %7655 = vmatprep.subr.bf16.mxu0 %v9995_v19 }
 0x686   :  { %7827 = vmatprep.subr.bf16.mxu1 %v9997_v45 }
 0x688   :  { %7656 = vmatpush1.bf16.msra.mxu0 %v9994_v30 }
 0x689   :  { %7828 = vmatpush1.bf16.msra.mxu1 %v9996_v36 }
 0x68b   :  { %7658 = vmatmul.mubr.bf16.vlgmr.msra.gmra.mrb[12].mxu0 %v11196_v32 }
 0x68c   :  { %7830 = vmatmul.mubr.bf16.vlgmr.msra.gmra.mrb[12].mxu1 %v11196_v32  ;;  %v7856_v32 = vadd.f32 %v7841_v5, %v7840_v47 }
 0x68e   :  { %v7857_v39 = vadd.f32 %v7856_v32, %v7842_v29 }
 0x690   :  { %v7858_v15 = vadd.f32 %v7857_v39, %v7843_v41 }
 0x75e   :  { %v7659_v8 = vpop.f32.mrb[12].mxu0 }
 0x75f   :  { %v11303_v6 = vadd.f32 %v7659_v8, %v4571_v0  ;;  %v7831_v57 = vpop.f32.mrb[12].mxu1  ;;  %v7661_v34 = vpop.f32.mrb[13].mxu0 }
 0x760   :  { %v11308_v7 = vadd.f32 %v7661_v34, %v4575_v27  ;;  %v7833_v51 = vpop.f32.mrb[13].mxu1  ;;  %v7663_v37 = vpop.f32.mrb[14].mxu0  ;;  %v11313_v16 = vadd.f32 %v7831_v57, %v4579_v40 }
 0x761   :  { %v7844_v54 = vsel %vm3572_vm0, %v11303_v6, 0.0  ;;  %v11315_v10 = vadd.f32 %v7663_v37, %v4571_v0  ;;  %v7835_v55 = vpop.f32.mrb[14].mxu1  ;;  %v7665_v50 = vpop.f32.mrb[15].mxu0  ;;  %v11324_v38 = vadd.f32 %v7833_v51, %v4583_v49 }
 0x762   :  { %v7859_v11 = vadd.f32 %v7858_v15, %v7844_v54  ;;  %v7845_v59 = vsel %vm3572_vm0, %v11308_v7, 0.0  ;;  %v11320_v3 = vadd.f32 %v7835_v55, %v4579_v40  ;;  %v11322_v2 = vadd.f32 %v7665_v50, %v4575_v27  ;;  %v7837_v46 = vpop.f32.mrb[15].mxu1 }
 0x763   :  { %v11326_v24 = vadd.f32 %v7837_v46, %v4583_v49  ;;  %v7846_v44 = vsel %vm3572_vm0, %v11313_v16, 0.0  ;;  %v7847_v1 = vsel %vm10940_vm2, %v11324_v38, 0.0 }
 0x764   :  { %v7860_v60 = vadd.f32 %v7859_v11, %v7845_v59 }
 0x766   :  { %v7861_v52 = vadd.f32 %v7860_v60, %v7846_v44 }
 0x768   :  { %v7862_v43 = vadd.f32 %v7861_v52, %v7847_v1  ;;  %v10302_v1 = vld [vmem:[#allocation9 + $0x40] sm:$0xff]  }
 0x769   :  { %10064 = vmatprep.subr.bf16.mxu0 %v10302_v1 }
 0x76a   :  { %7863 = vadd.xlane.f32.xlu0 %v7862_v43  ;;  %v10303_v43 = vld [vmem:[#allocation9 + $0xc0] sm:$0xff]  }
 0x76b   :  { %10086 = vmatprep.subr.bf16.mxu1 %v10303_v43 }
 0x7f7   :  { %v7864_v9 = vpop.xlane.xlu0 %7863 }
 0x7f8   :  { %v7874_v31 = vadd.f32 %v7873_v63, %v7864_v9  ;;  %v10304_v63 = vld [vmem:[#allocation9] sm:$0xff]  }
 0x7f9   :  { %v10305_v9 = vld [vmem:[#allocation9 + $0x80] sm:$0xff]   ;;  %10065 = vmatpush3.bf16.msra.mxu0 %v10304_v63 }
 0x7fa   :  { %v7875_v62 = vrot.slane %v7874_v31, 4  ;;  %10087 = vmatpush3.bf16.msra.mxu1 %v10305_v9 }
 0x7fc   :  { %v7876_v28 = vadd.f32 %v7875_v62, %v7874_v31  ;;  %v10306_v31 = vld [vmem:[#allocation9 + $0x48] sm:$0xff]  }
 0x7fd   :  { %v10307_v62 = vld [vmem:[#allocation9 + $0xc8] sm:$0xff]   ;;  %10066 = vmatprep.subr.bf16.mxu0 %v10306_v31 }
 0x7fe   :  { %v7877_v14 = vrot.slane %v7876_v28, 2  ;;  %10088 = vmatprep.subr.bf16.mxu1 %v10307_v62  ;;  %10067 = vmatpush3.bf16.msra.mxu0 %v10308_v25 }
 0x800   :  { %v7878_v17 = vadd.f32 %v7877_v14, %v7876_v28  ;;  %v10309_v28 = vld [vmem:[#allocation9 + $0x88] sm:$0xff]   ;;  %v10310_v14 = vld [vmem:[#allocation9 + $0x50] sm:$0xff]  }
 0x801   :  { %10089 = vmatpush3.bf16.msra.mxu1 %v10309_v28  ;;  %10068 = vmatprep.subr.bf16.mxu0 %v10310_v14 }
 0x802   :  { %v7879_v33 = vrot.slane %v7878_v17, 1 }
 0x804   :  { %v7880_v21 = vadd.f32 %v7879_v33, %v7878_v17  ;;  %v10311_v17 = vld [vmem:[#allocation9 + $0xd0] sm:$0xff]  }
 0x805   :  { %v10312_v33 = vld [vmem:[#allocation9 + $0x10] sm:$0xff]   ;;  %10090 = vmatprep.subr.bf16.mxu1 %v10311_v17 }
 0x806   :  { %v7881_v26 = vmul.f32 0.00025, %v7880_v21  ;;  %v10313_v21 = vld [vmem:[#allocation9 + $0x90] sm:$0xff]   ;;  %10069 = vmatpush3.bf16.msra.mxu0 %v10312_v33 }
 0x807   :  { %10091 = vmatpush3.bf16.msra.mxu1 %v10313_v21 }
 0x808   :  { %v7882_v4 = vsub.f32 %v11268_v48, %v7881_v26  ;;  %v7883_v20 = vsub.f32 %v11272_v56, %v7881_v26  ;;  %v7884_v18 = vsub.f32 %v11282_v58, %v7881_v26  ;;  %v7885_v19 = vsub.f32 %v11289_v35, %v7881_v26 }
 0x809   :  { %v7886_v36 = vsub.f32 %v11303_v6, %v7881_v26  ;;  %v7887_v29 = vsub.f32 %v11308_v7, %v7881_v26  ;;  %v7888_v40 = vsub.f32 %v11313_v16, %v7881_v26  ;;  %v9003_v34 = vsel %vm9002_vm11, %v7881_v26, 0.0 }
 0x80a   :  { %v7898_v45 = vsel %vm3572_vm0, %v7882_v4, 0.0  ;;  %v7899_v30 = vsel %vm3572_vm0, %v7883_v20, 0.0  ;;  %v7900_v47 = vsel %vm3572_vm0, %v7884_v18, 0.0  ;;  %v7901_v0 = vsel %vm3572_vm0, %v7885_v19, 0.0  ;;  %v10315_v4 = vld [vmem:[#allocation9 + $0xd8] sm:$0xff]   ;;  %v10318_v19 = vld [vmem:[#allocation9 + $0x60] sm:$0xff]  }
 0x80b   :  { %v11346_v5 = vmul.f32 %v7898_v45, %v7898_v45  ;;  %v11348_v32 = vmul.f32 %v7899_v30, %v7899_v30  ;;  %v11355_v39 = vmul.f32 %v7900_v47, %v7900_v47  ;;  %v7902_v8 = vsel %vm3572_vm0, %v7886_v36, 0.0  ;;  %v10316_v20 = vld [vmem:[#allocation9 + $0x18] sm:$0xff]   ;;  %10092 = vmatprep.subr.bf16.mxu1 %v10315_v4  ;;  %v10319_v45 = vld [vmem:[#allocation9 + $0xe0] sm:$0xff]   ;;  %v10322_v47 = vld [vmem:[#allocation9 + $0x68] sm:$0xff]  }
 0x80c   :  { %v11362_v41 = vmul.f32 %v7901_v0, %v7901_v0  ;;  %v7889_v49 = vsub.f32 %v11324_v38, %v7881_v26  ;;  %v7903_v15 = vsel %vm3572_vm0, %v7887_v29, 0.0  ;;  %v11369_v51 = vadd.f32 %v9003_v34, %v11044_v42  ;;  %v10314_v26 = vld [vmem:[#allocation9 + $0x58] sm:$0xff]   ;;  %v10320_v30 = vld [vmem:[#allocation9 + $0x20] sm:$0xff]   ;;  %v10323_v29 = vld [vmem:[#allocation9 + $0xe8] sm:$0xff]  }
 0x80d   :  { %v7930_v27 = vadd.f32 %v11348_v32, %v11346_v5  ;;  %v11371_v37 = vmul.f32 %v7902_v8, %v7902_v8  ;;  %v7904_v55 = vsel %vm3572_vm0, %v7888_v40, 0.0  ;;  %v11376_v50 = vmul.f32 %v7903_v15, %v7903_v15  ;;  %v10317_v18 = vld [vmem:[#allocation9 + $0x98] sm:$0xff]   ;;  %10070 = vmatprep.subr.bf16.mxu0 %v10314_v26  ;;  %v10321_v36 = vld [vmem:[#allocation9 + $0xa0] sm:$0xff]   ;;  %v10324_v0 = vld [vmem:[#allocation9 + $0x28] sm:$0xff]  }
 0x80e   :  { %v7905_v59 = vsel %vm10940_vm2, %v7889_v49, 0.0  ;;  %v11381_v46 = vmul.f32 %v7904_v55, %v7904_v55  ;;  %10071 = vmatpush3.bf16.msra.mxu0 %v10316_v20  ;;  %10093 = vmatpush3.bf16.msra.mxu1 %v10317_v18  ;;  %v10326_v40 = vld [vmem:[#allocation9 + $0x70] sm:$0xff]   ;;  %v10330_v49 = vld [vmem:[#allocation9 + $0x78] sm:$0xff]   ;;  %v7965_v14 = vsub.f32 0.0, %v11346_v5  ;;  %v7966_v33 = vsub.f32 0.0, %v11348_v32 }
 0x80f   :  { %v7931_v57 = vadd.f32 %v7930_v27, %v11355_v39  ;;  %v11384_v42 = vmul.f32 %v7905_v59, %v7905_v59  ;;  %10072 = vmatprep.subr.bf16.mxu0 %v10318_v19  ;;  %10094 = vmatprep.subr.bf16.mxu1 %v10319_v45  ;;  %v10325_v27 = vld [vmem:[#allocation9 + $0xa8] sm:$0xff]   ;;  %v10327_v8 = vld [vmem:[#allocation9 + $0xf0] sm:$0xff]   ;;  %v10331_v15 = vld [vmem:[#allocation9 + $0xf8] sm:$0xff]   ;;  %v7967_v21 = vsub.f32 0.0, %v11355_v39  ;;  %v7968_v26 = vsub.f32 0.0, %v11362_v41 }
 0x810   :  { %v10329_v34 = vld [vmem:[#allocation9 + $0xb0] sm:$0xff]   ;;  %v10333_v55 = vld [vmem:[#allocation9 + $0xb8] sm:$0xff]   ;;  %v10335_v59 = vld [vmem:[#allocation9 + $0x1c0] sm:$0xff]   ;;  %v7969_v20 = vsub.f32 0.0, %v11371_v37  ;;  %v7970_v5 = vsub.f32 0.0, %v11376_v50  ;;  %v7971_v32 = vsub.f32 0.0, %v11381_v46 }
 0x811   :  { %v7932_v54 = vadd.f32 %v7931_v57, %v11362_v41  ;;  %v10328_v57 = vld [vmem:[#allocation9 + $0x30] sm:$0xff]  }
 0x812   :  { %10073 = vmatpush3.bf16.msra.mxu0 %v10320_v30  ;;  %10095 = vmatpush3.bf16.msra.mxu1 %v10321_v36 }
 0x813   :  { %v7933_v11 = vadd.f32 %v7932_v54, %v11371_v37  ;;  %10074 = vmatprep.subr.bf16.mxu0 %v10322_v47  ;;  %10096 = vmatprep.subr.bf16.mxu1 %v10323_v29  ;;  %v10332_v54 = vld [vmem:[#allocation9 + $0x38] sm:$0xff]   ;;  %v7972_v37 = vsub.f32 0.0, %v11384_v42 }
 0x815   :  { %v7934_v60 = vadd.f32 %v7933_v11, %v11376_v50  ;;  %v10334_v11 = vld [vmem:[#allocation9 + $0x140] sm:$0xff]  }
 0x816   :  { %10075 = vmatpush3.bf16.msra.mxu0 %v10324_v0  ;;  %10097 = vmatpush3.bf16.msra.mxu1 %v10325_v27 }
 0x817   :  { %v7935_v44 = vadd.f32 %v7934_v60, %v11381_v46  ;;  %10076 = vmatprep.subr.bf16.mxu0 %v10326_v40  ;;  %10098 = vmatprep.subr.bf16.mxu1 %v10327_v8  ;;  %v7947_v60 = vpop.xlane.xlu1 %7946 }
 0x819   :  { %v7936_v52 = vadd.f32 %v7935_v44, %v11384_v42 }
 0x81a   :  { %10077 = vmatpush3.bf16.msra.mxu0 %v10328_v57  ;;  %10099 = vmatpush3.bf16.msra.mxu1 %v10329_v34 }
 0x81b   :  { %7937 = vadd.xlane.f32.xlu0 %v7936_v52  ;;  %10078 = vmatprep.subr.bf16.mxu0 %v10330_v49 }
 0x81c   :  { %10100 = vmatprep.subr.bf16.mxu1 %v10331_v15 }
 0x81e   :  { %10079 = vmatpush3.bf16.msra.mxu0 %v10332_v54  ;;  %10101 = vmatpush3.bf16.msra.mxu1 %v10333_v55 }
 0x81f   :  { %10108 = vmatprep.subr.bf16.mxu0 %v10334_v11  ;;  %10130 = vmatprep.subr.bf16.mxu1 %v10335_v59 }
 0x8a8   :  { %v7938_v44 = vpop.xlane.xlu0 %7937 }
 0x8a9   :  { %v7948_v52 = vadd.f32 %v7947_v60, %v7938_v44 }
 0x8ab   :  { %v7949_v1 = vrot.slane %v7948_v52, 4 }
 0x8ad   :  { %v7950_v43 = vadd.f32 %v7949_v1, %v7948_v52 }
 0x8af   :  { %v7951_v63 = vrot.slane %v7950_v43, 2 }
 0x8b1   :  { %v7952_v9 = vadd.f32 %v7951_v63, %v7950_v43 }
 0x8b3   :  { %v7953_v31 = vrot.slane %v7952_v9, 1 }
 0x8b5   :  { %v7954_v62 = vadd.f32 %v7953_v31, %v7952_v9 }
 0x8b7   :  { %v7955_v25 = vmul.f32 0.00025006253, %v7954_v62 }
 0x8b9   :  { %10436 = vrsqrt.f32 %v7955_v25  ;;  %vm7958_vm14 = vcmp.eq.f32.partialorder %v7955_v25, inf  ;;  %v7961_v19 = vand.u32 2147483648, %v7955_v25  ;;  %vm7960_vm15 = vcmp.eq.f32.partialorder %v7955_v25, 0.0 }
 0x8ba   :  { %10438 = vrcp.f32 %v7955_v25 }
 0x8c3   :  { %v10437_v28 = vpop.eup %10436 }
 0x8c4   :  { %v10439_v17 = vpop.eup %10438  ;;  %v7957_v4 = vmul.f32 %v10437_v28, %v7955_v25 }
 0x8c5   :  { %v7964_v45 = vmul.f32 0.5, %v10439_v17 }
 0x8c6   :  { %v7959_v30 = vsel %vm7958_vm14, %v7955_v25, %v7957_v4 }
 0x8c7   :  { %v7962_v39 = vsel %vm7960_vm15, %v7961_v19, %v7959_v30  ;;  %v7982_v41 = vmul.f32 %v7966_v33, %v7964_v45  ;;  %v7984_v36 = vmul.f32 %v7968_v26, %v7964_v45  ;;  %v7981_v47 = vmul.f32 %v7965_v14, %v7964_v45 }
 0x8c8   :  { %v9007_v29 = vsel %vm11396_vm13, %v7962_v39, 0.0  ;;  %v7983_v0 = vmul.f32 %v7967_v21, %v7964_v45  ;;  %v7986_v27 = vmul.f32 %v7970_v5, %v7964_v45  ;;  %v7988_v46 = vmul.f32 %v7972_v37, %v7964_v45 }
 0x8c9   :  { %v9008_v40 = vadd.f32 %v9007_v29, %v11369_v51  ;;  %v7999_v8 = vmul.f32 1.442695, %v7982_v41  ;;  %v8003_v57 = vmul.f32 1.442695, %v7984_v36  ;;  %v7997_v50 = vmul.f32 1.442695, %v7981_v47 }
 0x8ca   :  { %v8001_v34 = vmul.f32 1.442695, %v7983_v0  ;;  %v7985_v49 = vmul.f32 %v7969_v20, %v7964_v45  ;;  %v8007_v15 = vmul.f32 1.442695, %v7986_v27  ;;  %v7987_v42 = vmul.f32 %v7971_v32, %v7964_v45 }
 0x8cb   :  { %9009 = vst [vmem:[%s11548_s10] sm:$0xff] %v9008_v40  ;;  %10440 = vpow2.f32 %v7999_v8  ;;  %v8011_v54 = vmul.f32 1.442695, %v7988_v46 }
 0x8cc   :  { %10442 = vpow2.f32 %v8003_v57  ;;  %v8005_v55 = vmul.f32 1.442695, %v7985_v49  ;;  %v8009_v11 = vmul.f32 1.442695, %v7987_v42 }
 0x8cd   :  { %10444 = vpow2.f32 %v7997_v50 }
 0x8ce   :  { %10446 = vpow2.f32 %v8001_v34 }
 0x8cf   :  { %10448 = vpow2.f32 %v8007_v15 }
 0x8d0   :  { %10450 = vpow2.f32 %v8011_v54 }
 0x8d1   :  { %10452 = vpow2.f32 %v8005_v55 }
 0x8d2   :  { %10454 = vpow2.f32 %v8009_v11 }
 0x8d3   :  { %10456 = vlog2.f32 %v7962_v39 }
 0x8d5   :  { %v10441_v51 = vpop.eup %10440 }
 0x8d6   :  { %v10443_v59 = vpop.eup %10442  ;;  %v8030_v60 = vsel %vm3572_vm0, %v10441_v51, 0.0 }
 0x8d7   :  { %v10445_v44 = vpop.eup %10444  ;;  %v8053_v52 = vrot.slane %v8030_v60, 4  ;;  %v8032_v1 = vsel %vm3572_vm0, %v10443_v59, 0.0 }
 0x8d8   :  { %v10447_v43 = vpop.eup %10446  ;;  %v8067_v63 = vrot.slane %v8032_v1, 4  ;;  %v8029_v9 = vsel %vm3572_vm0, %v10445_v44, 0.0 }
 0x8d9   :  { %v10449_v31 = vpop.eup %10448  ;;  %v8054_v62 = vadd.f32 %v8053_v52, %v8030_v60  ;;  %v8046_v25 = vrot.slane %v8029_v9, 4  ;;  %v8031_v28 = vsel %vm3572_vm0, %v10447_v43, 0.0 }
 0x8da   :  { %v10451_v14 = vpop.eup %10450  ;;  %v8068_v17 = vadd.f32 %v8067_v63, %v8032_v1  ;;  %v8060_v33 = vrot.slane %v8031_v28, 4  ;;  %v8034_v21 = vsel %vm3572_vm0, %v10449_v31, 0.0 }
 0x8db   :  { %v10453_v26 = vpop.eup %10452  ;;  %v8055_v4 = vrot.slane %v8054_v62, 2  ;;  %v8047_v20 = vadd.f32 %v8046_v25, %v8029_v9  ;;  %v8081_v18 = vrot.slane %v8034_v21, 4  ;;  %v8036_v19 = vsel %vm3572_vm0, %v10451_v14, 0.0 }
 0x8dc   :  { %v10455_v45 = vpop.eup %10454  ;;  %v8069_v5 = vrot.slane %v8068_v17, 2  ;;  %v8061_v32 = vadd.f32 %v8060_v33, %v8031_v28  ;;  %v8095_v30 = vrot.slane %v8036_v19, 4  ;;  %v8033_v39 = vsel %vm3572_vm0, %v10453_v26, 0.0 }
 0x8dd   :  { %v8056_v41 = vadd.f32 %v8055_v4, %v8054_v62  ;;  %v8048_v36 = vrot.slane %v8047_v20, 2  ;;  %v8082_v47 = vadd.f32 %v8081_v18, %v8034_v21  ;;  %v8074_v37 = vrot.slane %v8033_v39, 4  ;;  %v10457_v1 = vpop.eup %10456 }
 0x8de   :  { %v8070_v29 = vadd.f32 %v8069_v5, %v8068_v17  ;;  %v8062_v0 = vrot.slane %v8061_v32, 2  ;;  %v8096_v27 = vadd.f32 %v8095_v30, %v8036_v19  ;;  %v8035_v40 = vsel %vm3572_vm0, %v10455_v45, 0.0 }
 0x8df   :  { %v8057_v8 = vrot.slane %v8056_v41, 1  ;;  %v8049_v57 = vadd.f32 %v8048_v36, %v8047_v20  ;;  %v8083_v50 = vrot.slane %v8082_v47, 2  ;;  %v8075_v34 = vadd.f32 %v8074_v37, %v8033_v39 }
 0x8e0   :  { %v8071_v46 = vrot.slane %v8070_v29, 1  ;;  %v8063_v49 = vadd.f32 %v8062_v0, %v8061_v32  ;;  %v8097_v15 = vrot.slane %v8096_v27, 2  ;;  %v8088_v42 = vrot.slane %v8035_v40, 4 }
 0x8e1   :  { %v8058_v54 = vadd.f32 %v8057_v8, %v8056_v41  ;;  %v8050_v55 = vrot.slane %v8049_v57, 1  ;;  %v8084_v11 = vadd.f32 %v8083_v50, %v8082_v47  ;;  %v8076_v51 = vrot.slane %v8075_v34, 2 }
 0x8e2   :  { %v8072_v59 = vadd.f32 %v8071_v46, %v8070_v29  ;;  %v8064_v60 = vrot.slane %v8063_v49, 1  ;;  %v8098_v44 = vadd.f32 %v8097_v15, %v8096_v27  ;;  %v8089_v52 = vadd.f32 %v8088_v42, %v8035_v40 }
 0x8e3   :  { %10458 = vlog2.f32 %v8058_v54  ;;  %v8051_v43 = vadd.f32 %v8050_v55, %v8049_v57  ;;  %v8085_v63 = vrot.slane %v8084_v11, 1  ;;  %v8077_v9 = vadd.f32 %v8076_v51, %v8075_v34 }
 0x8e4   :  { %10460 = vlog2.f32 %v8072_v59  ;;  %v8065_v31 = vadd.f32 %v8064_v60, %v8063_v49  ;;  %v8099_v62 = vrot.slane %v8098_v44, 1  ;;  %v8090_v25 = vrot.slane %v8089_v52, 2 }
 0x8e5   :  { %10462 = vlog2.f32 %v8051_v43  ;;  %v8086_v28 = vadd.f32 %v8085_v63, %v8084_v11  ;;  %v8078_v14 = vrot.slane %v8077_v9, 1  ;;  %v8102_v17 = vmul.f32 0.6931472, %v10457_v1 }
 0x8e6   :  { %10464 = vlog2.f32 %v8065_v31  ;;  %v8100_v33 = vadd.f32 %v8099_v62, %v8098_v44  ;;  %v8091_v21 = vadd.f32 %v8090_v25, %v8089_v52  ;;  %vm8932_vm0 = vcmp.lt.s32.totalorder %v10891_v53, 10 }
 0x8e7   :  { %10466 = vlog2.f32 %v8086_v28  ;;  %v8079_v26 = vadd.f32 %v8078_v14, %v8077_v9  ;;  %v8103_v20 = vsub.f32 0.0, %v8102_v17 }
 0x8e8   :  { %10468 = vlog2.f32 %v8100_v33  ;;  %v8092_v4 = vrot.slane %v8091_v21, 1 }
 0x8e9   :  { %10470 = vlog2.f32 %v8079_v26  ;;  %v9998_v5 = vadd.f32 -0.9189385, %v8103_v20 }
 0x8ea   :  { %v8093_v18 = vadd.f32 %v8092_v4, %v8091_v21 }
 0x8ec   :  { %10472 = vlog2.f32 %v8093_v18 }
 0x8ed   :  { %v10459_v19 = vpop.eup %10458 }
 0x8ee   :  { %v10461_v45 = vpop.eup %10460  ;;  %v8108_v32 = vmul.f32 0.6931472, %v10459_v19 }
 0x8ef   :  { %v10463_v30 = vpop.eup %10462  ;;  %v8112_v39 = vmul.f32 0.6931472, %v10461_v45 }
 0x8f0   :  { %v10465_v41 = vpop.eup %10464  ;;  %v11425_v36 = vadd.f32 %v9998_v5, %v8108_v32  ;;  %v8106_v47 = vmul.f32 0.6931472, %v10463_v30 }
 0x8f1   :  { %v10467_v37 = vpop.eup %10466  ;;  %v11427_v29 = vadd.f32 %v9998_v5, %v8112_v39  ;;  %v8110_v0 = vmul.f32 0.6931472, %v10465_v41 }
 0x8f2   :  { %v10469_v27 = vpop.eup %10468  ;;  %v8138_v40 = vand.u32 2147483647, %v11425_v36  ;;  %v11430_v8 = vadd.f32 %v9998_v5, %v8106_v47  ;;  %v8116_v57 = vmul.f32 0.6931472, %v10467_v37 }
 0x8f3   :  { %v8140_v50 = vand.u32 2147483647, %v11427_v29  ;;  %v11433_v34 = vadd.f32 %v9998_v5, %v8110_v0  ;;  %v8120_v46 = vmul.f32 0.6931472, %v10469_v27  ;;  %v10471_v54 = vpop.eup %10470 }
 0x8f4   :  { %v8146_v49 = vsub.f32 0.0, %v8138_v40  ;;  %v8137_v15 = vand.u32 2147483647, %v11430_v8  ;;  %v11436_v42 = vadd.f32 %v9998_v5, %v8116_v57  ;;  %v8114_v62 = vmul.f32 0.6931472, %v10471_v54 }
 0x8f5   :  { %v8148_v55 = vsub.f32 0.0, %v8140_v50  ;;  %v8139_v11 = vand.u32 2147483647, %v11433_v34  ;;  %v11439_v51 = vadd.f32 %v9998_v5, %v8120_v46 }
 0x8f6   :  { %v10473_v59 = vpop.eup %10472  ;;  %v8155_v60 = vmul.f32 1.442695, %v8146_v49  ;;  %v8145_v44 = vsub.f32 0.0, %v8137_v15  ;;  %v8142_v52 = vand.u32 2147483647, %v11436_v42  ;;  %v11443_v33 = vadd.f32 %v9998_v5, %v8114_v62 }
 0x8f7   :  { %v8159_v1 = vmul.f32 1.442695, %v8148_v55  ;;  %v8147_v43 = vsub.f32 0.0, %v8139_v11  ;;  %v8144_v63 = vand.u32 2147483647, %v11439_v51 }
 0x8f8   :  { %10474 = vpow2.f32 %v8155_v60  ;;  %v8153_v9 = vmul.f32 1.442695, %v8145_v44  ;;  %v8150_v31 = vsub.f32 0.0, %v8142_v52  ;;  %v8118_v14 = vmul.f32 0.6931472, %v10473_v59 }
 0x8f9   :  { %10476 = vpow2.f32 %v8159_v1  ;;  %v8157_v25 = vmul.f32 1.442695, %v8147_v43  ;;  %v8152_v28 = vsub.f32 0.0, %v8144_v63  ;;  %v8141_v4 = vand.u32 2147483647, %v11443_v33 }
 0x8fa   :  { %10478 = vpow2.f32 %v8153_v9  ;;  %v8163_v17 = vmul.f32 1.442695, %v8150_v31  ;;  %v11445_v26 = vadd.f32 %v9998_v5, %v8118_v14  ;;  %v8130_v60 = vmax.f32 %v11425_v36, 0.0 }
 0x8fb   :  { %10480 = vpow2.f32 %v8157_v25  ;;  %v8167_v21 = vmul.f32 1.442695, %v8152_v28  ;;  %v8149_v18 = vsub.f32 0.0, %v8141_v4  ;;  %v8132_v1 = vmax.f32 %v11427_v29, 0.0 }
 0x8fc   :  { %10482 = vpow2.f32 %v8163_v17  ;;  %v8143_v20 = vand.u32 2147483647, %v11445_v26  ;;  %v8129_v63 = vmax.f32 %v11430_v8, 0.0  ;;  %v8131_v9 = vmax.f32 %v11433_v34, 0.0 }
 0x8fd   :  { %10484 = vpow2.f32 %v8167_v21  ;;  %v8161_v45 = vmul.f32 1.442695, %v8149_v18  ;;  %v8134_v28 = vmax.f32 %v11436_v42, 0.0  ;;  %v8136_v14 = vmax.f32 %v11439_v51, 0.0 }
 0x8fe   :  { %v8151_v19 = vsub.f32 0.0, %v8143_v20  ;;  %v8133_v20 = vmax.f32 %v11443_v33, 0.0  ;;  %v8135_v18 = vmax.f32 %v11445_v26, 0.0 }
 0x8ff   :  { %10486 = vpow2.f32 %v8161_v45 }
 0x900   :  { %v8165_v32 = vmul.f32 1.442695, %v8151_v19 }
 0x902   :  { %v10475_v30 = vpop.eup %10474  ;;  %10488 = vpow2.f32 %v8165_v32 }
 0x903   :  { %v10477_v39 = vpop.eup %10476  ;;  %v8170_v41 = vadd.f32 1.0, %v10475_v30 }
 0x904   :  { %v10479_v47 = vpop.eup %10478  ;;  %v8172_v37 = vadd.f32 1.0, %v10477_v39 }
 0x905   :  { %v10481_v0 = vpop.eup %10480  ;;  %10490 = vlog2.f32 %v8170_v41  ;;  %v8169_v5 = vadd.f32 1.0, %v10479_v47 }
 0x906   :  { %v10483_v27 = vpop.eup %10482  ;;  %10492 = vlog2.f32 %v8172_v37  ;;  %v8171_v40 = vadd.f32 1.0, %v10481_v0 }
 0x907   :  { %v10485_v57 = vpop.eup %10484  ;;  %10494 = vlog2.f32 %v8169_v5  ;;  %v8174_v50 = vadd.f32 1.0, %v10483_v27 }
 0x908   :  { %10496 = vlog2.f32 %v8171_v40  ;;  %v8176_v46 = vadd.f32 1.0, %v10485_v57 }
 0x909   :  { %10498 = vlog2.f32 %v8174_v50  ;;  %v10487_v49 = vpop.eup %10486 }
 0x90a   :  { %10500 = vlog2.f32 %v8176_v46  ;;  %v8173_v54 = vadd.f32 1.0, %v10487_v49 }
 0x90c   :  { %v10489_v15 = vpop.eup %10488  ;;  %10502 = vlog2.f32 %v8173_v54 }
 0x90d   :  { %v8175_v55 = vadd.f32 1.0, %v10489_v15 }
 0x90f   :  { %v10491_v11 = vpop.eup %10490  ;;  %10504 = vlog2.f32 %v8175_v55 }
 0x910   :  { %v10493_v59 = vpop.eup %10492  ;;  %v8180_v44 = vmul.f32 0.6931472, %v10491_v11 }
 0x911   :  { %v10495_v52 = vpop.eup %10494  ;;  %v8184_v43 = vmul.f32 0.6931472, %v10493_v59 }
 0x912   :  { %v10497_v31 = vpop.eup %10496  ;;  %v8194_v62 = vadd.f32 %v8180_v44, %v8130_v60  ;;  %v8178_v25 = vmul.f32 0.6931472, %v10495_v52 }
 0x913   :  { %v10499_v17 = vpop.eup %10498  ;;  %v8196_v21 = vadd.f32 %v8184_v43, %v8132_v1  ;;  %v8182_v4 = vmul.f32 0.6931472, %v10497_v31 }
 0x914   :  { %v10501_v19 = vpop.eup %10500  ;;  %v8202_v45 = vsub.f32 %v8194_v62, %v11425_v36  ;;  %v8979_v32 = vsel %vm8961_vm3, %v8194_v62, 0.0  ;;  %v8193_v30 = vadd.f32 %v8178_v25, %v8129_v63  ;;  %v8188_v39 = vmul.f32 0.6931472, %v10499_v17  ;;  %v10338_v62 = vld [vmem:[#allocation9 + $0x148] sm:$0xff]  }
 0x915   :  { %8987 = vst [vmem:[%s11547_s9 + $0x8] sm:$0xff] %v8979_v32  ;;  %v8204_v41 = vsub.f32 %v8196_v21, %v11427_v29  ;;  %v8981_v47 = vsel %vm8961_vm3, %v8196_v21, 0.0  ;;  %v8195_v37 = vadd.f32 %v8182_v4, %v8131_v9  ;;  %v8192_v0 = vmul.f32 0.6931472, %v10501_v19  ;;  %v10337_v9 = vld [vmem:[#allocation9 + $0x180] sm:$0xff]   ;;  %v10339_v17 = vld [vmem:[#allocation9 + $0x1c8] sm:$0xff]  }
 0x916   :  { %v8210_v5 = vmul.f32 %v11272_v56, %v8202_v45  ;;  %v8218_v36 = vmul.f32 %v11259_v12, %v8202_v45  ;;  %8989 = vst [vmem:[%s11547_s9 + $0x18] sm:$0xff] %v8981_v47  ;;  %v8201_v27 = vsub.f32 %v8193_v30, %v11430_v8  ;;  %v8978_v40 = vsel %vm8961_vm3, %v8193_v30, 0.0  ;;  %v10340_v32 = vld [vmem:[#allocation9 + $0x108] sm:$0xff]  }
 0x917   :  { %v8212_v29 = vmul.f32 %v11289_v35, %v8204_v41  ;;  %v8220_v57 = vmul.f32 %v11262_v22, %v8204_v41  ;;  %8986 = vst [vmem:[%s11547_s9] sm:$0xff] %v8978_v40  ;;  %v8203_v56 = vsub.f32 %v8195_v37, %v11433_v34  ;;  %v8980_v12 = vsel %vm8961_vm3, %v8195_v37, 0.0  ;;  %v10503_v22 = vpop.eup %10502  ;;  %v10344_v40 = vld [vmem:[#allocation9 + $0x110] sm:$0xff]  }
 0x918   :  { %v8226_v50 = vmax.f32 %v8210_v5, 0.0  ;;  %v8234_v46 = vmax.f32 %v8218_v36, 0.0  ;;  %v8209_v8 = vmul.f32 %v11268_v48, %v8201_v27  ;;  %v8217_v49 = vmul.f32 %v11253_v23, %v8201_v27  ;;  %8988 = vst [vmem:[%s11547_s9 + $0x10] sm:$0xff] %v8980_v12  ;;  %v10336_v23 = vld [vmem:[#allocation9 + $0x100] sm:$0xff]   ;;  %v10343_v5 = vld [vmem:[#allocation9 + $0x1d0] sm:$0xff]  }
 0x919   :  { %v8228_v35 = vmax.f32 %v8212_v29, 0.0  ;;  %v8236_v15 = vmax.f32 %v8220_v57, 0.0  ;;  %v8211_v54 = vmul.f32 %v11282_v58, %v8203_v56  ;;  %v8219_v34 = vmul.f32 %v11256_v13, %v8203_v56  ;;  %v10505_v55 = vpop.eup %10504  ;;  %v10346_v57 = vld [vmem:[#allocation9 + $0x158] sm:$0xff]  }
 0x91a   :  { %v8242_v11 = vpack.c.bf16 %v8234_v46, %v8226_v50  ;;  %v8225_v59 = vmax.f32 %v8209_v8, 0.0  ;;  %v8233_v60 = vmax.f32 %v8217_v49, 0.0  ;;  %v8198_v44 = vadd.f32 %v8188_v39, %v8134_v28  ;;  %v10348_v8 = vld [vmem:[#allocation9 + $0x118] sm:$0xff]  }
 0x91b   :  { %v8244_v52 = vpack.c.bf16 %v8236_v15, %v8228_v35  ;;  %v8227_v48 = vmax.f32 %v8211_v54, 0.0  ;;  %v8235_v1 = vmax.f32 %v8219_v34, 0.0  ;;  %v8200_v43 = vadd.f32 %v8192_v0, %v8136_v14  ;;  %v10352_v35 = vld [vmem:[#allocation9 + $0x120] sm:$0xff]   ;;  %v10354_v54 = vld [vmem:[#allocation9 + $0x168] sm:$0xff]  }
 0x91c   :  { %8800 = vmatprep.mubr.bf16.mxu0 %v8242_v11  ;;  %v8241_v63 = vpack.c.bf16 %v8233_v60, %v8225_v59  ;;  %v8206_v31 = vsub.f32 %v8198_v44, %v11436_v42  ;;  %v8983_v58 = vsel %vm8961_vm3, %v8198_v44, 0.0  ;;  %v8186_v13 = vmul.f32 0.6931472, %v10503_v22  ;;  %v10351_v22 = vld [vmem:[#allocation9 + $0x1e0] sm:$0xff]   ;;  %v10355_v34 = vld [vmem:[#allocation9 + $0x1e8] sm:$0xff]   ;;  %v10358_v59 = vld [vmem:[#allocation9 + $0x170] sm:$0xff]  }
 0x91d   :  { %8841 = vmatprep.mubr.bf16.mxu1 %v8244_v52  ;;  %v8243_v25 = vpack.c.bf16 %v8235_v1, %v8227_v48  ;;  %8991 = vst [vmem:[%s11547_s9 + $0x28] sm:$0xff] %v8983_v58  ;;  %v8208_v28 = vsub.f32 %v8200_v43, %v11439_v51  ;;  %v8985_v14 = vsel %vm8961_vm3, %v8200_v43, 0.0  ;;  %v8190_v21 = vmul.f32 0.6931472, %v10505_v55  ;;  %v10353_v15 = vld [vmem:[#allocation9 + $0x1a0] sm:$0xff]   ;;  %v10356_v55 = vld [vmem:[#allocation9 + $0x128] sm:$0xff]  }
 0x91e   :  { %8801 = vmatmul.mubr.bf16.vlgmr.msra.gmra.mrb[16].mxu0 %v8241_v63  ;;  %v8214_v42 = vmul.f32 %v11308_v7, %v8206_v31  ;;  %v8222_v4 = vmul.f32 %v11322_v2, %v8206_v31  ;;  %8993 = vst [vmem:[%s11547_s9 + $0x38] sm:$0xff] %v8985_v14  ;;  %v8197_v19 = vadd.f32 %v8186_v13, %v8133_v20  ;;  %v10341_v2 = vld [vmem:[#allocation9 + $0x188] sm:$0xff]   ;;  %v10359_v60 = vld [vmem:[#allocation9 + $0x1f0] sm:$0xff]   ;;  %v10362_v48 = vld [vmem:[#allocation9 + $0x178] sm:$0xff]  }
 0x91f   :  { %8842 = vmatmul.mubr.bf16.vlgmr.msra.gmra.mrb[16].mxu1 %v8243_v25  ;;  %10109 = vmatpush3.bf16.msra.mxu0 %v10336_v23  ;;  %v8216_v45 = vmul.f32 %v11324_v38, %v8208_v28  ;;  %v8224_v51 = vmul.f32 %v11326_v24, %v8208_v28  ;;  %v8199_v30 = vadd.f32 %v8190_v21, %v8135_v18  ;;  %v10342_v38 = vld [vmem:[#allocation9 + $0x150] sm:$0xff]   ;;  %v10357_v11 = vld [vmem:[#allocation9 + $0x1a8] sm:$0xff]   ;;  %v10363_v1 = vld [vmem:[#allocation9 + $0x1f8] sm:$0xff]  }
 0x920   :  { %10131 = vmatpush3.bf16.msra.mxu1 %v10337_v9  ;;  %v8230_v39 = vmax.f32 %v8214_v42, 0.0  ;;  %v8238_v7 = vmax.f32 %v8222_v4, 0.0  ;;  %10110 = vmatprep.subr.bf16.mxu0 %v10338_v62  ;;  %v8205_v41 = vsub.f32 %v8197_v19, %v11443_v33  ;;  %v8982_v20 = vsel %vm8961_vm3, %v8197_v19, 0.0  ;;  %v10360_v44 = vld [vmem:[#allocation9 + $0x130] sm:$0xff]   ;;  %v10364_v23 = vld [vmem:[#allocation9 + $0x138] sm:$0xff]  }
 0x921   :  { %v8232_v47 = vmax.f32 %v8216_v45, 0.0  ;;  %v8240_v37 = vmax.f32 %v8224_v51, 0.0  ;;  %10132 = vmatprep.subr.bf16.mxu1 %v10339_v17  ;;  %8990 = vst [vmem:[%s11547_s9 + $0x20] sm:$0xff] %v8982_v20  ;;  %v8207_v24 = vsub.f32 %v8199_v30, %v11445_v26  ;;  %v8984_v18 = vsel %vm8961_vm3, %v8199_v30, 0.0  ;;  %v10361_v52 = vld [vmem:[#allocation9 + $0x1b0] sm:$0xff]   ;;  %v10365_v43 = vld [vmem:[#allocation9 + $0x1b8] sm:$0xff]  }
 0x922   :  { %v8246_v0 = vpack.c.bf16 %v8238_v7, %v8230_v39  ;;  %v8213_v33 = vmul.f32 %v11303_v6, %v8205_v41  ;;  %v8221_v36 = vmul.f32 %v11315_v10, %v8205_v41  ;;  %8992 = vst [vmem:[%s11547_s9 + $0x30] sm:$0xff] %v8984_v18  ;;  %v10347_v6 = vld [vmem:[#allocation9 + $0x1d8] sm:$0xff]   ;;  %v9999_v31 = vld [vmem:[#allocation10] ss:$0 sm:$0xff] }
 0x923   :  { %v8248_v27 = vpack.c.bf16 %v8240_v37, %v8232_v47  ;;  %10111 = vmatpush3.bf16.msra.mxu0 %v10340_v32  ;;  %v8215_v29 = vmul.f32 %v11313_v16, %v8207_v24  ;;  %v8223_v26 = vmul.f32 %v11320_v3, %v8207_v24  ;;  %v10349_v16 = vld [vmem:[#allocation9 + $0x198] sm:$0xff]   ;;  %v10350_v3 = vld [vmem:[#allocation9 + $0x160] sm:$0xff]  }
 0x924   :  { %8882 = vmatprep.mubr.bf16.mxu0 %v8246_v0  ;;  %10133 = vmatpush3.bf16.msra.mxu1 %v10341_v2  ;;  %v8229_v56 = vmax.f32 %v8213_v33, 0.0  ;;  %v8237_v12 = vmax.f32 %v8221_v36, 0.0 }
 0x925   :  { %8923 = vmatprep.mubr.bf16.mxu1 %v8248_v27  ;;  %10112 = vmatprep.subr.bf16.mxu0 %v10342_v38  ;;  %v8231_v10 = vmax.f32 %v8215_v29, 0.0  ;;  %v8239_v50 = vmax.f32 %v8223_v26, 0.0 }
 0x926   :  { %10134 = vmatprep.subr.bf16.mxu1 %v10343_v5  ;;  %v8245_v46 = vpack.c.bf16 %v8237_v12, %v8229_v56 }
 0x927   :  { %10113 = vmatpush3.bf16.msra.mxu0 %v10344_v40  ;;  %v8247_v49 = vpack.c.bf16 %v8239_v50, %v8231_v10 }
 0x928   :  { %10135 = vmatpush3.bf16.msra.mxu1 %v10345_v61  ;;  %10114 = vmatprep.subr.bf16.mxu0 %v10346_v57 }
 0x929   :  { %10136 = vmatprep.subr.bf16.mxu1 %v10347_v6 }
 0x92b   :  { %10115 = vmatpush3.bf16.msra.mxu0 %v10348_v8 }
 0x92c   :  { %10137 = vmatpush3.bf16.msra.mxu1 %v10349_v16  ;;  %10116 = vmatprep.subr.bf16.mxu0 %v10350_v3 }
 0x92d   :  { %10138 = vmatprep.subr.bf16.mxu1 %v10351_v22 }
 0x92f   :  { %10117 = vmatpush3.bf16.msra.mxu0 %v10352_v35 }
 0x930   :  { %10139 = vmatpush3.bf16.msra.mxu1 %v10353_v15  ;;  %10118 = vmatprep.subr.bf16.mxu0 %v10354_v54 }
 0x931   :  { %10140 = vmatprep.subr.bf16.mxu1 %v10355_v34 }
 0x933   :  { %10119 = vmatpush3.bf16.msra.mxu0 %v10356_v55 }
 0x934   :  { %10141 = vmatpush3.bf16.msra.mxu1 %v10357_v11  ;;  %10120 = vmatprep.subr.bf16.mxu0 %v10358_v59 }
 0x935   :  { %10142 = vmatprep.subr.bf16.mxu1 %v10359_v60 }
 0x937   :  { %10121 = vmatpush3.bf16.msra.mxu0 %v10360_v44 }
 0x938   :  { %10143 = vmatpush3.bf16.msra.mxu1 %v10361_v52  ;;  %10122 = vmatprep.subr.bf16.mxu0 %v10362_v48 }
 0x939   :  { %10144 = vmatprep.subr.bf16.mxu1 %v10363_v1 }
 0x93b   :  { %10123 = vmatpush3.bf16.msra.mxu0 %v10364_v23 }
 0x93c   :  { %10145 = vmatpush3.bf16.msra.mxu1 %v10365_v43 }
 0x93e   :  { %8883 = vmatmul.mubr.bf16.vlgmr.msra.gmra.mrb[20].mxu0 %v8245_v46 }
 0x93f   :  { %8924 = vmatmul.mubr.bf16.vlgmr.msra.gmra.mrb[20].mxu1 %v8247_v49 }
 0x9f1   :  { %v10080_v63 = vpop.f32.mrb[16].mxu0 }
 0x9f2   :  { %v10102_v9 = vpop.f32.mrb[16].mxu1  ;;  %v10081_v58 = vpop.f32.mrb[17].mxu0 }
 0x9f3   :  { %v10082_v62 = vadd.f32 %v10081_v58, %v10080_v63  ;;  %v10103_v13 = vpop.f32.mrb[17].mxu1  ;;  %v10083_v25 = vpop.f32.mrb[18].mxu0 }
 0x9f4   :  { %v10104_v28 = vadd.f32 %v10103_v13, %v10102_v9  ;;  %v10105_v14 = vpop.f32.mrb[18].mxu1  ;;  %v10084_v17 = vpop.f32.mrb[19].mxu0 }
 0x9f5   :  { %v8803_v21 = vadd.f32 %v10082_v62, %v9999_v31  ;;  %v10085_v42 = vadd.f32 %v10084_v17, %v10083_v25  ;;  %v10106_v4 = vpop.f32.mrb[19].mxu1 }
 0x9f6   :  { %v10107_v19 = vadd.f32 %v10106_v4, %v10105_v14 }
 0x9f7   :  { %v8844_v45 = vadd.f32 %v10104_v28, %v8803_v21  ;;  %v8806_v51 = vadd.f32 %v10085_v42, %v9999_v31 }
 0x9f9   :  { %v8847_v32 = vadd.f32 %v10107_v19, %v8806_v51 }
 0xa11   :  { %v10124_v30 = vpop.f32.mrb[20].mxu0 }
 0xa12   :  { %v10146_v39 = vpop.f32.mrb[20].mxu1  ;;  %v10125_v7 = vpop.f32.mrb[21].mxu0 }
 0xa13   :  { %v10126_v2 = vadd.f32 %v10125_v7, %v10124_v30  ;;  %v10147_v41 = vpop.f32.mrb[21].mxu1  ;;  %v10127_v20 = vpop.f32.mrb[22].mxu0 }
 0xa14   :  { %v10148_v47 = vadd.f32 %v10147_v41, %v10146_v39  ;;  %v10149_v37 = vpop.f32.mrb[22].mxu1  ;;  %v10128_v38 = vpop.f32.mrb[23].mxu0 }
 0xa15   :  { %v8885_v24 = vadd.f32 %v10126_v2, %v8844_v45  ;;  %v10129_v18 = vadd.f32 %v10128_v38, %v10127_v20  ;;  %v10150_v0 = vpop.f32.mrb[23].mxu1 }
 0xa16   :  { %v10151_v5 = vadd.f32 %v10150_v0, %v10149_v37 }
 0xa17   :  { %v8926_v33 = vadd.f32 %v10148_v47, %v8885_v24  ;;  %v8888_v36 = vadd.f32 %v10129_v18, %v8847_v32 }
 0xa19   :  { %v8929_v27 = vadd.f32 %v10151_v5, %v8888_v36  ;;  %v8933_v40 = vsel %vm8932_vm0, %v8926_v33, -1e+30 }
 0xa1a   :  { %8935 = vmax.xlane.f32.xlu0 %v8933_v40 }
 0xa1b   :  { %v8934_v29 = vsel %vm8932_vm0, %v8929_v27, -1e+30 }
 0xa1c   :  { %8937 = vmax.xlane.f32.xlu1 %v8934_v29 }
 0xaa7   :  { %v8936_v26 = vpop.xlane.xlu0 %8935 }
 0xaa8   :  { %v8939_v61 = vsub.f32 %v8926_v33, %v8936_v26 }
 0xaa9   :  { %v8938_v57 = vpop.xlane.xlu1 %8937 }
 0xaaa   :  { %v8941_v56 = vmul.f32 1.442695, %v8939_v61  ;;  %v8940_v12 = vsub.f32 %v8929_v27, %v8938_v57 }
 0xaac   :  { %10506 = vpow2.f32 %v8941_v56  ;;  %v8943_v6 = vmul.f32 1.442695, %v8940_v12 }
 0xaae   :  { %10508 = vpow2.f32 %v8943_v6 }
 0xab6   :  { %v10507_v10 = vpop.eup %10506 }
 0xab7   :  { %v8945_v50 = vsel %vm8932_vm0, %v10507_v10, 0.0 }
 0xab8   :  { %v10509_v46 = vpop.eup %10508  ;;  %8947 = vadd.xlane.f32.xlu0 %v8945_v50 }
 0xab9   :  { %v8946_v8 = vsel %vm8932_vm0, %v10509_v46, 0.0 }
 0xaba   :  { %8949 = vadd.xlane.f32.xlu1 %v8946_v8 }
 0xb45   :  { %v8948_v49 = vpop.xlane.xlu0 %8947 }
 0xb46   :  { %10510 = vlog2.f32 %v8948_v49 }
 0xb47   :  { %v8950_v16 = vpop.xlane.xlu1 %8949 }
 0xb48   :  { %10512 = vlog2.f32 %v8950_v16 }
 0xb50   :  { %v10511_v3 = vpop.eup %10510 }
 0xb51   :  { %v8952_v22 = vmul.f32 0.6931472, %v10511_v3 }
 0xb52   :  { %v10513_v35 = vpop.eup %10512 }
 0xb53   :  { %v8955_v15 = vadd.f32 %v8952_v22, %v8936_v26  ;;  %v8954_v54 = vmul.f32 0.6931472, %v10513_v35 }
 0xb55   :  { %v8957_v34 = vsub.f32 %v8926_v33, %v8955_v15  ;;  %v8956_v55 = vadd.f32 %v8954_v54, %v8938_v57 }
 0xb57   :  { %8959 = vst [vmem:[%s11545_s7] sm:$0xff] %v8957_v34  ;;  %v8958_v11 = vsub.f32 %v8929_v27, %v8956_v55 }
 0xb59   :  { %8960 = vst [vmem:[%s11545_s7 + $0x8] sm:$0xff] %v8958_v11 }
 0xb5a   :  { %9026 = vsyncpa [#allocation3], 1 }
 0xb5b   :  { %9027 = vsyncpa [#allocation5], 1 }
 0xb5c   :  { %9028 = vsyncpa [#allocation8], 1 }
 0xb5d   :  { %9029 = vsyncpa [#allocation11], 1 }

</bundles_post_ra>
